<compile_context>
chip_gen: v7x
topology: tpu7x:2x2x1
jax: 0.10.0
libtpu: 0.0.40
codegen_flags: <defaults>
</compile_context>

<pallas_src>
import functools

import jax
import jax.numpy as jnp
from jax import lax
from jax.experimental import pallas as pl
from jax.experimental.pallas import tpu as pltpu


# ----------------------------- helpers ---------------------------------------

def _round_up(n, m):
    return ((n + m - 1) // m) * m


def _pad2d(a, m0, m1):
    return jnp.pad(a, ((0, _round_up(a.shape[0], m0) - a.shape[0]),
                       (0, _round_up(a.shape[1], m1) - a.shape[1])))


def _im2col(x_nhwc, kh, kw, stride, pad):
    """Extract conv patches. Returns (B*OH*OW, kh*kw*C), OH, OW.

    Patch feature ordering: index = (i*kw + j)*C + c  (i over kh, j over kw)."""
    x = jnp.pad(x_nhwc, ((0, 0), (pad, pad), (pad, pad), (0, 0)))
    B, H, W, C = x.shape
    OH = (H - kh) // stride + 1
    OW = (W - kw) // stride + 1
    cols = []
    for i in range(kh):
        for j in range(kw):
            cols.append(x[:, i:i + stride * OH:stride, j:j + stride * OW:stride, :])
    patches = jnp.concatenate(cols, axis=-1)          # (B, OH, OW, kh*kw*C)
    return patches.reshape(B * OH * OW, kh * kw * C), OH, OW


# ----------------------------- Pallas kernels --------------------------------

def _matmul_bias_relu_kernel(x_ref, w_ref, b_ref, o_ref):
    # x_ref, w_ref: bf16 tiles -> MXU matmul with f32 accumulate; bias/relu fused.
    acc = jnp.dot(x_ref[...], w_ref[...], preferred_element_type=jnp.float32)
    o_ref[...] = jnp.maximum(acc + b_ref[...], 0.0)


def _lpips_dist_kernel(fx_ref, fy_ref, w_ref, o_ref):
    # Per pixel (row): unit-normalize over channels, squared diff, lin-weight,
    # then reduce over rows in-kernel into a small per-batch accumulator.
    @pl.when(pl.program_id(1) == 0)
    def _():
        o_ref[...] = jnp.zeros_like(o_ref)

    eps = 1e-10
    fx = fx_ref[...]
    fy = fy_ref[...]
    # one reciprocal per row (EUP/VPU cheap) instead of per-element divides
    inv_x = pl.reciprocal(jnp.sqrt(jnp.sum(fx * fx, axis=-1, keepdims=True)) + eps)
    inv_y = pl.reciprocal(jnp.sqrt(jnp.sum(fy * fy, axis=-1, keepdims=True)) + eps)
    d = (fx * inv_x - fy * inv_y) ** 2
    partial = jnp.sum(d * w_ref[...], axis=0, keepdims=True)   # (1, Cp) per-channel sums
    o_ref[...] += partial                                      # broadcast over 8 sublanes


def _sq_diff_sum_kernel(x_ref, y_ref, o_ref):
    @pl.when(pl.program_id(0) == 0)
    def _():
        o_ref[...] = jnp.zeros_like(o_ref)
    d = x_ref[...] - y_ref[...]
    o_ref[...] += jnp.sum(d * d, axis=0, keepdims=True)


def _abs_diff_sum_kernel(x_ref, y_ref, o_ref):
    @pl.when(pl.program_id(0) == 0)
    def _():
        o_ref[...] = jnp.zeros_like(o_ref)
    d = jnp.abs(x_ref[...] - y_ref[...])
    o_ref[...] += jnp.sum(d, axis=0, keepdims=True)


# ----------------------------- kernel wrappers --------------------------------

def conv_relu(x_nhwc, wp, bp, kh, kw, cout, stride, pad):
    """Conv2d + bias + ReLU via im2col + fused bf16 matmul kernel.

    wp: pre-packed bf16 weight (Kp, Cp); bp: f32 bias (1, Cp)."""
    B = x_nhwc.shape[0]
    patches, OH, OW = _im2col(x_nhwc.astype(jnp.bfloat16), kh, kw, stride, pad)
    P, K = patches.shape
    Kp, Cp = wp.shape

    tm = max(16, min(256, _round_up(P, 16)))          # bf16-friendly row tile
    Pp = _round_up(P, tm)
    xp = jnp.pad(patches, ((0, Pp - P), (0, Kp - K)))

    out = pl.pallas_call(
        _matmul_bias_relu_kernel,
        out_shape=jax.ShapeDtypeStruct((Pp, Cp), jnp.float32),
        grid=(Pp // tm,),
        in_specs=[
            pl.BlockSpec((tm, Kp), lambda i: (i, 0)),
            pl.BlockSpec((Kp, Cp), lambda i: (0, 0)),
            pl.BlockSpec((1, Cp), lambda i: (0, 0)),
        ],
        out_specs=pl.BlockSpec((tm, Cp), lambda i: (i, 0)),
        compiler_params=pltpu.CompilerParams(
            dimension_semantics=("parallel",)),
    )(xp, wp, bp)
    return out[:P, :cout].reshape(B, OH, OW, cout)


def lpips_layer_distance(fx, fy, w_lin_p):
    """fx, fy: (B,H,W,C) features; w_lin_p: (1, Cp) padded lin weights. Returns (B,)."""
    B, H, W, C = fx.shape
    Cp = w_lin_p.shape[1]
    HW = H * W
    tm = max(8, min(128, _round_up(HW, 8)))
    HWp = _round_up(HW, tm)
    n_rt = HWp // tm

    def prep(f):
        f = f.reshape(B, HW, C).astype(jnp.float32)
        f = jnp.pad(f, ((0, 0), (0, HWp - HW), (0, Cp - C)))
        return f.reshape(B * HWp, Cp)

    out = pl.pallas_call(
        _lpips_dist_kernel,
        out_shape=jax.ShapeDtypeStruct((B * 8, Cp), jnp.float32),
        grid=(B, n_rt),
        in_specs=[
            pl.BlockSpec((tm, Cp), lambda b, r: (b * n_rt + r, 0)),
            pl.BlockSpec((tm, Cp), lambda b, r: (b * n_rt + r, 0)),
            pl.BlockSpec((1, Cp), lambda b, r: (0, 0)),
        ],
        out_specs=pl.BlockSpec((8, Cp), lambda b, r: (b, 0)),
        compiler_params=pltpu.CompilerParams(
            dimension_semantics=("parallel", "arbitrary")),
    )(prep(fx), prep(fy), w_lin_p)

    # Each of the 8 sublanes holds the same accumulated per-(batch, channel) sums.
    return jnp.sum(out.reshape(B, 8 * Cp), axis=1) / (8.0 * HW)   # spatial mean -> (B,)


def _mean_reduce(x, y, kernel):
    # NOTE: reference module returns torch.mean over the WHOLE tensor (scalar), matched here.
    n = x.size
    rows = -(-n // 128)
    tm = max(8, min(512, _round_up(rows, 8)))
    rows_p = _round_up(rows, tm)

    def prep(a):
        return jnp.pad(a.reshape(-1).astype(jnp.float32),
                       (0, rows_p * 128 - n)).reshape(rows_p, 128)

    acc = pl.pallas_call(
        kernel,
        out_shape=jax.ShapeDtypeStruct((1, 128), jnp.float32),
        grid=(rows_p // tm,),
        in_specs=[
            pl.BlockSpec((tm, 128), lambda i: (i, 0)),
            pl.BlockSpec((tm, 128), lambda i: (i, 0)),
        ],
        out_specs=pl.BlockSpec((1, 128), lambda i: (0, 0)),
        compiler_params=pltpu.CompilerParams(
            dimension_semantics=("arbitrary",)),
    )(prep(x), prep(y))
    return jnp.sum(acc) / n


# ----------------------------- model definition -------------------------------

# AlexNet feature configs: (Cin, Cout, kernel, stride, pad), maxpool(3,2) after stages 0 and 1.
_ALEX_CFG = [(3, 64, 11, 4, 2),
             (64, 192, 5, 1, 2),
             (192, 384, 3, 1, 1),
             (384, 256, 3, 1, 1),
             (256, 256, 3, 1, 1)]
_POOL_AFTER = {0, 1}

# lpips ScalingLayer constants
_SHIFT = jnp.array([-0.030, -0.088, -0.188], dtype=jnp.float32)
_SCALE = jnp.array([0.458, 0.448, 0.450], dtype=jnp.float32)


def init_params(key):
    """Deterministic synthetic conv + lin weights, pre-packed for the Pallas kernels.

    conv weights are stored already transposed to (kh*kw*Cin, Cout), zero-padded to
    (Kp, Cp) multiples of 128 and cast to bf16 (MXU-native); biases / lin weights are
    padded f32 row vectors. This removes per-forward transposes/pads from the XLA glue."""
    params = {"conv_wp": [], "conv_bp": [], "lin_wp": []}
    for (cin, cout, k, _, _) in _ALEX_CFG:
        key, k1, k2, k3 = jax.random.split(key, 4)
        fan_in = cin * k * k
        w = jax.random.normal(k1, (cout, cin, k, k), jnp.float32) / jnp.sqrt(fan_in)
        b = 0.01 * jax.random.normal(k2, (cout,), jnp.float32)
        lin = jnp.abs(jax.random.normal(k3, (cout,), jnp.float32)) * 0.1

        w2 = jnp.transpose(w, (2, 3, 1, 0)).reshape(k * k * cin, cout)
        cp = _round_up(cout, 128)
        params["conv_wp"].append(_pad2d(w2, 128, 128).astype(jnp.bfloat16))
        params["conv_bp"].append(jnp.pad(b.reshape(1, cout), ((0, 0), (0, cp - cout))))
        params["lin_wp"].append(jnp.pad(lin.reshape(1, cout), ((0, 0), (0, cp - cout))))
    return params


def _maxpool3x3s2(x_nhwc):
    # TODO(synk): tiny 3x3/s2 maxpool kept in lax.reduce_window (no dedicated Pallas kernel).
    return lax.reduce_window(x_nhwc, -jnp.inf, lax.max,
                             (1, 3, 3, 1), (1, 2, 2, 1), "VALID")


def _alex_features(x_nhwc, params):
    feats = []
    h = x_nhwc
    for idx, (cin, cout, k, s, p) in enumerate(_ALEX_CFG):
        h = conv_relu(h, params["conv_wp"][idx], params["conv_bp"][idx],
                      k, k, cout, s, p)
        feats.append(h)
        if idx in _POOL_AFTER:
            h = _maxpool3x3s2(h)
    return feats


@functools.partial(jax.jit, static_argnames=("model",))
def perceptual_loss(x_nchw, y_nchw, params, model="net-lin"):
    """Forward of PerceptualLoss. x, y: (B, 3, H, W) in [-1, 1]."""
    if model == "l2":
        return _mean_reduce(x_nchw, y_nchw, _sq_diff_sum_kernel)
    if model == "l1":
        return _mean_reduce(x_nchw, y_nchw, _abs_diff_sum_kernel)

    # net-lin / alex path (LPIPS)
    B = x_nchw.shape[0]
    shift = _SHIFT.reshape(1, 3, 1, 1)
    scale = _SCALE.reshape(1, 3, 1, 1)
    xs = jnp.transpose((x_nchw - shift) / scale, (0, 2, 3, 1))   # -> NHWC
    ys = jnp.transpose((y_nchw - shift) / scale, (0, 2, 3, 1))

    # Run x and y through the feature extractor in ONE pass (2B batch): half the
    # conv launches, half the weight DMA, and a row grid big enough to pipeline.
    feats = _alex_features(jnp.concatenate([xs, ys], axis=0), params)

    total = jnp.zeros((B,), jnp.float32)
    for l in range(len(_ALEX_CFG)):
        f = feats[l]
        total = total + lpips_layer_distance(f[:B], f[B:], params["lin_wp"][l])
    return total.reshape(B, 1, 1, 1)      # matches LPIPS output shape (N,1,1,1)


# ----------------------------- main -------------------------------------------

if __name__ == "__main__":
    key = jax.random.PRNGKey(0)
    kp, kx, ky = jax.random.split(key, 3)
    params = init_params(kp)

    B, C, H, W = 2, 3, 64, 64
    x = jax.random.uniform(kx, (B, C, H, W), jnp.float32, minval=-1.0, maxval=1.0)
    y = jax.random.uniform(ky, (B, C, H, W), jnp.float32, minval=-1.0, maxval=1.0)

    out = perceptual_loss(x, y, params, model="net-lin")
    out = jax.block_until_ready(out)

    # also exercise the l2 / l1 branches of the module
    l2 = jax.block_until_ready(perceptual_loss(x, y, params, model="l2"))
    l1 = jax.block_until_ready(perceptual_loss(x, y, params, model="l1"))

    assert out.shape == (B, 1, 1, 1) and l2.shape == () and l1.shape == ()
    assert bool(jnp.all(jnp.isfinite(out))) and bool(jnp.isfinite(l2)) and bool(jnp.isfinite(l1))
    print("KERNEL_OK")
</pallas_src>

<mosaic_0001>
module attributes {stable_mosaic.version = 11 : i64} {
  func.func @_matmul_bias_relu_kernel(%arg0: i32, %arg1: memref<256x384xbf16, #tpu.memory_space<vmem>>, %arg2: memref<384x128xbf16, #tpu.memory_space<vmem>>, %arg3: memref<1x128xf32, #tpu.memory_space<vmem>>, %arg4: memref<256x128xf32, #tpu.memory_space<vmem>>) attributes {dimension_semantics = [#tpu.dimension_semantics<parallel>], iteration_bounds = array<i64: 4>, scalar_prefetch = 0 : i64, scratch_operands = 0 : i64, tpu.core_type = #tpu.core_type<tc>, window_params = [{transform_indices = @transform_0, window_bounds = array<i64: 256, 384>}, {pipeline_mode = #tpu.pipeline_mode<synchronous>, transform_indices = @transform_1, window_bounds = array<i64: 384, 128>}, {pipeline_mode = #tpu.pipeline_mode<synchronous>, transform_indices = @transform_2, window_bounds = array<i64: 1, 128>}, {transform_indices = @transform_3, window_bounds = array<i64: 256, 128>}]} {
    %c0 = arith.constant 0 : index
    %c0_0 = arith.constant 0 : index
    %0 = vector.load %arg1[%c0, %c0_0] : memref<256x384xbf16, #tpu.memory_space<vmem>>, vector<256x384xbf16>
    %c0_1 = arith.constant 0 : index
    %c0_2 = arith.constant 0 : index
    %1 = vector.load %arg2[%c0_1, %c0_2] : memref<384x128xbf16, #tpu.memory_space<vmem>>, vector<384x128xbf16>
    %cst = arith.constant dense<0.000000e+00> : vector<256x128xf32>
    %2 = tpu.matmul %0, %1, %cst {dimension_numbers = #tpu.dot_dimension_numbers<[1], [0], [0], [1], [0, 0, 1, 1], [], []>} : vector<256x384xbf16>, vector<384x128xbf16>, vector<256x128xf32> -> vector<256x128xf32>
    %c0_3 = arith.constant 0 : index
    %c0_4 = arith.constant 0 : index
    %3 = vector.load %arg3[%c0_3, %c0_4] : memref<1x128xf32, #tpu.memory_space<vmem>>, vector<1x128xf32>
    %4 = vector.broadcast %3 : vector<1x128xf32> to vector<256x128xf32>
    %5 = arith.addf %2, %4 : vector<256x128xf32>
    %cst_5 = arith.constant 0.000000e+00 : f32
    %6 = vector.broadcast %cst_5 : f32 to vector<256x128xf32>
    %7 = arith.maximumf %5, %6 : vector<256x128xf32>
    %c0_6 = arith.constant 0 : index
    %c0_7 = arith.constant 0 : index
    %8 = vector.load %arg4[%c0_6, %c0_7] : memref<256x128xf32, #tpu.memory_space<vmem>>, vector<256x128xf32>
    tpu.vector_store %arg4[%c0_6, %c0_7], %7 {strides = array<i32>} : memref<256x128xf32, #tpu.memory_space<vmem>>, vector<256x128xf32>,
    return
  }
  func.func @transform_0(%arg0: i32) -> (i32, i32) {
    %c0_i32 = arith.constant 0 : i32
    %c0_i32_0 = arith.constant 0 : i32
    return %arg0, %c0_i32 : i32, i32
  }
  func.func @transform_1(%arg0: i32) -> (i32, i32) {
    %c0_i32 = arith.constant 0 : i32
    %c0_i32_0 = arith.constant 0 : i32
    %c0_i32_1 = arith.constant 0 : i32
    return %c0_i32, %c0_i32_0 : i32, i32
  }
  func.func @transform_2(%arg0: i32) -> (i32, i32) {
    %c0_i32 = arith.constant 0 : i32
    %c0_i32_0 = arith.constant 0 : i32
    %c0_i32_1 = arith.constant 0 : i32
    return %c0_i32, %c0_i32_0 : i32, i32
  }
  func.func @transform_3(%arg0: i32) -> (i32, i32) {
    %c0_i32 = arith.constant 0 : i32
    %c0_i32_0 = arith.constant 0 : i32
    return %arg0, %c0_i32 : i32, i32
  }
}

module attributes {stable_mosaic.version = 11 : i64} {
  func.func @_lpips_dist_kernel(%arg0: i32, %arg1: i32, %arg2: memref<128x128xf32, #tpu.memory_space<vmem>>, %arg3: memref<128x128xf32, #tpu.memory_space<vmem>>, %arg4: memref<1x128xf32, #tpu.memory_space<vmem>>, %arg5: memref<8x128xf32, #tpu.memory_space<vmem>>) attributes {dimension_semantics = [#tpu.dimension_semantics<parallel>, #tpu.dimension_semantics<arbitrary>], iteration_bounds = array<i64: 2, 2>, scalar_prefetch = 0 : i64, scratch_operands = 0 : i64, tpu.core_type = #tpu.core_type<tc>, window_params = [{transform_indices = @transform_0, window_bounds = array<i64: 128, 128>}, {transform_indices = @transform_1, window_bounds = array<i64: 128, 128>}, {pipeline_mode = #tpu.pipeline_mode<synchronous>, transform_indices = @transform_2, window_bounds = array<i64: 1, 128>}, {transform_indices = @transform_3, window_bounds = array<i64: 8, 128>}]} {
    %c0_i32 = arith.constant 0 : i32
    %0 = arith.cmpi eq, %arg1, %c0_i32 : i32
    %1 = arith.extui %0 : i1 to i32
    %c0_i32_0 = arith.constant 0 : i32
    %2 = arith.cmpi ne, %1, %c0_i32_0 : i32
    scf.if %2 {
      %cst_14 = arith.constant 0.000000e+00 : f32
      %34 = vector.broadcast %cst_14 : f32 to vector<8x128xf32>
      %c0_15 = arith.constant 0 : index
      %c0_16 = arith.constant 0 : index
      %35 = vector.load %arg5[%c0_15, %c0_16] : memref<8x128xf32, #tpu.memory_space<vmem>>, vector<8x128xf32>
      tpu.vector_store %arg5[%c0_15, %c0_16], %34 {strides = array<i32>} : memref<8x128xf32, #tpu.memory_space<vmem>>, vector<8x128xf32>,
    } else {
    }
    %c0 = arith.constant 0 : index
    %c0_1 = arith.constant 0 : index
    %3 = vector.load %arg2[%c0, %c0_1] : memref<128x128xf32, #tpu.memory_space<vmem>>, vector<128x128xf32>
    %c0_2 = arith.constant 0 : index
    %c0_3 = arith.constant 0 : index
    %4 = vector.load %arg3[%c0_2, %c0_3] : memref<128x128xf32, #tpu.memory_space<vmem>>, vector<128x128xf32>
    %5 = arith.mulf %3, %3 : vector<128x128xf32>
    %cst = arith.constant dense<0.000000e+00> : vector<128xf32>
    %6 = vector.multi_reduction <add>, %5, %cst [1] : vector<128x128xf32> to vector<128xf32>
    %7 = vector.shape_cast %6 : vector<128xf32> to vector<128x1xf32>
    %8 = math.sqrt %7 : vector<128x1xf32>
    %cst_4 = arith.constant 1.000000e-10 : f32
    %9 = vector.broadcast %cst_4 : f32 to vector<128x1xf32>
    %10 = arith.addf %8, %9 : vector<128x1xf32>
    %11 = tpu.reciprocal %10 : vector<128x1xf32> -> vector<128x1xf32>
    %12 = arith.mulf %4, %4 : vector<128x128xf32>
    %cst_5 = arith.constant dense<0.000000e+00> : vector<128xf32>
    %13 = vector.multi_reduction <add>, %12, %cst_5 [1] : vector<128x128xf32> to vector<128xf32>
    %14 = vector.shape_cast %13 : vector<128xf32> to vector<128x1xf32>
    %15 = math.sqrt %14 : vector<128x1xf32>
    %cst_6 = arith.constant 1.000000e-10 : f32
    %16 = vector.broadcast %cst_6 : f32 to vector<128x1xf32>
    %17 = arith.addf %15, %16 : vector<128x1xf32>
    %18 = tpu.reciprocal %17 : vector<128x1xf32> -> vector<128x1xf32>
    %19 = vector.broadcast %11 : vector<128x1xf32> to vector<128x128xf32>
    %20 = arith.mulf %3, %19 : vector<128x128xf32>
    %21 = vector.broadcast %18 : vector<128x1xf32> to vector<128x128xf32>
    %22 = arith.mulf %4, %21 : vector<128x128xf32>
    %23 = arith.subf %20, %22 : vector<128x128xf32>
    %24 = arith.mulf %23, %23 : vector<128x128xf32>
    %c0_7 = arith.constant 0 : index
    %c0_8 = arith.constant 0 : index
    %25 = vector.load %arg4[%c0_7, %c0_8] : memref<1x128xf32, #tpu.memory_space<vmem>>, vector<1x128xf32>
    %26 = vector.broadcast %25 : vector<1x128xf32> to vector<128x128xf32>
    %27 = arith.mulf %24, %26 : vector<128x128xf32>
    %cst_9 = arith.constant dense<0.000000e+00> : vector<128xf32>
    %28 = vector.multi_reduction <add>, %27, %cst_9 [0] : vector<128x128xf32> to vector<128xf32>
    %29 = vector.shape_cast %28 : vector<128xf32> to vector<1x128xf32>
    %c0_10 = arith.constant 0 : index
    %c0_11 = arith.constant 0 : index
    %30 = vector.load %arg5[%c0_10, %c0_11] : memref<8x128xf32, #tpu.memory_space<vmem>>, vector<8x128xf32>
    %31 = vector.broadcast %29 : vector<1x128xf32> to vector<8x128xf32>
    %32 = arith.addf %30, %31 : vector<8x128xf32>
    %c0_12 = arith.constant 0 : index
    %c0_13 = arith.constant 0 : index
    %33 = vector.load %arg5[%c0_12, %c0_13] : memref<8x128xf32, #tpu.memory_space<vmem>>, vector<8x128xf32>
    tpu.vector_store %arg5[%c0_12, %c0_13], %32 {strides = array<i32>} : memref<8x128xf32, #tpu.memory_space<vmem>>, vector<8x128xf32>,
    return
  }
  func.func @transform_0(%arg0: i32, %arg1: i32) -> (i32, i32) {
    %c2_i32 = arith.constant 2 : i32
    %0 = arith.muli %arg0, %c2_i32 : i32
    %1 = arith.addi %0, %arg1 : i32
    %c0_i32 = arith.constant 0 : i32
    %c0_i32_0 = arith.constant 0 : i32
    return %1, %c0_i32 : i32, i32
  }
  func.func @transform_1(%arg0: i32, %arg1: i32) -> (i32, i32) {
    %c2_i32 = arith.constant 2 : i32
    %0 = arith.muli %arg0, %c2_i32 : i32
    %1 = arith.addi %0, %arg1 : i32
    %c0_i32 = arith.constant 0 : i32
    %c0_i32_0 = arith.constant 0 : i32
    return %1, %c0_i32 : i32, i32
  }
  func.func @transform_2(%arg0: i32, %arg1: i32) -> (i32, i32) {
    %c0_i32 = arith.constant 0 : i32
    %c0_i32_0 = arith.constant 0 : i32
    %c0_i32_1 = arith.constant 0 : i32
    return %c0_i32, %c0_i32_0 : i32, i32
  }
  func.func @transform_3(%arg0: i32, %arg1: i32) -> (i32, i32) {
    %c0_i32 = arith.constant 0 : i32
    %c0_i32_0 = arith.constant 0 : i32
    return %arg0, %c0_i32 : i32, i32
  }
}

module attributes {stable_mosaic.version = 11 : i64} {
  func.func @_matmul_bias_relu_kernel(%arg0: i32, %arg1: memref<208x1664xbf16, #tpu.memory_space<vmem>>, %arg2: memref<1664x256xbf16, #tpu.memory_space<vmem>>, %arg3: memref<1x256xf32, #tpu.memory_space<vmem>>, %arg4: memref<208x256xf32, #tpu.memory_space<vmem>>) attributes {dimension_semantics = [#tpu.dimension_semantics<parallel>], iteration_bounds = array<i64: 1>, scalar_prefetch = 0 : i64, scratch_operands = 0 : i64, tpu.core_type = #tpu.core_type<tc>, window_params = [{transform_indices = @transform_0, window_bounds = array<i64: 208, 1664>}, {pipeline_mode = #tpu.pipeline_mode<synchronous>, transform_indices = @transform_1, window_bounds = array<i64: 1664, 256>}, {pipeline_mode = #tpu.pipeline_mode<synchronous>, transform_indices = @transform_2, window_bounds = array<i64: 1, 256>}, {transform_indices = @transform_3, window_bounds = array<i64: 208, 256>}]} {
    %c0 = arith.constant 0 : index
    %c0_0 = arith.constant 0 : index
    %0 = vector.load %arg1[%c0, %c0_0] : memref<208x1664xbf16, #tpu.memory_space<vmem>>, vector<208x1664xbf16>
    %c0_1 = arith.constant 0 : index
    %c0_2 = arith.constant 0 : index
    %1 = vector.load %arg2[%c0_1, %c0_2] : memref<1664x256xbf16, #tpu.memory_space<vmem>>, vector<1664x256xbf16>
    %cst = arith.constant dense<0.000000e+00> : vector<208x256xf32>
    %2 = tpu.matmul %0, %1, %cst {dimension_numbers = #tpu.dot_dimension_numbers<[1], [0], [0], [1], [0, 0, 1, 1], [], []>} : vector<208x1664xbf16>, vector<1664x256xbf16>, vector<208x256xf32> -> vector<208x256xf32>
    %c0_3 = arith.constant 0 : index
    %c0_4 = arith.constant 0 : index
    %3 = vector.load %arg3[%c0_3, %c0_4] : memref<1x256xf32, #tpu.memory_space<vmem>>, vector<1x256xf32>
    %4 = vector.broadcast %3 : vector<1x256xf32> to vector<208x256xf32>
    %5 = arith.addf %2, %4 : vector<208x256xf32>
    %cst_5 = arith.constant 0.000000e+00 : f32
    %6 = vector.broadcast %cst_5 : f32 to vector<208x256xf32>
    %7 = arith.maximumf %5, %6 : vector<208x256xf32>
    %c0_6 = arith.constant 0 : index
    %c0_7 = arith.constant 0 : index
    %8 = vector.load %arg4[%c0_6, %c0_7] : memref<208x256xf32, #tpu.memory_space<vmem>>, vector<208x256xf32>
    tpu.vector_store %arg4[%c0_6, %c0_7], %7 {strides = array<i32>} : memref<208x256xf32, #tpu.memory_space<vmem>>, vector<208x256xf32>,
    return
  }
  func.func @transform_0(%arg0: i32) -> (i32, i32) {
    %c0_i32 = arith.constant 0 : i32
    %c0_i32_0 = arith.constant 0 : i32
    return %arg0, %c0_i32 : i32, i32
  }
  func.func @transform_1(%arg0: i32) -> (i32, i32) {
    %c0_i32 = arith.constant 0 : i32
    %c0_i32_0 = arith.constant 0 : i32
    %c0_i32_1 = arith.constant 0 : i32
    return %c0_i32, %c0_i32_0 : i32, i32
  }
  func.func @transform_2(%arg0: i32) -> (i32, i32) {
    %c0_i32 = arith.constant 0 : i32
    %c0_i32_0 = arith.constant 0 : i32
    %c0_i32_1 = arith.constant 0 : i32
    return %c0_i32, %c0_i32_0 : i32, i32
  }
  func.func @transform_3(%arg0: i32) -> (i32, i32) {
    %c0_i32 = arith.constant 0 : i32
    %c0_i32_0 = arith.constant 0 : i32
    return %arg0, %c0_i32 : i32, i32
  }
}

module attributes {stable_mosaic.version = 11 : i64} {
  func.func @_lpips_dist_kernel(%arg0: i32, %arg1: i32, %arg2: memref<56x256xf32, #tpu.memory_space<vmem>>, %arg3: memref<56x256xf32, #tpu.memory_space<vmem>>, %arg4: memref<1x256xf32, #tpu.memory_space<vmem>>, %arg5: memref<8x256xf32, #tpu.memory_space<vmem>>) attributes {dimension_semantics = [#tpu.dimension_semantics<parallel>, #tpu.dimension_semantics<arbitrary>], iteration_bounds = array<i64: 2, 1>, scalar_prefetch = 0 : i64, scratch_operands = 0 : i64, tpu.core_type = #tpu.core_type<tc>, window_params = [{transform_indices = @transform_0, window_bounds = array<i64: 56, 256>}, {transform_indices = @transform_1, window_bounds = array<i64: 56, 256>}, {pipeline_mode = #tpu.pipeline_mode<synchronous>, transform_indices = @transform_2, window_bounds = array<i64: 1, 256>}, {transform_indices = @transform_3, window_bounds = array<i64: 8, 256>}]} {
    %c0_i32 = arith.constant 0 : i32
    %0 = arith.cmpi eq, %arg1, %c0_i32 : i32
    %1 = arith.extui %0 : i1 to i32
    %c0_i32_0 = arith.constant 0 : i32
    %2 = arith.cmpi ne, %1, %c0_i32_0 : i32
    scf.if %2 {
      %cst_14 = arith.constant 0.000000e+00 : f32
      %34 = vector.broadcast %cst_14 : f32 to vector<8x256xf32>
      %c0_15 = arith.constant 0 : index
      %c0_16 = arith.constant 0 : index
      %35 = vector.load %arg5[%c0_15, %c0_16] : memref<8x256xf32, #tpu.memory_space<vmem>>, vector<8x256xf32>
      tpu.vector_store %arg5[%c0_15, %c0_16], %34 {strides = array<i32>} : memref<8x256xf32, #tpu.memory_space<vmem>>, vector<8x256xf32>,
    } else {
    }
    %c0 = arith.constant 0 : index
    %c0_1 = arith.constant 0 : index
    %3 = vector.load %arg2[%c0, %c0_1] : memref<56x256xf32, #tpu.memory_space<vmem>>, vector<56x256xf32>
    %c0_2 = arith.constant 0 : index
    %c0_3 = arith.constant 0 : index
    %4 = vector.load %arg3[%c0_2, %c0_3] : memref<56x256xf32, #tpu.memory_space<vmem>>, vector<56x256xf32>
    %5 = arith.mulf %3, %3 : vector<56x256xf32>
    %cst = arith.constant dense<0.000000e+00> : vector<56xf32>
    %6 = vector.multi_reduction <add>, %5, %cst [1] : vector<56x256xf32> to vector<56xf32>
    %7 = vector.shape_cast %6 : vector<56xf32> to vector<56x1xf32>
    %8 = math.sqrt %7 : vector<56x1xf32>
    %cst_4 = arith.constant 1.000000e-10 : f32
    %9 = vector.broadcast %cst_4 : f32 to vector<56x1xf32>
    %10 = arith.addf %8, %9 : vector<56x1xf32>
    %11 = tpu.reciprocal %10 : vector<56x1xf32> -> vector<56x1xf32>
    %12 = arith.mulf %4, %4 : vector<56x256xf32>
    %cst_5 = arith.constant dense<0.000000e+00> : vector<56xf32>
    %13 = vector.multi_reduction <add>, %12, %cst_5 [1] : vector<56x256xf32> to vector<56xf32>
    %14 = vector.shape_cast %13 : vector<56xf32> to vector<56x1xf32>
    %15 = math.sqrt %14 : vector<56x1xf32>
    %cst_6 = arith.constant 1.000000e-10 : f32
    %16 = vector.broadcast %cst_6 : f32 to vector<56x1xf32>
    %17 = arith.addf %15, %16 : vector<56x1xf32>
    %18 = tpu.reciprocal %17 : vector<56x1xf32> -> vector<56x1xf32>
    %19 = vector.broadcast %11 : vector<56x1xf32> to vector<56x256xf32>
    %20 = arith.mulf %3, %19 : vector<56x256xf32>
    %21 = vector.broadcast %18 : vector<56x1xf32> to vector<56x256xf32>
    %22 = arith.mulf %4, %21 : vector<56x256xf32>
    %23 = arith.subf %20, %22 : vector<56x256xf32>
    %24 = arith.mulf %23, %23 : vector<56x256xf32>
    %c0_7 = arith.constant 0 : index
    %c0_8 = arith.constant 0 : index
    %25 = vector.load %arg4[%c0_7, %c0_8] : memref<1x256xf32, #tpu.memory_space<vmem>>, vector<1x256xf32>
    %26 = vector.broadcast %25 : vector<1x256xf32> to vector<56x256xf32>
    %27 = arith.mulf %24, %26 : vector<56x256xf32>
    %cst_9 = arith.constant dense<0.000000e+00> : vector<256xf32>
    %28 = vector.multi_reduction <add>, %27, %cst_9 [0] : vector<56x256xf32> to vector<256xf32>
    %29 = vector.shape_cast %28 : vector<256xf32> to vector<1x256xf32>
    %c0_10 = arith.constant 0 : index
    %c0_11 = arith.constant 0 : index
    %30 = vector.load %arg5[%c0_10, %c0_11] : memref<8x256xf32, #tpu.memory_space<vmem>>, vector<8x256xf32>
    %31 = vector.broadcast %29 : vector<1x256xf32> to vector<8x256xf32>
    %32 = arith.addf %30, %31 : vector<8x256xf32>
    %c0_12 = arith.constant 0 : index
    %c0_13 = arith.constant 0 : index
    %33 = vector.load %arg5[%c0_12, %c0_13] : memref<8x256xf32, #tpu.memory_space<vmem>>, vector<8x256xf32>
    tpu.vector_store %arg5[%c0_12, %c0_13], %32 {strides = array<i32>} : memref<8x256xf32, #tpu.memory_space<vmem>>, vector<8x256xf32>,
    return
  }
  func.func @transform_0(%arg0: i32, %arg1: i32) -> (i32, i32) {
    %c1_i32 = arith.constant 1 : i32
    %0 = arith.muli %arg0, %c1_i32 : i32
    %1 = arith.addi %0, %arg1 : i32
    %c0_i32 = arith.constant 0 : i32
    %c0_i32_0 = arith.constant 0 : i32
    return %1, %c0_i32 : i32, i32
  }
  func.func @transform_1(%arg0: i32, %arg1: i32) -> (i32, i32) {
    %c1_i32 = arith.constant 1 : i32
    %0 = arith.muli %arg0, %c1_i32 : i32
    %1 = arith.addi %0, %arg1 : i32
    %c0_i32 = arith.constant 0 : i32
    %c0_i32_0 = arith.constant 0 : i32
    return %1, %c0_i32 : i32, i32
  }
  func.func @transform_2(%arg0: i32, %arg1: i32) -> (i32, i32) {
    %c0_i32 = arith.constant 0 : i32
    %c0_i32_0 = arith.constant 0 : i32
    %c0_i32_1 = arith.constant 0 : i32
    return %c0_i32, %c0_i32_0 : i32, i32
  }
  func.func @transform_3(%arg0: i32, %arg1: i32) -> (i32, i32) {
    %c0_i32 = arith.constant 0 : i32
    %c0_i32_0 = arith.constant 0 : i32
    return %arg0, %c0_i32 : i32, i32
  }
}

module attributes {stable_mosaic.version = 11 : i64} {
  func.func @_matmul_bias_relu_kernel(%arg0: i32, %arg1: memref<48x1792xbf16, #tpu.memory_space<vmem>>, %arg2: memref<1792x384xbf16, #tpu.memory_space<vmem>>, %arg3: memref<1x384xf32, #tpu.memory_space<vmem>>, %arg4: memref<48x384xf32, #tpu.memory_space<vmem>>) attributes {dimension_semantics = [#tpu.dimension_semantics<parallel>], iteration_bounds = array<i64: 1>, scalar_prefetch = 0 : i64, scratch_operands = 0 : i64, tpu.core_type = #tpu.core_type<tc>, window_params = [{transform_indices = @transform_0, window_bounds = array<i64: 48, 1792>}, {pipeline_mode = #tpu.pipeline_mode<synchronous>, transform_indices = @transform_1, window_bounds = array<i64: 1792, 384>}, {pipeline_mode = #tpu.pipeline_mode<synchronous>, transform_indices = @transform_2, window_bounds = array<i64: 1, 384>}, {transform_indices = @transform_3, window_bounds = array<i64: 48, 384>}]} {
    %c0 = arith.constant 0 : index
    %c0_0 = arith.constant 0 : index
    %0 = vector.load %arg1[%c0, %c0_0] : memref<48x1792xbf16, #tpu.memory_space<vmem>>, vector<48x1792xbf16>
    %c0_1 = arith.constant 0 : index
    %c0_2 = arith.constant 0 : index
    %1 = vector.load %arg2[%c0_1, %c0_2] : memref<1792x384xbf16, #tpu.memory_space<vmem>>, vector<1792x384xbf16>
    %cst = arith.constant dense<0.000000e+00> : vector<48x384xf32>
    %2 = tpu.matmul %0, %1, %cst {dimension_numbers = #tpu.dot_dimension_numbers<[1], [0], [0], [1], [0, 0, 1, 1], [], []>} : vector<48x1792xbf16>, vector<1792x384xbf16>, vector<48x384xf32> -> vector<48x384xf32>
    %c0_3 = arith.constant 0 : index
    %c0_4 = arith.constant 0 : index
    %3 = vector.load %arg3[%c0_3, %c0_4] : memref<1x384xf32, #tpu.memory_space<vmem>>, vector<1x384xf32>
    %4 = vector.broadcast %3 : vector<1x384xf32> to vector<48x384xf32>
    %5 = arith.addf %2, %4 : vector<48x384xf32>
    %cst_5 = arith.constant 0.000000e+00 : f32
    %6 = vector.broadcast %cst_5 : f32 to vector<48x384xf32>
    %7 = arith.maximumf %5, %6 : vector<48x384xf32>
    %c0_6 = arith.constant 0 : index
    %c0_7 = arith.constant 0 : index
    %8 = vector.load %arg4[%c0_6, %c0_7] : memref<48x384xf32, #tpu.memory_space<vmem>>, vector<48x384xf32>
    tpu.vector_store %arg4[%c0_6, %c0_7], %7 {strides = array<i32>} : memref<48x384xf32, #tpu.memory_space<vmem>>, vector<48x384xf32>,
    return
  }
  func.func @transform_0(%arg0: i32) -> (i32, i32) {
    %c0_i32 = arith.constant 0 : i32
    %c0_i32_0 = arith.constant 0 : i32
    return %arg0, %c0_i32 : i32, i32
  }
  func.func @transform_1(%arg0: i32) -> (i32, i32) {
    %c0_i32 = arith.constant 0 : i32
    %c0_i32_0 = arith.constant 0 : i32
    %c0_i32_1 = arith.constant 0 : i32
    return %c0_i32, %c0_i32_0 : i32, i32
  }
  func.func @transform_2(%arg0: i32) -> (i32, i32) {
    %c0_i32 = arith.constant 0 : i32
    %c0_i32_0 = arith.constant 0 : i32
    %c0_i32_1 = arith.constant 0 : i32
    return %c0_i32, %c0_i32_0 : i32, i32
  }
  func.func @transform_3(%arg0: i32) -> (i32, i32) {
    %c0_i32 = arith.constant 0 : i32
    %c0_i32_0 = arith.constant 0 : i32
    return %arg0, %c0_i32 : i32, i32
  }
}

module attributes {stable_mosaic.version = 11 : i64} {
  func.func @_lpips_dist_kernel(%arg0: i32, %arg1: i32, %arg2: memref<16x384xf32, #tpu.memory_space<vmem>>, %arg3: memref<16x384xf32, #tpu.memory_space<vmem>>, %arg4: memref<1x384xf32, #tpu.memory_space<vmem>>, %arg5: memref<8x384xf32, #tpu.memory_space<vmem>>) attributes {dimension_semantics = [#tpu.dimension_semantics<parallel>, #tpu.dimension_semantics<arbitrary>], iteration_bounds = array<i64: 2, 1>, scalar_prefetch = 0 : i64, scratch_operands = 0 : i64, tpu.core_type = #tpu.core_type<tc>, window_params = [{transform_indices = @transform_0, window_bounds = array<i64: 16, 384>}, {transform_indices = @transform_1, window_bounds = array<i64: 16, 384>}, {pipeline_mode = #tpu.pipeline_mode<synchronous>, transform_indices = @transform_2, window_bounds = array<i64: 1, 384>}, {transform_indices = @transform_3, window_bounds = array<i64: 8, 384>}]} {
    %c0_i32 = arith.constant 0 : i32
    %0 = arith.cmpi eq, %arg1, %c0_i32 : i32
    %1 = arith.extui %0 : i1 to i32
    %c0_i32_0 = arith.constant 0 : i32
    %2 = arith.cmpi ne, %1, %c0_i32_0 : i32
    scf.if %2 {
      %cst_14 = arith.constant 0.000000e+00 : f32
      %34 = vector.broadcast %cst_14 : f32 to vector<8x384xf32>
      %c0_15 = arith.constant 0 : index
      %c0_16 = arith.constant 0 : index
      %35 = vector.load %arg5[%c0_15, %c0_16] : memref<8x384xf32, #tpu.memory_space<vmem>>, vector<8x384xf32>
      tpu.vector_store %arg5[%c0_15, %c0_16], %34 {strides = array<i32>} : memref<8x384xf32, #tpu.memory_space<vmem>>, vector<8x384xf32>,
    } else {
    }
    %c0 = arith.constant 0 : index
    %c0_1 = arith.constant 0 : index
    %3 = vector.load %arg2[%c0, %c0_1] : memref<16x384xf32, #tpu.memory_space<vmem>>, vector<16x384xf32>
    %c0_2 = arith.constant 0 : index
    %c0_3 = arith.constant 0 : index
    %4 = vector.load %arg3[%c0_2, %c0_3] : memref<16x384xf32, #tpu.memory_space<vmem>>, vector<16x384xf32>
    %5 = arith.mulf %3, %3 : vector<16x384xf32>
    %cst = arith.constant dense<0.000000e+00> : vector<16xf32>
    %6 = vector.multi_reduction <add>, %5, %cst [1] : vector<16x384xf32> to vector<16xf32>
    %7 = vector.shape_cast %6 : vector<16xf32> to vector<16x1xf32>
    %8 = math.sqrt %7 : vector<16x1xf32>
    %cst_4 = arith.constant 1.000000e-10 : f32
    %9 = vector.broadcast %cst_4 : f32 to vector<16x1xf32>
    %10 = arith.addf %8, %9 : vector<16x1xf32>
    %11 = tpu.reciprocal %10 : vector<16x1xf32> -> vector<16x1xf32>
    %12 = arith.mulf %4, %4 : vector<16x384xf32>
    %cst_5 = arith.constant dense<0.000000e+00> : vector<16xf32>
    %13 = vector.multi_reduction <add>, %12, %cst_5 [1] : vector<16x384xf32> to vector<16xf32>
    %14 = vector.shape_cast %13 : vector<16xf32> to vector<16x1xf32>
    %15 = math.sqrt %14 : vector<16x1xf32>
    %cst_6 = arith.constant 1.000000e-10 : f32
    %16 = vector.broadcast %cst_6 : f32 to vector<16x1xf32>
    %17 = arith.addf %15, %16 : vector<16x1xf32>
    %18 = tpu.reciprocal %17 : vector<16x1xf32> -> vector<16x1xf32>
    %19 = vector.broadcast %11 : vector<16x1xf32> to vector<16x384xf32>
    %20 = arith.mulf %3, %19 : vector<16x384xf32>
    %21 = vector.broadcast %18 : vector<16x1xf32> to vector<16x384xf32>
    %22 = arith.mulf %4, %21 : vector<16x384xf32>
    %23 = arith.subf %20, %22 : vector<16x384xf32>
    %24 = arith.mulf %23, %23 : vector<16x384xf32>
    %c0_7 = arith.constant 0 : index
    %c0_8 = arith.constant 0 : index
    %25 = vector.load %arg4[%c0_7, %c0_8] : memref<1x384xf32, #tpu.memory_space<vmem>>, vector<1x384xf32>
    %26 = vector.broadcast %25 : vector<1x384xf32> to vector<16x384xf32>
    %27 = arith.mulf %24, %26 : vector<16x384xf32>
    %cst_9 = arith.constant dense<0.000000e+00> : vector<384xf32>
    %28 = vector.multi_reduction <add>, %27, %cst_9 [0] : vector<16x384xf32> to vector<384xf32>
    %29 = vector.shape_cast %28 : vector<384xf32> to vector<1x384xf32>
    %c0_10 = arith.constant 0 : index
    %c0_11 = arith.constant 0 : index
    %30 = vector.load %arg5[%c0_10, %c0_11] : memref<8x384xf32, #tpu.memory_space<vmem>>, vector<8x384xf32>
    %31 = vector.broadcast %29 : vector<1x384xf32> to vector<8x384xf32>
    %32 = arith.addf %30, %31 : vector<8x384xf32>
    %c0_12 = arith.constant 0 : index
    %c0_13 = arith.constant 0 : index
    %33 = vector.load %arg5[%c0_12, %c0_13] : memref<8x384xf32, #tpu.memory_space<vmem>>, vector<8x384xf32>
    tpu.vector_store %arg5[%c0_12, %c0_13], %32 {strides = array<i32>} : memref<8x384xf32, #tpu.memory_space<vmem>>, vector<8x384xf32>,
    return
  }
  func.func @transform_0(%arg0: i32, %arg1: i32) -> (i32, i32) {
    %c1_i32 = arith.constant 1 : i32
    %0 = arith.muli %arg0, %c1_i32 : i32
    %1 = arith.addi %0, %arg1 : i32
    %c0_i32 = arith.constant 0 : i32
    %c0_i32_0 = arith.constant 0 : i32
    return %1, %c0_i32 : i32, i32
  }
  func.func @transform_1(%arg0: i32, %arg1: i32) -> (i32, i32) {
    %c1_i32 = arith.constant 1 : i32
    %0 = arith.muli %arg0, %c1_i32 : i32
    %1 = arith.addi %0, %arg1 : i32
    %c0_i32 = arith.constant 0 : i32
    %c0_i32_0 = arith.constant 0 : i32
    return %1, %c0_i32 : i32, i32
  }
  func.func @transform_2(%arg0: i32, %arg1: i32) -> (i32, i32) {
    %c0_i32 = arith.constant 0 : i32
    %c0_i32_0 = arith.constant 0 : i32
    %c0_i32_1 = arith.constant 0 : i32
    return %c0_i32, %c0_i32_0 : i32, i32
  }
  func.func @transform_3(%arg0: i32, %arg1: i32) -> (i32, i32) {
    %c0_i32 = arith.constant 0 : i32
    %c0_i32_0 = arith.constant 0 : i32
    return %arg0, %c0_i32 : i32, i32
  }
}

module attributes {stable_mosaic.version = 11 : i64} {
  func.func @_matmul_bias_relu_kernel(%arg0: i32, %arg1: memref<48x3456xbf16, #tpu.memory_space<vmem>>, %arg2: memref<3456x256xbf16, #tpu.memory_space<vmem>>, %arg3: memref<1x256xf32, #tpu.memory_space<vmem>>, %arg4: memref<48x256xf32, #tpu.memory_space<vmem>>) attributes {dimension_semantics = [#tpu.dimension_semantics<parallel>], iteration_bounds = array<i64: 1>, scalar_prefetch = 0 : i64, scratch_operands = 0 : i64, tpu.core_type = #tpu.core_type<tc>, window_params = [{transform_indices = @transform_0, window_bounds = array<i64: 48, 3456>}, {pipeline_mode = #tpu.pipeline_mode<synchronous>, transform_indices = @transform_1, window_bounds = array<i64: 3456, 256>}, {pipeline_mode = #tpu.pipeline_mode<synchronous>, transform_indices = @transform_2, window_bounds = array<i64: 1, 256>}, {transform_indices = @transform_3, window_bounds = array<i64: 48, 256>}]} {
    %c0 = arith.constant 0 : index
    %c0_0 = arith.constant 0 : index
    %0 = vector.load %arg1[%c0, %c0_0] : memref<48x3456xbf16, #tpu.memory_space<vmem>>, vector<48x3456xbf16>
    %c0_1 = arith.constant 0 : index
    %c0_2 = arith.constant 0 : index
    %1 = vector.load %arg2[%c0_1, %c0_2] : memref<3456x256xbf16, #tpu.memory_space<vmem>>, vector<3456x256xbf16>
    %cst = arith.constant dense<0.000000e+00> : vector<48x256xf32>
    %2 = tpu.matmul %0, %1, %cst {dimension_numbers = #tpu.dot_dimension_numbers<[1], [0], [0], [1], [0, 0, 1, 1], [], []>} : vector<48x3456xbf16>, vector<3456x256xbf16>, vector<48x256xf32> -> vector<48x256xf32>
    %c0_3 = arith.constant 0 : index
    %c0_4 = arith.constant 0 : index
    %3 = vector.load %arg3[%c0_3, %c0_4] : memref<1x256xf32, #tpu.memory_space<vmem>>, vector<1x256xf32>
    %4 = vector.broadcast %3 : vector<1x256xf32> to vector<48x256xf32>
    %5 = arith.addf %2, %4 : vector<48x256xf32>
    %cst_5 = arith.constant 0.000000e+00 : f32
    %6 = vector.broadcast %cst_5 : f32 to vector<48x256xf32>
    %7 = arith.maximumf %5, %6 : vector<48x256xf32>
    %c0_6 = arith.constant 0 : index
    %c0_7 = arith.constant 0 : index
    %8 = vector.load %arg4[%c0_6, %c0_7] : memref<48x256xf32, #tpu.memory_space<vmem>>, vector<48x256xf32>
    tpu.vector_store %arg4[%c0_6, %c0_7], %7 {strides = array<i32>} : memref<48x256xf32, #tpu.memory_space<vmem>>, vector<48x256xf32>,
    return
  }
  func.func @transform_0(%arg0: i32) -> (i32, i32) {
    %c0_i32 = arith.constant 0 : i32
    %c0_i32_0 = arith.constant 0 : i32
    return %arg0, %c0_i32 : i32, i32
  }
  func.func @transform_1(%arg0: i32) -> (i32, i32) {
    %c0_i32 = arith.constant 0 : i32
    %c0_i32_0 = arith.constant 0 : i32
    %c0_i32_1 = arith.constant 0 : i32
    return %c0_i32, %c0_i32_0 : i32, i32
  }
  func.func @transform_2(%arg0: i32) -> (i32, i32) {
    %c0_i32 = arith.constant 0 : i32
    %c0_i32_0 = arith.constant 0 : i32
    %c0_i32_1 = arith.constant 0 : i32
    return %c0_i32, %c0_i32_0 : i32, i32
  }
  func.func @transform_3(%arg0: i32) -> (i32, i32) {
    %c0_i32 = arith.constant 0 : i32
    %c0_i32_0 = arith.constant 0 : i32
    return %arg0, %c0_i32 : i32, i32
  }
}

module attributes {stable_mosaic.version = 11 : i64} {
  func.func @_lpips_dist_kernel(%arg0: i32, %arg1: i32, %arg2: memref<16x256xf32, #tpu.memory_space<vmem>>, %arg3: memref<16x256xf32, #tpu.memory_space<vmem>>, %arg4: memref<1x256xf32, #tpu.memory_space<vmem>>, %arg5: memref<8x256xf32, #tpu.memory_space<vmem>>) attributes {dimension_semantics = [#tpu.dimension_semantics<parallel>, #tpu.dimension_semantics<arbitrary>], iteration_bounds = array<i64: 2, 1>, scalar_prefetch = 0 : i64, scratch_operands = 0 : i64, tpu.core_type = #tpu.core_type<tc>, window_params = [{transform_indices = @transform_0, window_bounds = array<i64: 16, 256>}, {transform_indices = @transform_1, window_bounds = array<i64: 16, 256>}, {pipeline_mode = #tpu.pipeline_mode<synchronous>, transform_indices = @transform_2, window_bounds = array<i64: 1, 256>}, {transform_indices = @transform_3, window_bounds = array<i64: 8, 256>}]} {
    %c0_i32 = arith.constant 0 : i32
    %0 = arith.cmpi eq, %arg1, %c0_i32 : i32
    %1 = arith.extui %0 : i1 to i32
    %c0_i32_0 = arith.constant 0 : i32
    %2 = arith.cmpi ne, %1, %c0_i32_0 : i32
    scf.if %2 {
      %cst_14 = arith.constant 0.000000e+00 : f32
      %34 = vector.broadcast %cst_14 : f32 to vector<8x256xf32>
      %c0_15 = arith.constant 0 : index
      %c0_16 = arith.constant 0 : index
      %35 = vector.load %arg5[%c0_15, %c0_16] : memref<8x256xf32, #tpu.memory_space<vmem>>, vector<8x256xf32>
      tpu.vector_store %arg5[%c0_15, %c0_16], %34 {strides = array<i32>} : memref<8x256xf32, #tpu.memory_space<vmem>>, vector<8x256xf32>,
    } else {
    }
    %c0 = arith.constant 0 : index
    %c0_1 = arith.constant 0 : index
    %3 = vector.load %arg2[%c0, %c0_1] : memref<16x256xf32, #tpu.memory_space<vmem>>, vector<16x256xf32>
    %c0_2 = arith.constant 0 : index
    %c0_3 = arith.constant 0 : index
    %4 = vector.load %arg3[%c0_2, %c0_3] : memref<16x256xf32, #tpu.memory_space<vmem>>, vector<16x256xf32>
    %5 = arith.mulf %3, %3 : vector<16x256xf32>
    %cst = arith.constant dense<0.000000e+00> : vector<16xf32>
    %6 = vector.multi_reduction <add>, %5, %cst [1] : vector<16x256xf32> to vector<16xf32>
    %7 = vector.shape_cast %6 : vector<16xf32> to vector<16x1xf32>
    %8 = math.sqrt %7 : vector<16x1xf32>
    %cst_4 = arith.constant 1.000000e-10 : f32
    %9 = vector.broadcast %cst_4 : f32 to vector<16x1xf32>
    %10 = arith.addf %8, %9 : vector<16x1xf32>
    %11 = tpu.reciprocal %10 : vector<16x1xf32> -> vector<16x1xf32>
    %12 = arith.mulf %4, %4 : vector<16x256xf32>
    %cst_5 = arith.constant dense<0.000000e+00> : vector<16xf32>
    %13 = vector.multi_reduction <add>, %12, %cst_5 [1] : vector<16x256xf32> to vector<16xf32>
    %14 = vector.shape_cast %13 : vector<16xf32> to vector<16x1xf32>
    %15 = math.sqrt %14 : vector<16x1xf32>
    %cst_6 = arith.constant 1.000000e-10 : f32
    %16 = vector.broadcast %cst_6 : f32 to vector<16x1xf32>
    %17 = arith.addf %15, %16 : vector<16x1xf32>
    %18 = tpu.reciprocal %17 : vector<16x1xf32> -> vector<16x1xf32>
    %19 = vector.broadcast %11 : vector<16x1xf32> to vector<16x256xf32>
    %20 = arith.mulf %3, %19 : vector<16x256xf32>
    %21 = vector.broadcast %18 : vector<16x1xf32> to vector<16x256xf32>
    %22 = arith.mulf %4, %21 : vector<16x256xf32>
    %23 = arith.subf %20, %22 : vector<16x256xf32>
    %24 = arith.mulf %23, %23 : vector<16x256xf32>
    %c0_7 = arith.constant 0 : index
    %c0_8 = arith.constant 0 : index
    %25 = vector.load %arg4[%c0_7, %c0_8] : memref<1x256xf32, #tpu.memory_space<vmem>>, vector<1x256xf32>
    %26 = vector.broadcast %25 : vector<1x256xf32> to vector<16x256xf32>
    %27 = arith.mulf %24, %26 : vector<16x256xf32>
    %cst_9 = arith.constant dense<0.000000e+00> : vector<256xf32>
    %28 = vector.multi_reduction <add>, %27, %cst_9 [0] : vector<16x256xf32> to vector<256xf32>
    %29 = vector.shape_cast %28 : vector<256xf32> to vector<1x256xf32>
    %c0_10 = arith.constant 0 : index
    %c0_11 = arith.constant 0 : index
    %30 = vector.load %arg5[%c0_10, %c0_11] : memref<8x256xf32, #tpu.memory_space<vmem>>, vector<8x256xf32>
    %31 = vector.broadcast %29 : vector<1x256xf32> to vector<8x256xf32>
    %32 = arith.addf %30, %31 : vector<8x256xf32>
    %c0_12 = arith.constant 0 : index
    %c0_13 = arith.constant 0 : index
    %33 = vector.load %arg5[%c0_12, %c0_13] : memref<8x256xf32, #tpu.memory_space<vmem>>, vector<8x256xf32>
    tpu.vector_store %arg5[%c0_12, %c0_13], %32 {strides = array<i32>} : memref<8x256xf32, #tpu.memory_space<vmem>>, vector<8x256xf32>,
    return
  }
  func.func @transform_0(%arg0: i32, %arg1: i32) -> (i32, i32) {
    %c1_i32 = arith.constant 1 : i32
    %0 = arith.muli %arg0, %c1_i32 : i32
    %1 = arith.addi %0, %arg1 : i32
    %c0_i32 = arith.constant 0 : i32
    %c0_i32_0 = arith.constant 0 : i32
    return %1, %c0_i32 : i32, i32
  }
  func.func @transform_1(%arg0: i32, %arg1: i32) -> (i32, i32) {
    %c1_i32 = arith.constant 1 : i32
    %0 = arith.muli %arg0, %c1_i32 : i32
    %1 = arith.addi %0, %arg1 : i32
    %c0_i32 = arith.constant 0 : i32
    %c0_i32_0 = arith.constant 0 : i32
    return %1, %c0_i32 : i32, i32
  }
  func.func @transform_2(%arg0: i32, %arg1: i32) -> (i32, i32) {
    %c0_i32 = arith.constant 0 : i32
    %c0_i32_0 = arith.constant 0 : i32
    %c0_i32_1 = arith.constant 0 : i32
    return %c0_i32, %c0_i32_0 : i32, i32
  }
  func.func @transform_3(%arg0: i32, %arg1: i32) -> (i32, i32) {
    %c0_i32 = arith.constant 0 : i32
    %c0_i32_0 = arith.constant 0 : i32
    return %arg0, %c0_i32 : i32, i32
  }
}

module attributes {stable_mosaic.version = 11 : i64} {
  func.func @_matmul_bias_relu_kernel(%arg0: i32, %arg1: memref<48x2304xbf16, #tpu.memory_space<vmem>>, %arg2: memref<2304x256xbf16, #tpu.memory_space<vmem>>, %arg3: memref<1x256xf32, #tpu.memory_space<vmem>>, %arg4: memref<48x256xf32, #tpu.memory_space<vmem>>) attributes {dimension_semantics = [#tpu.dimension_semantics<parallel>], iteration_bounds = array<i64: 1>, scalar_prefetch = 0 : i64, scratch_operands = 0 : i64, tpu.core_type = #tpu.core_type<tc>, window_params = [{transform_indices = @transform_0, window_bounds = array<i64: 48, 2304>}, {pipeline_mode = #tpu.pipeline_mode<synchronous>, transform_indices = @transform_1, window_bounds = array<i64: 2304, 256>}, {pipeline_mode = #tpu.pipeline_mode<synchronous>, transform_indices = @transform_2, window_bounds = array<i64: 1, 256>}, {transform_indices = @transform_3, window_bounds = array<i64: 48, 256>}]} {
    %c0 = arith.constant 0 : index
    %c0_0 = arith.constant 0 : index
    %0 = vector.load %arg1[%c0, %c0_0] : memref<48x2304xbf16, #tpu.memory_space<vmem>>, vector<48x2304xbf16>
    %c0_1 = arith.constant 0 : index
    %c0_2 = arith.constant 0 : index
    %1 = vector.load %arg2[%c0_1, %c0_2] : memref<2304x256xbf16, #tpu.memory_space<vmem>>, vector<2304x256xbf16>
    %cst = arith.constant dense<0.000000e+00> : vector<48x256xf32>
    %2 = tpu.matmul %0, %1, %cst {dimension_numbers = #tpu.dot_dimension_numbers<[1], [0], [0], [1], [0, 0, 1, 1], [], []>} : vector<48x2304xbf16>, vector<2304x256xbf16>, vector<48x256xf32> -> vector<48x256xf32>
    %c0_3 = arith.constant 0 : index
    %c0_4 = arith.constant 0 : index
    %3 = vector.load %arg3[%c0_3, %c0_4] : memref<1x256xf32, #tpu.memory_space<vmem>>, vector<1x256xf32>
    %4 = vector.broadcast %3 : vector<1x256xf32> to vector<48x256xf32>
    %5 = arith.addf %2, %4 : vector<48x256xf32>
    %cst_5 = arith.constant 0.000000e+00 : f32
    %6 = vector.broadcast %cst_5 : f32 to vector<48x256xf32>
    %7 = arith.maximumf %5, %6 : vector<48x256xf32>
    %c0_6 = arith.constant 0 : index
    %c0_7 = arith.constant 0 : index
    %8 = vector.load %arg4[%c0_6, %c0_7] : memref<48x256xf32, #tpu.memory_space<vmem>>, vector<48x256xf32>
    tpu.vector_store %arg4[%c0_6, %c0_7], %7 {strides = array<i32>} : memref<48x256xf32, #tpu.memory_space<vmem>>, vector<48x256xf32>,
    return
  }
  func.func @transform_0(%arg0: i32) -> (i32, i32) {
    %c0_i32 = arith.constant 0 : i32
    %c0_i32_0 = arith.constant 0 : i32
    return %arg0, %c0_i32 : i32, i32
  }
  func.func @transform_1(%arg0: i32) -> (i32, i32) {
    %c0_i32 = arith.constant 0 : i32
    %c0_i32_0 = arith.constant 0 : i32
    %c0_i32_1 = arith.constant 0 : i32
    return %c0_i32, %c0_i32_0 : i32, i32
  }
  func.func @transform_2(%arg0: i32) -> (i32, i32) {
    %c0_i32 = arith.constant 0 : i32
    %c0_i32_0 = arith.constant 0 : i32
    %c0_i32_1 = arith.constant 0 : i32
    return %c0_i32, %c0_i32_0 : i32, i32
  }
  func.func @transform_3(%arg0: i32) -> (i32, i32) {
    %c0_i32 = arith.constant 0 : i32
    %c0_i32_0 = arith.constant 0 : i32
    return %arg0, %c0_i32 : i32, i32
  }
}

</mosaic_0001>

<bundles_post_ra>
// kernel: perceptual_loss.10
= control target key start
LH: loop header
LB: loop body
LE: loop exit
PB: predicated region body
PF: predicated region fallthrough
CT: control target
= control target key end

     0   :  { %s1548_s12 = smov 0   ;;  %s1792_s0 = inlined_call_operand.vmem [shape: bf16[1024,384], index: 0, kind: input, shape index: {}]   ;;  %s1793_s1 = inlined_call_operand.vmem [shape: bf16[384,128], index: 1, kind: input, shape index: {}]   ;;  %s1794_s2 = inlined_call_operand.vmem [shape: f32[1,128], index: 2, kind: input, shape index: {}]   ;;  %s1795_s3 = inlined_call_operand.vmem [shape: f32[1024,128], index: 3, kind: output, shape index: {}]  }
   0x1 LB: > { %s1139_s13 = sadd.s32 4294967295, %s1526_s12   ;;  %p1143_p0 = scmp.ge.s32.totalorder %s1526_s12, 1  ;;  %s1526_s12 = sphi %s1548_s12, %s13_s12  }
   0x2   : > { %p139_p1 = scmp.lt.s32.totalorder %s1526_s12, 5 }
   0x4   : > { %p140_p2 = pnand %p1143_p0, %p139_p1 }
   0x5   : > { %v1432_v0 = vld [vmem:[%s1793_s1 + $0x40] sm:$0xff] (!%p140_p2)   ;;  %s1144_s16 = sshll.u32 (!%p140_p2), %s1139_s13, 5  ;;  %v1434_v2 = vld [vmem:[%s1793_s1 + $0x48] sm:$0xff] (!%p140_p2)   ;;  %v1436_v4 = vld [vmem:[%s1793_s1 + $0x50] sm:$0xff] (!%p140_p2)  }
   0x6   : > { %143 = sbr.rel (%p140_p2) target bundleno = 350 (0x15e), region = 32  ;;  %v1433_v1 = vld [vmem:[%s1793_s1] sm:$0xff] (!%p140_p2)   ;;  %1223 = vmatprep.subr.bf16.mxu0 (!%p140_p2), %v1432_v0  ;;  %1407 = vmatprep.subr.bf16.mxu1 (!%p140_p2), %v1432_v0  ;;  %p165_p3 = scmp.lt.s32.totalorder (!%p140_p2), %s1144_s16, 127  ;;  %v1435_v3 = vld [vmem:[%s1793_s1 + $0x8] sm:$0xff] (!%p140_p2)   ;;  %v1437_v5 = vld [vmem:[%s1793_s1 + $0x10] sm:$0xff] (!%p140_p2)  }
   0x7   : > { %1224 = vmatpush3.bf16.msra.mxu0 (!%p140_p2), %v1433_v1  ;;  %1415 = vmatpush3.bf16.msra.mxu1 (!%p140_p2), %v1433_v1  ;;  %v1438_v6 = vld [vmem:[%s1793_s1 + $0x58] sm:$0xff] (!%p140_p2)   ;;  %v1440_v8 = vld [vmem:[%s1793_s1 + $0x60] sm:$0xff] (!%p140_p2)   ;;  %v1442_v10 = vld [vmem:[%s1793_s1 + $0x68] sm:$0xff] (!%p140_p2)  }
   0x8   : > { %1225 = vmatprep.subr.bf16.mxu0 (!%p140_p2), %v1434_v2  ;;  %1408 = vmatprep.subr.bf16.mxu1 (!%p140_p2), %v1434_v2  ;;  %v1439_v7 = vld [vmem:[%s1793_s1 + $0x18] sm:$0xff] (!%p140_p2)   ;;  %v1441_v9 = vld [vmem:[%s1793_s1 + $0x20] sm:$0xff] (!%p140_p2)   ;;  %v1443_v13 = vld [vmem:[%s1793_s1 + $0x28] sm:$0xff] (!%p140_p2)  }
   0x9   : > { %v1444_v14 = vld [vmem:[%s1793_s1 + $0x70] sm:$0xff] (!%p140_p2)   ;;  %v1446_v16 = vld [vmem:[%s1793_s1 + $0x78] sm:$0xff] (!%p140_p2)   ;;  %v1454_v18 = vld [vmem:[%s1793_s1 + $0x80] sm:$0xff] (!%p140_p2)  }
   0xa   : > { %v1445_v15 = vld [vmem:[%s1793_s1 + $0x30] sm:$0xff] (!%p140_p2)   ;;  %v1447_v17 = vld [vmem:[%s1793_s1 + $0x38] sm:$0xff] (!%p140_p2)   ;;  %v1455_v22 = vld [vmem:[%s1793_s1 + $0x88] sm:$0xff] (!%p140_p2)  }
   0xb   : > { %1226 = vmatpush3.bf16.msra.mxu0 (!%p140_p2), %v1435_v3  ;;  %1416 = vmatpush3.bf16.msra.mxu1 (!%p140_p2), %v1435_v3  ;;  %v1462_v25 = vld [vmem:[%s1793_s1 + $0x90] sm:$0xff] (!%p140_p2)   ;;  %v1463_v27 = vld [vmem:[%s1793_s1 + $0x98] sm:$0xff] (!%p140_p2)   ;;  %v1470_v30 = vld [vmem:[%s1793_s1 + $0xa0] sm:$0xff] (!%p140_p2)  }
   0xc   : > { %1227 = vmatprep.subr.bf16.mxu0 (!%p140_p2), %v1436_v4  ;;  %1409 = vmatprep.subr.bf16.mxu1 (!%p140_p2), %v1436_v4  ;;  %v1471_v33 = vld [vmem:[%s1793_s1 + $0xa8] sm:$0xff] (!%p140_p2)   ;;  %v1478_v36 = vld [vmem:[%s1793_s1 + $0xb0] sm:$0xff] (!%p140_p2)   ;;  %v1479_v40 = vld [vmem:[%s1793_s1 + $0xb8] sm:$0xff] (!%p140_p2)  }
   0xd   : > { %s1797_s16 = smov (!%p165_p3, %s1144_s16), 127 }
   0xe   : > { %s1423_s29 = smul.u32 12, %s1797_s16  ;;  %s1147_s19 = sshll.u32 %s1797_s16, 3 }
   0xf   : > { %1228 = vmatpush3.bf16.msra.mxu0 %v1437_v5  ;;  %1417 = vmatpush3.bf16.msra.mxu1 %v1437_v5  ;;  %s1712_s22 = scalar_lea.vmem %s1795_s3, %s1147_s19 }
  0x10   : > { %1229 = vmatprep.subr.bf16.mxu0 %v1438_v6  ;;  %1410 = vmatprep.subr.bf16.mxu1 %v1438_v6  ;;  %s1589_s9 = scalar_lea.vmem %s1792_s0, %s1423_s29 }
  0x11   : > { %v1450_v11 = vld [vmem:[%s1589_s9 + $0x4] ss:$12 sps:$4 sm:$0xff]   ;;  %v1448_v19 = vld [vmem:[%s1589_s9] ss:$12 sps:$4 sm:$0xff]   ;;  %v1456_v21 = vld [vmem:[%s1589_s9 + $0x1c] ss:$12 sps:$4 sm:$0xff]  }
  0x12   : > { %v1453_v12 = vld [vmem:[%s1589_s9 + $0x124] ss:$12 sps:$4 sm:$0xff]   ;;  %729 = vmatprep.mubr.bf16.mxu0 %v1450_v11  ;;  %v1451_v20 = vld [vmem:[%s1589_s9 + $0x120] ss:$12 sps:$4 sm:$0xff]   ;;  %v1458_v23 = vld [vmem:[%s1589_s9 + $0x13c] ss:$12 sps:$4 sm:$0xff]  }
  0x13   : > { %1230 = vmatpush3.bf16.msra.mxu0 %v1439_v7  ;;  %1418 = vmatpush3.bf16.msra.mxu1 %v1439_v7  ;;  %v1460_v24 = vld [vmem:[%s1589_s9 + $0x18] ss:$12 sps:$4 sm:$0xff]   ;;  %v1464_v28 = vld [vmem:[%s1589_s9 + $0x34] ss:$12 sps:$4 sm:$0xff]   ;;  %v1468_v31 = vld [vmem:[%s1589_s9 + $0x30] ss:$12 sps:$4 sm:$0xff]  }
  0x14   : > { %1231 = vmatprep.subr.bf16.mxu0 %v1440_v8  ;;  %1411 = vmatprep.subr.bf16.mxu1 %v1440_v8  ;;  %v1461_v26 = vld [vmem:[%s1589_s9 + $0x138] ss:$12 sps:$4 sm:$0xff]   ;;  %v1466_v29 = vld [vmem:[%s1589_s9 + $0x154] ss:$12 sps:$4 sm:$0xff]   ;;  %v1469_v32 = vld [vmem:[%s1589_s9 + $0x150] ss:$12 sps:$4 sm:$0xff]  }
  0x15   : > { %825 = vmatprep.mubr.bf16.mxu1 %v1453_v12  ;;  %v1472_v34 = vld [vmem:[%s1589_s9 + $0x4c] ss:$12 sps:$4 sm:$0xff]   ;;  %v1476_v37 = vld [vmem:[%s1589_s9 + $0x48] ss:$12 sps:$4 sm:$0xff]   ;;  %v1480_v39 = vld [vmem:[%s1589_s9 + $0x64] ss:$12 sps:$4 sm:$0xff]  }
  0x16   : > { %v1474_v35 = vld [vmem:[%s1589_s9 + $0x16c] ss:$12 sps:$4 sm:$0xff]   ;;  %v1477_v38 = vld [vmem:[%s1589_s9 + $0x168] ss:$12 sps:$4 sm:$0xff]   ;;  %v1489_v47 = vld [vmem:[%s1589_s9 + $0x50] ss:$12 sps:$4 sm:$0xff]  }
  0x17   : > { %1232 = vmatpush3.bf16.msra.mxu0 %v1441_v9  ;;  %1419 = vmatpush3.bf16.msra.mxu1 %v1441_v9  ;;  %v1482_v41 = vld [vmem:[%s1589_s9 + $0x8] ss:$12 sps:$4 sm:$0xff]   ;;  %v1483_v42 = vld [vmem:[%s1589_s9 + $0x60] ss:$12 sps:$4 sm:$0xff]   ;;  %v1487_v45 = vld [vmem:[%s1589_s9 + $0x38] ss:$12 sps:$4 sm:$0xff]  }
  0x18   : > { %1233 = vmatprep.subr.bf16.mxu0 %v1442_v10  ;;  %1412 = vmatprep.subr.bf16.mxu1 %v1442_v10  ;;  %v1484_v43 = vld [vmem:[%s1589_s9 + $0x20] ss:$12 sps:$4 sm:$0xff]   ;;  %v1485_v44 = vld [vmem:[%s1589_s9 + $0x7c] ss:$12 sps:$4 sm:$0xff]   ;;  %v1488_v46 = vld [vmem:[%s1589_s9 + $0x78] ss:$12 sps:$4 sm:$0xff]  }
  0x19   : > { %v1490_v48 = vld [vmem:[%s1589_s9 + $0x94] ss:$12 sps:$4 sm:$0xff]   ;;  %v1493_v50 = vld [vmem:[%s1589_s9 + $0x90] ss:$12 sps:$4 sm:$0xff]   ;;  %v1495_v52 = vld [vmem:[%s1589_s9 + $0xac] ss:$12 sps:$4 sm:$0xff]  }
  0x1a   : > { %v1492_v49 = vld [vmem:[%s1589_s9 + $0x68] ss:$12 sps:$4 sm:$0xff]   ;;  %v1494_v51 = vld [vmem:[%s1589_s9 + $0x80] ss:$12 sps:$4 sm:$0xff]   ;;  %v1497_v53 = vld [vmem:[%s1589_s9 + $0x98] ss:$12 sps:$4 sm:$0xff]  }
  0x1b   : > { %1234 = vmatpush3.bf16.msra.mxu0 %v1443_v13  ;;  %1420 = vmatpush3.bf16.msra.mxu1 %v1443_v13  ;;  %v1498_v54 = vld [vmem:[%s1589_s9 + $0xa8] ss:$12 sps:$4 sm:$0xff]   ;;  %v1499_v55 = vld [vmem:[%s1589_s9 + $0xb0] ss:$12 sps:$4 sm:$0xff]   ;;  %v1503_v58 = vld [vmem:[%s1589_s9 + $0xc0] ss:$12 sps:$4 sm:$0xff]  }
  0x1c   : > { %1235 = vmatprep.subr.bf16.mxu0 %v1444_v14  ;;  %1413 = vmatprep.subr.bf16.mxu1 %v1444_v14  ;;  %v1500_v56 = vld [vmem:[%s1589_s9 + $0xc4] ss:$12 sps:$4 sm:$0xff]   ;;  %v1502_v57 = vld [vmem:[%s1589_s9 + $0xc8] ss:$12 sps:$4 sm:$0xff]   ;;  %v1504_v59 = vld [vmem:[%s1589_s9 + $0xe0] ss:$12 sps:$4 sm:$0xff]  }
  0x1d   : > { %v1505_v60 = vld [vmem:[%s1589_s9 + $0xdc] ss:$12 sps:$4 sm:$0xff]   ;;  %v1507_v61 = vld [vmem:[%s1589_s9 + $0xf8] ss:$12 sps:$4 sm:$0xff]   ;;  %v1510_v0 = vld [vmem:[%s1589_s9 + $0xf4] ss:$12 sps:$4 sm:$0xff]  }
  0x1e   : > { %v1508_v62 = vld [vmem:[%s1589_s9 + $0xd8] ss:$12 sps:$4 sm:$0xff]   ;;  %v1509_v63 = vld [vmem:[%s1589_s9 + $0x110] ss:$12 sps:$4 sm:$0xff]   ;;  %v1512_v1 = vld [vmem:[%s1589_s9 + $0x128] ss:$12 sps:$4 sm:$0xff]  }
  0x1f   : > { %1236 = vmatpush3.bf16.msra.mxu0 %v1445_v15  ;;  %1421 = vmatpush3.bf16.msra.mxu1 %v1445_v15  ;;  %v1513_v2 = vld [vmem:[%s1589_s9 + $0xf0] ss:$12 sps:$4 sm:$0xff]   ;;  %v1514_v3 = vld [vmem:[%s1589_s9 + $0x140] ss:$12 sps:$4 sm:$0xff]   ;;  %v1517_v5 = vld [vmem:[%s1589_s9 + $0x158] ss:$12 sps:$4 sm:$0xff]  }
  0x20   : > { %1237 = vmatprep.subr.bf16.mxu0 %v1446_v16  ;;  %1414 = vmatprep.subr.bf16.mxu1 %v1446_v16  ;;  %v1515_v4 = vld [vmem:[%s1589_s9 + $0x10c] ss:$12 sps:$4 sm:$0xff]   ;;  %v1518_v6 = vld [vmem:[%s1589_s9 + $0x108] ss:$12 sps:$4 sm:$0xff]   ;;  %v1519_v7 = vld [vmem:[%s1589_s9 + $0x170] ss:$12 sps:$4 sm:$0xff]  }
  0x23   : > { %1238 = vmatpush3.bf16.msra.mxu0 %v1447_v17  ;;  %1422 = vmatpush3.bf16.msra.mxu1 %v1447_v17 }
  0x24   : > { %1359 = vmatprep.subr.bf16.mxu1 %v1454_v18 }
  0x26   : > { %730 = vmatmul.mubr.bf16.vlgmr.msra.gmra.mrb[0].mxu0 %v1448_v19  ;;  %826 = vmatmul.mubr.bf16.vlgmr.msra.gmra.mrb[0].mxu1 %v1451_v20 }
  0x27   : > { %1360 = vmatpush3.bf16.msra.mxu1 %v1454_v18  ;;  %737 = vmatprep.mubr.bf16.mxu0 %v1456_v21 }
  0x28   : > { %1361 = vmatprep.subr.bf16.mxu1 %v1455_v22  ;;  %833 = vmatprep.mubr.bf16.mxu1 %v1458_v23 }
  0x2b   : > { %1362 = vmatpush3.bf16.msra.mxu1 %v1455_v22 }
  0x2c   : > { %1363 = vmatprep.subr.bf16.mxu1 %v1462_v25 }
  0x2e   : > { %738 = vmatmul.mubr.bf16.gmra.mrb[4].mxu0 %v1460_v24  ;;  %834 = vmatmul.mubr.bf16.gmra.mrb[4].mxu1 %v1461_v26 }
  0x2f   : > { %1364 = vmatpush3.bf16.msra.mxu1 %v1462_v25  ;;  %745 = vmatprep.mubr.bf16.mxu0 %v1464_v28 }
  0x30   : > { %1365 = vmatprep.subr.bf16.mxu1 %v1463_v27  ;;  %841 = vmatprep.mubr.bf16.mxu1 %v1466_v29 }
  0x33   : > { %1366 = vmatpush3.bf16.msra.mxu1 %v1463_v27 }
  0x34   : > { %1367 = vmatprep.subr.bf16.mxu1 %v1470_v30 }
  0x36   : > { %746 = vmatmul.mubr.bf16.gmra.mrb[8].mxu0 %v1468_v31  ;;  %842 = vmatmul.mubr.bf16.gmra.mrb[8].mxu1 %v1469_v32 }
  0x37   : > { %1368 = vmatpush3.bf16.msra.mxu1 %v1470_v30  ;;  %753 = vmatprep.mubr.bf16.mxu0 %v1472_v34 }
  0x38   : > { %1369 = vmatprep.subr.bf16.mxu1 %v1471_v33  ;;  %849 = vmatprep.mubr.bf16.mxu1 %v1474_v35 }
  0x3b   : > { %1370 = vmatpush3.bf16.msra.mxu1 %v1471_v33 }
  0x3c   : > { %1371 = vmatprep.subr.bf16.mxu1 %v1478_v36 }
  0x3e   : > { %754 = vmatmul.mubr.bf16.gmra.mrb[12].mxu0 %v1476_v37  ;;  %850 = vmatmul.mubr.bf16.gmra.mrb[12].mxu1 %v1477_v38 }
  0x3f   : > { %1372 = vmatpush3.bf16.msra.mxu1 %v1478_v36  ;;  %761 = vmatprep.mubr.bf16.mxu0 %v1480_v39 }
  0x40   : > { %1373 = vmatprep.subr.bf16.mxu1 %v1479_v40  ;;  %1375 = vmatprep.mubr.bf16.mxu1 %v1482_v41 }
  0x43   : > { %1374 = vmatpush3.bf16.msra.mxu1 %v1479_v40 }
  0x46   : > { %762 = vmatmul.mubr.bf16.gmra.mrb[16].mxu0 %v1483_v42  ;;  %1376 = vmatmul.mubr.bf16.vlgmr.msra.gmra.mrb[16].mxu1 %v1484_v43 }
  0x47   : > { %769 = vmatprep.mubr.bf16.mxu0 %v1485_v44  ;;  %1379 = vmatprep.mubr.bf16.mxu1 %v1487_v45 }
  0x4e   : > { %770 = vmatmul.mubr.bf16.gmra.mrb[20].mxu0 %v1488_v46  ;;  %1380 = vmatmul.mubr.bf16.gmra.mrb[20].mxu1 %v1489_v47 }
  0x4f   : > { %777 = vmatprep.mubr.bf16.mxu0 %v1490_v48  ;;  %1383 = vmatprep.mubr.bf16.mxu1 %v1492_v49 }
  0x56   : > { %778 = vmatmul.mubr.bf16.gmra.mrb[24].mxu0 %v1493_v50  ;;  %1384 = vmatmul.mubr.bf16.gmra.mrb[24].mxu1 %v1494_v51 }
  0x57   : > { %785 = vmatprep.mubr.bf16.mxu0 %v1495_v52  ;;  %1387 = vmatprep.mubr.bf16.mxu1 %v1497_v53 }
  0x5e   : > { %786 = vmatmul.mubr.bf16.gmra.mrb[28].mxu0 %v1498_v54  ;;  %1388 = vmatmul.mubr.bf16.gmra.mrb[28].mxu1 %v1499_v55 }
  0x5f   : > { %793 = vmatprep.mubr.bf16.mxu0 %v1500_v56  ;;  %1391 = vmatprep.mubr.bf16.mxu1 %v1502_v57  ;;  %v1703_v56 = vld [vmem:[%s1794_s2] ss:$0 sm:$0xff] }
  0x66   : > { %794 = vmatmul.mubr.bf16.gmra.mrb[32].mxu0 %v1503_v58  ;;  %1392 = vmatmul.mubr.bf16.gmra.mrb[32].mxu1 %v1504_v59 }
  0x67   : > { %801 = vmatprep.mubr.bf16.mxu0 %v1505_v60  ;;  %1395 = vmatprep.mubr.bf16.mxu1 %v1507_v61 }
  0x6e   : > { %802 = vmatmul.mubr.bf16.gmra.mrb[36].mxu0 %v1508_v62  ;;  %1396 = vmatmul.mubr.bf16.gmra.mrb[36].mxu1 %v1509_v63 }
  0x6f   : > { %809 = vmatprep.mubr.bf16.mxu0 %v1510_v0  ;;  %1399 = vmatprep.mubr.bf16.mxu1 %v1512_v1 }
  0x76   : > { %810 = vmatmul.mubr.bf16.gmra.mrb[40].mxu0 %v1513_v2  ;;  %1400 = vmatmul.mubr.bf16.gmra.mrb[40].mxu1 %v1514_v3 }
  0x77   : > { %817 = vmatprep.mubr.bf16.mxu0 %v1515_v4  ;;  %1403 = vmatprep.mubr.bf16.mxu1 %v1517_v5 }
  0x7e   : > { %818 = vmatmul.mubr.bf16.gmra.mrb[44].mxu0 %v1518_v6  ;;  %1404 = vmatmul.mubr.bf16.gmra.mrb[44].mxu1 %v1519_v7 }
  0xf9   : > { %v1239_v8 = vpop.f32.mrb[0].mxu0  ;;  %v1311_v9 = vpop.f32.mrb[0].mxu1 }
  0xfa   : > { %v1240_v10 = vpop.f32.mrb[1].mxu0  ;;  %v1312_v11 = vpop.f32.mrb[1].mxu1 }
  0xfb   : > { %v1241_v12 = vadd.f32 %v1240_v10, %v1239_v8  ;;  %v1242_v13 = vpop.f32.mrb[2].mxu0  ;;  %v1684_v14 = vadd.f32 %v1312_v11, %v1311_v9  ;;  %v1314_v15 = vpop.f32.mrb[2].mxu1 }
  0xfc   : > { %v1243_v16 = vpop.f32.mrb[3].mxu0  ;;  %v1315_v17 = vpop.f32.mrb[3].mxu1 }
  0xfd   : > { %v1244_v18 = vadd.f32 %v1243_v16, %v1242_v13  ;;  %v1686_v19 = vadd.f32 %v1315_v17, %v1314_v15  ;;  %v732_v60 = vadd.f32 %v1241_v12, %v1703_v56 }
  0xff   : > { %v735_v5 = vadd.f32 %v1244_v18, %v1703_v56 }
 0x101   : > { %v1245_v20 = vpop.f32.mrb[4].mxu0  ;;  %v1317_v21 = vpop.f32.mrb[4].mxu1 }
 0x102   : > { %v1246_v22 = vpop.f32.mrb[5].mxu0  ;;  %v1318_v23 = vpop.f32.mrb[5].mxu1 }
 0x103   : > { %v1247_v24 = vadd.f32 %v1246_v22, %v1245_v20  ;;  %v1248_v25 = vpop.f32.mrb[6].mxu0  ;;  %v1688_v26 = vadd.f32 %v1318_v23, %v1317_v21  ;;  %v1320_v27 = vpop.f32.mrb[6].mxu1 }
 0x104   : > { %v1249_v28 = vpop.f32.mrb[7].mxu0  ;;  %v1321_v29 = vpop.f32.mrb[7].mxu1 }
 0x105   : > { %v1250_v30 = vadd.f32 %v1249_v28, %v1248_v25  ;;  %v1690_v31 = vadd.f32 %v1321_v29, %v1320_v27  ;;  %v740_v57 = vadd.f32 %v1247_v24, %v1703_v56 }
 0x107   : > { %v743_v0 = vadd.f32 %v1250_v30, %v1703_v56 }
 0x109   : > { %v1251_v32 = vpop.f32.mrb[8].mxu0  ;;  %v1323_v33 = vpop.f32.mrb[8].mxu1 }
 0x10a   : > { %v1252_v34 = vpop.f32.mrb[9].mxu0  ;;  %v1324_v35 = vpop.f32.mrb[9].mxu1 }
 0x10b   : > { %v1253_v36 = vadd.f32 %v1252_v34, %v1251_v32  ;;  %v1254_v37 = vpop.f32.mrb[10].mxu0  ;;  %v1692_v38 = vadd.f32 %v1324_v35, %v1323_v33  ;;  %v1326_v39 = vpop.f32.mrb[10].mxu1 }
 0x10c   : > { %v1255_v40 = vpop.f32.mrb[11].mxu0  ;;  %v1327_v41 = vpop.f32.mrb[11].mxu1 }
 0x10d   : > { %v1256_v42 = vadd.f32 %v1255_v40, %v1254_v37  ;;  %v1694_v43 = vadd.f32 %v1327_v41, %v1326_v39  ;;  %v748_v21 = vadd.f32 %v1253_v36, %v1703_v56 }
 0x10f   : > { %v751_v30 = vadd.f32 %v1256_v42, %v1703_v56 }
 0x111   : > { %v1257_v44 = vpop.f32.mrb[12].mxu0  ;;  %v1329_v45 = vpop.f32.mrb[12].mxu1 }
 0x112   : > { %v1258_v46 = vpop.f32.mrb[13].mxu0  ;;  %v1330_v47 = vpop.f32.mrb[13].mxu1 }
 0x113   : > { %v1259_v48 = vadd.f32 %v1258_v46, %v1257_v44  ;;  %v1260_v49 = vpop.f32.mrb[14].mxu0  ;;  %v1696_v50 = vadd.f32 %v1330_v47, %v1329_v45  ;;  %v1332_v51 = vpop.f32.mrb[14].mxu1 }
 0x114   : > { %v1261_v52 = vpop.f32.mrb[15].mxu0  ;;  %v1333_v53 = vpop.f32.mrb[15].mxu1 }
 0x115   : > { %v1262_v54 = vadd.f32 %v1261_v52, %v1260_v49  ;;  %v1698_v55 = vadd.f32 %v1333_v53, %v1332_v51  ;;  %v756_v16 = vadd.f32 %v1259_v48, %v1703_v56 }
 0x117   : > { %v759_v24 = vadd.f32 %v1262_v54, %v1703_v56 }
 0x119   : > { %v1263_v58 = vpop.f32.mrb[16].mxu0  ;;  %v1377_v59 = vpop.f32.mrb[16].mxu1 }
 0x11a   : > { %v901_v61 = vadd.f32 %v1377_v59, %v740_v57  ;;  %v1264_v62 = vpop.f32.mrb[17].mxu0  ;;  %v892_v63 = vpop.f32.mrb[17].mxu1 }
 0x11b   : > { %v1265_v1 = vadd.f32 %v1264_v62, %v1263_v58  ;;  %v893_v2 = vadd.f32 %v892_v63, %v732_v60  ;;  %v1266_v3 = vpop.f32.mrb[18].mxu0  ;;  %v1378_v4 = vpop.f32.mrb[18].mxu1 }
 0x11c   : > { %v1021_v6 = vmax.f32 %v901_v61, 0.0  ;;  %v904_v7 = vadd.f32 %v1378_v4, %v743_v0  ;;  %v1267_v8 = vpop.f32.mrb[19].mxu0  ;;  %v895_v9 = vpop.f32.mrb[19].mxu1 }
 0x11d   : > { %v1019_v10 = vmax.f32 %v893_v2, 0.0  ;;  %v1268_v11 = vadd.f32 %v1267_v8, %v1266_v3  ;;  %v896_v12 = vadd.f32 %v895_v9, %v735_v5  ;;  %v764_v47 = vadd.f32 %v1265_v1, %v1703_v56 }
 0x11e   : > { %1053 = vst [vmem:[%s1712_s22 + $0x10] sm:$0xff] %v1021_v6  ;;  %v1022_v13 = vmax.f32 %v904_v7, 0.0 }
 0x11f   : > { %1051 = vst [vmem:[%s1712_s22] sm:$0xff] %v1019_v10  ;;  %v1020_v15 = vmax.f32 %v896_v12, 0.0  ;;  %v767_v58 = vadd.f32 %v1268_v11, %v1703_v56 }
 0x120   : > { %1054 = vst [vmem:[%s1712_s22 + $0x18] sm:$0xff] %v1022_v13 }
 0x121   : > { %1052 = vst [vmem:[%s1712_s22 + $0x8] sm:$0xff] %v1020_v15  ;;  %v1269_v17 = vpop.f32.mrb[20].mxu0  ;;  %v1381_v20 = vpop.f32.mrb[20].mxu1 }
 0x122   : > { %v917_v18 = vadd.f32 %v1381_v20, %v756_v16  ;;  %v1270_v22 = vpop.f32.mrb[21].mxu0  ;;  %v908_v23 = vpop.f32.mrb[21].mxu1 }
 0x123   : > { %v1271_v25 = vadd.f32 %v1270_v22, %v1269_v17  ;;  %v909_v27 = vadd.f32 %v908_v23, %v748_v21  ;;  %v1272_v28 = vpop.f32.mrb[22].mxu0  ;;  %v1382_v29 = vpop.f32.mrb[22].mxu1 }
 0x124   : > { %v1025_v32 = vmax.f32 %v917_v18, 0.0  ;;  %v920_v33 = vadd.f32 %v1382_v29, %v759_v24  ;;  %v1273_v34 = vpop.f32.mrb[23].mxu0  ;;  %v911_v35 = vpop.f32.mrb[23].mxu1 }
 0x125   : > { %v1023_v36 = vmax.f32 %v909_v27, 0.0  ;;  %v1274_v37 = vadd.f32 %v1273_v34, %v1272_v28  ;;  %v912_v39 = vadd.f32 %v911_v35, %v751_v30  ;;  %v772_v44 = vadd.f32 %v1271_v25, %v1703_v56 }
 0x126   : > { %1057 = vst [vmem:[%s1712_s22 + $0x30] sm:$0xff] %v1025_v32  ;;  %v1026_v40 = vmax.f32 %v920_v33, 0.0 }
 0x127   : > { %1055 = vst [vmem:[%s1712_s22 + $0x20] sm:$0xff] %v1023_v36  ;;  %v1024_v41 = vmax.f32 %v912_v39, 0.0  ;;  %v775_v51 = vadd.f32 %v1274_v37, %v1703_v56 }
 0x128   : > { %1058 = vst [vmem:[%s1712_s22 + $0x38] sm:$0xff] %v1026_v40 }
 0x129   : > { %1056 = vst [vmem:[%s1712_s22 + $0x28] sm:$0xff] %v1024_v41  ;;  %v1275_v45 = vpop.f32.mrb[24].mxu0  ;;  %v1385_v46 = vpop.f32.mrb[24].mxu1 }
 0x12a   : > { %v933_v42 = vadd.f32 %v1385_v46, %v772_v44  ;;  %v1276_v48 = vpop.f32.mrb[25].mxu0  ;;  %v924_v49 = vpop.f32.mrb[25].mxu1 }
 0x12b   : > { %v1277_v52 = vadd.f32 %v1276_v48, %v1275_v45  ;;  %v925_v53 = vadd.f32 %v924_v49, %v764_v47  ;;  %v1278_v54 = vpop.f32.mrb[26].mxu0  ;;  %v1386_v57 = vpop.f32.mrb[26].mxu1 }
 0x12c   : > { %v1029_v59 = vmax.f32 %v933_v42, 0.0  ;;  %v936_v60 = vadd.f32 %v1386_v57, %v775_v51  ;;  %v1279_v61 = vpop.f32.mrb[27].mxu0  ;;  %v927_v62 = vpop.f32.mrb[27].mxu1 }
 0x12d   : > { %v1027_v63 = vmax.f32 %v925_v53, 0.0  ;;  %v1280_v0 = vadd.f32 %v1279_v61, %v1278_v54  ;;  %v928_v1 = vadd.f32 %v927_v62, %v767_v58  ;;  %v780_v6 = vadd.f32 %v1277_v52, %v1703_v56 }
 0x12e   : > { %1061 = vst [vmem:[%s1712_s22 + $0x50] sm:$0xff] %v1029_v59  ;;  %v1030_v2 = vmax.f32 %v936_v60, 0.0 }
 0x12f   : > { %1059 = vst [vmem:[%s1712_s22 + $0x40] sm:$0xff] %v1027_v63  ;;  %v1028_v3 = vmax.f32 %v928_v1, 0.0  ;;  %v783_v13 = vadd.f32 %v1280_v0, %v1703_v56  ;;  %v836_v0 = vadd.f32 %v1688_v26, %v1703_v56 }
 0x130   : > { %1062 = vst [vmem:[%s1712_s22 + $0x58] sm:$0xff] %v1030_v2 }
 0x131   : > { %1060 = vst [vmem:[%s1712_s22 + $0x48] sm:$0xff] %v1028_v3  ;;  %v1281_v4 = vpop.f32.mrb[28].mxu0  ;;  %v1389_v5 = vpop.f32.mrb[28].mxu1 }
 0x132   : > { %v1282_v7 = vpop.f32.mrb[29].mxu0  ;;  %v940_v8 = vpop.f32.mrb[29].mxu1 }
 0x133   : > { %v1283_v9 = vadd.f32 %v1282_v7, %v1281_v4  ;;  %v941_v10 = vadd.f32 %v940_v8, %v780_v6  ;;  %v1284_v11 = vpop.f32.mrb[30].mxu0  ;;  %v1390_v12 = vpop.f32.mrb[30].mxu1 }
 0x134   : > { %v1285_v15 = vpop.f32.mrb[31].mxu0  ;;  %v943_v16 = vpop.f32.mrb[31].mxu1 }
 0x135   : > { %v788_v17 = vadd.f32 %v1283_v9, %v1703_v56  ;;  %v1031_v20 = vmax.f32 %v941_v10, 0.0  ;;  %v1286_v21 = vadd.f32 %v1285_v15, %v1284_v11  ;;  %v944_v18 = vadd.f32 %v943_v16, %v783_v13 }
 0x136   : > { %v839_v9 = vadd.f32 %v1690_v31, %v1703_v56  ;;  %v831_v15 = vadd.f32 %v1686_v19, %v1703_v56 }
 0x137   : > { %v949_v22 = vadd.f32 %v1389_v5, %v788_v17  ;;  %1063 = vst [vmem:[%s1712_s22 + $0x60] sm:$0xff] %v1031_v20  ;;  %v791_v23 = vadd.f32 %v1286_v21, %v1703_v56  ;;  %v1032_v24 = vmax.f32 %v944_v18, 0.0  ;;  %v828_v5 = vadd.f32 %v1684_v14, %v1703_v56 }
 0x139   : > { %v1033_v25 = vmax.f32 %v949_v22, 0.0  ;;  %v952_v27 = vadd.f32 %v1390_v12, %v791_v23  ;;  %1064 = vst [vmem:[%s1712_s22 + $0x68] sm:$0xff] %v1032_v24  ;;  %v1287_v28 = vpop.f32.mrb[32].mxu0  ;;  %v1393_v29 = vpop.f32.mrb[32].mxu1 }
 0x13a   : > { %v1288_v30 = vpop.f32.mrb[33].mxu0  ;;  %v956_v32 = vpop.f32.mrb[33].mxu1 }
 0x13b   : > { %1065 = vst [vmem:[%s1712_s22 + $0x70] sm:$0xff] %v1033_v25  ;;  %v1034_v33 = vmax.f32 %v952_v27, 0.0  ;;  %v1289_v34 = vadd.f32 %v1288_v30, %v1287_v28  ;;  %v1290_v35 = vpop.f32.mrb[34].mxu0  ;;  %v1394_v36 = vpop.f32.mrb[34].mxu1  ;;  %v852_v27 = vadd.f32 %v1696_v50, %v1703_v56 }
 0x13c   : > { %v1291_v37 = vpop.f32.mrb[35].mxu0  ;;  %v959_v39 = vpop.f32.mrb[35].mxu1 }
 0x13d   : > { %1066 = vst [vmem:[%s1712_s22 + $0x78] sm:$0xff] %v1034_v33  ;;  %v796_v40 = vadd.f32 %v1289_v34, %v1703_v56  ;;  %v1292_v41 = vadd.f32 %v1291_v37, %v1290_v35  ;;  %v844_v33 = vadd.f32 %v1692_v38, %v1703_v56  ;;  %v855_v37 = vadd.f32 %v1698_v55, %v1703_v56 }
 0x13f   : > { %v957_v44 = vadd.f32 %v956_v32, %v796_v40  ;;  %v799_v45 = vadd.f32 %v1292_v41, %v1703_v56 }
 0x141   : > { %v1035_v46 = vmax.f32 %v957_v44, 0.0  ;;  %v960_v47 = vadd.f32 %v959_v39, %v799_v45  ;;  %v1293_v42 = vpop.f32.mrb[36].mxu0  ;;  %v1745_v48 = vpop.f32.mrb[36].mxu1  ;;  %v847_v45 = vadd.f32 %v1694_v43, %v1703_v56 }
 0x142   : > { %v1294_v49 = vpop.f32.mrb[37].mxu0  ;;  %v972_v51 = vpop.f32.mrb[37].mxu1 }
 0x143   : > { %1067 = vst [vmem:[%s1712_s22 + $0x80] sm:$0xff] %v1035_v46  ;;  %v1036_v52 = vmax.f32 %v960_v47, 0.0  ;;  %v1295_v53 = vadd.f32 %v1294_v49, %v1293_v42  ;;  %v1296_v54 = vpop.f32.mrb[38].mxu0  ;;  %v1748_v57 = vpop.f32.mrb[38].mxu1 }
 0x144   : > { %v1297_v58 = vpop.f32.mrb[39].mxu0  ;;  %v975_v59 = vpop.f32.mrb[39].mxu1 }
 0x145   : > { %1068 = vst [vmem:[%s1712_s22 + $0x88] sm:$0xff] %v1036_v52  ;;  %v804_v60 = vadd.f32 %v1295_v53, %v1703_v56  ;;  %v1298_v61 = vadd.f32 %v1297_v58, %v1296_v54 }
 0x147   : > { %v965_v62 = vadd.f32 %v1393_v29, %v804_v60  ;;  %v807_v63 = vadd.f32 %v1298_v61, %v1703_v56 }
 0x149   : > { %v1037_v1 = vmax.f32 %v965_v62, 0.0  ;;  %v968_v2 = vadd.f32 %v1394_v36, %v807_v63  ;;  %v1299_v3 = vpop.f32.mrb[40].mxu0  ;;  %v1401_v4 = vpop.f32.mrb[40].mxu1 }
 0x14a   : > { %v997_v6 = vadd.f32 %v1401_v4, %v836_v0  ;;  %v1300_v7 = vpop.f32.mrb[41].mxu0  ;;  %v988_v8 = vpop.f32.mrb[41].mxu1 }
 0x14b   : > { %1069 = vst [vmem:[%s1712_s22 + $0x90] sm:$0xff] %v1037_v1  ;;  %v1038_v10 = vmax.f32 %v968_v2, 0.0  ;;  %v1301_v11 = vadd.f32 %v1300_v7, %v1299_v3  ;;  %v989_v12 = vadd.f32 %v988_v8, %v828_v5  ;;  %v1302_v26 = vpop.f32.mrb[42].mxu0  ;;  %v1402_v13 = vpop.f32.mrb[42].mxu1 }
 0x14c   : > { %v1045_v14 = vmax.f32 %v997_v6, 0.0  ;;  %v1000_v16 = vadd.f32 %v1402_v13, %v839_v9  ;;  %v1303_v17 = vpop.f32.mrb[43].mxu0  ;;  %v991_v20 = vpop.f32.mrb[43].mxu1 }
 0x14d   : > { %1070 = vst [vmem:[%s1712_s22 + $0x98] sm:$0xff] %v1038_v10  ;;  %v812_v31 = vadd.f32 %v1301_v11, %v1703_v56  ;;  %v1043_v21 = vmax.f32 %v989_v12, 0.0  ;;  %v1304_v18 = vadd.f32 %v1303_v17, %v1302_v26  ;;  %v992_v22 = vadd.f32 %v991_v20, %v831_v15 }
 0x14e   : > { %1077 = vst [vmem:[%s1712_s22 + $0xd0] sm:$0xff] %v1045_v14  ;;  %v1046_v23 = vmax.f32 %v1000_v16, 0.0 }
 0x14f   : > { %v973_v24 = vadd.f32 %v972_v51, %v812_v31  ;;  %1075 = vst [vmem:[%s1712_s22 + $0xc0] sm:$0xff] %v1043_v21  ;;  %v815_v25 = vadd.f32 %v1304_v18, %v1703_v56  ;;  %v1044_v19 = vmax.f32 %v992_v22, 0.0 }
 0x150   : > { %1078 = vst [vmem:[%s1712_s22 + $0xd8] sm:$0xff] %v1046_v23 }
 0x151   : > { %v1039_v28 = vmax.f32 %v973_v24, 0.0  ;;  %v976_v29 = vadd.f32 %v975_v59, %v815_v25  ;;  %1076 = vst [vmem:[%s1712_s22 + $0xc8] sm:$0xff] %v1044_v19  ;;  %v1305_v30 = vpop.f32.mrb[44].mxu0  ;;  %v1405_v32 = vpop.f32.mrb[44].mxu1 }
 0x152   : > { %v1013_v34 = vadd.f32 %v1405_v32, %v852_v27  ;;  %v1306_v35 = vpop.f32.mrb[45].mxu0  ;;  %v1004_v36 = vpop.f32.mrb[45].mxu1 }
 0x153   : > { %1071 = vst [vmem:[%s1712_s22 + $0xa0] sm:$0xff] %v1039_v28  ;;  %v1040_v39 = vmax.f32 %v976_v29, 0.0  ;;  %v1307_v40 = vadd.f32 %v1306_v35, %v1305_v30  ;;  %v1005_v50 = vadd.f32 %v1004_v36, %v844_v33  ;;  %v1308_v41 = vpop.f32.mrb[46].mxu0  ;;  %v1406_v44 = vpop.f32.mrb[46].mxu1 }
 0x154   : > { %v1049_v38 = vmax.f32 %v1013_v34, 0.0  ;;  %v1016_v46 = vadd.f32 %v1406_v44, %v855_v37  ;;  %v1309_v47 = vpop.f32.mrb[47].mxu0  ;;  %v1007_v42 = vpop.f32.mrb[47].mxu1 }
 0x155   : > { %1072 = vst [vmem:[%s1712_s22 + $0xa8] sm:$0xff] %v1040_v39  ;;  %v820_v55 = vadd.f32 %v1307_v40, %v1703_v56  ;;  %v1047_v49 = vmax.f32 %v1005_v50, 0.0  ;;  %v1310_v51 = vadd.f32 %v1309_v47, %v1308_v41  ;;  %v1008_v52 = vadd.f32 %v1007_v42, %v847_v45 }
 0x156   : > { %1081 = vst [vmem:[%s1712_s22 + $0xf0] sm:$0xff] %v1049_v38  ;;  %v1050_v53 = vmax.f32 %v1016_v46, 0.0 }
 0x157   : > { %v981_v54 = vadd.f32 %v1745_v48, %v820_v55  ;;  %1079 = vst [vmem:[%s1712_s22 + $0xe0] sm:$0xff] %v1047_v49  ;;  %v823_v43 = vadd.f32 %v1310_v51, %v1703_v56  ;;  %v1048_v58 = vmax.f32 %v1008_v52, 0.0 }
 0x158   : > { %1082 = vst [vmem:[%s1712_s22 + $0xf8] sm:$0xff] %v1050_v53 }
 0x159   : > { %v1041_v59 = vmax.f32 %v981_v54, 0.0  ;;  %v984_v60 = vadd.f32 %v1748_v57, %v823_v43  ;;  %1080 = vst [vmem:[%s1712_s22 + $0xe8] sm:$0xff] %v1048_v58 }
 0x15b   : > { %1073 = vst [vmem:[%s1712_s22 + $0xb0] sm:$0xff] %v1041_v59  ;;  %v1042_v61 = vmax.f32 %v984_v60, 0.0 }
 0x15d   : > { %1074 = vst [vmem:[%s1712_s22 + $0xb8] sm:$0xff] %v1042_v61 }
 0x15e PF: > { %s13_s12 = sadd.s32 1, %s1526_s12  }
 0x15f   : > { %p10_p4 = scmp.ge.s32.totalorder %s13_s12, 6  }
 0x161   :  { %12 = sbr.rel (!%p10_p4) target bundleno = 1 (0x1), region = 62 }

// kernel: perceptual_loss.15
= control target key start
LH: loop header
LB: loop body
LE: loop exit
PB: predicated region body
PF: predicated region fallthrough
CT: control target
= control target key end

     0   :  { %s1091_s12 = smov 0   ;;  %s1093_s13 = smov 0   ;;  %s1644_s0 = inlined_call_operand.vmem [shape: f32[512,128], index: 0, kind: input, shape index: {}]   ;;  %s1645_s1 = inlined_call_operand.vmem [shape: f32[512,128], index: 1, kind: input, shape index: {}]   ;;  %s1646_s2 = inlined_call_operand.vmem [shape: f32[1,128], index: 2, kind: input, shape index: {}]   ;;  %s1647_s3 = inlined_call_operand.vmem [shape: f32[16,128], index: 3, kind: output, shape index: {}]  }
   0x1   :  { %s1095_s14 = smov 0   ;;  %s1097_s15 = smov 0  }
   0x2   :  { %s1099_s16 = smov 0  }
   0x3 LB: > { %s22_s17 = sadd.s32 1, %s1060_s14  ;;  %s25_s18 = sadd.s32 1, %s1064_s15  ;;  %s1068_s16 = sphi %s1099_s16, %s13_s16   ;;  %s1064_s15 = sphi %s1097_s15, %s1651_s15   ;;  %s1060_s14 = sphi %s1095_s14, %s1650_s14   ;;  %s1056_s13 = sphi %s1093_s13, %s1649_s13   ;;  %s1052_s12 = sphi %s1091_s12, %s1648_s12  }
   0x4   : > { %p23_p0 = scmp.ge.s32.totalorder %s22_s17, 2  ;;  %p849_p1 = scmp.ge.s32.totalorder %s1068_s16, 1 }
   0x5   : > { %p177_p2 = scmp.lt.s32.totalorder %s1068_s16, 5 }
   0x6   : > { %s1653_s17 = smov (%p23_p0, %s22_s17), 0  ;;  %s1655_s18 = smov (!%p23_p0, %s25_s18), %s1064_s15 }
   0x7   : > { %p178_p3 = pnand %p849_p1, %p177_p2  ;;  %p27_p4 = scmp.ge.s32.totalorder %s1655_s18, 2 }
   0x8   : > { %s850_s19 = sshll.u32 (!%p178_p3), %s1056_s13, 1  ;;  %p229_p5 = scmp.lt.s32.totalorder (!%p178_p3), %s1056_s13, 1 }
   0x9   : > { %s1657_s18 = smov (%p27_p4, %s1655_s18), 0  ;;  %181 = sbr.rel (%p178_p3) target bundleno = 302 (0x12e), region = 32 }
   0xa   : > { %s210_s20 = sadd.s32 (!%p178_p3), %s1052_s12, %s850_s19  ;;  %p857_p7 = scmp.ne.s32.totalorder (!%p178_p3), %s1052_s12, 0 }
   0xb   : > { %s851_s21 = sshll.u32 (!%p178_p3), %s210_s20, 4 }
   0xc   : > { %p212_p6 = scmp.lt.s32.totalorder (!%p178_p3), %s851_s21, 63 }
  0x10   : > { %s1659_s13 = smov (!%p229_p5, %s1056_s13), 1  ;;  %s1661_s21 = smov (!%p212_p6, %s851_s21), 63 }
  0x11   : > { %s856_s22 = sshll.u32 %s1659_s13, 3  ;;  %s852_s23 = sshll.u32 %s1661_s21, 3  ;;  %v1070_v0 = vmov (!%p857_p7), 0.0  }
  0x12   : > { %s1124_s26 = scalar_lea.vmem %s1647_s3, %s856_s22  ;;  %s1129_s29 = scalar_lea.vmem %s1644_s0, %s852_s23 }
  0x13   : > { %s1134_s5 = scalar_lea.vmem %s1645_s1, %s852_s23  ;;  %236 = sbr.rel (%p857_p7) target bundleno = 26 (0x1a), region = 36  ;;  %237 = vst [vmem:[%s1124_s26] sm:$0xff] (!%p857_p7), %v1070_v0 }
  0x1a PF: > { %v1138_v1 = vld [vmem:[%s1134_s5] sm:$0xff]  ;;  %v1144_v3 = vld [vmem:[%s1134_s5 + $0x8] sm:$0xff]  ;;  %v1158_v9 = vld [vmem:[%s1134_s5 + $0x10] sm:$0xff] }
  0x1b   : > { %v1141_v2 = vld [vmem:[%s1129_s29] sm:$0xff]  ;;  %v462_v4 = vmul.f32 %v1138_v1, %v1138_v1  ;;  %v1151_v6 = vld [vmem:[%s1129_s29 + $0x8] sm:$0xff]  ;;  %v463_v7 = vmul.f32 %v1144_v3, %v1144_v3  ;;  %v1161_v10 = vld [vmem:[%s1129_s29 + $0x10] sm:$0xff]  ;;  %v464_v11 = vmul.f32 %v1158_v9, %v1158_v9 }
  0x1c   : > { %v270_v5 = vmul.f32 %v1141_v2, %v1141_v2  ;;  %v271_v8 = vmul.f32 %v1151_v6, %v1151_v6  ;;  %v272_v12 = vmul.f32 %v1161_v10, %v1161_v10  ;;  %v1168_v13 = vld [vmem:[%s1134_s5 + $0x18] sm:$0xff]  ;;  %v1178_v17 = vld [vmem:[%s1134_s5 + $0x20] sm:$0xff]  ;;  %v1188_v21 = vld [vmem:[%s1134_s5 + $0x28] sm:$0xff] }
  0x1d   : > { %478 = vadd.xlane.f32.xlu1 %v462_v4  ;;  %v1171_v14 = vld [vmem:[%s1129_s29 + $0x18] sm:$0xff]  ;;  %v465_v15 = vmul.f32 %v1168_v13, %v1168_v13  ;;  %v1181_v18 = vld [vmem:[%s1129_s29 + $0x20] sm:$0xff]  ;;  %v466_v19 = vmul.f32 %v1178_v17, %v1178_v17  ;;  %v1191_v22 = vld [vmem:[%s1129_s29 + $0x28] sm:$0xff]  ;;  %v467_v23 = vmul.f32 %v1188_v21, %v1188_v21 }
  0x1e   : > { %286 = vadd.xlane.f32.xlu0 %v270_v5  ;;  %v273_v16 = vmul.f32 %v1171_v14, %v1171_v14  ;;  %v274_v20 = vmul.f32 %v1181_v18, %v1181_v18  ;;  %v275_v24 = vmul.f32 %v1191_v22, %v1191_v22  ;;  %v1198_v25 = vld [vmem:[%s1134_s5 + $0x30] sm:$0xff]  ;;  %v1208_v29 = vld [vmem:[%s1134_s5 + $0x38] sm:$0xff]  ;;  %v1218_v33 = vld [vmem:[%s1134_s5 + $0x40] sm:$0xff] }
  0x1f   : > { %v1201_v26 = vld [vmem:[%s1129_s29 + $0x30] sm:$0xff]  ;;  %v468_v27 = vmul.f32 %v1198_v25, %v1198_v25  ;;  %v1211_v30 = vld [vmem:[%s1129_s29 + $0x38] sm:$0xff]  ;;  %v469_v31 = vmul.f32 %v1208_v29, %v1208_v29  ;;  %v1221_v34 = vld [vmem:[%s1129_s29 + $0x40] sm:$0xff]  ;;  %v470_v35 = vmul.f32 %v1218_v33, %v1218_v33 }
  0x20   : > { %v276_v28 = vmul.f32 %v1201_v26, %v1201_v26  ;;  %v277_v32 = vmul.f32 %v1211_v30, %v1211_v30  ;;  %v278_v36 = vmul.f32 %v1221_v34, %v1221_v34  ;;  %v1228_v37 = vld [vmem:[%s1134_s5 + $0x48] sm:$0xff]  ;;  %v1238_v41 = vld [vmem:[%s1134_s5 + $0x50] sm:$0xff]  ;;  %v1248_v45 = vld [vmem:[%s1134_s5 + $0x58] sm:$0xff] }
  0x21   : > { %480 = vadd.xlane.f32.xlu1 %v463_v7  ;;  %v1231_v38 = vld [vmem:[%s1129_s29 + $0x48] sm:$0xff]  ;;  %v471_v39 = vmul.f32 %v1228_v37, %v1228_v37  ;;  %v1241_v42 = vld [vmem:[%s1129_s29 + $0x50] sm:$0xff]  ;;  %v472_v43 = vmul.f32 %v1238_v41, %v1238_v41  ;;  %v1251_v46 = vld [vmem:[%s1129_s29 + $0x58] sm:$0xff]  ;;  %v473_v47 = vmul.f32 %v1248_v45, %v1248_v45 }
  0x22   : > { %288 = vadd.xlane.f32.xlu0 %v271_v8  ;;  %v279_v40 = vmul.f32 %v1231_v38, %v1231_v38  ;;  %v280_v44 = vmul.f32 %v1241_v42, %v1241_v42  ;;  %v281_v48 = vmul.f32 %v1251_v46, %v1251_v46  ;;  %v1258_v49 = vld [vmem:[%s1134_s5 + $0x60] sm:$0xff]  ;;  %v1268_v53 = vld [vmem:[%s1134_s5 + $0x68] sm:$0xff]  ;;  %v1278_v57 = vld [vmem:[%s1134_s5 + $0x70] sm:$0xff] }
  0x23   : > { %v1261_v50 = vld [vmem:[%s1129_s29 + $0x60] sm:$0xff]  ;;  %v474_v51 = vmul.f32 %v1258_v49, %v1258_v49  ;;  %v1271_v54 = vld [vmem:[%s1129_s29 + $0x68] sm:$0xff]  ;;  %v475_v55 = vmul.f32 %v1268_v53, %v1268_v53  ;;  %v1281_v58 = vld [vmem:[%s1129_s29 + $0x70] sm:$0xff]  ;;  %v476_v59 = vmul.f32 %v1278_v57, %v1278_v57 }
  0x24   : > { %v282_v52 = vmul.f32 %v1261_v50, %v1261_v50  ;;  %v283_v56 = vmul.f32 %v1271_v54, %v1271_v54  ;;  %v284_v60 = vmul.f32 %v1281_v58, %v1281_v58  ;;  %v1288_v61 = vld [vmem:[%s1134_s5 + $0x78] sm:$0xff] }
  0x25   : > { %482 = vadd.xlane.f32.xlu1 %v464_v11  ;;  %v1291_v62 = vld [vmem:[%s1129_s29 + $0x78] sm:$0xff]  ;;  %v477_v63 = vmul.f32 %v1288_v61, %v1288_v61 }
  0x26   : > { %290 = vadd.xlane.f32.xlu0 %v272_v12  ;;  %v285_v0 = vmul.f32 %v1291_v62, %v1291_v62 }
  0x29   : > { %484 = vadd.xlane.f32.xlu1 %v465_v15 }
  0x2a   : > { %292 = vadd.xlane.f32.xlu0 %v273_v16 }
  0x2d   : > { %486 = vadd.xlane.f32.xlu1 %v466_v19 }
  0x2e   : > { %294 = vadd.xlane.f32.xlu0 %v274_v20 }
  0x31   : > { %488 = vadd.xlane.f32.xlu1 %v467_v23 }
  0x32   : > { %296 = vadd.xlane.f32.xlu0 %v275_v24 }
  0x35   : > { %490 = vadd.xlane.f32.xlu1 %v468_v27 }
  0x36   : > { %298 = vadd.xlane.f32.xlu0 %v276_v28 }
  0x39   : > { %492 = vadd.xlane.f32.xlu1 %v469_v31 }
  0x3a   : > { %300 = vadd.xlane.f32.xlu0 %v277_v32 }
  0x3d   : > { %494 = vadd.xlane.f32.xlu1 %v470_v35 }
  0x3e   : > { %302 = vadd.xlane.f32.xlu0 %v278_v36 }
  0x41   : > { %496 = vadd.xlane.f32.xlu1 %v471_v39 }
  0x42   : > { %304 = vadd.xlane.f32.xlu0 %v279_v40 }
  0x45   : > { %498 = vadd.xlane.f32.xlu1 %v472_v43 }
  0x46   : > { %306 = vadd.xlane.f32.xlu0 %v280_v44 }
  0x49   : > { %500 = vadd.xlane.f32.xlu1 %v473_v47 }
  0x4a   : > { %308 = vadd.xlane.f32.xlu0 %v281_v48 }
  0x4d   : > { %502 = vadd.xlane.f32.xlu1 %v474_v51 }
  0x4e   : > { %310 = vadd.xlane.f32.xlu0 %v282_v52 }
  0x51   : > { %504 = vadd.xlane.f32.xlu1 %v475_v55 }
  0x52   : > { %312 = vadd.xlane.f32.xlu0 %v283_v56 }
  0x55   : > { %506 = vadd.xlane.f32.xlu1 %v476_v59 }
  0x56   : > { %314 = vadd.xlane.f32.xlu0 %v284_v60 }
  0x59   : > { %508 = vadd.xlane.f32.xlu1 %v477_v63 }
  0x5a   : > { %316 = vadd.xlane.f32.xlu0 %v285_v0 }
  0xaa   : > { %v479_v4 = vpop.xlane.xlu1 %478 }
  0xab   : > { %v287_v5 = vpop.xlane.xlu0 %286  ;;  %902 = vrsqrt.f32 %v479_v4  ;;  %vm512_vm0 = vcmp.eq.f32.partialorder %v479_v4, inf  ;;  %vm514_vm1 = vcmp.eq.f32.partialorder %v479_v4, 0.0  ;;  %v515_v20 = vand.u32 2147483648, %v479_v4 }
  0xac   : > { %904 = vrsqrt.f32 %v287_v5  ;;  %vm320_vm2 = vcmp.eq.f32.partialorder %v287_v5, inf  ;;  %vm322_vm3 = vcmp.eq.f32.partialorder %v287_v5, 0.0  ;;  %v323_v31 = vand.u32 2147483648, %v287_v5 }
  0xae   : > { %v481_v7 = vpop.xlane.xlu1 %480 }
  0xaf   : > { %v289_v8 = vpop.xlane.xlu0 %288  ;;  %906 = vrsqrt.f32 %v481_v7  ;;  %vm519_vm4 = vcmp.eq.f32.partialorder %v481_v7, inf  ;;  %vm521_vm5 = vcmp.eq.f32.partialorder %v481_v7, 0.0  ;;  %v522_v39 = vand.u32 2147483648, %v481_v7 }
  0xb0   : > { %908 = vrsqrt.f32 %v289_v8  ;;  %vm327_vm6 = vcmp.eq.f32.partialorder %v289_v8, inf  ;;  %vm329_vm7 = vcmp.eq.f32.partialorder %v289_v8, 0.0  ;;  %v330_v59 = vand.u32 2147483648, %v289_v8 }
  0xb2   : > { %v1297_v11 = vpop.xlane.xlu1 %482 }
  0xb3   : > { %v1299_v12 = vpop.xlane.xlu0 %290  ;;  %910 = vrsqrt.f32 %v1297_v11  ;;  %vm526_vm8 = vcmp.eq.f32.partialorder %v1297_v11, inf  ;;  %vm528_vm9 = vcmp.eq.f32.partialorder %v1297_v11, 0.0 }
  0xb4   : > { %912 = vrsqrt.f32 %v1299_v12  ;;  %vm334_vm10 = vcmp.eq.f32.partialorder %v1299_v12, inf  ;;  %vm336_vm11 = vcmp.eq.f32.partialorder %v1299_v12, 0.0 }
  0xb5   : > { %v903_v15 = vpop.eup %902 }
  0xb6   : > { %v905_v16 = vpop.eup %904  ;;  %v511_v19 = vmul.f32 %v903_v15, %v479_v4  ;;  %v1303_v23 = vpop.xlane.xlu1 %484 }
  0xb7   : > { %v1305_v24 = vpop.xlane.xlu0 %292  ;;  %v319_v27 = vmul.f32 %v905_v16, %v287_v5  ;;  %914 = vrsqrt.f32 %v1303_v23  ;;  %vm533_vm12 = vcmp.eq.f32.partialorder %v1303_v23, inf  ;;  %vm535_vm13 = vcmp.eq.f32.partialorder %v1303_v23, 0.0 }
  0xb8   : > { %v513_v28 = vsel %vm512_vm0, %v479_v4, %v511_v19  ;;  %916 = vrsqrt.f32 %v1305_v24  ;;  %v529_v4 = vand.u32 2147483648, %v1297_v11  ;;  %vm341_vm14 = vcmp.eq.f32.partialorder %v1305_v24, inf }
  0xb9   : > { %v907_v32 = vpop.eup %906  ;;  %v516_v35 = vsel %vm514_vm1, %v515_v20, %v513_v28  ;;  %v321_v36 = vsel %vm320_vm2, %v287_v5, %v319_v27  ;;  %vm343_vm15 = vcmp.eq.f32.partialorder %v1305_v24, 0.0 }
  0xba   : > { %v909_v40 = vpop.eup %908  ;;  %v622_v43 = vadd.f32 1e-10, %v516_v35  ;;  %v324_v44 = vsel %vm322_vm3, %v323_v31, %v321_v36  ;;  %v518_v47 = vmul.f32 %v907_v32, %v481_v7  ;;  %v1309_v48 = vpop.xlane.xlu1 %486  ;;  %v337_v31 = vand.u32 2147483648, %v1299_v12 }
  0xbb   : > { %v1311_v51 = vpop.xlane.xlu0 %294  ;;  %v430_v52 = vadd.f32 1e-10, %v324_v44  ;;  %v326_v55 = vmul.f32 %v909_v40, %v289_v8  ;;  %918 = vrsqrt.f32 %v1309_v48  ;;  %vm540_vm0 = vcmp.eq.f32.partialorder %v1309_v48, inf }
  0xbc   : > { %v520_v56 = vsel %vm519_vm4, %v481_v7, %v518_v47  ;;  %920 = vrcp.f32 %v622_v43  ;;  %vm542_vm1 = vcmp.eq.f32.partialorder %v1309_v48, 0.0  ;;  %vm348_vm2 = vcmp.eq.f32.partialorder %v1311_v51, inf }
  0xbd   : > { %v911_v60 = vpop.eup %910  ;;  %v523_v63 = vsel %vm521_vm5, %v522_v39, %v520_v56  ;;  %v328_v0 = vsel %vm327_vm6, %v289_v8, %v326_v55  ;;  %922 = vrsqrt.f32 %v1311_v51  ;;  %v536_v55 = vand.u32 2147483648, %v1303_v23 }
  0xbe   : > { %v913_v5 = vpop.eup %912  ;;  %v623_v15 = vadd.f32 1e-10, %v523_v63  ;;  %v331_v16 = vsel %vm329_vm7, %v330_v59, %v328_v0  ;;  %v525_v19 = vmul.f32 %v911_v60, %v1297_v11  ;;  %v1321_v20 = vpop.xlane.xlu1 %488  ;;  %924 = vrcp.f32 %v430_v52 }
  0xbf   : > { %v431_v27 = vadd.f32 1e-10, %v331_v16  ;;  %v333_v28 = vmul.f32 %v913_v5, %v1299_v12  ;;  %v1325_v7 = vpop.xlane.xlu0 %296  ;;  %vm350_vm3 = vcmp.eq.f32.partialorder %v1311_v51, 0.0  ;;  %vm547_vm4 = vcmp.eq.f32.partialorder %v1321_v20, inf }
  0xc0   : > { %926 = vrcp.f32 %v623_v15  ;;  %v527_v8 = vsel %vm526_vm8, %v1297_v11, %v525_v19  ;;  %v543_v19 = vand.u32 2147483648, %v1309_v48  ;;  %vm549_vm5 = vcmp.eq.f32.partialorder %v1321_v20, 0.0 }
  0xc1   : > { %v915_v32 = vpop.eup %914  ;;  %928 = vrcp.f32 %v431_v27  ;;  %v530_v35 = vsel %vm528_vm9, %v529_v4, %v527_v8  ;;  %v335_v36 = vsel %vm334_vm10, %v1299_v12, %v333_v28  ;;  %v344_v12 = vand.u32 2147483648, %v1305_v24 }
  0xc2   : > { %v917_v39 = vpop.eup %916  ;;  %v624_v40 = vadd.f32 1e-10, %v530_v35  ;;  %v338_v43 = vsel %vm336_vm11, %v337_v31, %v335_v36  ;;  %v532_v44 = vmul.f32 %v915_v32, %v1303_v23  ;;  %930 = vrsqrt.f32 %v1321_v20  ;;  %v1338_v47 = vpop.xlane.xlu1 %490 }
  0xc3   : > { %v432_v52 = vadd.f32 1e-10, %v338_v43  ;;  %v340_v56 = vmul.f32 %v917_v39, %v1305_v24  ;;  %932 = vrsqrt.f32 %v1325_v7  ;;  %v1349_v0 = vpop.xlane.xlu0 %298  ;;  %v351_v36 = vand.u32 2147483648, %v1311_v51 }
  0xc4   : > { %v534_v11 = vsel %vm533_vm12, %v1303_v23, %v532_v44  ;;  %934 = vrcp.f32 %v624_v40  ;;  %vm355_vm6 = vcmp.eq.f32.partialorder %v1325_v7, inf  ;;  %vm357_vm7 = vcmp.eq.f32.partialorder %v1325_v7, 0.0 }
  0xc5   : > { %v919_v59 = vpop.eup %918  ;;  %v537_v60 = vsel %vm535_vm13, %v536_v55, %v534_v11  ;;  %v342_v63 = vsel %vm341_vm14, %v1305_v24, %v340_v56  ;;  %936 = vrsqrt.f32 %v1338_v47  ;;  %vm554_vm8 = vcmp.eq.f32.partialorder %v1338_v47, inf }
  0xc6   : > { %v625_v4 = vadd.f32 1e-10, %v537_v60  ;;  %v345_v5 = vsel %vm343_vm15, %v344_v12, %v342_v63  ;;  %v539_v15 = vmul.f32 %v919_v59, %v1309_v48  ;;  %v921_v23 = vpop.eup %920  ;;  %938 = vrcp.f32 %v432_v52  ;;  %v1357_v24 = vpop.xlane.xlu1 %492 }
  0xc7   : > { %v433_v16 = vadd.f32 1e-10, %v345_v5  ;;  %v923_v27 = vpop.eup %922  ;;  %v550_v12 = vand.u32 2147483648, %v1321_v20  ;;  %v670_v60 = vmul.f32 %v921_v23, %v1138_v1  ;;  %vm556_vm9 = vcmp.eq.f32.partialorder %v1338_v47, 0.0 }
  0xc8   : > { %940 = vrcp.f32 %v625_v4  ;;  %v541_v28 = vsel %vm540_vm0, %v1309_v48, %v539_v15  ;;  %v925_v8 = vpop.eup %924  ;;  %v347_v32 = vmul.f32 %v923_v27, %v1311_v51  ;;  %v1366_v48 = vpop.xlane.xlu0 %300  ;;  %vm362_vm10 = vcmp.eq.f32.partialorder %v1349_v0, inf }
  0xc9   : > { %942 = vrcp.f32 %v433_v16  ;;  %v544_v31 = vsel %vm542_vm1, %v543_v19, %v541_v28  ;;  %v654_v63 = vmul.f32 %v925_v8, %v1141_v2  ;;  %v358_v2 = vand.u32 2147483648, %v1325_v7 }
  0xca   : > { %v927_v35 = vpop.eup %926  ;;  %944 = vrsqrt.f32 %v1349_v0  ;;  %v349_v40 = vsel %vm348_vm2, %v1311_v51, %v347_v32  ;;  %v626_v44 = vadd.f32 1e-10, %v544_v31  ;;  %v1378_v5 = vpop.xlane.xlu1 %494  ;;  %vm364_vm11 = vcmp.eq.f32.partialorder %v1349_v0, 0.0 }
  0xcb   : > { %v929_v39 = vpop.eup %928  ;;  %946 = vrsqrt.f32 %v1357_v24  ;;  %v352_v52 = vsel %vm350_vm3, %v351_v36, %v349_v40  ;;  %v671_v16 = vmul.f32 %v927_v35, %v1144_v3  ;;  %v557_v3 = vand.u32 2147483648, %v1338_v47 }
  0xcc   : > { %v931_v43 = vpop.eup %930  ;;  %v434_v56 = vadd.f32 1e-10, %v352_v52  ;;  %948 = vrsqrt.f32 %v1366_v48  ;;  %v655_v19 = vmul.f32 %v929_v39, %v1151_v6  ;;  %v1387_v8 = vpop.xlane.xlu0 %302  ;;  %v686_v32 = vsub.f32 %v654_v63, %v670_v60 }
  0xcd   : > { %v933_v55 = vpop.eup %932  ;;  %v546_v11 = vmul.f32 %v931_v43, %v1321_v20  ;;  %950 = vrcp.f32 %v626_v44  ;;  %vm561_vm12 = vcmp.eq.f32.partialorder %v1357_v24, inf  ;;  %vm369_vm13 = vcmp.eq.f32.partialorder %v1366_v48, inf }
  0xce   : > { %v354_v59 = vmul.f32 %v933_v55, %v1325_v7  ;;  %v935_v51 = vpop.eup %934  ;;  %952 = vrcp.f32 %v434_v56  ;;  %v687_v39 = vsub.f32 %v655_v19, %v671_v16  ;;  %vm563_vm14 = vcmp.eq.f32.partialorder %v1357_v24, 0.0 }
  0xcf   : > { %v548_v4 = vsel %vm547_vm4, %v1321_v20, %v546_v11  ;;  %v937_v15 = vpop.eup %936  ;;  %v672_v40 = vmul.f32 %v935_v51, %v1158_v9  ;;  %954 = vrsqrt.f32 %v1378_v5  ;;  %v1401_v11 = vpop.xlane.xlu1 %496  ;;  %v365_v9 = vand.u32 2147483648, %v1349_v0 }
  0xd0   : > { %v356_v27 = vsel %vm355_vm6, %v1325_v7, %v354_v59  ;;  %v939_v28 = vpop.eup %938  ;;  %v551_v1 = vsel %vm549_vm5, %v550_v12, %v548_v4  ;;  %v553_v23 = vmul.f32 %v937_v15, %v1338_v47  ;;  %956 = vrsqrt.f32 %v1387_v8 }
  0xd1   : > { %v359_v35 = vsel %vm357_vm7, %v358_v2, %v356_v27  ;;  %v656_v43 = vmul.f32 %v939_v28, %v1161_v10  ;;  %v627_v7 = vadd.f32 1e-10, %v551_v1  ;;  %v703_v60 = vmul.f32 %v687_v39, %v687_v39 }
  0xd2   : > { %v941_v31 = vpop.eup %940  ;;  %v555_v20 = vsel %vm554_vm8, %v1338_v47, %v553_v23  ;;  %v435_v12 = vadd.f32 1e-10, %v359_v35  ;;  %v702_v28 = vmul.f32 %v686_v32, %v686_v32  ;;  %vm371_vm15 = vcmp.eq.f32.partialorder %v1366_v48, 0.0 }
  0xd3   : > { %v943_v6 = vpop.eup %942  ;;  %v673_v52 = vmul.f32 %v941_v31, %v1168_v13  ;;  %v558_v59 = vsel %vm556_vm9, %v557_v3, %v555_v20  ;;  %v688_v47 = vsub.f32 %v656_v43, %v672_v40  ;;  %958 = vrcp.f32 %v627_v7  ;;  %v1422_v3 = vpop.xlane.xlu1 %498 }
  0xd4   : > { %v945_v36 = vpop.eup %944  ;;  %v657_v55 = vmul.f32 %v943_v6, %v1171_v14  ;;  %v1413_v14 = vpop.xlane.xlu0 %304  ;;  %v628_v15 = vadd.f32 1e-10, %v558_v59  ;;  %960 = vrcp.f32 %v435_v12  ;;  %v372_v31 = vand.u32 2147483648, %v1366_v48  ;;  %v1427_v6 = vld [vmem:[%s1646_s2] ss:$0 sm:$0xff] }
  0xd5   : > { %v947_v44 = vpop.eup %946  ;;  %v361_v56 = vmul.f32 %v945_v36, %v1349_v0  ;;  %v704_v32 = vmul.f32 %v688_v47, %v688_v47  ;;  %962 = vrsqrt.f32 %v1401_v11  ;;  %v726_v20 = vmul.f32 %v1427_v6, %v703_v60 }
  0xd6   : > { %v560_v10 = vmul.f32 %v947_v44, %v1357_v24  ;;  %v949_v51 = vpop.eup %948  ;;  %v689_v4 = vsub.f32 %v657_v55, %v673_v52  ;;  %964 = vrcp.f32 %v628_v15  ;;  %v725_v44 = vmul.f32 %v1427_v6, %v702_v28 }
  0xd7   : > { %v363_v13 = vsel %vm362_vm10, %v1349_v0, %v361_v56  ;;  %v368_v19 = vmul.f32 %v949_v51, %v1366_v48  ;;  %v951_v27 = vpop.eup %950  ;;  %v564_v0 = vand.u32 2147483648, %v1357_v24  ;;  %966 = vrsqrt.f32 %v1413_v14 }
  0xd8   : > { %v366_v63 = vsel %vm364_vm11, %v365_v9, %v363_v13  ;;  %v562_v16 = vsel %vm561_vm12, %v1357_v24, %v560_v10  ;;  %v953_v1 = vpop.eup %952  ;;  %v705_v24 = vmul.f32 %v689_v4, %v689_v4  ;;  %v1432_v39 = vpop.xlane.xlu0 %306  ;;  %v674_v40 = vmul.f32 %v951_v27, %v1178_v17 }
  0xd9   : > { %v436_v2 = vadd.f32 1e-10, %v366_v63  ;;  %v370_v23 = vsel %vm369_vm13, %v1366_v48, %v368_v19  ;;  %v565_v35 = vsel %vm563_vm14, %v564_v0, %v562_v16  ;;  %v658_v43 = vmul.f32 %v953_v1, %v1181_v18  ;;  %v955_v7 = vpop.eup %954  ;;  %v1445_v9 = vpop.xlane.xlu1 %500 }
  0xda   : > { %v373_v36 = vsel %vm371_vm15, %v372_v31, %v370_v23  ;;  %v629_v48 = vadd.f32 1e-10, %v565_v35  ;;  %vm568_vm0 = vcmp.eq.f32.partialorder %v1378_v5, inf  ;;  %v727_v52 = vmul.f32 %v1427_v6, %v704_v32  ;;  %v957_v12 = vpop.eup %956 }
  0xdb   : > { %968 = vrcp.f32 %v436_v2  ;;  %v437_v55 = vadd.f32 1e-10, %v373_v36  ;;  %v567_v56 = vmul.f32 %v955_v7, %v1378_v5  ;;  %v741_v17 = vadd.f32 %v726_v20, %v725_v44 }
  0xdc   : > { %970 = vrsqrt.f32 %v1422_v3  ;;  %v728_v18 = vmul.f32 %v1427_v6, %v705_v24  ;;  %vm570_vm1 = vcmp.eq.f32.partialorder %v1378_v5, 0.0  ;;  %v571_v59 = vand.u32 2147483648, %v1378_v5  ;;  %v1452_v4 = vpop.xlane.xlu0 %308 }
  0xdd   : > { %v959_v10 = vpop.eup %958  ;;  %v690_v13 = vsub.f32 %v658_v43, %v674_v40  ;;  %v569_v51 = vsel %vm568_vm0, %v1378_v5, %v567_v56  ;;  %v375_v60 = vmul.f32 %v957_v12, %v1387_v8  ;;  %972 = vrsqrt.f32 %v1432_v39  ;;  %v1463_v20 = vpop.xlane.xlu1 %502 }
  0xde   : > { %974 = vrcp.f32 %v629_v48  ;;  %v572_v47 = vsel %vm570_vm1, %v571_v59, %v569_v51  ;;  %vm376_vm2 = vcmp.eq.f32.partialorder %v1387_v8, inf  ;;  %v379_v63 = vand.u32 2147483648, %v1387_v8  ;;  %v961_v15 = vpop.eup %960 }
  0xdf   : > { %v742_v16 = vadd.f32 %v741_v17, %v727_v52  ;;  %976 = vrcp.f32 %v437_v55  ;;  %v377_v19 = vsel %vm376_vm2, %v1387_v8, %v375_v60  ;;  %vm378_vm3 = vcmp.eq.f32.partialorder %v1387_v8, 0.0  ;;  %v963_v28 = vpop.eup %962 }
  0xe0   : > { %v630_v5 = vadd.f32 1e-10, %v572_v47  ;;  %v380_v27 = vsel %vm378_vm3, %v379_v63, %v377_v19  ;;  %978 = vrsqrt.f32 %v1445_v9  ;;  %v706_v1 = vmul.f32 %v690_v13, %v690_v13  ;;  %v965_v23 = vpop.eup %964  ;;  %v1472_v40 = vpop.xlane.xlu0 %310 }
  0xe1   : > { %v1457_v0 = vadd.f32 %v742_v16, %v728_v18  ;;  %v675_v2 = vmul.f32 %v959_v10, %v1188_v21  ;;  %v659_v31 = vmul.f32 %v961_v15, %v1191_v22  ;;  %v438_v32 = vadd.f32 1e-10, %v380_v27  ;;  %v967_v8 = vpop.eup %966  ;;  %v1487_v47 = vpop.xlane.xlu1 %504 }
  0xe2   : > { %v574_v35 = vmul.f32 %v963_v28, %v1401_v11  ;;  %980 = vrsqrt.f32 %v1452_v4  ;;  %vm575_vm4 = vcmp.eq.f32.partialorder %v1401_v11, inf  ;;  %vm577_vm5 = vcmp.eq.f32.partialorder %v1401_v11, 0.0 }
  0xe3   : > { %v578_v24 = vand.u32 2147483648, %v1401_v11  ;;  %vm383_vm6 = vcmp.eq.f32.partialorder %v1413_v14, inf  ;;  %982 = vrcp.f32 %v630_v5  ;;  %v382_v36 = vmul.f32 %v967_v8, %v1413_v14 }
  0xe4   : > { %v576_v22 = vsel %vm575_vm4, %v1401_v11, %v574_v35  ;;  %vm385_vm7 = vcmp.eq.f32.partialorder %v1413_v14, 0.0  ;;  %v1475_v7 = vmul.f32 %v1427_v6, %v706_v1  ;;  %v386_v48 = vand.u32 2147483648, %v1413_v14  ;;  %v1495_v19 = vpop.xlane.xlu0 %312 }
  0xe5   : > { %v969_v21 = vpop.eup %968  ;;  %v579_v44 = vsel %vm577_vm5, %v578_v24, %v576_v22  ;;  %984 = vrsqrt.f32 %v1463_v20  ;;  %v691_v52 = vsub.f32 %v659_v31, %v675_v2  ;;  %v384_v55 = vsel %vm383_vm6, %v1413_v14, %v382_v36 }
  0xe6   : > { %v971_v43 = vpop.eup %970  ;;  %986 = vrcp.f32 %v438_v32  ;;  %v676_v12 = vmul.f32 %v965_v23, %v1198_v25  ;;  %v660_v17 = vmul.f32 %v969_v21, %v1201_v26  ;;  %v387_v18 = vsel %vm385_vm7, %v386_v48, %v384_v55  ;;  %v1507_v21 = vpop.xlane.xlu1 %506 }
  0xe7   : > { %v581_v11 = vmul.f32 %v971_v43, %v1422_v3  ;;  %v973_v56 = vpop.eup %972  ;;  %vm582_vm8 = vcmp.eq.f32.partialorder %v1422_v3, inf  ;;  %v631_v10 = vadd.f32 1e-10, %v579_v44  ;;  %v585_v51 = vand.u32 2147483648, %v1422_v3 }
  0xe8   : > { %v975_v59 = vpop.eup %974  ;;  %v389_v60 = vmul.f32 %v973_v56, %v1432_v39  ;;  %v439_v63 = vadd.f32 1e-10, %v387_v18  ;;  %vm584_vm9 = vcmp.eq.f32.partialorder %v1422_v3, 0.0  ;;  %vm390_vm10 = vcmp.eq.f32.partialorder %v1432_v39, inf }
  0xe9   : > { %v583_v13 = vsel %vm582_vm8, %v1422_v3, %v581_v11  ;;  %v977_v14 = vpop.eup %976  ;;  %vm392_vm11 = vcmp.eq.f32.partialorder %v1432_v39, 0.0  ;;  %v393_v16 = vand.u32 2147483648, %v1432_v39  ;;  %vm589_vm12 = vcmp.eq.f32.partialorder %v1445_v9, inf }
  0xea   : > { %v979_v25 = vpop.eup %978  ;;  %v586_v26 = vsel %vm584_vm9, %v585_v51, %v583_v13  ;;  %v391_v15 = vsel %vm390_vm10, %v1432_v39, %v389_v60  ;;  %v692_v5 = vsub.f32 %v660_v17, %v676_v12  ;;  %v592_v28 = vand.u32 2147483648, %v1445_v9 }
  0xeb   : > { %v588_v27 = vmul.f32 %v979_v25, %v1445_v9  ;;  %988 = vrsqrt.f32 %v1472_v40  ;;  %v677_v1 = vmul.f32 %v975_v59, %v1208_v29  ;;  %v661_v2 = vmul.f32 %v977_v14, %v1211_v30 }
  0xec   : > { %v981_v3 = vpop.eup %980  ;;  %990 = vrcp.f32 %v631_v10  ;;  %v394_v23 = vsel %vm392_vm11, %v393_v16, %v391_v15  ;;  %v632_v39 = vadd.f32 1e-10, %v586_v26  ;;  %v707_v8 = vmul.f32 %v691_v52, %v691_v52  ;;  %v1523_v10 = vpop.xlane.xlu1 %508 }
  0xed   : > { %992 = vrcp.f32 %v439_v63  ;;  %v590_v31 = vsel %vm589_vm12, %v1445_v9, %v588_v27  ;;  %v396_v32 = vmul.f32 %v981_v3, %v1452_v4  ;;  %v983_v35 = vpop.eup %982  ;;  %vm591_vm13 = vcmp.eq.f32.partialorder %v1445_v9, 0.0  ;;  %v1514_v9 = vpop.xlane.xlu0 %314 }
  0xee   : > { %vm397_vm14 = vcmp.eq.f32.partialorder %v1452_v4, inf  ;;  %v400_v24 = vand.u32 2147483648, %v1452_v4  ;;  %v440_v30 = vadd.f32 1e-10, %v394_v23  ;;  %v593_v22 = vsel %vm591_vm13, %v592_v28, %v590_v31 }
  0xef   : > { %v985_v29 = vpop.eup %984  ;;  %v398_v36 = vsel %vm397_vm14, %v1452_v4, %v396_v32  ;;  %994 = vrsqrt.f32 %v1487_v47  ;;  %v708_v44 = vmul.f32 %v692_v5, %v692_v5  ;;  %vm399_vm15 = vcmp.eq.f32.partialorder %v1452_v4, 0.0 }
  0xf0   : > { %v987_v43 = vpop.eup %986  ;;  %v595_v48 = vmul.f32 %v985_v29, %v1463_v20  ;;  %vm596_vm0 = vcmp.eq.f32.partialorder %v1463_v20, inf  ;;  %v693_v52 = vsub.f32 %v661_v2, %v677_v1  ;;  %996 = vrcp.f32 %v632_v39 }
  0xf1   : > { %v401_v55 = vsel %vm399_vm15, %v400_v24, %v398_v36  ;;  %v599_v11 = vand.u32 2147483648, %v1463_v20  ;;  %v633_v56 = vadd.f32 1e-10, %v593_v22  ;;  %vm598_vm1 = vcmp.eq.f32.partialorder %v1463_v20, 0.0  ;;  %v1539_v25 = vpop.xlane.xlu0 %316 }
  0xf2   : > { %v597_v12 = vsel %vm596_vm0, %v1463_v20, %v595_v48  ;;  %998 = vrsqrt.f32 %v1495_v19  ;;  %v678_v4 = vmul.f32 %v983_v35, %v1218_v33  ;;  %v662_v17 = vmul.f32 %v987_v43, %v1221_v34 }
  0xf3   : > { %1000 = vrcp.f32 %v440_v30  ;;  %v600_v18 = vsel %vm598_vm1, %v599_v11, %v597_v12  ;;  %v441_v59 = vadd.f32 1e-10, %v401_v55  ;;  %v1527_v51 = vadd.f32 %v1457_v0, %v1475_v7 }
  0xf4   : > { %1002 = vrsqrt.f32 %v1507_v21  ;;  %v1530_v20 = vmul.f32 %v1427_v6, %v707_v8  ;;  %v1533_v60 = vmul.f32 %v1427_v6, %v708_v44  ;;  %v1536_v34 = vmul.f32 %v693_v52, %v693_v52 }
  0xf5   : > { %v989_v13 = vpop.eup %988  ;;  %1004 = vrsqrt.f32 %v1514_v9  ;;  %v634_v14 = vadd.f32 1e-10, %v600_v18  ;;  %v694_v0 = vsub.f32 %v662_v17, %v678_v4  ;;  %vm404_vm2 = vcmp.eq.f32.partialorder %v1472_v40, inf }
  0xf6   : > { %v991_v33 = vpop.eup %990  ;;  %1006 = vrcp.f32 %v633_v56  ;;  %v403_v63 = vmul.f32 %v989_v13, %v1472_v40  ;;  %v407_v7 = vand.u32 2147483648, %v1472_v40  ;;  %vm406_vm3 = vcmp.eq.f32.partialorder %v1472_v40, 0.0 }
  0xf7   : > { %v993_v26 = vpop.eup %992  ;;  %1008 = vrsqrt.f32 %v1523_v10  ;;  %vm603_vm4 = vcmp.eq.f32.partialorder %v1487_v47, inf  ;;  %v679_v5 = vmul.f32 %v991_v33, %v1228_v37  ;;  %vm605_vm5 = vcmp.eq.f32.partialorder %v1487_v47, 0.0 }
  0xf8   : > { %1010 = vrcp.f32 %v441_v59  ;;  %v405_v15 = vsel %vm404_vm2, %v1472_v40, %v403_v63  ;;  %v663_v28 = vmul.f32 %v993_v26, %v1231_v38  ;;  %v1552_v23 = vmul.f32 %v694_v0, %v694_v0 }
  0xf9   : > { %v995_v16 = vpop.eup %994  ;;  %v408_v27 = vsel %vm406_vm3, %v407_v7, %v405_v15  ;;  %1012 = vrsqrt.f32 %v1539_v25  ;;  %v606_v40 = vand.u32 2147483648, %v1487_v47  ;;  %vm411_vm6 = vcmp.eq.f32.partialorder %v1495_v19, inf }
  0xfa   : > { %1014 = vrcp.f32 %v634_v14  ;;  %v442_v3 = vadd.f32 1e-10, %v408_v27  ;;  %v602_v1 = vmul.f32 %v995_v16, %v1487_v47  ;;  %v997_v2 = vpop.eup %996  ;;  %vm413_vm7 = vcmp.eq.f32.partialorder %v1495_v19, 0.0 }
  0xfb   : > { %v414_v38 = vand.u32 2147483648, %v1495_v19  ;;  %vm610_vm8 = vcmp.eq.f32.partialorder %v1507_v21, inf  ;;  %vm612_vm9 = vcmp.eq.f32.partialorder %v1507_v21, 0.0  ;;  %v613_v8 = vand.u32 2147483648, %v1507_v21 }
  0xfc   : > { %v999_v37 = vpop.eup %998  ;;  %1016 = vrcp.f32 %v442_v3  ;;  %v604_v39 = vsel %vm603_vm4, %v1487_v47, %v602_v1  ;;  %v695_v29 = vsub.f32 %v663_v28, %v679_v5  ;;  %vm418_vm10 = vcmp.eq.f32.partialorder %v1514_v9, inf }
  0xfd   : > { %v1001_v31 = vpop.eup %1000  ;;  %v607_v32 = vsel %vm605_vm5, %v606_v40, %v604_v39  ;;  %v410_v35 = vmul.f32 %v999_v37, %v1495_v19  ;;  %vm420_vm11 = vcmp.eq.f32.partialorder %v1514_v9, 0.0  ;;  %v680_v36 = vmul.f32 %v997_v2, %v1238_v41 }
  0xfe   : > { %v1003_v24 = vpop.eup %1002  ;;  %v635_v30 = vadd.f32 1e-10, %v607_v32  ;;  %v421_v44 = vand.u32 2147483648, %v1514_v9  ;;  %vm617_vm12 = vcmp.eq.f32.partialorder %v1523_v10, inf  ;;  %vm619_vm13 = vcmp.eq.f32.partialorder %v1523_v10, 0.0 }
  0xff   : > { %v1005_v22 = vpop.eup %1004  ;;  %v412_v47 = vsel %vm411_vm6, %v1495_v19, %v410_v35  ;;  %v609_v43 = vmul.f32 %v1003_v24, %v1507_v21  ;;  %v620_v12 = vand.u32 2147483648, %v1523_v10  ;;  %v664_v17 = vmul.f32 %v1001_v31, %v1241_v42 }
 0x100   : > { %v1007_v48 = vpop.eup %1006  ;;  %1018 = vrcp.f32 %v635_v30  ;;  %v415_v52 = vsel %vm413_vm7, %v414_v38, %v412_v47  ;;  %v417_v55 = vmul.f32 %v1005_v22, %v1514_v9  ;;  %vm425_vm14 = vcmp.eq.f32.partialorder %v1539_v25, inf }
 0x101   : > { %v1009_v11 = vpop.eup %1008  ;;  %v443_v56 = vadd.f32 1e-10, %v415_v52  ;;  %v611_v41 = vsel %vm610_vm8, %v1507_v21, %v609_v43  ;;  %v428_v0 = vand.u32 2147483648, %v1539_v25  ;;  %v681_v7 = vmul.f32 %v1007_v48, %v1248_v45 }
 0x102   : > { %v1011_v4 = vpop.eup %1010  ;;  %v614_v19 = vsel %vm612_vm9, %v613_v8, %v611_v41  ;;  %v419_v18 = vsel %vm418_vm10, %v1514_v9, %v417_v55  ;;  %v616_v59 = vmul.f32 %v1009_v11, %v1523_v10  ;;  %vm427_vm15 = vcmp.eq.f32.partialorder %v1539_v25, 0.0 }
 0x103   : > { %v1013_v13 = vpop.eup %1012  ;;  %1020 = vrcp.f32 %v443_v56  ;;  %v636_v33 = vadd.f32 1e-10, %v614_v19  ;;  %v422_v14 = vsel %vm420_vm11, %v421_v44, %v419_v18  ;;  %v665_v15 = vmul.f32 %v1011_v4, %v1251_v46 }
 0x104   : > { %v1015_v63 = vpop.eup %1014  ;;  %v444_v26 = vadd.f32 1e-10, %v422_v14  ;;  %v618_v42 = vsel %vm617_vm12, %v1523_v10, %v616_v59  ;;  %v424_v21 = vmul.f32 %v1013_v13, %v1539_v25  ;;  %v696_v28 = vsub.f32 %v664_v17, %v680_v36 }
 0x105   : > { %1022 = vrcp.f32 %v636_v33  ;;  %v621_v9 = vsel %vm619_vm13, %v620_v12, %v618_v42  ;;  %v682_v3 = vmul.f32 %v1015_v63, %v1258_v49  ;;  %v745_v46 = vadd.f32 %v1527_v51, %v1530_v20 }
 0x106   : > { %v1017_v16 = vpop.eup %1016  ;;  %1024 = vrcp.f32 %v444_v26  ;;  %v637_v5 = vadd.f32 1e-10, %v621_v9  ;;  %v426_v27 = vsel %vm425_vm14, %v1539_v25, %v424_v21  ;;  %v732_v10 = vmul.f32 %v1427_v6, %v1536_v34  ;;  %v762_v21 = vld [vmem:[%s1124_s26] sm:$0xff] }
 0x107   : > { %v666_v1 = vmul.f32 %v1017_v16, %v1261_v50  ;;  %v429_v2 = vsel %vm427_vm15, %v428_v0, %v426_v27  ;;  %v711_v40 = vmul.f32 %v695_v29, %v695_v29  ;;  %v697_v37 = vsub.f32 %v665_v15, %v681_v7 }
 0x108   : > { %1026 = vrcp.f32 %v637_v5  ;;  %v445_v45 = vadd.f32 1e-10, %v429_v2  ;;  %v746_v25 = vadd.f32 %v745_v46, %v1533_v60  ;;  %v733_v49 = vmul.f32 %v1427_v6, %v1552_v23 }
 0x109   : > { %v712_v38 = vmul.f32 %v696_v28, %v696_v28  ;;  %v698_v50 = vsub.f32 %v666_v1, %v682_v3  ;;  %v734_v51 = vmul.f32 %v1427_v6, %v711_v40  ;;  %v713_v20 = vmul.f32 %v697_v37, %v697_v37 }
 0x10a   : > { %v1019_v39 = vpop.eup %1018  ;;  %1028 = vrcp.f32 %v445_v45  ;;  %v747_v35 = vadd.f32 %v746_v25, %v732_v10 }
 0x10b   : > { %v683_v31 = vmul.f32 %v1019_v39, %v1268_v53  ;;  %v735_v29 = vmul.f32 %v1427_v6, %v712_v38  ;;  %v714_v30 = vmul.f32 %v698_v50, %v698_v50  ;;  %v736_v47 = vmul.f32 %v1427_v6, %v713_v20 }
 0x10c   : > { %v748_v24 = vadd.f32 %v747_v35, %v733_v49 }
 0x10d   : > { %v1021_v32 = vpop.eup %1020  ;;  %v737_v52 = vmul.f32 %v1427_v6, %v714_v30 }
 0x10e   : > { %v667_v34 = vmul.f32 %v1021_v32, %v1271_v54  ;;  %v749_v36 = vadd.f32 %v748_v24, %v734_v51 }
 0x10f   : > { %v1023_v8 = vpop.eup %1022 }
 0x110   : > { %v1025_v60 = vpop.eup %1024  ;;  %v699_v22 = vsub.f32 %v667_v34, %v683_v31  ;;  %v684_v23 = vmul.f32 %v1023_v8, %v1278_v57  ;;  %v750_v48 = vadd.f32 %v749_v36, %v735_v29 }
 0x111   : > { %v668_v53 = vmul.f32 %v1025_v60, %v1281_v58 }
 0x112   : > { %v1027_v43 = vpop.eup %1026  ;;  %v715_v44 = vmul.f32 %v699_v22, %v699_v22  ;;  %v751_v56 = vadd.f32 %v750_v48, %v736_v47 }
 0x113   : > { %v700_v54 = vsub.f32 %v668_v53, %v684_v23  ;;  %v685_v55 = vmul.f32 %v1027_v43, %v1288_v61 }
 0x114   : > { %v1029_v11 = vpop.eup %1028  ;;  %v738_v41 = vmul.f32 %v1427_v6, %v715_v44  ;;  %v752_v4 = vadd.f32 %v751_v56, %v737_v52 }
 0x115   : > { %v716_v12 = vmul.f32 %v700_v54, %v700_v54  ;;  %v669_v57 = vmul.f32 %v1029_v11, %v1291_v62 }
 0x116   : > { %v753_v19 = vadd.f32 %v752_v4, %v738_v41 }
 0x117   : > { %v739_v58 = vmul.f32 %v1427_v6, %v716_v12  ;;  %v701_v17 = vsub.f32 %v669_v57, %v685_v55 }
 0x119   : > { %v717_v18 = vmul.f32 %v701_v17, %v701_v17  ;;  %v754_v59 = vadd.f32 %v753_v19, %v739_v58 }
 0x11b   : > { %v740_v13 = vmul.f32 %v1427_v6, %v717_v18 }
 0x11d   : > { %v755_v33 = vadd.f32 %v754_v59, %v740_v13 }
 0x11f   : > { %v756_v61 = vrot.slane %v755_v33, 4 }
 0x121   : > { %v757_v14 = vadd.f32 %v756_v61, %v755_v33 }
 0x123   : > { %v758_v63 = vrot.slane %v757_v14, 2 }
 0x125   : > { %v759_v26 = vadd.f32 %v758_v63, %v757_v14 }
 0x127   : > { %v760_v42 = vrot.slane %v759_v26, 1 }
 0x129   : > { %v761_v0 = vadd.f32 %v760_v42, %v759_v26 }
 0x12b   : > { %v763_v7 = vadd.f32 %v762_v21, %v761_v0 }
 0x12d   : > { %764 = vst [vmem:[%s1124_s26] sm:$0xff] %v763_v7 }
 0x12e PF: > { %s13_s16 = sadd.s32 1, %s1068_s16   ;;  %s1648_s12 = smov %s1060_s14 }
 0x12f   : > { %p10_p8 = scmp.ge.s32.totalorder %s13_s16, 6   ;;  %s1649_s13 = smov %s1064_s15 }
 0x130   : > { %s1650_s14 = smov %s1653_s17  ;;  %s1651_s15 = smov %s1657_s18 }
 0x131   :  { %12 = sbr.rel (!%p10_p8) target bundleno = 3 (0x3), region = 69 }

// kernel: perceptual_loss.16
= control target key start
LH: loop header
LB: loop body
LE: loop exit
PB: predicated region body
PF: predicated region fallthrough
CT: control target
= control target key end

     0   :  { %s785_s12 = smov 0   ;;  %s787_s13 = smov 0   ;;  %s1106_s0 = inlined_call_operand.vmem [shape: f32[112,256], index: 0, kind: input, shape index: {}]   ;;  %s1107_s1 = inlined_call_operand.vmem [shape: f32[112,256], index: 1, kind: input, shape index: {}]   ;;  %s1108_s2 = inlined_call_operand.vmem [shape: f32[1,256], index: 2, kind: input, shape index: {}]   ;;  %s1109_s3 = inlined_call_operand.vmem [shape: f32[16,256], index: 3, kind: output, shape index: {}]  }
   0x1   :  { %s789_s14 = smov 0  }
   0x2 LB: > { %s25_s15 = sadd.s32 1, %s759_s13  ;;  %p648_p0 = scmp.ge.s32.totalorder %s763_s14, 1  ;;  %s763_s14 = sphi %s789_s14, %s13_s14   ;;  %s759_s13 = sphi %s787_s13, %s1111_s13   ;;  %s755_s12 = sphi %s785_s12, %s1110_s12  }
   0x3   : > { %p27_p1 = scmp.ge.s32.totalorder %s25_s15, 2  ;;  %p171_p2 = scmp.lt.s32.totalorder %s763_s14, 3 }
   0x5   : > { %s1113_s15 = smov (%p27_p1, %s25_s15), 0  ;;  %p172_p3 = pnand %p648_p0, %p171_p2 }
   0x6   : > { %s205_s16 = smul.u32 (!%p172_p3), 7, %s755_s12  ;;  %p222_p5 = scmp.lt.s32.totalorder (!%p172_p3), %s755_s12, 1 }
   0x7   : > { %175 = sbr.rel (%p172_p3) target bundleno = 244 (0xf4), region = 32 }
   0x8   : > { %p206_p4 = scmp.lt.s32.totalorder (!%p172_p3), %s205_s16, 13 }
   0xe   : > { %s1115_s16 = smov (!%p206_p4, %s205_s16), 13  ;;  %s1117_s12 = smov (!%p222_p5, %s755_s12), 1 }
   0xf   : > { %s657_s17 = sshll.u32 %s1115_s16, 4  ;;  %s659_s26 = sshll.u32 %s1117_s12, 4 }
  0x10   : > { %s809_s20 = scalar_lea.vmem %s1107_s1, %s657_s17  ;;  %s814_s23 = scalar_lea.vmem %s1106_s0, %s657_s17 }
  0x11   : > { %v817_v0 = vld [vmem:[%s809_s20] sm:$0xff]  ;;  %v820_v1 = vld [vmem:[%s809_s20 + $0x8] sm:$0xff]  ;;  %v835_v7 = vld [vmem:[%s809_s20 + $0x10] sm:$0xff]  ;;  %s226_s29 = scalar_lea.vmem %s1109_s3, %s659_s26 }
  0x12   : > { %v823_v2 = vld [vmem:[%s814_s23] sm:$0xff]  ;;  %v359_v3 = vmul.f32 %v817_v0, %v817_v0  ;;  %v360_v4 = vmul.f32 %v820_v1, %v820_v1  ;;  %v830_v5 = vld [vmem:[%s814_s23 + $0x8] sm:$0xff]  ;;  %v838_v8 = vld [vmem:[%s809_s20 + $0x18] sm:$0xff]  ;;  %v361_v10 = vmul.f32 %v835_v7, %v835_v7 }
  0x13   : > { %v261_v6 = vmul.f32 %v823_v2, %v823_v2  ;;  %v262_v9 = vmul.f32 %v830_v5, %v830_v5  ;;  %v362_v11 = vmul.f32 %v838_v8, %v838_v8  ;;  %v847_v12 = vld [vmem:[%s814_s23 + $0x10] sm:$0xff]  ;;  %v850_v13 = vld [vmem:[%s814_s23 + $0x18] sm:$0xff]  ;;  %v853_v14 = vld [vmem:[%s809_s20 + $0x20] sm:$0xff] }
  0x14   : > { %v373_v15 = vadd.f32 %v360_v4, %v359_v3  ;;  %v263_v16 = vmul.f32 %v847_v12, %v847_v12  ;;  %v264_v17 = vmul.f32 %v850_v13, %v850_v13  ;;  %v860_v18 = vld [vmem:[%s809_s20 + $0x28] sm:$0xff]  ;;  %v863_v19 = vld [vmem:[%s814_s23 + $0x20] sm:$0xff]  ;;  %v363_v23 = vmul.f32 %v853_v14, %v853_v14  ;;  %v877_v28 = vld [vmem:[%s809_s20 + $0x30] sm:$0xff] }
  0x15   : > { %v866_v20 = vld [vmem:[%s814_s23 + $0x28] sm:$0xff]  ;;  %v275_v21 = vadd.f32 %v262_v9, %v261_v6  ;;  %v376_v22 = vadd.f32 %v362_v11, %v361_v10  ;;  %v364_v24 = vmul.f32 %v860_v18, %v860_v18  ;;  %v265_v26 = vmul.f32 %v863_v19, %v863_v19  ;;  %v880_v29 = vld [vmem:[%s809_s20 + $0x38] sm:$0xff]  ;;  %v883_v30 = vld [vmem:[%s814_s23 + $0x30] sm:$0xff] }
  0x16   : > { %374 = vadd.xlane.f32.xlu1 %v373_v15  ;;  %v278_v25 = vadd.f32 %v264_v17, %v263_v16  ;;  %v266_v27 = vmul.f32 %v866_v20, %v866_v20  ;;  %v886_v31 = vld [vmem:[%s814_s23 + $0x38] sm:$0xff]  ;;  %v365_v33 = vmul.f32 %v877_v28, %v877_v28  ;;  %v366_v34 = vmul.f32 %v880_v29, %v880_v29  ;;  %v897_v38 = vld [vmem:[%s809_s20 + $0x40] sm:$0xff]  ;;  %v900_v39 = vld [vmem:[%s809_s20 + $0x48] sm:$0xff] }
  0x17   : > { %276 = vadd.xlane.f32.xlu0 %v275_v21  ;;  %v379_v32 = vadd.f32 %v364_v24, %v363_v23  ;;  %v267_v36 = vmul.f32 %v883_v30, %v883_v30  ;;  %v268_v37 = vmul.f32 %v886_v31, %v886_v31  ;;  %v903_v40 = vld [vmem:[%s814_s23 + $0x40] sm:$0xff]  ;;  %v906_v41 = vld [vmem:[%s814_s23 + $0x48] sm:$0xff]  ;;  %v367_v43 = vmul.f32 %v897_v38, %v897_v38  ;;  %v917_v48 = vld [vmem:[%s809_s20 + $0x50] sm:$0xff] }
  0x18   : > { %v281_v35 = vadd.f32 %v266_v27, %v265_v26  ;;  %v382_v42 = vadd.f32 %v366_v34, %v365_v33  ;;  %v368_v44 = vmul.f32 %v900_v39, %v900_v39  ;;  %v269_v46 = vmul.f32 %v903_v40, %v903_v40  ;;  %v920_v49 = vld [vmem:[%s809_s20 + $0x58] sm:$0xff]  ;;  %v923_v50 = vld [vmem:[%s814_s23 + $0x50] sm:$0xff]  ;;  %v937_v58 = vld [vmem:[%s809_s20 + $0x60] sm:$0xff] }
  0x19   : > { %v284_v45 = vadd.f32 %v268_v37, %v267_v36  ;;  %v270_v47 = vmul.f32 %v906_v41, %v906_v41  ;;  %v926_v51 = vld [vmem:[%s814_s23 + $0x58] sm:$0xff]  ;;  %v369_v53 = vmul.f32 %v917_v48, %v917_v48  ;;  %v370_v54 = vmul.f32 %v920_v49, %v920_v49  ;;  %v940_v59 = vld [vmem:[%s809_s20 + $0x68] sm:$0xff]  ;;  %v943_v60 = vld [vmem:[%s814_s23 + $0x60] sm:$0xff] }
  0x1a   : > { %377 = vadd.xlane.f32.xlu1 %v376_v22  ;;  %v385_v52 = vadd.f32 %v368_v44, %v367_v43  ;;  %v271_v56 = vmul.f32 %v923_v50, %v923_v50  ;;  %v272_v57 = vmul.f32 %v926_v51, %v926_v51  ;;  %v946_v61 = vld [vmem:[%s814_s23 + $0x68] sm:$0xff]  ;;  %v371_v63 = vmul.f32 %v937_v58, %v937_v58 }
  0x1b   : > { %279 = vadd.xlane.f32.xlu0 %v278_v25  ;;  %v287_v55 = vadd.f32 %v270_v47, %v269_v46  ;;  %v388_v62 = vadd.f32 %v370_v54, %v369_v53  ;;  %v372_v3 = vmul.f32 %v940_v59, %v940_v59  ;;  %v273_v6 = vmul.f32 %v943_v60, %v943_v60 }
  0x1c   : > { %v290_v4 = vadd.f32 %v272_v57, %v271_v56  ;;  %v274_v9 = vmul.f32 %v946_v61, %v946_v61 }
  0x1d   : > { %v391_v10 = vadd.f32 %v372_v3, %v371_v63 }
  0x1e   : > { %380 = vadd.xlane.f32.xlu1 %v379_v32  ;;  %v293_v11 = vadd.f32 %v274_v9, %v273_v6 }
  0x1f   : > { %282 = vadd.xlane.f32.xlu0 %v281_v35 }
  0x22   : > { %383 = vadd.xlane.f32.xlu1 %v382_v42 }
  0x23   : > { %285 = vadd.xlane.f32.xlu0 %v284_v45 }
  0x26   : > { %386 = vadd.xlane.f32.xlu1 %v385_v52 }
  0x27   : > { %288 = vadd.xlane.f32.xlu0 %v287_v55 }
  0x2a   : > { %389 = vadd.xlane.f32.xlu1 %v388_v62 }
  0x2b   : > { %291 = vadd.xlane.f32.xlu0 %v290_v4 }
  0x2e   : > { %392 = vadd.xlane.f32.xlu1 %v391_v10 }
  0x2f   : > { %294 = vadd.xlane.f32.xlu0 %v293_v11 }
  0xa3   : > { %v375_v15 = vpop.xlane.xlu1 %374 }
  0xa4   : > { %685 = vrsqrt.f32 %v375_v15  ;;  %v277_v16 = vpop.xlane.xlu0 %276  ;;  %vm396_vm0 = vcmp.eq.f32.partialorder %v375_v15, inf  ;;  %vm398_vm1 = vcmp.eq.f32.partialorder %v375_v15, 0.0  ;;  %v399_v33 = vand.u32 2147483648, %v375_v15 }
  0xa5   : > { %687 = vrsqrt.f32 %v277_v16  ;;  %vm298_vm2 = vcmp.eq.f32.partialorder %v277_v16, inf  ;;  %vm300_vm3 = vcmp.eq.f32.partialorder %v277_v16, 0.0  ;;  %v301_v36 = vand.u32 2147483648, %v277_v16 }
  0xa7   : > { %v378_v17 = vpop.xlane.xlu1 %377 }
  0xa8   : > { %689 = vrsqrt.f32 %v378_v17  ;;  %v280_v21 = vpop.xlane.xlu0 %279  ;;  %vm403_vm4 = vcmp.eq.f32.partialorder %v378_v17, inf  ;;  %vm405_vm5 = vcmp.eq.f32.partialorder %v378_v17, 0.0  ;;  %v406_v45 = vand.u32 2147483648, %v378_v17 }
  0xa9   : > { %691 = vrsqrt.f32 %v280_v21  ;;  %vm305_vm6 = vcmp.eq.f32.partialorder %v280_v21, inf  ;;  %vm307_vm7 = vcmp.eq.f32.partialorder %v280_v21, 0.0  ;;  %v308_v54 = vand.u32 2147483648, %v280_v21 }
  0xab   : > { %v956_v22 = vpop.xlane.xlu1 %380 }
  0xac   : > { %693 = vrsqrt.f32 %v956_v22  ;;  %v959_v23 = vpop.xlane.xlu0 %282  ;;  %vm410_vm8 = vcmp.eq.f32.partialorder %v956_v22, inf  ;;  %vm412_vm9 = vcmp.eq.f32.partialorder %v956_v22, 0.0  ;;  %v413_v57 = vand.u32 2147483648, %v956_v22 }
  0xad   : > { %695 = vrsqrt.f32 %v959_v23  ;;  %vm312_vm10 = vcmp.eq.f32.partialorder %v959_v23, inf  ;;  %vm314_vm11 = vcmp.eq.f32.partialorder %v959_v23, 0.0 }
  0xae   : > { %v686_v24 = vpop.eup %685 }
  0xaf   : > { %v395_v25 = vmul.f32 %v686_v24, %v375_v15  ;;  %v962_v26 = vpop.xlane.xlu1 %383  ;;  %v688_v27 = vpop.eup %687 }
  0xb0   : > { %697 = vrsqrt.f32 %v962_v26  ;;  %v965_v32 = vpop.xlane.xlu0 %285  ;;  %v297_v42 = vmul.f32 %v688_v27, %v277_v16  ;;  %vm417_vm12 = vcmp.eq.f32.partialorder %v962_v26, inf  ;;  %vm419_vm13 = vcmp.eq.f32.partialorder %v962_v26, 0.0 }
  0xb1   : > { %699 = vrsqrt.f32 %v965_v32  ;;  %v397_v35 = vsel %vm396_vm0, %v375_v15, %v395_v25  ;;  %v315_v15 = vand.u32 2147483648, %v959_v23  ;;  %vm319_vm14 = vcmp.eq.f32.partialorder %v965_v32, inf }
  0xb2   : > { %v690_v34 = vpop.eup %689  ;;  %v400_v52 = vsel %vm398_vm1, %v399_v33, %v397_v35  ;;  %v299_v63 = vsel %vm298_vm2, %v277_v16, %v297_v42  ;;  %v420_v33 = vand.u32 2147483648, %v962_v26  ;;  %vm321_vm15 = vcmp.eq.f32.partialorder %v965_v32, 0.0 }
  0xb3   : > { %v692_v37 = vpop.eup %691  ;;  %v402_v43 = vmul.f32 %v690_v34, %v378_v17  ;;  %v968_v44 = vpop.xlane.xlu1 %386  ;;  %v443_v9 = vadd.f32 1e-10, %v400_v52  ;;  %v302_v24 = vsel %vm300_vm3, %v301_v36, %v299_v63 }
  0xb4   : > { %v304_v46 = vmul.f32 %v692_v37, %v280_v21  ;;  %701 = vrsqrt.f32 %v968_v44  ;;  %v971_v47 = vpop.xlane.xlu0 %288  ;;  %vm424_vm0 = vcmp.eq.f32.partialorder %v968_v44, inf  ;;  %vm426_vm1 = vcmp.eq.f32.partialorder %v968_v44, 0.0 }
  0xb5   : > { %v404_v53 = vsel %vm403_vm4, %v378_v17, %v402_v43  ;;  %703 = vrsqrt.f32 %v971_v47  ;;  %v345_v43 = vadd.f32 1e-10, %v302_v24  ;;  %vm326_vm2 = vcmp.eq.f32.partialorder %v971_v47, inf }
  0xb6   : > { %v694_v55 = vpop.eup %693  ;;  %v306_v56 = vsel %vm305_vm6, %v280_v21, %v304_v46  ;;  %v407_v3 = vsel %vm405_vm5, %v406_v45, %v404_v53  ;;  %v329_v24 = vand.u32 2147483648, %v971_v47  ;;  %vm328_vm3 = vcmp.eq.f32.partialorder %v971_v47, 0.0 }
  0xb7   : > { %v696_v62 = vpop.eup %695  ;;  %v409_v4 = vmul.f32 %v694_v55, %v956_v22  ;;  %v981_v6 = vpop.xlane.xlu1 %389  ;;  %v309_v11 = vsel %vm307_vm7, %v308_v54, %v306_v56  ;;  %v444_v25 = vadd.f32 1e-10, %v407_v3  ;;  %v322_v55 = vand.u32 2147483648, %v965_v32 }
  0xb8   : > { %v311_v10 = vmul.f32 %v696_v62, %v959_v23  ;;  %v995_v34 = vpop.xlane.xlu0 %291  ;;  %705 = vrsqrt.f32 %v981_v6  ;;  %v346_v16 = vadd.f32 1e-10, %v309_v11  ;;  %vm431_vm4 = vcmp.eq.f32.partialorder %v981_v6, inf }
  0xb9   : > { %v411_v27 = vsel %vm410_vm8, %v956_v22, %v409_v4  ;;  %707 = vrcp.f32 %v443_v9  ;;  %v515_v9 = vlaneseq  ;;  %vm433_vm5 = vcmp.eq.f32.partialorder %v981_v6, 0.0 }
  0xba   : > { %v698_v17 = vpop.eup %697  ;;  %v313_v35 = vsel %vm312_vm10, %v959_v23, %v311_v10  ;;  %v414_v45 = vsel %vm412_vm9, %v413_v57, %v411_v27  ;;  %709 = vrsqrt.f32 %v995_v34  ;;  %v427_v23 = vand.u32 2147483648, %v968_v44 }
  0xbb   : > { %v700_v21 = vpop.eup %699  ;;  %v416_v37 = vmul.f32 %v698_v17, %v962_v26  ;;  %v1003_v42 = vpop.xlane.xlu1 %392  ;;  %711 = vrcp.f32 %v444_v25  ;;  %v316_v53 = vsel %vm314_vm11, %v315_v15, %v313_v35  ;;  %v445_v57 = vadd.f32 1e-10, %v414_v45 }
  0xbc   : > { %v318_v36 = vmul.f32 %v700_v21, %v965_v32  ;;  %713 = vrsqrt.f32 %v1003_v42  ;;  %v1023_v63 = vpop.xlane.xlu0 %294  ;;  %v347_v4 = vadd.f32 1e-10, %v316_v53  ;;  %v434_v45 = vand.u32 2147483648, %v981_v6 }
  0xbd   : > { %v418_v46 = vsel %vm417_vm12, %v962_v26, %v416_v37  ;;  %715 = vrcp.f32 %v346_v16  ;;  %vm333_vm6 = vcmp.eq.f32.partialorder %v995_v34, inf  ;;  %vm335_vm7 = vcmp.eq.f32.partialorder %v995_v34, 0.0 }
  0xbe   : > { %v702_v52 = vpop.eup %701  ;;  %v320_v54 = vsel %vm319_vm14, %v965_v32, %v318_v36  ;;  %v421_v56 = vsel %vm419_vm13, %v420_v33, %v418_v46  ;;  %717 = vrcp.f32 %v345_v43  ;;  %v1033_v33 = vshrl.u32 %v515_v9, 7 }
  0xbf   : > { %v423_v22 = vmul.f32 %v702_v52, %v968_v44  ;;  %v323_v62 = vsel %vm321_vm15, %v322_v55, %v320_v54  ;;  %v704_v3 = vpop.eup %703  ;;  %v446_v10 = vadd.f32 1e-10, %v421_v56  ;;  %719 = vrsqrt.f32 %v1023_v63 }
  0xc0   : > { %v325_v15 = vmul.f32 %v704_v3, %v971_v47  ;;  %v348_v17 = vadd.f32 1e-10, %v323_v62  ;;  %721 = vrcp.f32 %v445_v57  ;;  %v517_v52 = vsub.s32 0, %v1033_v33 }
  0xc1   : > { %v425_v26 = vsel %vm424_vm0, %v968_v44, %v423_v22  ;;  %723 = vrcp.f32 %v347_v4  ;;  %v336_v56 = vand.u32 2147483648, %v995_v34  ;;  %vm438_vm8 = vcmp.eq.f32.partialorder %v1003_v42, inf }
  0xc2   : > { %v428_v11 = vsel %vm426_vm1, %v427_v23, %v425_v26  ;;  %v327_v32 = vsel %vm326_vm2, %v971_v47, %v325_v15  ;;  %v706_v25 = vpop.eup %705  ;;  %725 = vrcp.f32 %v446_v10  ;;  %vm440_vm9 = vcmp.eq.f32.partialorder %v1003_v42, 0.0 }
  0xc3   : > { %v447_v27 = vadd.f32 1e-10, %v428_v11  ;;  %v708_v44 = vpop.eup %707  ;;  %v330_v21 = vsel %vm328_vm3, %v329_v24, %v327_v32  ;;  %v430_v35 = vmul.f32 %v706_v25, %v981_v6  ;;  %727 = vrcp.f32 %v348_v17 }
  0xc4   : > { %v710_v37 = vpop.eup %709  ;;  %v349_v36 = vadd.f32 1e-10, %v330_v21  ;;  %v471_v57 = vmul.f32 %v708_v44, %v817_v0  ;;  %v472_v3 = vmul.f32 %v708_v44, %v820_v1  ;;  %v441_v0 = vand.u32 2147483648, %v1003_v42 }
  0xc5   : > { %v712_v16 = vpop.eup %711  ;;  %v432_v43 = vsel %vm431_vm4, %v981_v6, %v430_v35  ;;  %729 = vrcp.f32 %v447_v27  ;;  %v332_v54 = vmul.f32 %v710_v37, %v995_v34  ;;  %vm340_vm10 = vcmp.eq.f32.partialorder %v1023_v63, inf }
  0xc6   : > { %v714_v46 = vpop.eup %713  ;;  %731 = vrcp.f32 %v349_v36  ;;  %v435_v53 = vsel %vm433_vm5, %v434_v45, %v432_v43  ;;  %v473_v4 = vmul.f32 %v712_v16, %v835_v7  ;;  %vm342_vm11 = vcmp.eq.f32.partialorder %v1023_v63, 0.0 }
  0xc7   : > { %v716_v47 = vpop.eup %715  ;;  %v437_v22 = vmul.f32 %v714_v46, %v1003_v42  ;;  %v448_v62 = vadd.f32 1e-10, %v435_v53  ;;  %v334_v6 = vsel %vm333_vm6, %v995_v34, %v332_v54  ;;  %v474_v34 = vmul.f32 %v712_v16, %v838_v8 }
  0xc8   : > { %v718_v55 = vpop.eup %717  ;;  %v459_v26 = vmul.f32 %v716_v47, %v847_v12  ;;  %v337_v11 = vsel %vm335_vm7, %v336_v56, %v334_v6  ;;  %v460_v17 = vmul.f32 %v716_v47, %v850_v13  ;;  %v343_v36 = vand.u32 2147483648, %v1023_v63 }
  0xc9   : > { %v720_v23 = vpop.eup %719  ;;  %v457_v10 = vmul.f32 %v718_v55, %v823_v2  ;;  %733 = vrcp.f32 %v448_v62  ;;  %v350_v32 = vadd.f32 1e-10, %v337_v11  ;;  %v439_v1 = vsel %vm438_vm8, %v1003_v42, %v437_v22 }
  0xca   : > { %v722_v9 = vpop.eup %721  ;;  %v458_v12 = vmul.f32 %v718_v55, %v830_v5  ;;  %v442_v24 = vsel %vm440_vm9, %v441_v0, %v439_v1  ;;  %v339_v25 = vmul.f32 %v720_v23, %v1023_v63  ;;  %v487_v27 = vsub.f32 %v459_v26, %v473_v4 }
  0xcb   : > { %v724_v15 = vpop.eup %723  ;;  %v475_v44 = vmul.f32 %v722_v9, %v853_v14  ;;  %v476_v21 = vmul.f32 %v722_v9, %v860_v18  ;;  %735 = vrcp.f32 %v350_v32  ;;  %v449_v42 = vadd.f32 1e-10, %v442_v24 }
  0xcc   : > { %v726_v7 = vpop.eup %725  ;;  %v461_v8 = vmul.f32 %v724_v15, %v863_v19  ;;  %v462_v13 = vmul.f32 %v724_v15, %v866_v20  ;;  %v488_v35 = vsub.f32 %v460_v17, %v474_v34  ;;  %v341_v16 = vsel %vm340_vm10, %v1023_v63, %v339_v25 }
  0xcd   : > { %v728_v2 = vpop.eup %727  ;;  %v477_v37 = vmul.f32 %v726_v7, %v877_v28  ;;  %v478_v14 = vmul.f32 %v726_v7, %v880_v29  ;;  %737 = vrcp.f32 %v449_v42  ;;  %v521_v19 = vsub.s32 1, %v1033_v33  ;;  %v513_v28 = vld [vmem:[%s1108_s2] sm:$0x3] }
  0xce   : > { %v463_v18 = vmul.f32 %v728_v2, %v883_v30  ;;  %v464_v45 = vmul.f32 %v728_v2, %v886_v31  ;;  %v485_v20 = vsub.f32 %v457_v10, %v471_v57  ;;  %v486_v46 = vsub.f32 %v458_v12, %v472_v3 }
  0xcf   : > { %v730_v5 = vpop.eup %729  ;;  %v344_v47 = vsel %vm342_vm11, %v343_v36, %v341_v16  ;;  %v501_v53 = vmul.f32 %v487_v27, %v487_v27  ;;  %v489_v54 = vsub.f32 %v461_v8, %v475_v44  ;;  %v490_v55 = vsub.f32 %v462_v13, %v476_v21 }
  0xd0   : > { %v732_v43 = vpop.eup %731  ;;  %v351_v29 = vadd.f32 1e-10, %v344_v47  ;;  %v479_v30 = vmul.f32 %v730_v5, %v897_v38  ;;  %v480_v31 = vmul.f32 %v730_v5, %v900_v39  ;;  %v502_v62 = vmul.f32 %v488_v35, %v488_v35 }
  0xd1   : > { %v465_v56 = vmul.f32 %v732_v43, %v903_v40  ;;  %v466_v22 = vmul.f32 %v732_v43, %v906_v41  ;;  %v491_v63 = vsub.f32 %v463_v18, %v477_v37  ;;  %v492_v6 = vsub.f32 %v464_v45, %v478_v14 }
  0xd2   : > { %739 = vrcp.f32 %v351_v29  ;;  %v518_v23 = vrot.slane %v513_v28, %v517_v52  ;;  %v522_v3 = vrot.slane %v513_v28, %v521_v19  ;;  %v499_v4 = vmul.f32 %v485_v20, %v485_v20 }
  0xd3   : > { %v734_v57 = vpop.eup %733  ;;  %v500_v26 = vmul.f32 %v486_v46, %v486_v46  ;;  %v503_v9 = vmul.f32 %v489_v54, %v489_v54  ;;  %v504_v10 = vmul.f32 %v490_v55, %v490_v55  ;;  %v493_v38 = vsub.f32 %v465_v56, %v479_v30 }
  0xd4   : > { %v494_v11 = vsub.f32 %v466_v22, %v480_v31  ;;  %v481_v39 = vmul.f32 %v734_v57, %v917_v48  ;;  %v482_v40 = vmul.f32 %v734_v57, %v920_v49  ;;  %v527_v0 = vmul.f32 %v518_v23, %v501_v53 }
  0xd5   : > { %v736_v41 = vpop.eup %735  ;;  %v528_v15 = vmul.f32 %v522_v3, %v502_v62  ;;  %v505_v34 = vmul.f32 %v491_v63, %v491_v63  ;;  %v506_v17 = vmul.f32 %v492_v6, %v492_v6  ;;  %v525_v1 = vmul.f32 %v518_v23, %v499_v4 }
  0xd6   : > { %v467_v32 = vmul.f32 %v736_v41, %v923_v50  ;;  %v468_v33 = vmul.f32 %v736_v41, %v926_v51  ;;  %v526_v7 = vmul.f32 %v522_v3, %v500_v26  ;;  %v529_v12 = vmul.f32 %v518_v23, %v503_v9 }
  0xd7   : > { %v738_v52 = vpop.eup %737  ;;  %v530_v24 = vmul.f32 %v522_v3, %v504_v10  ;;  %v507_v25 = vmul.f32 %v493_v38, %v493_v38  ;;  %v508_v2 = vmul.f32 %v494_v11, %v494_v11  ;;  %v539_v44 = vadd.f32 %v527_v0, %v525_v1 }
  0xd8   : > { %v495_v27 = vsub.f32 %v467_v32, %v481_v39  ;;  %v496_v48 = vsub.f32 %v468_v33, %v482_v40  ;;  %v551_v49 = vadd.f32 %v528_v15, %v526_v7  ;;  %v531_v21 = vmul.f32 %v518_v23, %v505_v34 }
  0xd9   : > { %v532_v8 = vmul.f32 %v522_v3, %v506_v17  ;;  %v483_v5 = vmul.f32 %v738_v52, %v937_v58  ;;  %v484_v50 = vmul.f32 %v738_v52, %v940_v59  ;;  %v540_v35 = vadd.f32 %v539_v44, %v529_v12 }
  0xda   : > { %v509_v13 = vmul.f32 %v495_v27, %v495_v27  ;;  %v510_v42 = vmul.f32 %v496_v48, %v496_v48  ;;  %v552_v37 = vadd.f32 %v551_v49, %v530_v24  ;;  %v533_v16 = vmul.f32 %v518_v23, %v507_v25 }
  0xdb   : > { %v534_v36 = vmul.f32 %v522_v3, %v508_v2  ;;  %v541_v18 = vadd.f32 %v540_v35, %v531_v21 }
  0xdc   : > { %v740_v51 = vpop.eup %739  ;;  %v553_v45 = vadd.f32 %v552_v37, %v532_v8  ;;  %v535_v19 = vmul.f32 %v518_v23, %v509_v13  ;;  %v536_v20 = vmul.f32 %v522_v3, %v510_v42 }
  0xdd   : > { %v469_v43 = vmul.f32 %v740_v51, %v943_v60  ;;  %v470_v14 = vmul.f32 %v740_v51, %v946_v61  ;;  %v542_v58 = vadd.f32 %v541_v18, %v533_v16 }
  0xde   : > { %v554_v28 = vadd.f32 %v553_v45, %v534_v36 }
  0xdf   : > { %v497_v46 = vsub.f32 %v469_v43, %v483_v5  ;;  %v498_v47 = vsub.f32 %v470_v14, %v484_v50  ;;  %v543_v54 = vadd.f32 %v542_v58, %v535_v19 }
  0xe0   : > { %v555_v55 = vadd.f32 %v554_v28, %v536_v20 }
  0xe1   : > { %v511_v59 = vmul.f32 %v497_v46, %v497_v46  ;;  %v512_v53 = vmul.f32 %v498_v47, %v498_v47 }
  0xe3   : > { %v537_v29 = vmul.f32 %v518_v23, %v511_v59  ;;  %v538_v30 = vmul.f32 %v522_v3, %v512_v53 }
  0xe5   : > { %v544_v31 = vadd.f32 %v543_v54, %v537_v29  ;;  %v556_v60 = vadd.f32 %v555_v55, %v538_v30 }
  0xe7   : > { %v545_v61 = vrot.slane %v544_v31, 4  ;;  %v557_v56 = vrot.slane %v556_v60, 4 }
  0xe9   : > { %v546_v22 = vadd.f32 %v545_v61, %v544_v31  ;;  %v558_v57 = vadd.f32 %v557_v56, %v556_v60 }
  0xeb   : > { %v547_v62 = vrot.slane %v546_v22, 2  ;;  %v559_v63 = vrot.slane %v558_v57, 2 }
  0xed   : > { %v548_v6 = vadd.f32 %v547_v62, %v546_v22  ;;  %v560_v4 = vadd.f32 %v559_v63, %v558_v57 }
  0xef   : > { %v549_v26 = vrot.slane %v548_v6, 1  ;;  %v561_v9 = vrot.slane %v560_v4, 1 }
  0xf1   : > { %v550_v10 = vadd.f32 %v549_v26, %v548_v6  ;;  %v562_v38 = vadd.f32 %v561_v9, %v560_v4 }
  0xf3   : > { %567 = vst [vmem:[%s226_s29] sm:$0xff] %v550_v10  ;;  %568 = vst [vmem:[%s226_s29 + $0x8] sm:$0xff] %v562_v38 }
  0xf4 PF: > { %s13_s14 = sadd.s32 1, %s763_s14   ;;  %s1110_s12 = smov %s759_s13 }
  0xf5   : > { %p10_p6 = scmp.ge.s32.totalorder %s13_s14, 4   ;;  %s1111_s13 = smov %s1113_s15 }
  0xf7   :  { %12 = sbr.rel (!%p10_p6) target bundleno = 2 (0x2), region = 69 }

// kernel: perceptual_loss.11
= control target key start
LH: loop header
LB: loop body
LE: loop exit
PB: predicated region body
PF: predicated region fallthrough
CT: control target
= control target key end

     0   :  { %s6621_s1 = inlined_call_operand.vmem [shape: bf16[1664,256], index: 1, kind: input, shape index: {}]   ;;  %s6622_s0 = inlined_call_operand.vmem [shape: bf16[208,1664], index: 0, kind: input, shape index: {}]   ;;  %s6623_s2 = inlined_call_operand.vmem [shape: f32[1,256], index: 2, kind: input, shape index: {}]   ;;  %s6624_s3 = inlined_call_operand.vmem [shape: f32[208,256], index: 3, kind: output, shape index: {}]  }
   0x1   :  { %v4338_v0 = vld [vmem:[%s6621_s1 + $0x4] ss:$8 sps:$4 sm:$0xff]   ;;  %v4342_v2 = vld [vmem:[%s6621_s1] ss:$8 sps:$4 sm:$0xff]   ;;  %v4344_v4 = vld [vmem:[%s6621_s1 + $0x14] ss:$8 sps:$4 sm:$0xff]  }
   0x2   :  { %v4340_v1 = vld [vmem:[%s6621_s1 + $0x304] ss:$8 sps:$4 sm:$0xff]   ;;  %2315 = vmatprep.subr.bf16.mxu1 %v4338_v0  ;;  %v4343_v3 = vld [vmem:[%s6621_s1 + $0x300] ss:$8 sps:$4 sm:$0xff]   ;;  %v4346_v5 = vld [vmem:[%s6621_s1 + $0x314] ss:$8 sps:$4 sm:$0xff]  }
   0x3   :  { %2804 = vmatprep.subr.bf16.mxu0 %v4340_v1  ;;  %2316 = vmatpush1.bf16.msra.mxu1 %v4342_v2  ;;  %v4348_v6 = vld [vmem:[%s6621_s1 + $0x10] ss:$8 sps:$4 sm:$0xff]   ;;  %v4350_v8 = vld [vmem:[%s6621_s1 + $0x24] ss:$8 sps:$4 sm:$0xff]   ;;  %v4354_v10 = vld [vmem:[%s6621_s1 + $0x20] ss:$8 sps:$4 sm:$0xff]  }
   0x4   :  { %2805 = vmatpush1.bf16.msra.mxu0 %v4343_v3  ;;  %2317 = vmatprep.subr.bf16.mxu1 %v4344_v4  ;;  %v4349_v7 = vld [vmem:[%s6621_s1 + $0x310] ss:$8 sps:$4 sm:$0xff]   ;;  %v4352_v9 = vld [vmem:[%s6621_s1 + $0x324] ss:$8 sps:$4 sm:$0xff]   ;;  %v4355_v11 = vld [vmem:[%s6621_s1 + $0x320] ss:$8 sps:$4 sm:$0xff]  }
   0x5   :  { %2806 = vmatprep.subr.bf16.mxu0 %v4346_v5  ;;  %v4356_v12 = vld [vmem:[%s6621_s1 + $0x34] ss:$8 sps:$4 sm:$0xff]   ;;  %v4360_v14 = vld [vmem:[%s6621_s1 + $0x30] ss:$8 sps:$4 sm:$0xff]   ;;  %v4362_v16 = vld [vmem:[%s6621_s1 + $0x44] ss:$8 sps:$4 sm:$0xff]  }
   0x6   :  { %v4358_v13 = vld [vmem:[%s6621_s1 + $0x334] ss:$8 sps:$4 sm:$0xff]   ;;  %v4361_v15 = vld [vmem:[%s6621_s1 + $0x330] ss:$8 sps:$4 sm:$0xff]   ;;  %v4364_v17 = vld [vmem:[%s6621_s1 + $0x344] ss:$8 sps:$4 sm:$0xff]  }
   0x7   :  { %2318 = vmatpush1.bf16.msra.mxu1 %v4348_v6  ;;  %v4366_v18 = vld [vmem:[%s6621_s1 + $0x40] ss:$8 sps:$4 sm:$0xff]   ;;  %v4368_v20 = vld [vmem:[%s6621_s1 + $0x54] ss:$8 sps:$4 sm:$0xff]   ;;  %v4372_v22 = vld [vmem:[%s6621_s1 + $0x50] ss:$8 sps:$4 sm:$0xff]  }
   0x8   :  { %2807 = vmatpush1.bf16.msra.mxu0 %v4349_v7  ;;  %2319 = vmatprep.subr.bf16.mxu1 %v4350_v8  ;;  %v4367_v19 = vld [vmem:[%s6621_s1 + $0x340] ss:$8 sps:$4 sm:$0xff]   ;;  %v4370_v21 = vld [vmem:[%s6621_s1 + $0x354] ss:$8 sps:$4 sm:$0xff]   ;;  %v4373_v23 = vld [vmem:[%s6621_s1 + $0x350] ss:$8 sps:$4 sm:$0xff]  }
   0x9   :  { %2808 = vmatprep.subr.bf16.mxu0 %v4352_v9  ;;  %v4374_v24 = vld [vmem:[%s6621_s1 + $0x64] ss:$8 sps:$4 sm:$0xff]   ;;  %v4378_v26 = vld [vmem:[%s6621_s1 + $0x60] ss:$8 sps:$4 sm:$0xff]   ;;  %v4380_v28 = vld [vmem:[%s6621_s1 + $0x74] ss:$8 sps:$4 sm:$0xff]  }
   0xa   :  { %v4376_v25 = vld [vmem:[%s6621_s1 + $0x364] ss:$8 sps:$4 sm:$0xff]   ;;  %v4379_v27 = vld [vmem:[%s6621_s1 + $0x360] ss:$8 sps:$4 sm:$0xff]   ;;  %v4382_v29 = vld [vmem:[%s6621_s1 + $0x374] ss:$8 sps:$4 sm:$0xff]  }
   0xb   :  { %2320 = vmatpush1.bf16.msra.mxu1 %v4354_v10  ;;  %v4384_v30 = vld [vmem:[%s6621_s1 + $0x70] ss:$8 sps:$4 sm:$0xff]   ;;  %v4386_v32 = vld [vmem:[%s6621_s1 + $0x84] ss:$8 sps:$4 sm:$0xff]   ;;  %v4390_v34 = vld [vmem:[%s6621_s1 + $0x80] ss:$8 sps:$4 sm:$0xff]  }
   0xc   :  { %2809 = vmatpush1.bf16.msra.mxu0 %v4355_v11  ;;  %2321 = vmatprep.subr.bf16.mxu1 %v4356_v12  ;;  %v4385_v31 = vld [vmem:[%s6621_s1 + $0x370] ss:$8 sps:$4 sm:$0xff]   ;;  %v4388_v33 = vld [vmem:[%s6621_s1 + $0x384] ss:$8 sps:$4 sm:$0xff]   ;;  %v4391_v35 = vld [vmem:[%s6621_s1 + $0x380] ss:$8 sps:$4 sm:$0xff]  }
   0xd   :  { %2810 = vmatprep.subr.bf16.mxu0 %v4358_v13  ;;  %v4392_v36 = vld [vmem:[%s6621_s1 + $0x94] ss:$8 sps:$4 sm:$0xff]   ;;  %v4396_v38 = vld [vmem:[%s6621_s1 + $0x90] ss:$8 sps:$4 sm:$0xff]   ;;  %v4398_v40 = vld [vmem:[%s6621_s1 + $0xa4] ss:$8 sps:$4 sm:$0xff]  }
   0xe   :  { %v4394_v37 = vld [vmem:[%s6621_s1 + $0x394] ss:$8 sps:$4 sm:$0xff]   ;;  %v4397_v39 = vld [vmem:[%s6621_s1 + $0x390] ss:$8 sps:$4 sm:$0xff]   ;;  %v4400_v41 = vld [vmem:[%s6621_s1 + $0x3a4] ss:$8 sps:$4 sm:$0xff]  }
   0xf   :  { %2322 = vmatpush1.bf16.msra.mxu1 %v4360_v14  ;;  %v4402_v42 = vld [vmem:[%s6621_s1 + $0xa0] ss:$8 sps:$4 sm:$0xff]   ;;  %v4404_v44 = vld [vmem:[%s6621_s1 + $0xb4] ss:$8 sps:$4 sm:$0xff]   ;;  %v4408_v46 = vld [vmem:[%s6621_s1 + $0xb0] ss:$8 sps:$4 sm:$0xff]  }
  0x10   :  { %2811 = vmatpush1.bf16.msra.mxu0 %v4361_v15  ;;  %2323 = vmatprep.subr.bf16.mxu1 %v4362_v16  ;;  %v4403_v43 = vld [vmem:[%s6621_s1 + $0x3a0] ss:$8 sps:$4 sm:$0xff]   ;;  %v4406_v45 = vld [vmem:[%s6621_s1 + $0x3b4] ss:$8 sps:$4 sm:$0xff]   ;;  %v4409_v47 = vld [vmem:[%s6621_s1 + $0x3b0] ss:$8 sps:$4 sm:$0xff]  }
  0x11   :  { %2812 = vmatprep.subr.bf16.mxu0 %v4364_v17  ;;  %v4410_v48 = vld [vmem:[%s6621_s1 + $0xc4] ss:$8 sps:$4 sm:$0xff]   ;;  %v4439_v51 = vld [vmem:[%s6622_s0 + $0x1c] ss:$52 sps:$4 sm:$0xff]   ;;  %v4414_v52 = vld [vmem:[%s6621_s1 + $0xc0] ss:$8 sps:$4 sm:$0xff]  }
  0x12   :  { %v4436_v49 = vld [vmem:[%s6622_s0 + $0x4] ss:$52 sps:$4 sm:$0xff]   ;;  %v4415_v53 = vld [vmem:[%s6621_s1 + $0x3c0] ss:$8 sps:$4 sm:$0xff]   ;;  %2836 = vmatprep.mubr.bf16.mxu0 %v4439_v51  ;;  %v4416_v54 = vld [vmem:[%s6621_s1 + $0xd4] ss:$8 sps:$4 sm:$0xff]  }
  0x13   :  { %2324 = vmatpush1.bf16.msra.mxu1 %v4366_v18  ;;  %v4412_v50 = vld [vmem:[%s6621_s1 + $0x3c4] ss:$8 sps:$4 sm:$0xff]   ;;  %2347 = vmatprep.mubr.bf16.mxu1 %v4436_v49  ;;  %v4418_v55 = vld [vmem:[%s6621_s1 + $0x3d4] ss:$8 sps:$4 sm:$0xff]   ;;  %v4420_v56 = vld [vmem:[%s6621_s1 + $0xd0] ss:$8 sps:$4 sm:$0xff]  }
  0x14   :  { %2813 = vmatpush1.bf16.msra.mxu0 %v4367_v19  ;;  %2325 = vmatprep.subr.bf16.mxu1 %v4368_v20  ;;  %v4421_v57 = vld [vmem:[%s6621_s1 + $0x3d0] ss:$8 sps:$4 sm:$0xff]   ;;  %v4422_v58 = vld [vmem:[%s6621_s1 + $0xe4] ss:$8 sps:$4 sm:$0xff]   ;;  %v4426_v60 = vld [vmem:[%s6621_s1 + $0xe0] ss:$8 sps:$4 sm:$0xff]  }
  0x15   :  { %2814 = vmatprep.subr.bf16.mxu0 %v4370_v21  ;;  %v4424_v59 = vld [vmem:[%s6621_s1 + $0x3e4] ss:$8 sps:$4 sm:$0xff]   ;;  %v4427_v61 = vld [vmem:[%s6621_s1 + $0x3e0] ss:$8 sps:$4 sm:$0xff]   ;;  %v4428_v62 = vld [vmem:[%s6621_s1 + $0xf4] ss:$8 sps:$4 sm:$0xff]  }
  0x16   :  { %v4430_v63 = vld [vmem:[%s6621_s1 + $0x3f4] ss:$8 sps:$4 sm:$0xff]   ;;  %v4432_v0 = vld [vmem:[%s6621_s1 + $0xf0] ss:$8 sps:$4 sm:$0xff]   ;;  %v4442_v2 = vld [vmem:[%s6621_s1 + $0x404] ss:$8 sps:$4 sm:$0xff]  }
  0x17   :  { %2326 = vmatpush1.bf16.msra.mxu1 %v4372_v22  ;;  %v4433_v1 = vld [vmem:[%s6621_s1 + $0x3f0] ss:$8 sps:$4 sm:$0xff]   ;;  %v4434_v3 = vld [vmem:[%s6622_s0] ss:$52 sps:$4 sm:$0xff]   ;;  %v4445_v4 = vld [vmem:[%s6621_s1 + $0x104] ss:$8 sps:$4 sm:$0xff]  }
  0x18   :  { %2815 = vmatpush1.bf16.msra.mxu0 %v4373_v23  ;;  %2327 = vmatprep.subr.bf16.mxu1 %v4374_v24  ;;  %v4437_v5 = vld [vmem:[%s6622_s0 + $0x18] ss:$52 sps:$4 sm:$0xff]   ;;  %v4440_v6 = vld [vmem:[%s6621_s1 + $0x400] ss:$8 sps:$4 sm:$0xff]   ;;  %v4452_v10 = vld [vmem:[%s6621_s1 + $0x414] ss:$8 sps:$4 sm:$0xff]  }
  0x19   :  { %2816 = vmatprep.subr.bf16.mxu0 %v4376_v25  ;;  %v4443_v7 = vld [vmem:[%s6621_s1 + $0x100] ss:$8 sps:$4 sm:$0xff]   ;;  %v4448_v9 = vld [vmem:[%s6622_s0 + $0x84] ss:$52 sps:$4 sm:$0xff]   ;;  %v4457_v11 = vld [vmem:[%s6621_s1 + $0x114] ss:$8 sps:$4 sm:$0xff]  }
  0x1a   :  { %v4446_v8 = vld [vmem:[%s6622_s0 + $0x6c] ss:$52 sps:$4 sm:$0xff]   ;;  %v4450_v12 = vld [vmem:[%s6621_s1 + $0x410] ss:$8 sps:$4 sm:$0xff]   ;;  %v4453_v14 = vld [vmem:[%s6622_s0 + $0x68] ss:$52 sps:$4 sm:$0xff]  }
  0x1b   :  { %2328 = vmatpush1.bf16.msra.mxu1 %v4378_v26  ;;  %v4455_v13 = vld [vmem:[%s6621_s1 + $0x110] ss:$8 sps:$4 sm:$0xff]   ;;  %v4454_v15 = vld [vmem:[%s6622_s0 + $0x80] ss:$52 sps:$4 sm:$0xff]   ;;  %v4460_v16 = vld [vmem:[%s6621_s1 + $0x424] ss:$8 sps:$4 sm:$0xff]  }
  0x1c   :  { %2817 = vmatpush1.bf16.msra.mxu0 %v4379_v27  ;;  %2329 = vmatprep.subr.bf16.mxu1 %v4380_v28  ;;  %v4458_v17 = vld [vmem:[%s6621_s1 + $0x420] ss:$8 sps:$4 sm:$0xff]   ;;  %v4469_v18 = vld [vmem:[%s6621_s1 + $0x124] ss:$8 sps:$4 sm:$0xff]   ;;  %v4472_v22 = vld [vmem:[%s6621_s1 + $0x434] ss:$8 sps:$4 sm:$0xff]  }
  0x1d   :  { %2818 = vmatprep.subr.bf16.mxu0 %v4382_v29  ;;  %v4461_v19 = vld [vmem:[%s6622_s0 + $0xd4] ss:$52 sps:$4 sm:$0xff]   ;;  %v4463_v20 = vld [vmem:[%s6622_s0 + $0xec] ss:$52 sps:$4 sm:$0xff]   ;;  %v4470_v24 = vld [vmem:[%s6621_s1 + $0x430] ss:$8 sps:$4 sm:$0xff]  }
  0x1e   :  { %v4467_v21 = vld [vmem:[%s6621_s1 + $0x120] ss:$8 sps:$4 sm:$0xff]   ;;  %v4481_v23 = vld [vmem:[%s6621_s1 + $0x134] ss:$8 sps:$4 sm:$0xff]   ;;  %v4479_v25 = vld [vmem:[%s6621_s1 + $0x130] ss:$8 sps:$4 sm:$0xff]  }
  0x1f   :  { %2330 = vmatpush1.bf16.msra.mxu1 %v4384_v30  ;;  %v4465_v26 = vld [vmem:[%s6622_s0 + $0xd0] ss:$52 sps:$4 sm:$0xff]   ;;  %v4466_v28 = vld [vmem:[%s6622_s0 + $0xe8] ss:$52 sps:$4 sm:$0xff]   ;;  %v4489_v49 = vld [vmem:[%s6622_s0 + $0x1a0] ss:$52 sps:$4 sm:$0xff]  }
  0x20   :  { %2819 = vmatpush1.bf16.msra.mxu0 %v4385_v31  ;;  %2331 = vmatprep.subr.bf16.mxu1 %v4386_v32  ;;  %v4484_v27 = vld [vmem:[%s6621_s1 + $0x444] ss:$8 sps:$4 sm:$0xff]   ;;  %v4473_v30 = vld [vmem:[%s6622_s0 + $0x13c] ss:$52 sps:$4 sm:$0xff]   ;;  %v4475_v31 = vld [vmem:[%s6622_s0 + $0x154] ss:$52 sps:$4 sm:$0xff]  }
  0x21   :  { %2820 = vmatprep.subr.bf16.mxu0 %v4388_v33  ;;  %v4492_v29 = vld [vmem:[%s6621_s1 + $0x144] ss:$8 sps:$4 sm:$0xff]   ;;  %v4482_v32 = vld [vmem:[%s6621_s1 + $0x440] ss:$8 sps:$4 sm:$0xff]   ;;  %v4521_v51 = vld [vmem:[%s6621_s1 + $0x170] ss:$8 sps:$4 sm:$0xff]  }
  0x22   :  { %v4490_v33 = vld [vmem:[%s6621_s1 + $0x140] ss:$8 sps:$4 sm:$0xff]  }
  0x23   :  { %2332 = vmatpush1.bf16.msra.mxu1 %v4390_v34  ;;  %v4496_v34 = vld [vmem:[%s6621_s1 + $0x454] ss:$8 sps:$4 sm:$0xff]  }
  0x24   :  { %2821 = vmatpush1.bf16.msra.mxu0 %v4391_v35  ;;  %2333 = vmatprep.subr.bf16.mxu1 %v4392_v36  ;;  %v4501_v35 = vld [vmem:[%s6621_s1 + $0x154] ss:$8 sps:$4 sm:$0xff]   ;;  %v4494_v36 = vld [vmem:[%s6621_s1 + $0x450] ss:$8 sps:$4 sm:$0xff]  }
  0x25   :  { %2822 = vmatprep.subr.bf16.mxu0 %v4394_v37  ;;  %v4477_v37 = vld [vmem:[%s6622_s0 + $0x138] ss:$52 sps:$4 sm:$0xff]  }
  0x27   :  { %2334 = vmatpush1.bf16.msra.mxu1 %v4396_v38  ;;  %v4478_v38 = vld [vmem:[%s6622_s0 + $0x150] ss:$52 sps:$4 sm:$0xff]  }
  0x28   :  { %2823 = vmatpush1.bf16.msra.mxu0 %v4397_v39  ;;  %2335 = vmatprep.subr.bf16.mxu1 %v4398_v40  ;;  %v4499_v39 = vld [vmem:[%s6621_s1 + $0x150] ss:$8 sps:$4 sm:$0xff]  }
  0x29   :  { %2824 = vmatprep.subr.bf16.mxu0 %v4400_v41  ;;  %v4485_v40 = vld [vmem:[%s6622_s0 + $0x1a4] ss:$52 sps:$4 sm:$0xff]  }
  0x2a   :  { %v4506_v41 = vld [vmem:[%s6621_s1 + $0x464] ss:$8 sps:$4 sm:$0xff]  }
  0x2b   :  { %2336 = vmatpush1.bf16.msra.mxu1 %v4402_v42  ;;  %v4511_v42 = vld [vmem:[%s6621_s1 + $0x164] ss:$8 sps:$4 sm:$0xff]  }
  0x2c   :  { %2825 = vmatpush1.bf16.msra.mxu0 %v4403_v43  ;;  %2337 = vmatprep.subr.bf16.mxu1 %v4404_v44  ;;  %v4487_v43 = vld [vmem:[%s6622_s0 + $0x1bc] ss:$52 sps:$4 sm:$0xff]   ;;  %v4504_v44 = vld [vmem:[%s6621_s1 + $0x460] ss:$8 sps:$4 sm:$0xff]  }
  0x2d   :  { %2826 = vmatprep.subr.bf16.mxu0 %v4406_v45  ;;  %v4509_v45 = vld [vmem:[%s6621_s1 + $0x160] ss:$8 sps:$4 sm:$0xff]  }
  0x2f   :  { %2338 = vmatpush1.bf16.msra.mxu1 %v4408_v46  ;;  %v4514_v46 = vld [vmem:[%s6621_s1 + $0x474] ss:$8 sps:$4 sm:$0xff]  }
  0x30   :  { %2827 = vmatpush1.bf16.msra.mxu0 %v4409_v47  ;;  %2339 = vmatprep.subr.bf16.mxu1 %v4410_v48  ;;  %v4523_v47 = vld [vmem:[%s6621_s1 + $0x174] ss:$8 sps:$4 sm:$0xff]   ;;  %v4512_v48 = vld [vmem:[%s6621_s1 + $0x470] ss:$8 sps:$4 sm:$0xff]  }
  0x31   :  { %2828 = vmatprep.subr.bf16.mxu0 %v4412_v50  ;;  %v4493_v50 = vld [vmem:[%s6622_s0 + $0x1b8] ss:$52 sps:$4 sm:$0xff]  }
  0x33   :  { %2340 = vmatpush1.bf16.msra.mxu1 %v4414_v52  ;;  %v4526_v52 = vld [vmem:[%s6621_s1 + $0x484] ss:$8 sps:$4 sm:$0xff]  }
  0x34   :  { %2829 = vmatpush1.bf16.msra.mxu0 %v4415_v53  ;;  %2341 = vmatprep.subr.bf16.mxu1 %v4416_v54  ;;  %v4535_v53 = vld [vmem:[%s6621_s1 + $0x184] ss:$8 sps:$4 sm:$0xff]  }
  0x35   :  { %2830 = vmatprep.subr.bf16.mxu0 %v4418_v55  ;;  %v4497_v54 = vld [vmem:[%s6622_s0 + $0x20c] ss:$52 sps:$4 sm:$0xff]   ;;  %v4502_v55 = vld [vmem:[%s6622_s0 + $0x224] ss:$52 sps:$4 sm:$0xff]  }
  0x37   :  { %2342 = vmatpush1.bf16.msra.mxu1 %v4420_v56  ;;  %v4524_v56 = vld [vmem:[%s6621_s1 + $0x480] ss:$8 sps:$4 sm:$0xff]  }
  0x38   :  { %2831 = vmatpush1.bf16.msra.mxu0 %v4421_v57  ;;  %2343 = vmatprep.subr.bf16.mxu1 %v4422_v58  ;;  %v4533_v57 = vld [vmem:[%s6621_s1 + $0x180] ss:$8 sps:$4 sm:$0xff]   ;;  %v4538_v58 = vld [vmem:[%s6621_s1 + $0x494] ss:$8 sps:$4 sm:$0xff]  }
  0x39   :  { %2832 = vmatprep.subr.bf16.mxu0 %v4424_v59  ;;  %v4547_v59 = vld [vmem:[%s6621_s1 + $0x194] ss:$8 sps:$4 sm:$0xff]  }
  0x3b   :  { %2344 = vmatpush1.bf16.msra.mxu1 %v4426_v60  ;;  %v4536_v60 = vld [vmem:[%s6621_s1 + $0x490] ss:$8 sps:$4 sm:$0xff]  }
  0x3c   :  { %2833 = vmatpush1.bf16.msra.mxu0 %v4427_v61  ;;  %2345 = vmatprep.subr.bf16.mxu1 %v4428_v62  ;;  %v4507_v61 = vld [vmem:[%s6622_s0 + $0x208] ss:$52 sps:$4 sm:$0xff]   ;;  %v4508_v62 = vld [vmem:[%s6622_s0 + $0x220] ss:$52 sps:$4 sm:$0xff]  }
  0x3d   :  { %2834 = vmatprep.subr.bf16.mxu0 %v4430_v63  ;;  %v4545_v63 = vld [vmem:[%s6621_s1 + $0x190] ss:$8 sps:$4 sm:$0xff]  }
  0x3f   :  { %2346 = vmatpush1.bf16.msra.mxu1 %v4432_v0  ;;  %v4550_v0 = vld [vmem:[%s6621_s1 + $0x4a4] ss:$8 sps:$4 sm:$0xff]  }
  0x40   :  { %2835 = vmatpush1.bf16.msra.mxu0 %v4433_v1  ;;  %2478 = vmatprep.subr.bf16.mxu1 %v4445_v4  ;;  %v4555_v1 = vld [vmem:[%s6621_s1 + $0x1a4] ss:$8 sps:$4 sm:$0xff]   ;;  %v4548_v4 = vld [vmem:[%s6621_s1 + $0x4a0] ss:$8 sps:$4 sm:$0xff]  }
  0x41   :  { %2967 = vmatprep.subr.bf16.mxu0 %v4442_v2  ;;  %v4515_v2 = vld [vmem:[%s6622_s0 + $0x274] ss:$52 sps:$4 sm:$0xff]  }
  0x42   :  { %2348 = vmatmul.mubr.bf16.vlgmr.msra.gmra.mrb[0].mxu1 %v4434_v3  ;;  %v4517_v3 = vld [vmem:[%s6622_s0 + $0x28c] ss:$52 sps:$4 sm:$0xff]  }
  0x43   :  { %2837 = vmatmul.mubr.bf16.vlgmr.msra.gmra.mrb[0].mxu0 %v4437_v5  ;;  %2357 = vmatprep.mubr.bf16.mxu1 %v4446_v8  ;;  %v4553_v5 = vld [vmem:[%s6621_s1 + $0x1a0] ss:$8 sps:$4 sm:$0xff]   ;;  %v4560_v8 = vld [vmem:[%s6621_s1 + $0x4b0] ss:$8 sps:$4 sm:$0xff]  }
  0x44   :  { %2968 = vmatpush1.bf16.msra.mxu0 %v4440_v6  ;;  %2479 = vmatpush1.bf16.msra.mxu1 %v4443_v7  ;;  %v4562_v6 = vld [vmem:[%s6621_s1 + $0x4b4] ss:$8 sps:$4 sm:$0xff]  }
  0x45   :  { %2846 = vmatprep.mubr.bf16.mxu0 %v4448_v9  ;;  %2969 = vmatprep.subr.bf16.mxu0 %v4452_v10  ;;  %v4565_v7 = vld [vmem:[%s6621_s1 + $0x1b4] ss:$8 sps:$4 sm:$0xff]   ;;  %v4519_v9 = vld [vmem:[%s6622_s0 + $0x270] ss:$52 sps:$4 sm:$0xff]  }
  0x46   :  { %2480 = vmatprep.subr.bf16.mxu1 %v4457_v11  ;;  %v4520_v10 = vld [vmem:[%s6622_s0 + $0x288] ss:$52 sps:$4 sm:$0xff]   ;;  %v4563_v11 = vld [vmem:[%s6621_s1 + $0x1b0] ss:$8 sps:$4 sm:$0xff]  }
  0x48   :  { %2970 = vmatpush1.bf16.msra.mxu0 %v4450_v12  ;;  %2481 = vmatpush1.bf16.msra.mxu1 %v4455_v13  ;;  %v4527_v12 = vld [vmem:[%s6622_s0 + $0x2dc] ss:$52 sps:$4 sm:$0xff]   ;;  %v4568_v13 = vld [vmem:[%s6621_s1 + $0x4c4] ss:$8 sps:$4 sm:$0xff]  }
  0x49   :  { %2971 = vmatprep.subr.bf16.mxu0 %v4460_v16  ;;  %2482 = vmatprep.subr.bf16.mxu1 %v4469_v18  ;;  %v4566_v16 = vld [vmem:[%s6621_s1 + $0x4c0] ss:$8 sps:$4 sm:$0xff]   ;;  %v4580_v18 = vld [vmem:[%s6621_s1 + $0x4d4] ss:$8 sps:$4 sm:$0xff]  }
  0x4a   :  { %2358 = vmatmul.mubr.bf16.gmra.mrb[4].mxu1 %v4453_v14  ;;  %v4577_v14 = vld [vmem:[%s6621_s1 + $0x1c4] ss:$8 sps:$4 sm:$0xff]  }
  0x4b   :  { %2847 = vmatmul.mubr.bf16.gmra.mrb[4].mxu0 %v4454_v15  ;;  %2367 = vmatprep.mubr.bf16.mxu1 %v4461_v19  ;;  %v4529_v15 = vld [vmem:[%s6622_s0 + $0x2f4] ss:$52 sps:$4 sm:$0xff]  }
  0x4c   :  { %2972 = vmatpush1.bf16.msra.mxu0 %v4458_v17  ;;  %2856 = vmatprep.mubr.bf16.mxu0 %v4463_v20  ;;  %v4575_v17 = vld [vmem:[%s6621_s1 + $0x1c0] ss:$8 sps:$4 sm:$0xff]   ;;  %v4589_v19 = vld [vmem:[%s6621_s1 + $0x1d4] ss:$8 sps:$4 sm:$0xff]   ;;  %v4578_v20 = vld [vmem:[%s6621_s1 + $0x4d0] ss:$8 sps:$4 sm:$0xff]  }
  0x4d   :  { %2483 = vmatpush1.bf16.msra.mxu1 %v4467_v21  ;;  %2973 = vmatprep.subr.bf16.mxu0 %v4472_v22  ;;  %v4531_v21 = vld [vmem:[%s6622_s0 + $0x2d8] ss:$52 sps:$4 sm:$0xff]   ;;  %v4532_v22 = vld [vmem:[%s6622_s0 + $0x2f0] ss:$52 sps:$4 sm:$0xff]  }
  0x4e   :  { %2484 = vmatprep.subr.bf16.mxu1 %v4481_v23  ;;  %v4587_v23 = vld [vmem:[%s6621_s1 + $0x1d0] ss:$8 sps:$4 sm:$0xff]  }
  0x50   :  { %2974 = vmatpush1.bf16.msra.mxu0 %v4470_v24  ;;  %v4592_v24 = vld [vmem:[%s6621_s1 + $0x4e4] ss:$8 sps:$4 sm:$0xff]  }
  0x51   :  { %2975 = vmatprep.subr.bf16.mxu0 %v4484_v27  ;;  %2485 = vmatpush1.bf16.msra.mxu1 %v4479_v25  ;;  %v4600_v25 = vld [vmem:[%s6621_s1 + $0x1e4] ss:$8 sps:$4 sm:$0xff]   ;;  %v4541_v27 = vld [vmem:[%s6622_s0 + $0x35c] ss:$52 sps:$4 sm:$0xff]  }
  0x52   :  { %2486 = vmatprep.subr.bf16.mxu1 %v4492_v29  ;;  %2368 = vmatmul.mubr.bf16.gmra.mrb[8].mxu1 %v4465_v26  ;;  %v4539_v26 = vld [vmem:[%s6622_s0 + $0x344] ss:$52 sps:$4 sm:$0xff]   ;;  %v4598_v29 = vld [vmem:[%s6621_s1 + $0x1e0] ss:$8 sps:$4 sm:$0xff]  }
  0x53   :  { %2857 = vmatmul.mubr.bf16.gmra.mrb[8].mxu0 %v4466_v28  ;;  %2377 = vmatprep.mubr.bf16.mxu1 %v4473_v30  ;;  %v4590_v28 = vld [vmem:[%s6621_s1 + $0x4e0] ss:$8 sps:$4 sm:$0xff]   ;;  %v4604_v30 = vld [vmem:[%s6621_s1 + $0x4f4] ss:$8 sps:$4 sm:$0xff]  }
  0x54   :  { %2866 = vmatprep.mubr.bf16.mxu0 %v4475_v31  ;;  %2976 = vmatpush1.bf16.msra.mxu0 %v4482_v32  ;;  %v4607_v31 = vld [vmem:[%s6621_s1 + $0x1f4] ss:$8 sps:$4 sm:$0xff]   ;;  %v4602_v32 = vld [vmem:[%s6621_s1 + $0x4f0] ss:$8 sps:$4 sm:$0xff]  }
  0x55   :  { %2487 = vmatpush1.bf16.msra.mxu1 %v4490_v33  ;;  %2977 = vmatprep.subr.bf16.mxu0 %v4496_v34  ;;  %v4605_v33 = vld [vmem:[%s6621_s1 + $0x1f0] ss:$8 sps:$4 sm:$0xff]   ;;  %v4543_v34 = vld [vmem:[%s6622_s0 + $0x340] ss:$52 sps:$4 sm:$0xff]  }
  0x56   :  { %2488 = vmatprep.subr.bf16.mxu1 %v4501_v35  ;;  %v5410_v35 = vld [vmem:[%s6621_s1 + $0x504] ss:$8 sps:$4 sm:$0xff]  }
  0x58   :  { %2978 = vmatpush1.bf16.msra.mxu0 %v4494_v36  ;;  %v4619_v36 = vld [vmem:[%s6621_s1 + $0x204] ss:$8 sps:$4 sm:$0xff]  }
  0x59   :  { %2489 = vmatpush1.bf16.msra.mxu1 %v4499_v39  ;;  %2979 = vmatprep.subr.bf16.mxu0 %v4506_v41  ;;  %v4556_v39 = vld [vmem:[%s6622_s0 + $0x3c4] ss:$52 sps:$4 sm:$0xff]   ;;  %v4559_v41 = vld [vmem:[%s6622_s0 + $0x3c0] ss:$52 sps:$4 sm:$0xff]  }
  0x5a   :  { %2490 = vmatprep.subr.bf16.mxu1 %v4511_v42  ;;  %2378 = vmatmul.mubr.bf16.gmra.mrb[12].mxu1 %v4477_v37  ;;  %v4544_v37 = vld [vmem:[%s6622_s0 + $0x358] ss:$52 sps:$4 sm:$0xff]   ;;  %v4569_v42 = vld [vmem:[%s6622_s0 + $0x414] ss:$52 sps:$4 sm:$0xff]  }
  0x5b   :  { %2867 = vmatmul.mubr.bf16.gmra.mrb[12].mxu0 %v4478_v38  ;;  %2387 = vmatprep.mubr.bf16.mxu1 %v4485_v40  ;;  %v4551_v38 = vld [vmem:[%s6622_s0 + $0x3ac] ss:$52 sps:$4 sm:$0xff]   ;;  %v4558_v40 = vld [vmem:[%s6622_s0 + $0x3a8] ss:$52 sps:$4 sm:$0xff]  }
  0x5c   :  { %2876 = vmatprep.mubr.bf16.mxu0 %v4487_v43  ;;  %2980 = vmatpush1.bf16.msra.mxu0 %v4504_v44  ;;  %v4571_v43 = vld [vmem:[%s6622_s0 + $0x42c] ss:$52 sps:$4 sm:$0xff]   ;;  %v4573_v44 = vld [vmem:[%s6622_s0 + $0x410] ss:$52 sps:$4 sm:$0xff]  }
  0x5d   :  { %2491 = vmatpush1.bf16.msra.mxu1 %v4509_v45  ;;  %2981 = vmatprep.subr.bf16.mxu0 %v4514_v46  ;;  %v4574_v45 = vld [vmem:[%s6622_s0 + $0x428] ss:$52 sps:$4 sm:$0xff]  }
  0x5e   :  { %2492 = vmatprep.subr.bf16.mxu1 %v4523_v47  ;;  %v4581_v46 = vld [vmem:[%s6622_s0 + $0x47c] ss:$52 sps:$4 sm:$0xff]   ;;  %v4583_v47 = vld [vmem:[%s6622_s0 + $0x494] ss:$52 sps:$4 sm:$0xff]  }
  0x60   :  { %2982 = vmatpush1.bf16.msra.mxu0 %v4512_v48  ;;  %v4585_v48 = vld [vmem:[%s6622_s0 + $0x478] ss:$52 sps:$4 sm:$0xff]  }
  0x61   :  { %2493 = vmatpush1.bf16.msra.mxu1 %v4521_v51  ;;  %2983 = vmatprep.subr.bf16.mxu0 %v4526_v52  ;;  %v4595_v51 = vld [vmem:[%s6622_s0 + $0x4fc] ss:$52 sps:$4 sm:$0xff]   ;;  %v4597_v52 = vld [vmem:[%s6622_s0 + $0x4e0] ss:$52 sps:$4 sm:$0xff]  }
  0x62   :  { %2494 = vmatprep.subr.bf16.mxu1 %v4535_v53  ;;  %2388 = vmatmul.mubr.bf16.gmra.mrb[16].mxu1 %v4489_v49  ;;  %v4586_v49 = vld [vmem:[%s6622_s0 + $0x490] ss:$52 sps:$4 sm:$0xff]   ;;  %v4601_v53 = vld [vmem:[%s6622_s0 + $0x4f8] ss:$52 sps:$4 sm:$0xff]  }
  0x63   :  { %2877 = vmatmul.mubr.bf16.gmra.mrb[16].mxu0 %v4493_v50  ;;  %2397 = vmatprep.mubr.bf16.mxu1 %v4497_v54  ;;  %v4593_v50 = vld [vmem:[%s6622_s0 + $0x4e4] ss:$52 sps:$4 sm:$0xff]   ;;  %v4610_v54 = vld [vmem:[%s6622_s0 + $0xc] ss:$52 sps:$4 sm:$0xff]  }
  0x64   :  { %2886 = vmatprep.mubr.bf16.mxu0 %v4502_v55  ;;  %2984 = vmatpush1.bf16.msra.mxu0 %v4524_v56  ;;  %v4613_v55 = vld [vmem:[%s6622_s0 + $0x24] ss:$52 sps:$4 sm:$0xff]   ;;  %v4608_v56 = vld [vmem:[%s6622_s0 + $0x8] ss:$52 sps:$4 sm:$0xff]  }
  0x65   :  { %2495 = vmatpush1.bf16.msra.mxu1 %v4533_v57  ;;  %2985 = vmatprep.subr.bf16.mxu0 %v4538_v58  ;;  %v4611_v57 = vld [vmem:[%s6622_s0 + $0x20] ss:$52 sps:$4 sm:$0xff]  }
  0x66   :  { %2496 = vmatprep.subr.bf16.mxu1 %v4547_v59  ;;  %v5482_v58 = vld [vmem:[%s6621_s1 + $0x500] ss:$8 sps:$4 sm:$0xff]  }
  0x67   :  { %v4617_v59 = vld [vmem:[%s6621_s1 + $0x200] ss:$8 sps:$4 sm:$0xff]  }
  0x68   :  { %2986 = vmatpush1.bf16.msra.mxu0 %v4536_v60  ;;  %v4620_v60 = vld [vmem:[%s6622_s0 + $0x74] ss:$52 sps:$4 sm:$0xff]  }
  0x69   :  { %2497 = vmatpush1.bf16.msra.mxu1 %v4545_v63  ;;  %2987 = vmatprep.subr.bf16.mxu0 %v4550_v0  ;;  %v4631_v63 = vld [vmem:[%s6621_s1 + $0x214] ss:$8 sps:$4 sm:$0xff]   ;;  %v5504_v0 = vld [vmem:[%s6621_s1 + $0x510] ss:$8 sps:$4 sm:$0xff]  }
  0x6a   :  { %2498 = vmatprep.subr.bf16.mxu1 %v4555_v1  ;;  %2398 = vmatmul.mubr.bf16.gmra.mrb[20].mxu1 %v4507_v61  ;;  %v4622_v61 = vld [vmem:[%s6622_s0 + $0x8c] ss:$52 sps:$4 sm:$0xff]   ;;  %v4629_v1 = vld [vmem:[%s6621_s1 + $0x210] ss:$8 sps:$4 sm:$0xff]  }
  0x6b   :  { %2887 = vmatmul.mubr.bf16.gmra.mrb[20].mxu0 %v4508_v62  ;;  %2407 = vmatprep.mubr.bf16.mxu1 %v4515_v2  ;;  %v5496_v62 = vld [vmem:[%s6621_s1 + $0x514] ss:$8 sps:$4 sm:$0xff]   ;;  %v4627_v2 = vld [vmem:[%s6622_s0 + $0x70] ss:$52 sps:$4 sm:$0xff]  }
  0x6c   :  { %2896 = vmatprep.mubr.bf16.mxu0 %v4517_v3  ;;  %2988 = vmatpush1.bf16.msra.mxu0 %v4548_v4  ;;  %v5516_v3 = vld [vmem:[%s6621_s1 + $0x524] ss:$8 sps:$4 sm:$0xff]  }
  0x6d   :  { %2499 = vmatpush1.bf16.msra.mxu1 %v4553_v5  ;;  %2989 = vmatprep.subr.bf16.mxu0 %v4562_v6  ;;  %v4643_v4 = vld [vmem:[%s6621_s1 + $0x224] ss:$8 sps:$4 sm:$0xff]   ;;  %v4628_v5 = vld [vmem:[%s6622_s0 + $0x88] ss:$52 sps:$4 sm:$0xff]  }
  0x6e   :  { %2500 = vmatprep.subr.bf16.mxu1 %v4565_v7  ;;  %v5528_v6 = vld [vmem:[%s6621_s1 + $0x520] ss:$8 sps:$4 sm:$0xff]   ;;  %v4635_v7 = vld [vmem:[%s6622_s0 + $0xdc] ss:$52 sps:$4 sm:$0xff]  }
  0x70   :  { %2990 = vmatpush1.bf16.msra.mxu0 %v4560_v8  ;;  %v4637_v8 = vld [vmem:[%s6622_s0 + $0xf4] ss:$52 sps:$4 sm:$0xff]  }
  0x71   :  { %2501 = vmatpush1.bf16.msra.mxu1 %v4563_v11  ;;  %2991 = vmatprep.subr.bf16.mxu0 %v4568_v13  ;;  %v4655_v11 = vld [vmem:[%s6621_s1 + $0x234] ss:$8 sps:$4 sm:$0xff]   ;;  %v4653_v13 = vld [vmem:[%s6621_s1 + $0x230] ss:$8 sps:$4 sm:$0xff]  }
  0x72   :  { %2502 = vmatprep.subr.bf16.mxu1 %v4577_v14  ;;  %2408 = vmatmul.mubr.bf16.gmra.mrb[24].mxu1 %v4519_v9  ;;  %v4641_v9 = vld [vmem:[%s6621_s1 + $0x220] ss:$8 sps:$4 sm:$0xff]   ;;  %v4639_v14 = vld [vmem:[%s6622_s0 + $0xd8] ss:$52 sps:$4 sm:$0xff]  }
  0x73   :  { %2897 = vmatmul.mubr.bf16.gmra.mrb[24].mxu0 %v4520_v10  ;;  %2417 = vmatprep.mubr.bf16.mxu1 %v4527_v12  ;;  %v5544_v10 = vld [vmem:[%s6621_s1 + $0x534] ss:$8 sps:$4 sm:$0xff]   ;;  %v5552_v12 = vld [vmem:[%s6621_s1 + $0x530] ss:$8 sps:$4 sm:$0xff]  }
  0x74   :  { %2906 = vmatprep.mubr.bf16.mxu0 %v4529_v15  ;;  %2992 = vmatpush1.bf16.msra.mxu0 %v4566_v16  ;;  %v4640_v15 = vld [vmem:[%s6622_s0 + $0xf0] ss:$52 sps:$4 sm:$0xff]  }
  0x75   :  { %2503 = vmatpush1.bf16.msra.mxu1 %v4575_v17  ;;  %2993 = vmatprep.subr.bf16.mxu0 %v4580_v18  ;;  %v5567_v16 = vld [vmem:[%s6621_s1 + $0x544] ss:$8 sps:$4 sm:$0xff]  }
  0x76   :  { %2504 = vmatprep.subr.bf16.mxu1 %v4589_v19  ;;  %v4647_v17 = vld [vmem:[%s6622_s0 + $0x144] ss:$52 sps:$4 sm:$0xff]   ;;  %v4649_v19 = vld [vmem:[%s6622_s0 + $0x15c] ss:$52 sps:$4 sm:$0xff]  }
  0x77   :  { %v4666_v18 = vld [vmem:[%s6621_s1 + $0x244] ss:$8 sps:$4 sm:$0xff]  }
  0x78   :  { %2994 = vmatpush1.bf16.msra.mxu0 %v4578_v20  ;;  %v5582_v20 = vld [vmem:[%s6621_s1 + $0x540] ss:$8 sps:$4 sm:$0xff]  }
  0x79   :  { %2505 = vmatpush1.bf16.msra.mxu1 %v4587_v23  ;;  %2995 = vmatprep.subr.bf16.mxu0 %v4592_v24  ;;  %v4675_v23 = vld [vmem:[%s6621_s1 + $0x254] ss:$8 sps:$4 sm:$0xff]   ;;  %v5600_v24 = vld [vmem:[%s6621_s1 + $0x550] ss:$8 sps:$4 sm:$0xff]  }
  0x7a   :  { %2506 = vmatprep.subr.bf16.mxu1 %v4600_v25  ;;  %2418 = vmatmul.mubr.bf16.gmra.mrb[28].mxu1 %v4531_v21  ;;  %v4664_v21 = vld [vmem:[%s6621_s1 + $0x240] ss:$8 sps:$4 sm:$0xff]  }
  0x7b   :  { %2907 = vmatmul.mubr.bf16.gmra.mrb[28].mxu0 %v4532_v22  ;;  %2427 = vmatprep.mubr.bf16.mxu1 %v4539_v26  ;;  %v5592_v22 = vld [vmem:[%s6621_s1 + $0x554] ss:$8 sps:$4 sm:$0xff]   ;;  %v4652_v26 = vld [vmem:[%s6622_s0 + $0x158] ss:$52 sps:$4 sm:$0xff]  }
  0x7c   :  { %2916 = vmatprep.mubr.bf16.mxu0 %v4541_v27  ;;  %2996 = vmatpush1.bf16.msra.mxu0 %v4590_v28  ;;  %v4651_v25 = vld [vmem:[%s6622_s0 + $0x140] ss:$52 sps:$4 sm:$0xff]   ;;  %v4673_v27 = vld [vmem:[%s6621_s1 + $0x250] ss:$8 sps:$4 sm:$0xff]   ;;  %v5616_v28 = vld [vmem:[%s6621_s1 + $0x564] ss:$8 sps:$4 sm:$0xff]  }
  0x7d   :  { %2507 = vmatpush1.bf16.msra.mxu1 %v4598_v29  ;;  %2997 = vmatprep.subr.bf16.mxu0 %v4604_v30  ;;  %v4685_v29 = vld [vmem:[%s6621_s1 + $0x264] ss:$8 sps:$4 sm:$0xff]  }
  0x7e   :  { %2508 = vmatprep.subr.bf16.mxu1 %v4607_v31  ;;  %v4659_v30 = vld [vmem:[%s6622_s0 + $0x1ac] ss:$52 sps:$4 sm:$0xff]   ;;  %v4661_v31 = vld [vmem:[%s6622_s0 + $0x1c4] ss:$52 sps:$4 sm:$0xff]  }
  0x80   :  { %2998 = vmatpush1.bf16.msra.mxu0 %v4602_v32  ;;  %v5630_v32 = vld [vmem:[%s6621_s1 + $0x560] ss:$8 sps:$4 sm:$0xff]  }
  0x81   :  { %2509 = vmatpush1.bf16.msra.mxu1 %v4605_v33  ;;  %3130 = vmatprep.subr.bf16.mxu0 %v5410_v35  ;;  %v4683_v33 = vld [vmem:[%s6621_s1 + $0x260] ss:$8 sps:$4 sm:$0xff]  }
  0x82   :  { %2641 = vmatprep.subr.bf16.mxu1 %v4619_v36  ;;  %2428 = vmatmul.mubr.bf16.gmra.mrb[32].mxu1 %v4543_v34  ;;  %v5640_v34 = vld [vmem:[%s6621_s1 + $0x574] ss:$8 sps:$4 sm:$0xff]  }
  0x83   :  { %2917 = vmatmul.mubr.bf16.gmra.mrb[32].mxu0 %v4544_v37  ;;  %2437 = vmatprep.mubr.bf16.mxu1 %v4551_v38  ;;  %v4697_v36 = vld [vmem:[%s6621_s1 + $0x274] ss:$8 sps:$4 sm:$0xff]   ;;  %v5648_v37 = vld [vmem:[%s6621_s1 + $0x570] ss:$8 sps:$4 sm:$0xff]  }
  0x84   :  { %2926 = vmatprep.mubr.bf16.mxu0 %v4556_v39  ;;  %v4663_v38 = vld [vmem:[%s6622_s0 + $0x1a8] ss:$52 sps:$4 sm:$0xff]   ;;  %v4667_v39 = vld [vmem:[%s6622_s0 + $0x1c0] ss:$52 sps:$4 sm:$0xff]  }
  0x8a   :  { %2438 = vmatmul.mubr.bf16.gmra.mrb[36].mxu1 %v4558_v40  ;;  %v4695_v40 = vld [vmem:[%s6621_s1 + $0x270] ss:$8 sps:$4 sm:$0xff]  }
  0x8b   :  { %2927 = vmatmul.mubr.bf16.gmra.mrb[36].mxu0 %v4559_v41  ;;  %2447 = vmatprep.mubr.bf16.mxu1 %v4569_v42  ;;  %v4671_v41 = vld [vmem:[%s6622_s0 + $0x214] ss:$52 sps:$4 sm:$0xff]   ;;  %v5667_v42 = vld [vmem:[%s6621_s1 + $0x584] ss:$8 sps:$4 sm:$0xff]  }
  0x8c   :  { %2936 = vmatprep.mubr.bf16.mxu0 %v4571_v43  ;;  %v4709_v43 = vld [vmem:[%s6621_s1 + $0x284] ss:$8 sps:$4 sm:$0xff]  }
  0x92   :  { %2448 = vmatmul.mubr.bf16.gmra.mrb[40].mxu1 %v4573_v44  ;;  %v4676_v44 = vld [vmem:[%s6622_s0 + $0x22c] ss:$52 sps:$4 sm:$0xff]  }
  0x93   :  { %2937 = vmatmul.mubr.bf16.gmra.mrb[40].mxu0 %v4574_v45  ;;  %2457 = vmatprep.mubr.bf16.mxu1 %v4581_v46  ;;  %v5678_v45 = vld [vmem:[%s6621_s1 + $0x580] ss:$8 sps:$4 sm:$0xff]  }
  0x94   :  { %2946 = vmatprep.mubr.bf16.mxu0 %v4583_v47  ;;  %v4707_v46 = vld [vmem:[%s6621_s1 + $0x280] ss:$8 sps:$4 sm:$0xff]   ;;  %v5687_v47 = vld [vmem:[%s6621_s1 + $0x594] ss:$8 sps:$4 sm:$0xff]  }
  0x9a   :  { %2458 = vmatmul.mubr.bf16.gmra.mrb[44].mxu1 %v4585_v48  ;;  %v4721_v48 = vld [vmem:[%s6621_s1 + $0x294] ss:$8 sps:$4 sm:$0xff]  }
  0x9b   :  { %2947 = vmatmul.mubr.bf16.gmra.mrb[44].mxu0 %v4586_v49  ;;  %2467 = vmatprep.mubr.bf16.mxu1 %v4593_v50  ;;  %v5696_v49 = vld [vmem:[%s6621_s1 + $0x590] ss:$8 sps:$4 sm:$0xff]  }
  0x9c   :  { %2956 = vmatprep.mubr.bf16.mxu0 %v4595_v51  ;;  %v4681_v50 = vld [vmem:[%s6622_s0 + $0x210] ss:$52 sps:$4 sm:$0xff]   ;;  %v4682_v51 = vld [vmem:[%s6622_s0 + $0x228] ss:$52 sps:$4 sm:$0xff]  }
  0xa2   :  { %2468 = vmatmul.mubr.bf16.gmra.mrb[48].mxu1 %v4597_v52  ;;  %v4719_v52 = vld [vmem:[%s6621_s1 + $0x290] ss:$8 sps:$4 sm:$0xff]  }
  0xa3   :  { %2957 = vmatmul.mubr.bf16.gmra.mrb[48].mxu0 %v4601_v53  ;;  %2510 = vmatprep.mubr.bf16.mxu1 %v4610_v54  ;;  %v5712_v53 = vld [vmem:[%s6621_s1 + $0x5a4] ss:$8 sps:$4 sm:$0xff]  }
  0xa4   :  { %2999 = vmatprep.mubr.bf16.mxu0 %v4613_v55  ;;  %v4729_v54 = vld [vmem:[%s6621_s1 + $0x2a4] ss:$8 sps:$4 sm:$0xff]   ;;  %v4689_v55 = vld [vmem:[%s6622_s0 + $0x27c] ss:$52 sps:$4 sm:$0xff]  }
  0xaa   :  { %2511 = vmatmul.mubr.bf16.vlgmr.msra.gmra.mrb[0].mxu1 %v4608_v56  ;;  %v4691_v56 = vld [vmem:[%s6622_s0 + $0x294] ss:$52 sps:$4 sm:$0xff]  }
  0xab   :  { %3000 = vmatmul.mubr.bf16.vlgmr.msra.gmra.mrb[0].mxu0 %v4611_v57  ;;  %2520 = vmatprep.mubr.bf16.mxu1 %v4620_v60  ;;  %v5726_v57 = vld [vmem:[%s6621_s1 + $0x5a0] ss:$8 sps:$4 sm:$0xff]   ;;  %v5736_v60 = vld [vmem:[%s6621_s1 + $0x5b4] ss:$8 sps:$4 sm:$0xff]  }
  0xac   :  { %3131 = vmatpush1.bf16.msra.mxu0 %v5482_v58  ;;  %2642 = vmatpush1.bf16.msra.mxu1 %v4617_v59  ;;  %v4727_v59 = vld [vmem:[%s6621_s1 + $0x2a0] ss:$8 sps:$4 sm:$0xff]  }
  0xad   :  { %3009 = vmatprep.mubr.bf16.mxu0 %v4622_v61  ;;  %3132 = vmatprep.subr.bf16.mxu0 %v5496_v62  ;;  %v4739_v61 = vld [vmem:[%s6621_s1 + $0x2b4] ss:$8 sps:$4 sm:$0xff]  }
  0xae   :  { %2643 = vmatprep.subr.bf16.mxu1 %v4631_v63  ;;  %v5744_v63 = vld [vmem:[%s6621_s1 + $0x5b0] ss:$8 sps:$4 sm:$0xff]  }
  0xb0   :  { %3133 = vmatpush1.bf16.msra.mxu0 %v5504_v0  ;;  %2644 = vmatpush1.bf16.msra.mxu1 %v4629_v1  ;;  %v4693_v1 = vld [vmem:[%s6622_s0 + $0x278] ss:$52 sps:$4 sm:$0xff]  }
  0xb1   :  { %3134 = vmatprep.subr.bf16.mxu0 %v5516_v3  ;;  %2645 = vmatprep.subr.bf16.mxu1 %v4643_v4  ;;  %v4737_v4 = vld [vmem:[%s6621_s1 + $0x2b0] ss:$8 sps:$4 sm:$0xff]  }
  0xb2   :  { %2521 = vmatmul.mubr.bf16.gmra.mrb[4].mxu1 %v4627_v2  ;;  %v4694_v2 = vld [vmem:[%s6622_s0 + $0x290] ss:$52 sps:$4 sm:$0xff]  }
  0xb3   :  { %3010 = vmatmul.mubr.bf16.gmra.mrb[4].mxu0 %v4628_v5  ;;  %2530 = vmatprep.mubr.bf16.mxu1 %v4635_v7  ;;  %v5760_v5 = vld [vmem:[%s6621_s1 + $0x5c4] ss:$8 sps:$4 sm:$0xff]  }
  0xb4   :  { %3135 = vmatpush1.bf16.msra.mxu0 %v5528_v6  ;;  %3019 = vmatprep.mubr.bf16.mxu0 %v4637_v8  ;;  %v4751_v7 = vld [vmem:[%s6621_s1 + $0x2c4] ss:$8 sps:$4 sm:$0xff]  }
  0xb5   :  { %2646 = vmatpush1.bf16.msra.mxu1 %v4641_v9  ;;  %3136 = vmatprep.subr.bf16.mxu0 %v5544_v10  ;;  %v4701_v8 = vld [vmem:[%s6622_s0 + $0x2e4] ss:$52 sps:$4 sm:$0xff]   ;;  %v4703_v9 = vld [vmem:[%s6622_s0 + $0x2fc] ss:$52 sps:$4 sm:$0xff]  }
  0xb6   :  { %2647 = vmatprep.subr.bf16.mxu1 %v4655_v11  ;;  %v5774_v11 = vld [vmem:[%s6621_s1 + $0x5c0] ss:$8 sps:$4 sm:$0xff]  }
  0xb8   :  { %3137 = vmatpush1.bf16.msra.mxu0 %v5552_v12 }
  0xb9   :  { %3138 = vmatprep.subr.bf16.mxu0 %v5567_v16  ;;  %2648 = vmatpush1.bf16.msra.mxu1 %v4653_v13  ;;  %v4749_v13 = vld [vmem:[%s6621_s1 + $0x2c0] ss:$8 sps:$4 sm:$0xff]  }
  0xba   :  { %2649 = vmatprep.subr.bf16.mxu1 %v4666_v18  ;;  %2531 = vmatmul.mubr.bf16.gmra.mrb[8].mxu1 %v4639_v14  ;;  %v5784_v14 = vld [vmem:[%s6621_s1 + $0x5d4] ss:$8 sps:$4 sm:$0xff]  }
  0xbb   :  { %3020 = vmatmul.mubr.bf16.gmra.mrb[8].mxu0 %v4640_v15  ;;  %2540 = vmatprep.mubr.bf16.mxu1 %v4647_v17  ;;  %v4763_v15 = vld [vmem:[%s6621_s1 + $0x2d4] ss:$8 sps:$4 sm:$0xff]   ;;  %v5792_v17 = vld [vmem:[%s6621_s1 + $0x5d0] ss:$8 sps:$4 sm:$0xff]  }
  0xbc   :  { %3029 = vmatprep.mubr.bf16.mxu0 %v4649_v19  ;;  %3139 = vmatpush1.bf16.msra.mxu0 %v5582_v20  ;;  %v4705_v18 = vld [vmem:[%s6622_s0 + $0x2e0] ss:$52 sps:$4 sm:$0xff]   ;;  %v4706_v19 = vld [vmem:[%s6622_s0 + $0x2f8] ss:$52 sps:$4 sm:$0xff]  }
  0xbd   :  { %2650 = vmatpush1.bf16.msra.mxu1 %v4664_v21  ;;  %3140 = vmatprep.subr.bf16.mxu0 %v5592_v22  ;;  %v4761_v21 = vld [vmem:[%s6621_s1 + $0x2d0] ss:$8 sps:$4 sm:$0xff]  }
  0xbe   :  { %2651 = vmatprep.subr.bf16.mxu1 %v4675_v23  ;;  %v5808_v23 = vld [vmem:[%s6621_s1 + $0x5e4] ss:$8 sps:$4 sm:$0xff]  }
  0xc0   :  { %3141 = vmatpush1.bf16.msra.mxu0 %v5600_v24 }
  0xc1   :  { %2652 = vmatpush1.bf16.msra.mxu1 %v4673_v27  ;;  %3142 = vmatprep.subr.bf16.mxu0 %v5616_v28  ;;  %v4715_v27 = vld [vmem:[%s6622_s0 + $0x364] ss:$52 sps:$4 sm:$0xff]  }
  0xc2   :  { %2653 = vmatprep.subr.bf16.mxu1 %v4685_v29  ;;  %2541 = vmatmul.mubr.bf16.gmra.mrb[12].mxu1 %v4651_v25  ;;  %v4774_v25 = vld [vmem:[%s6621_s1 + $0x2e4] ss:$8 sps:$4 sm:$0xff]   ;;  %v5822_v29 = vld [vmem:[%s6621_s1 + $0x5e0] ss:$8 sps:$4 sm:$0xff]  }
  0xc3   :  { %3030 = vmatmul.mubr.bf16.gmra.mrb[12].mxu0 %v4652_v26  ;;  %2550 = vmatprep.mubr.bf16.mxu1 %v4659_v30  ;;  %v4713_v26 = vld [vmem:[%s6622_s0 + $0x34c] ss:$52 sps:$4 sm:$0xff]  }
  0xc4   :  { %3039 = vmatprep.mubr.bf16.mxu0 %v4661_v31  ;;  %3143 = vmatpush1.bf16.msra.mxu0 %v5630_v32  ;;  %v4772_v30 = vld [vmem:[%s6621_s1 + $0x2e0] ss:$8 sps:$4 sm:$0xff]   ;;  %v5832_v31 = vld [vmem:[%s6621_s1 + $0x5f4] ss:$8 sps:$4 sm:$0xff]  }
  0xc5   :  { %2654 = vmatpush1.bf16.msra.mxu1 %v4683_v33  ;;  %3144 = vmatprep.subr.bf16.mxu0 %v5640_v34  ;;  %v4781_v33 = vld [vmem:[%s6621_s1 + $0x2f4] ss:$8 sps:$4 sm:$0xff]  }
  0xc6   :  { %2655 = vmatprep.subr.bf16.mxu1 %v4697_v36  ;;  %v5840_v36 = vld [vmem:[%s6621_s1 + $0x5f0] ss:$8 sps:$4 sm:$0xff]  }
  0xc8   :  { %3145 = vmatpush1.bf16.msra.mxu0 %v5648_v37 }
  0xc9   :  { %2656 = vmatpush1.bf16.msra.mxu1 %v4695_v40  ;;  %3146 = vmatprep.subr.bf16.mxu0 %v5667_v42  ;;  %v4790_v40 = vld [vmem:[%s6621_s1 + $0x604] ss:$8 sps:$4 sm:$0xff]  }
  0xca   :  { %2657 = vmatprep.subr.bf16.mxu1 %v4709_v43  ;;  %2551 = vmatmul.mubr.bf16.gmra.mrb[16].mxu1 %v4663_v38  ;;  %v4717_v38 = vld [vmem:[%s6622_s0 + $0x348] ss:$52 sps:$4 sm:$0xff]  }
  0xcb   :  { %3040 = vmatmul.mubr.bf16.gmra.mrb[16].mxu0 %v4667_v39  ;;  %2560 = vmatprep.mubr.bf16.mxu1 %v4671_v41  ;;  %v4779_v39 = vld [vmem:[%s6621_s1 + $0x2f0] ss:$8 sps:$4 sm:$0xff]   ;;  %v4718_v41 = vld [vmem:[%s6622_s0 + $0x360] ss:$52 sps:$4 sm:$0xff]  }
  0xcc   :  { %3049 = vmatprep.mubr.bf16.mxu0 %v4676_v44  ;;  %3147 = vmatpush1.bf16.msra.mxu0 %v5678_v45  ;;  %v4725_v43 = vld [vmem:[%s6622_s0 + $0x3b4] ss:$52 sps:$4 sm:$0xff]   ;;  %v4730_v44 = vld [vmem:[%s6622_s0 + $0x3cc] ss:$52 sps:$4 sm:$0xff]  }
  0xcd   :  { %2658 = vmatpush1.bf16.msra.mxu1 %v4707_v46  ;;  %3148 = vmatprep.subr.bf16.mxu0 %v5687_v47  ;;  %v4732_v46 = vld [vmem:[%s6622_s0 + $0x3b0] ss:$52 sps:$4 sm:$0xff]  }
  0xce   :  { %2659 = vmatprep.subr.bf16.mxu1 %v4721_v48  ;;  %v4733_v48 = vld [vmem:[%s6622_s0 + $0x3c8] ss:$52 sps:$4 sm:$0xff]  }
  0xd0   :  { %3149 = vmatpush1.bf16.msra.mxu0 %v5696_v49 }
  0xd1   :  { %2660 = vmatpush1.bf16.msra.mxu1 %v4719_v52  ;;  %3150 = vmatprep.subr.bf16.mxu0 %v5712_v53  ;;  %v4748_v52 = vld [vmem:[%s6622_s0 + $0x430] ss:$52 sps:$4 sm:$0xff]  }
  0xd2   :  { %2661 = vmatprep.subr.bf16.mxu1 %v4729_v54  ;;  %2561 = vmatmul.mubr.bf16.gmra.mrb[20].mxu1 %v4681_v50  ;;  %v4743_v50 = vld [vmem:[%s6622_s0 + $0x41c] ss:$52 sps:$4 sm:$0xff]   ;;  %v4755_v54 = vld [vmem:[%s6622_s0 + $0x484] ss:$52 sps:$4 sm:$0xff]  }
  0xd3   :  { %3050 = vmatmul.mubr.bf16.gmra.mrb[20].mxu0 %v4682_v51  ;;  %2570 = vmatprep.mubr.bf16.mxu1 %v4689_v55  ;;  %v4747_v51 = vld [vmem:[%s6622_s0 + $0x418] ss:$52 sps:$4 sm:$0xff]   ;;  %v4757_v55 = vld [vmem:[%s6622_s0 + $0x49c] ss:$52 sps:$4 sm:$0xff]  }
  0xd4   :  { %3059 = vmatprep.mubr.bf16.mxu0 %v4691_v56  ;;  %3151 = vmatpush1.bf16.msra.mxu0 %v5726_v57  ;;  %v4759_v56 = vld [vmem:[%s6622_s0 + $0x480] ss:$52 sps:$4 sm:$0xff]  }
  0xd5   :  { %2662 = vmatpush1.bf16.msra.mxu1 %v4727_v59  ;;  %3152 = vmatprep.subr.bf16.mxu0 %v5736_v60  ;;  %v4760_v59 = vld [vmem:[%s6622_s0 + $0x498] ss:$52 sps:$4 sm:$0xff]  }
  0xd6   :  { %2663 = vmatprep.subr.bf16.mxu1 %v4739_v61  ;;  %v4767_v61 = vld [vmem:[%s6622_s0 + $0x4ec] ss:$52 sps:$4 sm:$0xff]  }
  0xd8   :  { %3153 = vmatpush1.bf16.msra.mxu0 %v5744_v63 }
  0xd9   :  { %2664 = vmatpush1.bf16.msra.mxu1 %v4737_v4  ;;  %3154 = vmatprep.subr.bf16.mxu0 %v5760_v5  ;;  %v4775_v4 = vld [vmem:[%s6622_s0 + $0x500] ss:$52 sps:$4 sm:$0xff]  }
  0xda   :  { %2665 = vmatprep.subr.bf16.mxu1 %v4751_v7  ;;  %2571 = vmatmul.mubr.bf16.gmra.mrb[24].mxu1 %v4693_v1  ;;  %v4769_v1 = vld [vmem:[%s6622_s0 + $0x504] ss:$52 sps:$4 sm:$0xff]   ;;  %v4784_v7 = vld [vmem:[%s6622_s0 + $0x14] ss:$52 sps:$4 sm:$0xff]  }
  0xdb   :  { %3060 = vmatmul.mubr.bf16.gmra.mrb[24].mxu0 %v4694_v2  ;;  %2580 = vmatprep.mubr.bf16.mxu1 %v4701_v8  ;;  %v4771_v2 = vld [vmem:[%s6622_s0 + $0x4e8] ss:$52 sps:$4 sm:$0xff]   ;;  %v4787_v8 = vld [vmem:[%s6622_s0 + $0x2c] ss:$52 sps:$4 sm:$0xff]  }
  0xdc   :  { %3069 = vmatprep.mubr.bf16.mxu0 %v4703_v9  ;;  %3155 = vmatpush1.bf16.msra.mxu0 %v5774_v11  ;;  %v4782_v9 = vld [vmem:[%s6622_s0 + $0x10] ss:$52 sps:$4 sm:$0xff]  }
  0xdd   :  { %2666 = vmatpush1.bf16.msra.mxu1 %v4749_v13  ;;  %3156 = vmatprep.subr.bf16.mxu0 %v5784_v14  ;;  %v4785_v13 = vld [vmem:[%s6622_s0 + $0x28] ss:$52 sps:$4 sm:$0xff]  }
  0xde   :  { %2667 = vmatprep.subr.bf16.mxu1 %v4763_v15  ;;  %v4788_v15 = vld [vmem:[%s6621_s1 + $0x600] ss:$8 sps:$4 sm:$0xff]  }
  0xe0   :  { %3157 = vmatpush1.bf16.msra.mxu0 %v5792_v17 }
  0xe1   :  { %2668 = vmatpush1.bf16.msra.mxu1 %v4761_v21  ;;  %3158 = vmatprep.subr.bf16.mxu0 %v5808_v23  ;;  %v4797_v21 = vld [vmem:[%s6621_s1 + $0x614] ss:$8 sps:$4 sm:$0xff]  }
  0xe2   :  { %2669 = vmatprep.subr.bf16.mxu1 %v4774_v25  ;;  %2581 = vmatmul.mubr.bf16.gmra.mrb[28].mxu1 %v4705_v18  ;;  %v4791_v18 = vld [vmem:[%s6622_s0 + $0x7c] ss:$52 sps:$4 sm:$0xff]  }
  0xe3   :  { %3070 = vmatmul.mubr.bf16.gmra.mrb[28].mxu0 %v4706_v19  ;;  %2590 = vmatprep.mubr.bf16.mxu1 %v4713_v26  ;;  %v4793_v19 = vld [vmem:[%s6622_s0 + $0x94] ss:$52 sps:$4 sm:$0xff]   ;;  %v4795_v25 = vld [vmem:[%s6621_s1 + $0x610] ss:$8 sps:$4 sm:$0xff]   ;;  %v4802_v26 = vld [vmem:[%s6621_s1 + $0x624] ss:$8 sps:$4 sm:$0xff]  }
  0xe4   :  { %3079 = vmatprep.mubr.bf16.mxu0 %v4715_v27  ;;  %3159 = vmatpush1.bf16.msra.mxu0 %v5822_v29  ;;  %v4798_v27 = vld [vmem:[%s6622_s0 + $0x78] ss:$52 sps:$4 sm:$0xff]  }
  0xe5   :  { %2670 = vmatpush1.bf16.msra.mxu1 %v4772_v30  ;;  %3160 = vmatprep.subr.bf16.mxu0 %v5832_v31  ;;  %v4799_v30 = vld [vmem:[%s6622_s0 + $0x90] ss:$52 sps:$4 sm:$0xff]  }
  0xe6   :  { %2671 = vmatprep.subr.bf16.mxu1 %v4781_v33  ;;  %v4805_v33 = vld [vmem:[%s6622_s0 + $0xfc] ss:$52 sps:$4 sm:$0xff]  }
  0xe8   :  { %3161 = vmatpush1.bf16.msra.mxu0 %v5840_v36 }
  0xe9   :  { %2672 = vmatpush1.bf16.msra.mxu1 %v4779_v39  ;;  %3293 = vmatprep.subr.bf16.mxu0 %v4790_v40  ;;  %v4807_v39 = vld [vmem:[%s6622_s0 + $0xe0] ss:$52 sps:$4 sm:$0xff]   ;;  %v4808_v40 = vld [vmem:[%s6622_s0 + $0xf8] ss:$52 sps:$4 sm:$0xff]  }
  0xea   :  { %3941 = vmatprep.subr.bf16.mxu1 %v5410_v35  ;;  %2591 = vmatmul.mubr.bf16.gmra.mrb[32].mxu1 %v4717_v38  ;;  %v4745_v35 = vld [vmem:[%s6622_s0 + $0x434] ss:$52 sps:$4 sm:$0xff]  }
  0xeb   :  { %3080 = vmatmul.mubr.bf16.gmra.mrb[32].mxu0 %v4718_v41  ;;  %2600 = vmatprep.mubr.bf16.mxu1 %v4725_v43  ;;  %v4811_v38 = vld [vmem:[%s6621_s1 + $0x634] ss:$8 sps:$4 sm:$0xff]   ;;  %v4818_v41 = vld [vmem:[%s6621_s1 + $0x640] ss:$8 sps:$4 sm:$0xff]  }
  0xec   :  { %3089 = vmatprep.mubr.bf16.mxu0 %v4730_v44  ;;  %v4829_v43 = vld [vmem:[%s6621_s1 + $0x654] ss:$8 sps:$4 sm:$0xff]  }
  0xed   :  { %v4816_v44 = vld [vmem:[%s6622_s0 + $0x148] ss:$52 sps:$4 sm:$0xff]  }
  0xf2   :  { %2601 = vmatmul.mubr.bf16.gmra.mrb[36].mxu1 %v4732_v46  ;;  %v4817_v46 = vld [vmem:[%s6622_s0 + $0x160] ss:$52 sps:$4 sm:$0xff]  }
  0xf3   :  { %3090 = vmatmul.mubr.bf16.gmra.mrb[36].mxu0 %v4733_v48  ;;  %2610 = vmatprep.mubr.bf16.mxu1 %v4743_v50  ;;  %v4836_v48 = vld [vmem:[%s6621_s1 + $0x660] ss:$8 sps:$4 sm:$0xff]   ;;  %v4847_v50 = vld [vmem:[%s6621_s1 + $0x674] ss:$8 sps:$4 sm:$0xff]  }
  0xf4   :  { %3099 = vmatprep.mubr.bf16.mxu0 %v4745_v35  ;;  %v4826_v35 = vld [vmem:[%s6622_s0 + $0x1c8] ss:$52 sps:$4 sm:$0xff]  }
  0xfa   :  { %2611 = vmatmul.mubr.bf16.gmra.mrb[40].mxu1 %v4747_v51  ;;  %v4830_v51 = vld [vmem:[%s6622_s0 + $0x21c] ss:$52 sps:$4 sm:$0xff]  }
  0xfb   :  { %3100 = vmatmul.mubr.bf16.gmra.mrb[40].mxu0 %v4748_v52  ;;  %2620 = vmatprep.mubr.bf16.mxu1 %v4755_v54  ;;  %v4835_v52 = vld [vmem:[%s6622_s0 + $0x230] ss:$52 sps:$4 sm:$0xff]   ;;  %v4864_v54 = vld [vmem:[%s6622_s0 + $0x48c] ss:$52 sps:$4 sm:$0xff]  }
  0xfc   :  { %3109 = vmatprep.mubr.bf16.mxu0 %v4757_v55  ;;  %v4866_v55 = vld [vmem:[%s6622_s0 + $0x488] ss:$52 sps:$4 sm:$0xff]  }
 0x102   :  { %2621 = vmatmul.mubr.bf16.gmra.mrb[44].mxu1 %v4759_v56  ;;  %v4867_v56 = vld [vmem:[%s6622_s0 + $0x1d0] ss:$52 sps:$4 sm:$0xff]  }
 0x103   :  { %3110 = vmatmul.mubr.bf16.gmra.mrb[44].mxu0 %v4760_v59  ;;  %2630 = vmatprep.mubr.bf16.mxu1 %v4767_v61  ;;  %v4868_v59 = vld [vmem:[%s6622_s0 + $0x4f4] ss:$52 sps:$4 sm:$0xff]   ;;  %v4870_v61 = vld [vmem:[%s6622_s0 + $0x4f0] ss:$52 sps:$4 sm:$0xff]  }
 0x104   :  { %3119 = vmatprep.mubr.bf16.mxu0 %v4769_v1  ;;  %v4871_v1 = vld [vmem:[%s6622_s0 + $0x238] ss:$52 sps:$4 sm:$0xff]  }
 0x10a   :  { %2631 = vmatmul.mubr.bf16.gmra.mrb[48].mxu1 %v4771_v2  ;;  %v4874_v2 = vld [vmem:[%s6622_s0 + $0x304] ss:$52 sps:$4 sm:$0xff]  }
 0x10b   :  { %3120 = vmatmul.mubr.bf16.gmra.mrb[48].mxu0 %v4775_v4  ;;  %2673 = vmatprep.mubr.bf16.mxu1 %v4784_v7  ;;  %v4872_v4 = vld [vmem:[%s6622_s0 + $0x300] ss:$52 sps:$4 sm:$0xff]  }
 0x10c   :  { %3162 = vmatprep.mubr.bf16.mxu0 %v4787_v8  ;;  %v4875_v7 = vld [vmem:[%s6622_s0 + $0x2a0] ss:$52 sps:$4 sm:$0xff]  }
 0x10d   :  { %v4876_v8 = vld [vmem:[%s6622_s0 + $0x36c] ss:$52 sps:$4 sm:$0xff]  }
 0x112   :  { %2674 = vmatmul.mubr.bf16.vlgmr.msra.gmra.mrb[0].mxu1 %v4782_v9  ;;  %v4878_v9 = vld [vmem:[%s6622_s0 + $0x368] ss:$52 sps:$4 sm:$0xff]  }
 0x113   :  { %3163 = vmatmul.mubr.bf16.vlgmr.msra.gmra.mrb[0].mxu0 %v4785_v13  ;;  %2683 = vmatprep.mubr.bf16.mxu1 %v4791_v18  ;;  %v4879_v13 = vld [vmem:[%s6622_s0 + $0x308] ss:$52 sps:$4 sm:$0xff]   ;;  %v4882_v18 = vld [vmem:[%s6622_s0 + $0x3d0] ss:$52 sps:$4 sm:$0xff]  }
 0x114   :  { %3294 = vmatpush1.bf16.msra.mxu0 %v4788_v15  ;;  %3957 = vmatpush1.bf16.msra.mxu1 %v5482_v58  ;;  %v4803_v58 = vld [vmem:[%s6622_s0 + $0xe4] ss:$52 sps:$4 sm:$0xff]   ;;  %v4880_v15 = vld [vmem:[%s6622_s0 + $0x3d4] ss:$52 sps:$4 sm:$0xff]  }
 0x115   :  { %3172 = vmatprep.mubr.bf16.mxu0 %v4793_v19  ;;  %3295 = vmatprep.subr.bf16.mxu0 %v4797_v21  ;;  %v4883_v19 = vld [vmem:[%s6622_s0 + $0x370] ss:$52 sps:$4 sm:$0xff]  }
 0x116   :  { %3942 = vmatprep.subr.bf16.mxu1 %v5496_v62  ;;  %v4800_v62 = vld [vmem:[%s6621_s1 + $0x620] ss:$8 sps:$4 sm:$0xff]   ;;  %v4884_v21 = vld [vmem:[%s6622_s0 + $0x43c] ss:$52 sps:$4 sm:$0xff]  }
 0x118   :  { %3296 = vmatpush1.bf16.msra.mxu0 %v4795_v25  ;;  %3958 = vmatpush1.bf16.msra.mxu1 %v5504_v0  ;;  %v4809_v0 = vld [vmem:[%s6621_s1 + $0x630] ss:$8 sps:$4 sm:$0xff]  }
 0x119   :  { %3297 = vmatprep.subr.bf16.mxu0 %v4802_v26  ;;  %3943 = vmatprep.subr.bf16.mxu1 %v5516_v3  ;;  %v4820_v3 = vld [vmem:[%s6621_s1 + $0x644] ss:$8 sps:$4 sm:$0xff]  }
 0x11a   :  { %2684 = vmatmul.mubr.bf16.gmra.mrb[4].mxu1 %v4798_v27  ;;  %v4886_v25 = vld [vmem:[%s6622_s0 + $0x438] ss:$52 sps:$4 sm:$0xff]  }
 0x11b   :  { %3173 = vmatmul.mubr.bf16.gmra.mrb[4].mxu0 %v4799_v30  ;;  %2693 = vmatprep.mubr.bf16.mxu1 %v4803_v58  ;;  %v4887_v26 = vld [vmem:[%s6622_s0 + $0x3d8] ss:$52 sps:$4 sm:$0xff]   ;;  %v4890_v30 = vld [vmem:[%s6622_s0 + $0x4a0] ss:$52 sps:$4 sm:$0xff]  }
 0x11c   :  { %3182 = vmatprep.mubr.bf16.mxu0 %v4805_v33  ;;  %3298 = vmatpush1.bf16.msra.mxu0 %v4800_v62  ;;  %v4888_v27 = vld [vmem:[%s6622_s0 + $0x4a4] ss:$52 sps:$4 sm:$0xff]   ;;  %v4891_v58 = vld [vmem:[%s6622_s0 + $0x440] ss:$52 sps:$4 sm:$0xff]   ;;  %v4894_v62 = vld [vmem:[%s6622_s0 + $0x508] ss:$52 sps:$4 sm:$0xff]  }
 0x11d   :  { %3959 = vmatpush1.bf16.msra.mxu1 %v5528_v6  ;;  %3299 = vmatprep.subr.bf16.mxu0 %v4811_v38  ;;  %v4812_v6 = vld [vmem:[%s6622_s0 + $0x14c] ss:$52 sps:$4 sm:$0xff]   ;;  %v4895_v38 = vld [vmem:[%s6622_s0 + $0x4a8] ss:$52 sps:$4 sm:$0xff]  }
 0x11e   :  { %3944 = vmatprep.subr.bf16.mxu1 %v5544_v10  ;;  %v4814_v10 = vld [vmem:[%s6622_s0 + $0x164] ss:$52 sps:$4 sm:$0xff]   ;;  %v4892_v33 = vld [vmem:[%s6622_s0 + $0x50c] ss:$52 sps:$4 sm:$0xff]  }
 0x120   :  { %3300 = vmatpush1.bf16.msra.mxu0 %v4809_v0  ;;  %v4896_v0 = vld [vmem:[%s6622_s0 + $0x510] ss:$52 sps:$4 sm:$0xff]  }
 0x121   :  { %3960 = vmatpush1.bf16.msra.mxu1 %v5552_v12  ;;  %3301 = vmatprep.subr.bf16.mxu0 %v4820_v3  ;;  %v4827_v12 = vld [vmem:[%s6621_s1 + $0x650] ss:$8 sps:$4 sm:$0xff]  }
 0x122   :  { %3945 = vmatprep.subr.bf16.mxu1 %v5567_v16  ;;  %2694 = vmatmul.mubr.bf16.gmra.mrb[8].mxu1 %v4807_v39  ;;  %v4838_v16 = vld [vmem:[%s6621_s1 + $0x664] ss:$8 sps:$4 sm:$0xff]  }
 0x123   :  { %3183 = vmatmul.mubr.bf16.gmra.mrb[8].mxu0 %v4808_v40  ;;  %2703 = vmatprep.mubr.bf16.mxu1 %v4812_v6 }
 0x124   :  { %3192 = vmatprep.mubr.bf16.mxu0 %v4814_v10  ;;  %3302 = vmatpush1.bf16.msra.mxu0 %v4818_v41 }
 0x125   :  { %3961 = vmatpush1.bf16.msra.mxu1 %v5582_v20  ;;  %3303 = vmatprep.subr.bf16.mxu0 %v4829_v43  ;;  %v4821_v20 = vld [vmem:[%s6622_s0 + $0x1b4] ss:$52 sps:$4 sm:$0xff]  }
 0x126   :  { %3946 = vmatprep.subr.bf16.mxu1 %v5592_v22  ;;  %v4823_v22 = vld [vmem:[%s6622_s0 + $0x1cc] ss:$52 sps:$4 sm:$0xff]  }
 0x128   :  { %3304 = vmatpush1.bf16.msra.mxu0 %v4827_v12 }
 0x129   :  { %3962 = vmatpush1.bf16.msra.mxu1 %v5600_v24  ;;  %3305 = vmatprep.subr.bf16.mxu0 %v4838_v16  ;;  %v4845_v24 = vld [vmem:[%s6621_s1 + $0x670] ss:$8 sps:$4 sm:$0xff]  }
 0x12a   :  { %3947 = vmatprep.subr.bf16.mxu1 %v5616_v28  ;;  %2704 = vmatmul.mubr.bf16.gmra.mrb[12].mxu1 %v4816_v44  ;;  %v4825_v28 = vld [vmem:[%s6622_s0 + $0x1b0] ss:$52 sps:$4 sm:$0xff]  }
 0x12b   :  { %3193 = vmatmul.mubr.bf16.gmra.mrb[12].mxu0 %v4817_v46  ;;  %2713 = vmatprep.mubr.bf16.mxu1 %v4821_v20 }
 0x12c   :  { %3202 = vmatprep.mubr.bf16.mxu0 %v4823_v22  ;;  %3306 = vmatpush1.bf16.msra.mxu0 %v4836_v48 }
 0x12d   :  { %3963 = vmatpush1.bf16.msra.mxu1 %v5630_v32  ;;  %3307 = vmatprep.subr.bf16.mxu0 %v4847_v50  ;;  %v4832_v32 = vld [vmem:[%s6622_s0 + $0x234] ss:$52 sps:$4 sm:$0xff]  }
 0x12e   :  { %3948 = vmatprep.subr.bf16.mxu1 %v5640_v34  ;;  %v4834_v34 = vld [vmem:[%s6622_s0 + $0x218] ss:$52 sps:$4 sm:$0xff]  }
 0x130   :  { %3308 = vmatpush1.bf16.msra.mxu0 %v4845_v24 }
 0x131   :  { %3964 = vmatpush1.bf16.msra.mxu1 %v5648_v37  ;;  %v4839_v37 = vld [vmem:[%s6622_s0 + $0x284] ss:$52 sps:$4 sm:$0xff]  }
 0x132   :  { %3949 = vmatprep.subr.bf16.mxu1 %v5667_v42  ;;  %2714 = vmatmul.mubr.bf16.gmra.mrb[16].mxu1 %v4825_v28  ;;  %v4841_v42 = vld [vmem:[%s6622_s0 + $0x29c] ss:$52 sps:$4 sm:$0xff]  }
 0x133   :  { %3203 = vmatmul.mubr.bf16.gmra.mrb[16].mxu0 %v4826_v35  ;;  %2723 = vmatprep.mubr.bf16.mxu1 %v4830_v51 }
 0x134   :  { %3212 = vmatprep.mubr.bf16.mxu0 %v4832_v32 }
 0x135   :  { %3965 = vmatpush1.bf16.msra.mxu1 %v5678_v45  ;;  %v4843_v45 = vld [vmem:[%s6622_s0 + $0x280] ss:$52 sps:$4 sm:$0xff]  }
 0x136   :  { %3950 = vmatprep.subr.bf16.mxu1 %v5687_v47  ;;  %v4844_v47 = vld [vmem:[%s6622_s0 + $0x298] ss:$52 sps:$4 sm:$0xff]  }
 0x139   :  { %3966 = vmatpush1.bf16.msra.mxu1 %v5696_v49  ;;  %v4848_v49 = vld [vmem:[%s6622_s0 + $0x2ec] ss:$52 sps:$4 sm:$0xff]  }
 0x13a   :  { %3951 = vmatprep.subr.bf16.mxu1 %v5712_v53  ;;  %2724 = vmatmul.mubr.bf16.gmra.mrb[20].mxu1 %v4834_v34  ;;  %v4897_v53 = vmov 0  }
 0x13b   :  { %3213 = vmatmul.mubr.bf16.gmra.mrb[20].mxu0 %v4835_v52  ;;  %2733 = vmatprep.mubr.bf16.mxu1 %v4839_v37 }
 0x13c   :  { %3222 = vmatprep.mubr.bf16.mxu0 %v4841_v42 }
 0x13d   :  { %3967 = vmatpush1.bf16.msra.mxu1 %v5726_v57  ;;  %v4850_v57 = vld [vmem:[%s6622_s0 + $0x2e8] ss:$52 sps:$4 sm:$0xff]  }
 0x13e   :  { %3952 = vmatprep.subr.bf16.mxu1 %v5736_v60  ;;  %v4851_v60 = vld [vmem:[%s6622_s0 + $0x30] ss:$52 sps:$4 sm:$0xff]  }
 0x141   :  { %3968 = vmatpush1.bf16.msra.mxu1 %v5744_v63  ;;  %v4852_v63 = vld [vmem:[%s6622_s0 + $0x354] ss:$52 sps:$4 sm:$0xff]  }
 0x142   :  { %3953 = vmatprep.subr.bf16.mxu1 %v5760_v5  ;;  %2734 = vmatmul.mubr.bf16.gmra.mrb[24].mxu1 %v4843_v45  ;;  %v4854_v5 = vld [vmem:[%s6622_s0 + $0x350] ss:$52 sps:$4 sm:$0xff]  }
 0x143   :  { %3223 = vmatmul.mubr.bf16.gmra.mrb[24].mxu0 %v4844_v47  ;;  %2743 = vmatprep.mubr.bf16.mxu1 %v4848_v49 }
 0x144   :  { %3325 = vmatprep.mubr.bf16.mxu0 %v4897_v53 }
 0x145   :  { %3969 = vmatpush1.bf16.msra.mxu1 %v5774_v11  ;;  %v4855_v11 = vld [vmem:[%s6622_s0 + $0x98] ss:$52 sps:$4 sm:$0xff]  }
 0x146   :  { %3954 = vmatprep.subr.bf16.mxu1 %v5784_v14  ;;  %v4856_v14 = vld [vmem:[%s6622_s0 + $0x3bc] ss:$52 sps:$4 sm:$0xff]  }
 0x149   :  { %3970 = vmatpush1.bf16.msra.mxu1 %v5792_v17  ;;  %v4858_v17 = vld [vmem:[%s6622_s0 + $0x3b8] ss:$52 sps:$4 sm:$0xff]  }
 0x14a   :  { %3955 = vmatprep.subr.bf16.mxu1 %v5808_v23  ;;  %2744 = vmatmul.mubr.bf16.gmra.mrb[28].mxu1 %v4850_v57  ;;  %v4859_v23 = vld [vmem:[%s6622_s0 + $0x100] ss:$52 sps:$4 sm:$0xff]  }
 0x14b   :  { %3326 = vmatmul.mubr.bf16.vlgmr.msra.gmra.mrb[0].mxu0 %v4851_v60  ;;  %2753 = vmatprep.mubr.bf16.mxu1 %v4852_v63 }
 0x14c   :  { %3335 = vmatprep.mubr.bf16.mxu0 %v4897_v53 }
 0x14d   :  { %3971 = vmatpush1.bf16.msra.mxu1 %v5822_v29  ;;  %v4860_v29 = vld [vmem:[%s6622_s0 + $0x424] ss:$52 sps:$4 sm:$0xff]  }
 0x14e   :  { %3956 = vmatprep.subr.bf16.mxu1 %v5832_v31  ;;  %v4862_v31 = vld [vmem:[%s6622_s0 + $0x420] ss:$52 sps:$4 sm:$0xff]  }
 0x151   :  { %3972 = vmatpush1.bf16.msra.mxu1 %v5840_v36  ;;  %v4863_v36 = vld [vmem:[%s6622_s0 + $0x168] ss:$52 sps:$4 sm:$0xff]  }
 0x152   :  { %2754 = vmatmul.mubr.bf16.gmra.mrb[32].mxu1 %v4854_v5 }
 0x153   :  { %3336 = vmatmul.mubr.bf16.gmra.mrb[4].mxu0 %v4855_v11  ;;  %2763 = vmatprep.mubr.bf16.mxu1 %v4856_v14 }
 0x154   :  { %3345 = vmatprep.mubr.bf16.mxu0 %v4897_v53 }
 0x15a   :  { %2764 = vmatmul.mubr.bf16.gmra.mrb[36].mxu1 %v4858_v17 }
 0x15b   :  { %3346 = vmatmul.mubr.bf16.gmra.mrb[8].mxu0 %v4859_v23  ;;  %2773 = vmatprep.mubr.bf16.mxu1 %v4860_v29 }
 0x15c   :  { %3355 = vmatprep.mubr.bf16.mxu0 %v4897_v53 }
 0x162   :  { %2774 = vmatmul.mubr.bf16.gmra.mrb[40].mxu1 %v4862_v31 }
 0x163   :  { %3356 = vmatmul.mubr.bf16.gmra.mrb[12].mxu0 %v4863_v36  ;;  %2783 = vmatprep.mubr.bf16.mxu1 %v4864_v54 }
 0x164   :  { %3365 = vmatprep.mubr.bf16.mxu0 %v4897_v53 }
 0x16a   :  { %2784 = vmatmul.mubr.bf16.gmra.mrb[44].mxu1 %v4866_v55 }
 0x16b   :  { %3366 = vmatmul.mubr.bf16.gmra.mrb[16].mxu0 %v4867_v56  ;;  %2793 = vmatprep.mubr.bf16.mxu1 %v4868_v59 }
 0x16c   :  { %3375 = vmatprep.mubr.bf16.mxu0 %v4897_v53 }
 0x172   :  { %2794 = vmatmul.mubr.bf16.gmra.mrb[48].mxu1 %v4870_v61 }
 0x173   :  { %3376 = vmatmul.mubr.bf16.gmra.mrb[20].mxu0 %v4871_v1  ;;  %3232 = vmatprep.mubr.bf16.mxu1 %v4874_v2  ;;  %v407_v1 = vlaneseq }
 0x174   :  { %3385 = vmatprep.mubr.bf16.mxu0 %v4897_v53 }
 0x17a   :  { %3233 = vmatmul.mubr.bf16.vlgmr.msra.gmra.mrb[52].mxu1 %v4872_v4 }
 0x17b   :  { %3386 = vmatmul.mubr.bf16.gmra.mrb[24].mxu0 %v4875_v7  ;;  %3242 = vmatprep.mubr.bf16.mxu1 %v4876_v8  ;;  %v408_v8 = vshrl.u32 %v407_v1, 7 }
 0x17c   :  { %3395 = vmatprep.mubr.bf16.mxu0 %v4897_v53 }
 0x182   :  { %3243 = vmatmul.mubr.bf16.gmra.mrb[56].mxu1 %v4878_v9 }
 0x183   :  { %3396 = vmatmul.mubr.bf16.gmra.mrb[52].mxu0 %v4879_v13  ;;  %3252 = vmatprep.mubr.bf16.mxu1 %v4880_v15  ;;  %v409_v13 = vsub.s32 0, %v408_v8  ;;  %v405_v15 = vld [vmem:[%s6623_s2] sm:$0x3] }
 0x184   :  { %3405 = vmatprep.mubr.bf16.mxu0 %v4897_v53 }
 0x18a   :  { %3253 = vmatmul.mubr.bf16.gmra.mrb[60].mxu1 %v4882_v18  ;;  %v413_v18 = vsub.s32 1, %v408_v8 }
 0x18b   :  { %3406 = vmatmul.mubr.bf16.gmra.mrb[56].mxu0 %v4883_v19  ;;  %3262 = vmatprep.mubr.bf16.mxu1 %v4884_v21 }
 0x18c   :  { %3415 = vmatprep.mubr.bf16.mxu0 %v4897_v53 }
 0x192   :  { %3263 = vmatmul.mubr.bf16.gmra.mrb[64].mxu1 %v4886_v25 }
 0x193   :  { %3416 = vmatmul.mubr.bf16.gmra.mrb[60].mxu0 %v4887_v26  ;;  %3272 = vmatprep.mubr.bf16.mxu1 %v4888_v27  ;;  %v6287_v26 = vrot.slane %v405_v15, %v409_v13 }
 0x194   :  { %3425 = vmatprep.mubr.bf16.mxu0 %v4897_v53 }
 0x19a   :  { %3273 = vmatmul.mubr.bf16.gmra.mrb[68].mxu1 %v4890_v30  ;;  %v6291_v30 = vrot.slane %v405_v15, %v413_v18 }
 0x19b   :  { %3426 = vmatmul.mubr.bf16.gmra.mrb[64].mxu0 %v4891_v58  ;;  %3282 = vmatprep.mubr.bf16.mxu1 %v4892_v33 }
 0x19c   :  { %3435 = vmatprep.mubr.bf16.mxu0 %v4897_v53 }
 0x1a2   :  { %3283 = vmatmul.mubr.bf16.gmra.mrb[72].mxu1 %v4894_v62 }
 0x1a3   :  { %3436 = vmatmul.mubr.bf16.gmra.mrb[68].mxu0 %v4895_v38 }
 0x1a4   :  { %3445 = vmatprep.mubr.bf16.mxu0 %v4897_v53 }
 0x1ab   :  { %3446 = vmatmul.mubr.bf16.gmra.mrb[72].mxu0 %v4896_v0 }
 0x1b6   :  { %v6190_v3 = vpop.f32.mrb[28].mxu0 }
 0x1b7   :  { %v6192_v39 = vpop.f32.mrb[29].mxu0 }
 0x1b8   :  { %v6194_v40 = vpop.f32.mrb[30].mxu0 }
 0x1b9   :  { %v6196_v6 = vpop.f32.mrb[31].mxu0 }
 0x1be   :  { %v6198_v10 = vpop.f32.mrb[32].mxu0 }
 0x1bf   :  { %v6200_v41 = vpop.f32.mrb[33].mxu0 }
 0x1c0   :  { %v6202_v43 = vpop.f32.mrb[34].mxu0 }
 0x1c1   :  { %v6204_v12 = vpop.f32.mrb[35].mxu0 }
 0x1c6   :  { %v6206_v16 = vpop.f32.mrb[36].mxu0 }
 0x1c7   :  { %v6208_v44 = vpop.f32.mrb[37].mxu0 }
 0x1c8   :  { %v6210_v46 = vpop.f32.mrb[38].mxu0 }
 0x1c9   :  { %v6212_v20 = vpop.f32.mrb[39].mxu0 }
 0x1ce   :  { %v6214_v22 = vpop.f32.mrb[40].mxu0 }
 0x1cf   :  { %v6216_v48 = vpop.f32.mrb[41].mxu0 }
 0x1d0   :  { %v6218_v50 = vpop.f32.mrb[42].mxu0 }
 0x1d1   :  { %v6220_v24 = vpop.f32.mrb[43].mxu0 }
 0x1d6   :  { %v6222_v28 = vpop.f32.mrb[44].mxu0 }
 0x1d7   :  { %v6224_v35 = vpop.f32.mrb[45].mxu0 }
 0x1d8   :  { %v6226_v51 = vpop.f32.mrb[46].mxu0 }
 0x1d9   :  { %v6228_v32 = vpop.f32.mrb[47].mxu0 }
 0x1de   :  { %v6230_v34 = vpop.f32.mrb[48].mxu0 }
 0x1df   :  { %v6232_v52 = vpop.f32.mrb[49].mxu0 }
 0x1e0   :  { %6625 = vst [vmem:[#allocation2_spill] sm:$0xff] %v6232_v52  ;;  %v6234_v37 = vpop.f32.mrb[50].mxu0 }
 0x1e1   :  { %6626 = vst [vmem:[#allocation3_spill] sm:$0xff] %v6234_v37  ;;  %v6236_v42 = vpop.f32.mrb[51].mxu0 }
 0x1e2   :  { %6627 = vst [vmem:[#allocation4_spill] sm:$0xff] %v6236_v42 }
 0x1e5   :  { %v2675_v45 = vpop.f32.mrb[0].mxu1 }
 0x1e6   :  { %v2677_v47 = vpop.f32.mrb[1].mxu1  ;;  %v3973_v58 = vadd.f32 %v2675_v45, %v6287_v26 }
 0x1e7   :  { %v2679_v49 = vpop.f32.mrb[2].mxu1  ;;  %v3975_v33 = vadd.f32 %v2677_v47, %v6291_v30 }
 0x1e8   :  { %v2681_v53 = vpop.f32.mrb[3].mxu1  ;;  %v3977_v0 = vadd.f32 %v2679_v49, %v6287_v26 }
 0x1e9   :  { %v3979_v13 = vadd.f32 %v2681_v53, %v6291_v30 }
 0x1ed   :  { %v6238_v57 = vpop.f32.mrb[4].mxu1 }
 0x1ee   :  { %v6240_v60 = vpop.f32.mrb[5].mxu1 }
 0x1ef   :  { %v6242_v63 = vpop.f32.mrb[6].mxu1 }
 0x1f0   :  { %v6244_v5 = vpop.f32.mrb[7].mxu1 }
 0x1f5   :  { %v6246_v11 = vpop.f32.mrb[8].mxu1 }
 0x1f6   :  { %v6248_v14 = vpop.f32.mrb[9].mxu1 }
 0x1f7   :  { %v6250_v17 = vpop.f32.mrb[10].mxu1 }
 0x1f8   :  { %v6252_v23 = vpop.f32.mrb[11].mxu1 }
 0x1fd   :  { %v6254_v29 = vpop.f32.mrb[12].mxu1 }
 0x1fe   :  { %v6256_v31 = vpop.f32.mrb[13].mxu1 }
 0x1ff   :  { %v6258_v36 = vpop.f32.mrb[14].mxu1 }
 0x200   :  { %v6260_v54 = vpop.f32.mrb[15].mxu1 }
 0x205   :  { %v6262_v55 = vpop.f32.mrb[16].mxu1 }
 0x206   :  { %v6264_v56 = vpop.f32.mrb[17].mxu1 }
 0x207   :  { %v6266_v59 = vpop.f32.mrb[18].mxu1 }
 0x208   :  { %v6268_v61 = vpop.f32.mrb[19].mxu1 }
 0x20d   :  { %v6270_v2 = vpop.f32.mrb[20].mxu1 }
 0x20e   :  { %v6272_v4 = vpop.f32.mrb[21].mxu1 }
 0x20f   :  { %v6274_v7 = vpop.f32.mrb[22].mxu1 }
 0x210   :  { %v6276_v9 = vpop.f32.mrb[23].mxu1 }
 0x215   :  { %v6281_v19 = vpop.f32.mrb[24].mxu1 }
 0x216   :  { %6628 = vst [vmem:[#allocation5_spill] sm:$0xff] %v6281_v19  ;;  %v6283_v21 = vpop.f32.mrb[25].mxu1 }
 0x217   :  { %6629 = vst [vmem:[#allocation6_spill] sm:$0xff] %v6283_v21  ;;  %v6285_v25 = vpop.f32.mrb[26].mxu1 }
 0x218   :  { %6630 = vst [vmem:[#allocation7_spill] sm:$0xff] %v6285_v25  ;;  %v6289_v27 = vpop.f32.mrb[27].mxu1 }
 0x219   :  { %6631 = vst [vmem:[#allocation8_spill] sm:$0xff] %v6289_v27 }
 0x21d   :  { %v2745_v62 = vpop.f32.mrb[28].mxu1 }
 0x21e   :  { %v3327_v38 = vpop.f32.mrb[0].mxu0  ;;  %v4029_v1 = vadd.f32 %v2745_v62, %v6287_v26  ;;  %v2747_v21 = vpop.f32.mrb[29].mxu1 }
 0x21f   :  { %v3974_v8 = vadd.f32 %v3973_v58, %v3327_v38  ;;  %v3329_v19 = vpop.f32.mrb[1].mxu0  ;;  %v4033_v25 = vadd.f32 %v2747_v21, %v6291_v30  ;;  %v2749_v15 = vpop.f32.mrb[30].mxu1 }
 0x220   :  { %v3976_v27 = vadd.f32 %v3975_v33, %v3329_v19  ;;  %v3331_v18 = vpop.f32.mrb[2].mxu0  ;;  %v4037_v45 = vadd.f32 %v2749_v15, %v6287_v26  ;;  %v2751_v37 = vpop.f32.mrb[31].mxu1  ;;  %v6301_v49 = vadd.f32 %v4029_v1, %v6190_v3 }
 0x221   :  { %v3456_v42 = vmax.f32 %v3974_v8, 0.0  ;;  %v3978_v47 = vadd.f32 %v3977_v0, %v3331_v18  ;;  %v3333_v52 = vpop.f32.mrb[3].mxu0  ;;  %v4041_v58 = vadd.f32 %v2751_v37, %v6291_v30  ;;  %v6305_v53 = vadd.f32 %v4033_v25, %v6192_v39 }
 0x222   :  { %v3457_v62 = vmax.f32 %v3976_v27, 0.0  ;;  %v3980_v38 = vadd.f32 %v3979_v13, %v3333_v52  ;;  %v6311_v21 = vadd.f32 %v4037_v45, %v6194_v40  ;;  %v3981_v39 = vadd.f32 %v6238_v57, %v6287_v26 }
 0x223   :  { %3508 = vst [vmem:[%s6624_s3] sm:$0xff] %v3456_v42  ;;  %v3458_v19 = vmax.f32 %v3978_v47, 0.0  ;;  %v6317_v27 = vadd.f32 %v4041_v58, %v6196_v6  ;;  %v3983_v52 = vadd.f32 %v6240_v60, %v6291_v30  ;;  %v3985_v6 = vadd.f32 %v6242_v63, %v6287_v26 }
 0x224   :  { %3509 = vst [vmem:[%s6624_s3 + $0x8] sm:$0xff] %v3457_v62  ;;  %v3459_v3 = vmax.f32 %v3980_v38, 0.0  ;;  %v3987_v0 = vadd.f32 %v6244_v5, %v6291_v30 }
 0x225   :  { %3510 = vst [vmem:[%s6624_s3 + $0x10] sm:$0xff] %v3458_v19  ;;  %v2755_v40 = vpop.f32.mrb[32].mxu1 }
 0x226   :  { %3511 = vst [vmem:[%s6624_s3 + $0x18] sm:$0xff] %v3459_v3  ;;  %v3337_v37 = vpop.f32.mrb[4].mxu0  ;;  %v4045_v42 = vadd.f32 %v2755_v40, %v6287_v26  ;;  %v2757_v57 = vpop.f32.mrb[33].mxu1  ;;  %v3991_v40 = vadd.f32 %v6248_v14, %v6291_v30 }
 0x227   :  { %v3982_v25 = vadd.f32 %v3981_v39, %v3337_v37  ;;  %v3339_v33 = vpop.f32.mrb[5].mxu0  ;;  %v4049_v1 = vadd.f32 %v2757_v57, %v6291_v30  ;;  %v2759_v8 = vpop.f32.mrb[34].mxu1  ;;  %v3995_v57 = vadd.f32 %v6252_v23, %v6291_v30 }
 0x228   :  { %v3984_v60 = vadd.f32 %v3983_v52, %v3339_v33  ;;  %v3341_v13 = vpop.f32.mrb[6].mxu0  ;;  %v4053_v18 = vadd.f32 %v2759_v8, %v6287_v26  ;;  %v2761_v47 = vpop.f32.mrb[35].mxu1  ;;  %v6337_v63 = vadd.f32 %v4045_v42, %v6198_v10 }
 0x229   :  { %v3460_v15 = vmax.f32 %v3982_v25, 0.0  ;;  %v3986_v45 = vadd.f32 %v3985_v6, %v3341_v13  ;;  %v3343_v62 = vpop.f32.mrb[7].mxu0  ;;  %v4057_v38 = vadd.f32 %v2761_v47, %v6291_v30  ;;  %v6341_v5 = vadd.f32 %v4049_v1, %v6200_v41 }
 0x22a   :  { %v3461_v58 = vmax.f32 %v3984_v60, 0.0  ;;  %v3988_v19 = vadd.f32 %v3987_v0, %v3343_v62  ;;  %v6347_v39 = vadd.f32 %v4053_v18, %v6202_v43  ;;  %v3989_v41 = vadd.f32 %v6246_v11, %v6287_v26 }
 0x22b   :  { %3512 = vst [vmem:[%s6624_s3 + $0x20] sm:$0xff] %v3460_v15  ;;  %v3462_v3 = vmax.f32 %v3986_v45, 0.0  ;;  %v6353_v52 = vadd.f32 %v4057_v38, %v6204_v12  ;;  %v3993_v12 = vadd.f32 %v6250_v17, %v6287_v26 }
 0x22c   :  { %3513 = vst [vmem:[%s6624_s3 + $0x28] sm:$0xff] %v3461_v58  ;;  %v3463_v10 = vmax.f32 %v3988_v19, 0.0 }
 0x22d   :  { %3514 = vst [vmem:[%s6624_s3 + $0x30] sm:$0xff] %v3462_v3  ;;  %v2765_v43 = vpop.f32.mrb[36].mxu1  ;;  %v3999_v3 = vadd.f32 %v6256_v31, %v6291_v30 }
 0x22e   :  { %3515 = vst [vmem:[%s6624_s3 + $0x38] sm:$0xff] %v3463_v10  ;;  %v3347_v37 = vpop.f32.mrb[8].mxu0  ;;  %v4061_v6 = vadd.f32 %v2765_v43, %v6287_v26  ;;  %v2767_v11 = vpop.f32.mrb[37].mxu1 }
 0x22f   :  { %v3990_v42 = vadd.f32 %v3989_v41, %v3347_v37  ;;  %v3349_v25 = vpop.f32.mrb[9].mxu0  ;;  %v4065_v33 = vadd.f32 %v2767_v11, %v6291_v30  ;;  %v2769_v0 = vpop.f32.mrb[38].mxu1  ;;  %v4003_v37 = vadd.f32 %v6260_v54, %v6291_v30 }
 0x230   :  { %v3992_v14 = vadd.f32 %v3991_v40, %v3349_v25  ;;  %v3351_v1 = vpop.f32.mrb[10].mxu0  ;;  %v4069_v8 = vadd.f32 %v2769_v0, %v6287_v26  ;;  %v2771_v15 = vpop.f32.mrb[39].mxu1  ;;  %v6373_v17 = vadd.f32 %v4061_v6, %v6206_v16 }
 0x231   :  { %v3464_v60 = vmax.f32 %v3990_v42, 0.0  ;;  %v3994_v13 = vadd.f32 %v3993_v12, %v3351_v1  ;;  %v3353_v18 = vpop.f32.mrb[11].mxu0  ;;  %v4073_v47 = vadd.f32 %v2771_v15, %v6291_v30  ;;  %v6377_v23 = vadd.f32 %v4065_v33, %v6208_v44 }
 0x232   :  { %v3465_v45 = vmax.f32 %v3992_v14, 0.0  ;;  %v3996_v62 = vadd.f32 %v3995_v57, %v3353_v18  ;;  %v6383_v38 = vadd.f32 %v4069_v8, %v6210_v46  ;;  %v3997_v44 = vadd.f32 %v6254_v29, %v6287_v26 }
 0x233   :  { %3516 = vst [vmem:[%s6624_s3 + $0x40] sm:$0xff] %v3464_v60  ;;  %v3466_v58 = vmax.f32 %v3994_v13, 0.0  ;;  %v6389_v19 = vadd.f32 %v4073_v47, %v6212_v20  ;;  %v4001_v20 = vadd.f32 %v6258_v36, %v6287_v26  ;;  %v4007_v18 = vadd.f32 %v6264_v56, %v6291_v30 }
 0x234   :  { %3517 = vst [vmem:[%s6624_s3 + $0x48] sm:$0xff] %v3465_v45  ;;  %v3467_v16 = vmax.f32 %v3996_v62, 0.0 }
 0x235   :  { %3518 = vst [vmem:[%s6624_s3 + $0x50] sm:$0xff] %v3466_v58  ;;  %v2775_v46 = vpop.f32.mrb[40].mxu1 }
 0x236   :  { %3519 = vst [vmem:[%s6624_s3 + $0x58] sm:$0xff] %v3467_v16  ;;  %v3357_v10 = vpop.f32.mrb[12].mxu0  ;;  %v4077_v41 = vadd.f32 %v2775_v46, %v6287_v26  ;;  %v2777_v29 = vpop.f32.mrb[41].mxu1  ;;  %v4011_v16 = vadd.f32 %v6268_v61, %v6291_v30 }
 0x237   :  { %v3998_v40 = vadd.f32 %v3997_v44, %v3357_v10  ;;  %v3359_v43 = vpop.f32.mrb[13].mxu0  ;;  %v4081_v12 = vadd.f32 %v2777_v29, %v6291_v30  ;;  %v2779_v6 = vpop.f32.mrb[42].mxu1 }
 0x238   :  { %v4000_v31 = vadd.f32 %v3999_v3, %v3359_v43  ;;  %v3361_v42 = vpop.f32.mrb[14].mxu0  ;;  %v4085_v25 = vadd.f32 %v2779_v6, %v6287_v26  ;;  %v2781_v33 = vpop.f32.mrb[43].mxu1  ;;  %v6409_v36 = vadd.f32 %v4077_v41, %v6214_v22 }
 0x239   :  { %v3468_v11 = vmax.f32 %v3998_v40, 0.0  ;;  %v4002_v57 = vadd.f32 %v4001_v20, %v3361_v42  ;;  %v3363_v14 = vpop.f32.mrb[15].mxu0  ;;  %v4089_v1 = vadd.f32 %v2781_v33, %v6291_v30  ;;  %v6413_v54 = vadd.f32 %v4081_v12, %v6216_v48 }
 0x23a   :  { %v3469_v0 = vmax.f32 %v4000_v31, 0.0  ;;  %v4004_v60 = vadd.f32 %v4003_v37, %v3363_v14  ;;  %v6419_v13 = vadd.f32 %v4085_v25, %v6218_v50  ;;  %v4005_v48 = vadd.f32 %v6262_v55, %v6287_v26 }
 0x23b   :  { %3520 = vst [vmem:[%s6624_s3 + $0x60] sm:$0xff] %v3468_v11  ;;  %v3470_v8 = vmax.f32 %v4002_v57, 0.0  ;;  %v6425_v15 = vadd.f32 %v4089_v1, %v6220_v24  ;;  %v4009_v24 = vadd.f32 %v6266_v59, %v6287_v26  ;;  %v4015_v11 = vadd.f32 %v6272_v4, %v6291_v30 }
 0x23c   :  { %3521 = vst [vmem:[%s6624_s3 + $0x68] sm:$0xff] %v3469_v0  ;;  %v3471_v22 = vmax.f32 %v4004_v60, 0.0  ;;  %v4019_v0 = vadd.f32 %v6276_v9, %v6291_v30 }
 0x23d   :  { %3522 = vst [vmem:[%s6624_s3 + $0x70] sm:$0xff] %v3470_v8  ;;  %v2785_v50 = vpop.f32.mrb[44].mxu1 }
 0x23e   :  { %3523 = vst [vmem:[%s6624_s3 + $0x78] sm:$0xff] %v3471_v22  ;;  %v3367_v45 = vpop.f32.mrb[16].mxu0  ;;  %v4093_v47 = vadd.f32 %v2785_v50, %v6287_v26  ;;  %v2787_v55 = vpop.f32.mrb[45].mxu1 }
 0x23f   :  { %v4006_v62 = vadd.f32 %v4005_v48, %v3367_v45  ;;  %v3369_v58 = vpop.f32.mrb[17].mxu0  ;;  %v4097_v44 = vadd.f32 %v2787_v55, %v6291_v30  ;;  %v2789_v3 = vpop.f32.mrb[46].mxu1  ;;  %v6632_v55 = vld [vmem:[#allocation2_spill] sm:$0xff] }
 0x240   :  { %v4008_v56 = vadd.f32 %v4007_v18, %v3369_v58  ;;  %v3371_v46 = vpop.f32.mrb[18].mxu0  ;;  %v4101_v20 = vadd.f32 %v2789_v3, %v6287_v26  ;;  %v2791_v40 = vpop.f32.mrb[47].mxu1  ;;  %v6445_v59 = vadd.f32 %v4093_v47, %v6222_v28 }
 0x241   :  { %v3472_v10 = vmax.f32 %v4006_v62, 0.0  ;;  %v4010_v41 = vadd.f32 %v4009_v24, %v3371_v46  ;;  %v3373_v29 = vpop.f32.mrb[19].mxu0  ;;  %v4105_v37 = vadd.f32 %v2791_v40, %v6291_v30  ;;  %v6449_v61 = vadd.f32 %v4097_v44, %v6224_v35  ;;  %v6635_v46 = vld [vmem:[#allocation5_spill] sm:$0xff] }
 0x242   :  { %v3473_v43 = vmax.f32 %v4008_v56, 0.0  ;;  %v4012_v12 = vadd.f32 %v4011_v16, %v3373_v29  ;;  %v6455_v6 = vadd.f32 %v4101_v20, %v6226_v51  ;;  %v4013_v35 = vadd.f32 %v6270_v2, %v6287_v26  ;;  %v6633_v16 = vld [vmem:[#allocation3_spill] sm:$0xff]  ;;  %v6634_v56 = vld [vmem:[#allocation4_spill] sm:$0xff]  ;;  %v6636_v20 = vld [vmem:[#allocation6_spill] sm:$0xff] }
 0x243   :  { %3524 = vst [vmem:[%s6624_s3 + $0x80] sm:$0xff] %v3472_v10  ;;  %v3474_v31 = vmax.f32 %v4010_v41, 0.0  ;;  %v6461_v42 = vadd.f32 %v4105_v37, %v6228_v32  ;;  %v4017_v32 = vadd.f32 %v6274_v7, %v6287_v26  ;;  %v4021_v10 = vadd.f32 %v6635_v46, %v6287_v26 }
 0x244   :  { %3525 = vst [vmem:[%s6624_s3 + $0x88] sm:$0xff] %v3473_v43  ;;  %v3475_v28 = vmax.f32 %v4012_v12, 0.0  ;;  %v4023_v41 = vadd.f32 %v6636_v20, %v6291_v30  ;;  %v6637_v43 = vld [vmem:[#allocation7_spill] sm:$0xff] }
 0x245   :  { %3526 = vst [vmem:[%s6624_s3 + $0x90] sm:$0xff] %v3474_v31  ;;  %v2795_v51 = vpop.f32.mrb[48].mxu1  ;;  %v4025_v37 = vadd.f32 %v6637_v43, %v6287_v26 }
 0x246   :  { %3527 = vst [vmem:[%s6624_s3 + $0x98] sm:$0xff] %v3475_v28  ;;  %v3377_v25 = vpop.f32.mrb[20].mxu0  ;;  %v4109_v57 = vadd.f32 %v2795_v51, %v6287_v26  ;;  %v2797_v2 = vpop.f32.mrb[49].mxu1 }
 0x247   :  { %v4014_v33 = vadd.f32 %v4013_v35, %v3377_v25  ;;  %v3379_v14 = vpop.f32.mrb[21].mxu0  ;;  %v4113_v1 = vadd.f32 %v2797_v2, %v6291_v30  ;;  %v2799_v60 = vpop.f32.mrb[50].mxu1 }
 0x248   :  { %v4016_v4 = vadd.f32 %v4015_v11, %v3379_v14  ;;  %v3381_v8 = vpop.f32.mrb[22].mxu0  ;;  %v4117_v48 = vadd.f32 %v2799_v60, %v6287_v26  ;;  %v2801_v50 = vpop.f32.mrb[51].mxu1  ;;  %v6481_v7 = vadd.f32 %v4109_v57, %v6230_v34  ;;  %v6638_v11 = vld [vmem:[#allocation8_spill] sm:$0xff] }
 0x249   :  { %v3476_v22 = vmax.f32 %v4014_v33, 0.0  ;;  %v4018_v18 = vadd.f32 %v4017_v32, %v3381_v8  ;;  %v3383_v45 = vpop.f32.mrb[23].mxu0  ;;  %v4121_v47 = vadd.f32 %v2801_v50, %v6291_v30  ;;  %v6485_v9 = vadd.f32 %v4113_v1, %v6632_v55 }
 0x24a   :  { %v3477_v24 = vmax.f32 %v4016_v4, 0.0  ;;  %v4020_v62 = vadd.f32 %v4019_v0, %v3383_v45  ;;  %v6491_v44 = vadd.f32 %v4117_v48, %v6633_v16  ;;  %v4027_v51 = vadd.f32 %v6638_v11, %v6291_v30 }
 0x24b   :  { %3528 = vst [vmem:[%s6624_s3 + $0xa0] sm:$0xff] %v3476_v22  ;;  %v3478_v58 = vmax.f32 %v4018_v18, 0.0  ;;  %v6497_v3 = vadd.f32 %v4121_v47, %v6634_v56 }
 0x24c   :  { %3529 = vst [vmem:[%s6624_s3 + $0xa8] sm:$0xff] %v3477_v24  ;;  %v3479_v34 = vmax.f32 %v4020_v62, 0.0 }
 0x24d   :  { %3530 = vst [vmem:[%s6624_s3 + $0xb0] sm:$0xff] %v3478_v58  ;;  %v3234_v40 = vpop.f32.mrb[52].mxu1 }
 0x24e   :  { %3531 = vst [vmem:[%s6624_s3 + $0xb8] sm:$0xff] %v3479_v34  ;;  %v3387_v29 = vpop.f32.mrb[24].mxu0  ;;  %v4031_v12 = vadd.f32 %v6301_v49, %v3234_v40  ;;  %v3236_v28 = vpop.f32.mrb[53].mxu1 }
 0x24f   :  { %v4022_v31 = vadd.f32 %v4021_v10, %v3387_v29  ;;  %v3389_v35 = vpop.f32.mrb[25].mxu0  ;;  %v4035_v25 = vadd.f32 %v6305_v53, %v3236_v28  ;;  %v3238_v57 = vpop.f32.mrb[54].mxu1 }
 0x250   :  { %v4024_v32 = vadd.f32 %v4023_v41, %v3389_v35  ;;  %v3391_v33 = vpop.f32.mrb[26].mxu0  ;;  %v4039_v14 = vadd.f32 %v6311_v21, %v3238_v57  ;;  %v3240_v1 = vpop.f32.mrb[55].mxu1 }
 0x251   :  { %v3480_v2 = vmax.f32 %v4022_v31, 0.0  ;;  %v4026_v0 = vadd.f32 %v4025_v37, %v3391_v33  ;;  %v3393_v4 = vpop.f32.mrb[27].mxu0  ;;  %v4043_v49 = vadd.f32 %v6317_v27, %v3240_v1 }
 0x252   :  { %v3481_v26 = vmax.f32 %v4024_v32, 0.0  ;;  %v4028_v60 = vadd.f32 %v4027_v51, %v3393_v4 }
 0x253   :  { %3532 = vst [vmem:[%s6624_s3 + $0xc0] sm:$0xff] %v3480_v2  ;;  %v3482_v30 = vmax.f32 %v4026_v0, 0.0 }
 0x254   :  { %3533 = vst [vmem:[%s6624_s3 + $0xc8] sm:$0xff] %v3481_v26  ;;  %v3483_v53 = vmax.f32 %v4028_v60, 0.0 }
 0x255   :  { %3534 = vst [vmem:[%s6624_s3 + $0xd0] sm:$0xff] %v3482_v30  ;;  %v3244_v21 = vpop.f32.mrb[56].mxu1 }
 0x256   :  { %3535 = vst [vmem:[%s6624_s3 + $0xd8] sm:$0xff] %v3483_v53  ;;  %v3397_v27 = vpop.f32.mrb[52].mxu0  ;;  %v4047_v8 = vadd.f32 %v6337_v63, %v3244_v21  ;;  %v3246_v48 = vpop.f32.mrb[57].mxu1 }
 0x257   :  { %v4032_v22 = vadd.f32 %v4031_v12, %v3397_v27  ;;  %v3399_v18 = vpop.f32.mrb[53].mxu0  ;;  %v4051_v50 = vadd.f32 %v6341_v5, %v3246_v48  ;;  %v3248_v24 = vpop.f32.mrb[58].mxu1 }
 0x258   :  { %v4036_v45 = vadd.f32 %v4035_v25, %v3399_v18  ;;  %v3401_v47 = vpop.f32.mrb[54].mxu0  ;;  %v4055_v55 = vadd.f32 %v6347_v39, %v3248_v24  ;;  %v3250_v16 = vpop.f32.mrb[59].mxu1 }
 0x259   :  { %v3484_v62 = vmax.f32 %v4032_v22, 0.0  ;;  %v4040_v58 = vadd.f32 %v4039_v14, %v3401_v47  ;;  %v3403_v34 = vpop.f32.mrb[55].mxu0  ;;  %v4059_v46 = vadd.f32 %v6353_v52, %v3250_v16 }
 0x25a   :  { %v3485_v56 = vmax.f32 %v4036_v45, 0.0  ;;  %v4044_v10 = vadd.f32 %v4043_v49, %v3403_v34 }
 0x25b   :  { %3536 = vst [vmem:[%s6624_s3 + $0xe0] sm:$0xff] %v3484_v62  ;;  %v3486_v63 = vmax.f32 %v4040_v58, 0.0 }
 0x25c   :  { %3537 = vst [vmem:[%s6624_s3 + $0xe8] sm:$0xff] %v3485_v56  ;;  %v3487_v5 = vmax.f32 %v4044_v10, 0.0 }
 0x25d   :  { %3538 = vst [vmem:[%s6624_s3 + $0xf0] sm:$0xff] %v3486_v63  ;;  %v3254_v39 = vpop.f32.mrb[60].mxu1 }
 0x25e   :  { %3539 = vst [vmem:[%s6624_s3 + $0xf8] sm:$0xff] %v3487_v5  ;;  %v3407_v52 = vpop.f32.mrb[56].mxu0  ;;  %v4063_v20 = vadd.f32 %v6373_v17, %v3254_v39  ;;  %v3256_v40 = vpop.f32.mrb[61].mxu1 }
 0x25f   :  { %v4048_v41 = vadd.f32 %v4047_v8, %v3407_v52  ;;  %v3409_v29 = vpop.f32.mrb[57].mxu0  ;;  %v4067_v43 = vadd.f32 %v6377_v23, %v3256_v40  ;;  %v3258_v12 = vpop.f32.mrb[62].mxu1 }
 0x260   :  { %v4052_v37 = vadd.f32 %v4051_v50, %v3409_v29  ;;  %v3411_v31 = vpop.f32.mrb[58].mxu0  ;;  %v4071_v35 = vadd.f32 %v6383_v38, %v3258_v12  ;;  %v3260_v51 = vpop.f32.mrb[63].mxu1 }
 0x261   :  { %v3488_v28 = vmax.f32 %v4048_v41, 0.0  ;;  %v4056_v11 = vadd.f32 %v4055_v55, %v3411_v31  ;;  %v3413_v25 = vpop.f32.mrb[59].mxu0  ;;  %v4075_v57 = vadd.f32 %v6389_v19, %v3260_v51 }
 0x262   :  { %v3489_v32 = vmax.f32 %v4052_v37, 0.0  ;;  %v4060_v33 = vadd.f32 %v4059_v46, %v3413_v25 }
 0x263   :  { %3540 = vst [vmem:[%s6624_s3 + $0x100] sm:$0xff] %v3488_v28  ;;  %v3490_v17 = vmax.f32 %v4056_v11, 0.0 }
 0x264   :  { %3541 = vst [vmem:[%s6624_s3 + $0x108] sm:$0xff] %v3489_v32  ;;  %v3491_v23 = vmax.f32 %v4060_v33, 0.0 }
 0x265   :  { %3542 = vst [vmem:[%s6624_s3 + $0x110] sm:$0xff] %v3490_v17  ;;  %v3264_v38 = vpop.f32.mrb[64].mxu1 }
 0x266   :  { %3543 = vst [vmem:[%s6624_s3 + $0x118] sm:$0xff] %v3491_v23  ;;  %v3417_v19 = vpop.f32.mrb[60].mxu0  ;;  %v4079_v2 = vadd.f32 %v6409_v36, %v3264_v38  ;;  %v3266_v0 = vpop.f32.mrb[65].mxu1 }
 0x267   :  { %v4064_v14 = vadd.f32 %v4063_v20, %v3417_v19  ;;  %v3419_v1 = vpop.f32.mrb[61].mxu0  ;;  %v4083_v4 = vadd.f32 %v6413_v54, %v3266_v0  ;;  %v3268_v49 = vpop.f32.mrb[66].mxu1 }
 0x268   :  { %v4068_v26 = vadd.f32 %v4067_v43, %v3419_v1  ;;  %v3421_v60 = vpop.f32.mrb[62].mxu0  ;;  %v4087_v53 = vadd.f32 %v6419_v13, %v3268_v49  ;;  %v3270_v27 = vpop.f32.mrb[67].mxu1 }
 0x269   :  { %v3492_v30 = vmax.f32 %v4064_v14, 0.0  ;;  %v4072_v21 = vadd.f32 %v4071_v35, %v3421_v60  ;;  %v3423_v8 = vpop.f32.mrb[63].mxu0  ;;  %v4091_v48 = vadd.f32 %v6425_v15, %v3270_v27 }
 0x26a   :  { %v3493_v22 = vmax.f32 %v4068_v26, 0.0  ;;  %v4076_v18 = vadd.f32 %v4075_v57, %v3423_v8 }
 0x26b   :  { %3544 = vst [vmem:[%s6624_s3 + $0x120] sm:$0xff] %v3492_v30  ;;  %v3494_v36 = vmax.f32 %v4072_v21, 0.0 }
 0x26c   :  { %3545 = vst [vmem:[%s6624_s3 + $0x128] sm:$0xff] %v3493_v22  ;;  %v3495_v54 = vmax.f32 %v4076_v18, 0.0 }
 0x26d   :  { %3546 = vst [vmem:[%s6624_s3 + $0x130] sm:$0xff] %v3494_v36  ;;  %v3274_v13 = vpop.f32.mrb[68].mxu1 }
 0x26e   :  { %3547 = vst [vmem:[%s6624_s3 + $0x138] sm:$0xff] %v3495_v54  ;;  %v3427_v15 = vpop.f32.mrb[64].mxu0  ;;  %v4095_v50 = vadd.f32 %v6445_v59, %v3274_v13  ;;  %v3276_v24 = vpop.f32.mrb[69].mxu1 }
 0x26f   :  { %v4080_v45 = vadd.f32 %v4079_v2, %v3427_v15  ;;  %v3429_v47 = vpop.f32.mrb[65].mxu0  ;;  %v4099_v62 = vadd.f32 %v6449_v61, %v3276_v24  ;;  %v3278_v58 = vpop.f32.mrb[70].mxu1 }
 0x270   :  { %v4084_v55 = vadd.f32 %v4083_v4, %v3429_v47  ;;  %v3431_v16 = vpop.f32.mrb[66].mxu0  ;;  %v4103_v56 = vadd.f32 %v6455_v6, %v3278_v58  ;;  %v3280_v10 = vpop.f32.mrb[71].mxu1 }
 0x271   :  { %v3496_v34 = vmax.f32 %v4080_v45, 0.0  ;;  %v4088_v46 = vadd.f32 %v4087_v53, %v3431_v16  ;;  %v3433_v63 = vpop.f32.mrb[67].mxu0  ;;  %v4107_v39 = vadd.f32 %v6461_v42, %v3280_v10 }
 0x272   :  { %v3497_v5 = vmax.f32 %v4084_v55, 0.0  ;;  %v4092_v52 = vadd.f32 %v4091_v48, %v3433_v63 }
 0x273   :  { %3548 = vst [vmem:[%s6624_s3 + $0x140] sm:$0xff] %v3496_v34  ;;  %v3498_v59 = vmax.f32 %v4088_v46, 0.0 }
 0x274   :  { %3549 = vst [vmem:[%s6624_s3 + $0x148] sm:$0xff] %v3497_v5  ;;  %v3499_v61 = vmax.f32 %v4092_v52, 0.0 }
 0x275   :  { %3550 = vst [vmem:[%s6624_s3 + $0x150] sm:$0xff] %v3498_v59  ;;  %v3284_v6 = vpop.f32.mrb[72].mxu1 }
 0x276   :  { %3551 = vst [vmem:[%s6624_s3 + $0x158] sm:$0xff] %v3499_v61  ;;  %v3437_v42 = vpop.f32.mrb[68].mxu0  ;;  %v4111_v20 = vadd.f32 %v6481_v7, %v3284_v6  ;;  %v3286_v40 = vpop.f32.mrb[73].mxu1 }
 0x277   :  { %v4096_v41 = vadd.f32 %v4095_v50, %v3437_v42  ;;  %v3439_v29 = vpop.f32.mrb[69].mxu0  ;;  %v4115_v43 = vadd.f32 %v6485_v9, %v3286_v40  ;;  %v3288_v12 = vpop.f32.mrb[74].mxu1 }
 0x278   :  { %v4100_v37 = vadd.f32 %v4099_v62, %v3439_v29  ;;  %v3441_v31 = vpop.f32.mrb[70].mxu0  ;;  %v4119_v35 = vadd.f32 %v6491_v44, %v3288_v12  ;;  %v3290_v51 = vpop.f32.mrb[75].mxu1 }
 0x279   :  { %v3500_v28 = vmax.f32 %v4096_v41, 0.0  ;;  %v4104_v11 = vadd.f32 %v4103_v56, %v3441_v31  ;;  %v3443_v25 = vpop.f32.mrb[71].mxu0  ;;  %v4123_v57 = vadd.f32 %v6497_v3, %v3290_v51 }
 0x27a   :  { %v3501_v32 = vmax.f32 %v4100_v37, 0.0  ;;  %v4108_v33 = vadd.f32 %v4107_v39, %v3443_v25 }
 0x27b   :  { %3552 = vst [vmem:[%s6624_s3 + $0x160] sm:$0xff] %v3500_v28  ;;  %v3502_v7 = vmax.f32 %v4104_v11, 0.0 }
 0x27c   :  { %3553 = vst [vmem:[%s6624_s3 + $0x168] sm:$0xff] %v3501_v32  ;;  %v3503_v9 = vmax.f32 %v4108_v33, 0.0 }
 0x27d   :  { %3554 = vst [vmem:[%s6624_s3 + $0x170] sm:$0xff] %v3502_v7 }
 0x27e   :  { %3555 = vst [vmem:[%s6624_s3 + $0x178] sm:$0xff] %v3503_v9  ;;  %v3447_v44 = vpop.f32.mrb[72].mxu0 }
 0x27f   :  { %v4112_v3 = vadd.f32 %v4111_v20, %v3447_v44  ;;  %v3449_v17 = vpop.f32.mrb[73].mxu0 }
 0x280   :  { %v4116_v23 = vadd.f32 %v4115_v43, %v3449_v17  ;;  %v3451_v38 = vpop.f32.mrb[74].mxu0 }
 0x281   :  { %v3504_v19 = vmax.f32 %v4112_v3, 0.0  ;;  %v4120_v2 = vadd.f32 %v4119_v35, %v3451_v38  ;;  %v3453_v14 = vpop.f32.mrb[75].mxu0 }
 0x282   :  { %v3505_v0 = vmax.f32 %v4116_v23, 0.0  ;;  %v4124_v1 = vadd.f32 %v4123_v57, %v3453_v14 }
 0x283   :  { %3556 = vst [vmem:[%s6624_s3 + $0x180] sm:$0xff] %v3504_v19  ;;  %v3506_v4 = vmax.f32 %v4120_v2, 0.0 }
 0x284   :  { %3557 = vst [vmem:[%s6624_s3 + $0x188] sm:$0xff] %v3505_v0  ;;  %v3507_v26 = vmax.f32 %v4124_v1, 0.0 }
 0x285   :  { %3558 = vst [vmem:[%s6624_s3 + $0x190] sm:$0xff] %v3506_v4 }
 0x286   :  { %3559 = vst [vmem:[%s6624_s3 + $0x198] sm:$0xff] %v3507_v26 }

// kernel: perceptual_loss.17
= control target key start
LH: loop header
LB: loop body
LE: loop exit
PB: predicated region body
PF: predicated region fallthrough
CT: control target
= control target key end

     0   :  { %s561_s12 = smov 0   ;;  %s563_s13 = smov 0   ;;  %s665_s0 = inlined_call_operand.vmem [shape: f32[32,384], index: 0, kind: input, shape index: {}]   ;;  %s666_s1 = inlined_call_operand.vmem [shape: f32[32,384], index: 1, kind: input, shape index: {}]   ;;  %s667_s2 = inlined_call_operand.vmem [shape: f32[1,384], index: 2, kind: input, shape index: {}]   ;;  %s668_s3 = inlined_call_operand.vmem [shape: f32[16,384], index: 3, kind: output, shape index: {}]  }
   0x1   :  { %s565_s14 = smov 0  }
   0x2 LB: > { %s25_s15 = sadd.s32 1, %s535_s13  ;;  %p466_p0 = scmp.ge.s32.totalorder %s539_s14, 1  ;;  %s539_s14 = sphi %s565_s14, %s13_s14   ;;  %s535_s13 = sphi %s563_s13, %s670_s13   ;;  %s531_s12 = sphi %s561_s12, %s669_s12  }
   0x3   : > { %p27_p1 = scmp.ge.s32.totalorder %s25_s15, 2  ;;  %p171_p2 = scmp.lt.s32.totalorder %s539_s14, 3 }
   0x5   : > { %s672_s15 = smov (%p27_p1, %s25_s15), 0  ;;  %p172_p3 = pnand %p466_p0, %p171_p2 }
   0x6   : > { %s467_s16 = sshll.u32 (!%p172_p3), %s531_s12, 1  ;;  %v336_v60 = vlaneseq (!%p172_p3)  ;;  %p222_p5 = scmp.lt.s32.totalorder (!%p172_p3), %s531_s12, 1 }
   0x7   : > { %175 = sbr.rel (%p172_p3) target bundleno = 224 (0xe0), region = 32  ;;  %p206_p4 = scmp.lt.s32.totalorder (!%p172_p3), %s467_s16, 3 }
   0x8   : > { %v337_v61 = vshrl.u32 (!%p172_p3), %v336_v60, 7 }
   0xe   : > { %s674_s16 = smov (!%p206_p4, %s467_s16), 3  ;;  %s676_s12 = smov (!%p222_p5, %s531_s12), 1 }
   0xf   : > { %s474_s17 = smul.u32 24, %s674_s16 }
  0x10   : > { %s475_s26 = smul.u32 24, %s676_s12 }
  0x11   : > { %s219_s20 = scalar_lea.vmem %s666_s1, %s474_s17  ;;  %s210_s23 = scalar_lea.vmem %s665_s0, %s474_s17 }
  0x12   : > { %v588_v0 = vld [vmem:[%s219_s20] sm:$0xff]  ;;  %v590_v1 = vld [vmem:[%s219_s20 + $0x8] sm:$0xff]  ;;  %v592_v2 = vld [vmem:[%s219_s20 + $0x10] sm:$0xff]  ;;  %s226_s29 = scalar_lea.vmem %s668_s3, %s475_s26 }
  0x13   : > { %v278_v3 = vmul.f32 %v588_v0, %v588_v0  ;;  %v279_v4 = vmul.f32 %v590_v1, %v590_v1  ;;  %v280_v5 = vmul.f32 %v592_v2, %v592_v2  ;;  %v600_v6 = vld [vmem:[%s210_s23] sm:$0xff]  ;;  %v602_v7 = vld [vmem:[%s210_s23 + $0x8] sm:$0xff]  ;;  %v604_v8 = vld [vmem:[%s210_s23 + $0x10] sm:$0xff] }
  0x14   : > { %v246_v9 = vmul.f32 %v600_v6, %v600_v6  ;;  %v247_v10 = vmul.f32 %v602_v7, %v602_v7  ;;  %v248_v11 = vmul.f32 %v604_v8, %v604_v8  ;;  %v612_v12 = vld [vmem:[%s219_s20 + $0x18] sm:$0xff]  ;;  %v614_v13 = vld [vmem:[%s219_s20 + $0x20] sm:$0xff]  ;;  %v616_v14 = vld [vmem:[%s219_s20 + $0x28] sm:$0xff] }
  0x15   : > { %v284_v15 = vadd.f32 %v279_v4, %v278_v3  ;;  %v281_v16 = vmul.f32 %v612_v12, %v612_v12  ;;  %v282_v17 = vmul.f32 %v614_v13, %v614_v13  ;;  %v283_v18 = vmul.f32 %v616_v14, %v616_v14  ;;  %v624_v19 = vld [vmem:[%s210_s23 + $0x18] sm:$0xff]  ;;  %v626_v20 = vld [vmem:[%s210_s23 + $0x20] sm:$0xff]  ;;  %v628_v21 = vld [vmem:[%s210_s23 + $0x28] sm:$0xff] }
  0x16   : > { %v252_v22 = vadd.f32 %v247_v10, %v246_v9  ;;  %v249_v23 = vmul.f32 %v624_v19, %v624_v19  ;;  %v250_v24 = vmul.f32 %v626_v20, %v626_v20  ;;  %v251_v25 = vmul.f32 %v628_v21, %v628_v21 }
  0x17   : > { %v285_v26 = vadd.f32 %v284_v15, %v280_v5  ;;  %v288_v27 = vadd.f32 %v282_v17, %v281_v16  ;;  %v338_v15 = vsub.s32 0, %v337_v61 }
  0x18   : > { %v253_v28 = vadd.f32 %v252_v22, %v248_v11  ;;  %v256_v29 = vadd.f32 %v250_v24, %v249_v23  ;;  %v334_v22 = vld [vmem:[%s667_s2] sm:$0x7]  ;;  %v342_v23 = vsub.s32 1, %v337_v61 }
  0x19   : > { %286 = vadd.xlane.f32.xlu1 %v285_v26  ;;  %v289_v30 = vadd.f32 %v288_v27, %v283_v18 }
  0x1a   : > { %254 = vadd.xlane.f32.xlu0 %v253_v28  ;;  %v257_v31 = vadd.f32 %v256_v29, %v251_v25  ;;  %v339_v25 = vrot.slane %v334_v22, %v338_v15  ;;  %v343_v29 = vrot.slane %v334_v22, %v342_v23 }
  0x1d   : > { %290 = vadd.xlane.f32.xlu1 %v289_v30 }
  0x1e   : > { %258 = vadd.xlane.f32.xlu0 %v257_v31 }
  0xa6   : > { %v287_v32 = vpop.xlane.xlu1 %286 }
  0xa7   : > { %501 = vrsqrt.f32 %v287_v32  ;;  %v255_v33 = vpop.xlane.xlu0 %254  ;;  %vm294_vm0 = vcmp.eq.f32.partialorder %v287_v32, inf  ;;  %v297_v39 = vand.u32 2147483648, %v287_v32  ;;  %vm296_vm1 = vcmp.eq.f32.partialorder %v287_v32, 0.0 }
  0xa8   : > { %503 = vrsqrt.f32 %v255_v33  ;;  %vm262_vm2 = vcmp.eq.f32.partialorder %v255_v33, inf  ;;  %v265_v42 = vand.u32 2147483648, %v255_v33  ;;  %vm264_vm3 = vcmp.eq.f32.partialorder %v255_v33, 0.0 }
  0xaa   : > { %v291_v34 = vpop.xlane.xlu1 %290 }
  0xab   : > { %505 = vrsqrt.f32 %v291_v34  ;;  %v259_v35 = vpop.xlane.xlu0 %258  ;;  %vm301_vm4 = vcmp.eq.f32.partialorder %v291_v34, inf  ;;  %vm303_vm5 = vcmp.eq.f32.partialorder %v291_v34, 0.0  ;;  %v304_v51 = vand.u32 2147483648, %v291_v34 }
  0xac   : > { %507 = vrsqrt.f32 %v259_v35  ;;  %vm269_vm6 = vcmp.eq.f32.partialorder %v259_v35, inf  ;;  %v272_v54 = vand.u32 2147483648, %v259_v35  ;;  %vm271_vm7 = vcmp.eq.f32.partialorder %v259_v35, 0.0 }
  0xb1   : > { %v502_v36 = vpop.eup %501 }
  0xb2   : > { %v504_v37 = vpop.eup %503  ;;  %v293_v38 = vmul.f32 %v502_v36, %v287_v32 }
  0xb3   : > { %v261_v40 = vmul.f32 %v504_v37, %v255_v33 }
  0xb4   : > { %v295_v41 = vsel %vm294_vm0, %v287_v32, %v293_v38 }
  0xb5   : > { %v506_v43 = vpop.eup %505  ;;  %v298_v44 = vsel %vm296_vm1, %v297_v39, %v295_v41  ;;  %v263_v45 = vsel %vm262_vm2, %v255_v33, %v261_v40 }
  0xb6   : > { %v508_v46 = vpop.eup %507  ;;  %v306_v47 = vadd.f32 1e-10, %v298_v44  ;;  %v266_v48 = vsel %vm264_vm3, %v265_v42, %v263_v45  ;;  %v300_v49 = vmul.f32 %v506_v43, %v291_v34 }
  0xb7   : > { %v274_v50 = vadd.f32 1e-10, %v266_v48  ;;  %v268_v52 = vmul.f32 %v508_v46, %v259_v35 }
  0xb8   : > { %509 = vrcp.f32 %v306_v47  ;;  %v302_v53 = vsel %vm301_vm4, %v291_v34, %v300_v49 }
  0xb9   : > { %511 = vrcp.f32 %v274_v50  ;;  %v305_v55 = vsel %vm303_vm5, %v304_v51, %v302_v53  ;;  %v270_v56 = vsel %vm269_vm6, %v259_v35, %v268_v52 }
  0xba   : > { %v307_v57 = vadd.f32 1e-10, %v305_v55  ;;  %v273_v58 = vsel %vm271_vm7, %v272_v54, %v270_v56 }
  0xbb   : > { %v275_v59 = vadd.f32 1e-10, %v273_v58 }
  0xbc   : > { %513 = vrcp.f32 %v307_v57 }
  0xbd   : > { %515 = vrcp.f32 %v275_v59 }
  0xc2   : > { %v510_v62 = vpop.eup %509 }
  0xc3   : > { %v512_v63 = vpop.eup %511  ;;  %v316_v3 = vmul.f32 %v510_v62, %v588_v0  ;;  %v317_v4 = vmul.f32 %v510_v62, %v590_v1  ;;  %v318_v5 = vmul.f32 %v510_v62, %v592_v2  ;;  %v346_v0 = vsub.s32 2, %v337_v61 }
  0xc4   : > { %v310_v9 = vmul.f32 %v512_v63, %v600_v6  ;;  %v311_v10 = vmul.f32 %v512_v63, %v602_v7  ;;  %v312_v11 = vmul.f32 %v512_v63, %v604_v8 }
  0xc5   : > { %v347_v30 = vrot.slane %v334_v22, %v346_v0 }
  0xc6   : > { %v514_v16 = vpop.eup %513  ;;  %v322_v17 = vsub.f32 %v310_v9, %v316_v3  ;;  %v323_v18 = vsub.f32 %v311_v10, %v317_v4  ;;  %v324_v1 = vsub.f32 %v312_v11, %v318_v5 }
  0xc7   : > { %v516_v24 = vpop.eup %515  ;;  %v319_v2 = vmul.f32 %v514_v16, %v612_v12  ;;  %v320_v6 = vmul.f32 %v514_v16, %v614_v13  ;;  %v321_v7 = vmul.f32 %v514_v16, %v616_v14 }
  0xc8   : > { %v313_v8 = vmul.f32 %v516_v24, %v624_v19  ;;  %v314_v26 = vmul.f32 %v516_v24, %v626_v20  ;;  %v315_v27 = vmul.f32 %v516_v24, %v628_v21  ;;  %v328_v28 = vmul.f32 %v322_v17, %v322_v17 }
  0xc9   : > { %v329_v32 = vmul.f32 %v323_v18, %v323_v18  ;;  %v330_v33 = vmul.f32 %v324_v1, %v324_v1 }
  0xca   : > { %v325_v31 = vsub.f32 %v313_v8, %v319_v2  ;;  %v326_v34 = vsub.f32 %v314_v26, %v320_v6  ;;  %v327_v12 = vsub.f32 %v315_v27, %v321_v7  ;;  %v351_v36 = vmul.f32 %v339_v25, %v328_v28 }
  0xcb   : > { %v352_v37 = vmul.f32 %v343_v29, %v329_v32  ;;  %v353_v38 = vmul.f32 %v347_v30, %v330_v33 }
  0xcc   : > { %v331_v35 = vmul.f32 %v325_v31, %v325_v31  ;;  %v332_v13 = vmul.f32 %v326_v34, %v326_v34  ;;  %v333_v14 = vmul.f32 %v327_v12, %v327_v12 }
  0xce   : > { %v354_v19 = vmul.f32 %v339_v25, %v331_v35  ;;  %v355_v20 = vmul.f32 %v343_v29, %v332_v13  ;;  %v356_v39 = vmul.f32 %v347_v30, %v333_v14 }
  0xd0   : > { %v357_v21 = vadd.f32 %v354_v19, %v351_v36  ;;  %v364_v40 = vadd.f32 %v355_v20, %v352_v37  ;;  %v371_v41 = vadd.f32 %v356_v39, %v353_v38 }
  0xd2   : > { %v358_v42 = vrot.slane %v357_v21, 4  ;;  %v365_v43 = vrot.slane %v364_v40, 4  ;;  %v372_v44 = vrot.slane %v371_v41, 4 }
  0xd4   : > { %v359_v45 = vadd.f32 %v358_v42, %v357_v21  ;;  %v366_v46 = vadd.f32 %v365_v43, %v364_v40  ;;  %v373_v47 = vadd.f32 %v372_v44, %v371_v41 }
  0xd6   : > { %v360_v48 = vrot.slane %v359_v45, 2  ;;  %v367_v49 = vrot.slane %v366_v46, 2  ;;  %v374_v50 = vrot.slane %v373_v47, 2 }
  0xd8   : > { %v361_v51 = vadd.f32 %v360_v48, %v359_v45  ;;  %v368_v52 = vadd.f32 %v367_v49, %v366_v46  ;;  %v375_v53 = vadd.f32 %v374_v50, %v373_v47 }
  0xda   : > { %v362_v54 = vrot.slane %v361_v51, 1  ;;  %v369_v55 = vrot.slane %v368_v52, 1  ;;  %v376_v56 = vrot.slane %v375_v53, 1 }
  0xdc   : > { %v363_v57 = vadd.f32 %v362_v54, %v361_v51  ;;  %v370_v58 = vadd.f32 %v369_v55, %v368_v52  ;;  %v377_v59 = vadd.f32 %v376_v56, %v375_v53 }
  0xde   : > { %384 = vst [vmem:[%s226_s29] sm:$0xff] %v363_v57  ;;  %385 = vst [vmem:[%s226_s29 + $0x8] sm:$0xff] %v370_v58 }
  0xdf   : > { %386 = vst [vmem:[%s226_s29 + $0x10] sm:$0xff] %v377_v59 }
  0xe0 PF: > { %s13_s14 = sadd.s32 1, %s539_s14   ;;  %s669_s12 = smov %s535_s13 }
  0xe1   : > { %p10_p6 = scmp.ge.s32.totalorder %s13_s14, 4   ;;  %s670_s13 = smov %s672_s15 }
  0xe3   :  { %12 = sbr.rel (!%p10_p6) target bundleno = 2 (0x2), region = 69 }

// kernel: perceptual_loss.12
= control target key start
LH: loop header
LB: loop body
LE: loop exit
PB: predicated region body
PF: predicated region fallthrough
CT: control target
= control target key end

     0   :  { %s6081_s1 = inlined_call_operand.vmem [shape: bf16[1792,384], index: 1, kind: input, shape index: {}]   ;;  %s6082_s0 = inlined_call_operand.vmem [shape: bf16[48,1792], index: 0, kind: input, shape index: {}]   ;;  %s6083_s2 = inlined_call_operand.vmem [shape: f32[1,384], index: 2, kind: input, shape index: {}]   ;;  %s6084_s3 = inlined_call_operand.vmem [shape: f32[48,384], index: 3, kind: output, shape index: {}]  }
   0x1   :  { %v4120_v0 = vld [vmem:[%s6081_s1 + $0x4] ss:$12 sps:$4 sm:$0xff]   ;;  %v4124_v2 = vld [vmem:[%s6081_s1] ss:$12 sps:$4 sm:$0xff]   ;;  %v4126_v4 = vld [vmem:[%s6081_s1 + $0x1c] ss:$12 sps:$4 sm:$0xff]  }
   0x2   :  { %v4122_v1 = vld [vmem:[%s6081_s1 + $0x304] ss:$12 sps:$4 sm:$0xff]   ;;  %2524 = vmatprep.subr.bf16.mxu1 %v4120_v0  ;;  %v4125_v3 = vld [vmem:[%s6081_s1 + $0x300] ss:$12 sps:$4 sm:$0xff]   ;;  %v4128_v5 = vld [vmem:[%s6081_s1 + $0x31c] ss:$12 sps:$4 sm:$0xff]  }
   0x3   :  { %2650 = vmatprep.subr.bf16.mxu0 %v4122_v1  ;;  %2525 = vmatpush1.bf16.msra.mxu1 %v4124_v2  ;;  %v4130_v6 = vld [vmem:[%s6081_s1 + $0x18] ss:$12 sps:$4 sm:$0xff]   ;;  %v4132_v8 = vld [vmem:[%s6081_s1 + $0x34] ss:$12 sps:$4 sm:$0xff]   ;;  %v4136_v10 = vld [vmem:[%s6081_s1 + $0x30] ss:$12 sps:$4 sm:$0xff]  }
   0x4   :  { %2651 = vmatpush1.bf16.msra.mxu0 %v4125_v3  ;;  %2526 = vmatprep.subr.bf16.mxu1 %v4126_v4  ;;  %v4131_v7 = vld [vmem:[%s6081_s1 + $0x318] ss:$12 sps:$4 sm:$0xff]   ;;  %v4134_v9 = vld [vmem:[%s6081_s1 + $0x334] ss:$12 sps:$4 sm:$0xff]   ;;  %v4137_v11 = vld [vmem:[%s6081_s1 + $0x330] ss:$12 sps:$4 sm:$0xff]  }
   0x5   :  { %2652 = vmatprep.subr.bf16.mxu0 %v4128_v5  ;;  %v4138_v12 = vld [vmem:[%s6081_s1 + $0x4c] ss:$12 sps:$4 sm:$0xff]   ;;  %v4142_v14 = vld [vmem:[%s6081_s1 + $0x48] ss:$12 sps:$4 sm:$0xff]   ;;  %v4144_v16 = vld [vmem:[%s6081_s1 + $0x64] ss:$12 sps:$4 sm:$0xff]  }
   0x6   :  { %v4140_v13 = vld [vmem:[%s6081_s1 + $0x34c] ss:$12 sps:$4 sm:$0xff]   ;;  %v4143_v15 = vld [vmem:[%s6081_s1 + $0x348] ss:$12 sps:$4 sm:$0xff]   ;;  %v4146_v17 = vld [vmem:[%s6081_s1 + $0x364] ss:$12 sps:$4 sm:$0xff]  }
   0x7   :  { %2527 = vmatpush1.bf16.msra.mxu1 %v4130_v6  ;;  %v4148_v18 = vld [vmem:[%s6081_s1 + $0x60] ss:$12 sps:$4 sm:$0xff]   ;;  %v4150_v20 = vld [vmem:[%s6081_s1 + $0x7c] ss:$12 sps:$4 sm:$0xff]   ;;  %v4154_v22 = vld [vmem:[%s6081_s1 + $0x78] ss:$12 sps:$4 sm:$0xff]  }
   0x8   :  { %2653 = vmatpush1.bf16.msra.mxu0 %v4131_v7  ;;  %2528 = vmatprep.subr.bf16.mxu1 %v4132_v8  ;;  %v4149_v19 = vld [vmem:[%s6081_s1 + $0x360] ss:$12 sps:$4 sm:$0xff]   ;;  %v4152_v21 = vld [vmem:[%s6081_s1 + $0x37c] ss:$12 sps:$4 sm:$0xff]   ;;  %v4155_v23 = vld [vmem:[%s6081_s1 + $0x378] ss:$12 sps:$4 sm:$0xff]  }
   0x9   :  { %2654 = vmatprep.subr.bf16.mxu0 %v4134_v9  ;;  %v4156_v24 = vld [vmem:[%s6081_s1 + $0x94] ss:$12 sps:$4 sm:$0xff]   ;;  %v4160_v26 = vld [vmem:[%s6081_s1 + $0x90] ss:$12 sps:$4 sm:$0xff]   ;;  %v4162_v28 = vld [vmem:[%s6081_s1 + $0xac] ss:$12 sps:$4 sm:$0xff]  }
   0xa   :  { %v4158_v25 = vld [vmem:[%s6081_s1 + $0x394] ss:$12 sps:$4 sm:$0xff]   ;;  %v4161_v27 = vld [vmem:[%s6081_s1 + $0x390] ss:$12 sps:$4 sm:$0xff]   ;;  %v4164_v29 = vld [vmem:[%s6081_s1 + $0x3ac] ss:$12 sps:$4 sm:$0xff]  }
   0xb   :  { %2529 = vmatpush1.bf16.msra.mxu1 %v4136_v10  ;;  %v4166_v30 = vld [vmem:[%s6081_s1 + $0xa8] ss:$12 sps:$4 sm:$0xff]   ;;  %v4168_v32 = vld [vmem:[%s6081_s1 + $0xc4] ss:$12 sps:$4 sm:$0xff]   ;;  %v4172_v34 = vld [vmem:[%s6081_s1 + $0xc0] ss:$12 sps:$4 sm:$0xff]  }
   0xc   :  { %2655 = vmatpush1.bf16.msra.mxu0 %v4137_v11  ;;  %2530 = vmatprep.subr.bf16.mxu1 %v4138_v12  ;;  %v4167_v31 = vld [vmem:[%s6081_s1 + $0x3a8] ss:$12 sps:$4 sm:$0xff]   ;;  %v4170_v33 = vld [vmem:[%s6081_s1 + $0x3c4] ss:$12 sps:$4 sm:$0xff]   ;;  %v4173_v35 = vld [vmem:[%s6081_s1 + $0x3c0] ss:$12 sps:$4 sm:$0xff]  }
   0xd   :  { %2656 = vmatprep.subr.bf16.mxu0 %v4140_v13  ;;  %v4174_v36 = vld [vmem:[%s6081_s1 + $0xdc] ss:$12 sps:$4 sm:$0xff]   ;;  %v4178_v38 = vld [vmem:[%s6081_s1 + $0xd8] ss:$12 sps:$4 sm:$0xff]   ;;  %v4180_v40 = vld [vmem:[%s6081_s1 + $0xf4] ss:$12 sps:$4 sm:$0xff]  }
   0xe   :  { %v4176_v37 = vld [vmem:[%s6081_s1 + $0x3dc] ss:$12 sps:$4 sm:$0xff]   ;;  %v4179_v39 = vld [vmem:[%s6081_s1 + $0x3d8] ss:$12 sps:$4 sm:$0xff]   ;;  %v4182_v41 = vld [vmem:[%s6081_s1 + $0x3f4] ss:$12 sps:$4 sm:$0xff]  }
   0xf   :  { %2531 = vmatpush1.bf16.msra.mxu1 %v4142_v14  ;;  %v4184_v42 = vld [vmem:[%s6081_s1 + $0xf0] ss:$12 sps:$4 sm:$0xff]   ;;  %v4186_v44 = vld [vmem:[%s6081_s1 + $0x10c] ss:$12 sps:$4 sm:$0xff]   ;;  %v4190_v46 = vld [vmem:[%s6081_s1 + $0x108] ss:$12 sps:$4 sm:$0xff]  }
  0x10   :  { %2657 = vmatpush1.bf16.msra.mxu0 %v4143_v15  ;;  %2532 = vmatprep.subr.bf16.mxu1 %v4144_v16  ;;  %v4185_v43 = vld [vmem:[%s6081_s1 + $0x3f0] ss:$12 sps:$4 sm:$0xff]   ;;  %v4188_v45 = vld [vmem:[%s6081_s1 + $0x40c] ss:$12 sps:$4 sm:$0xff]   ;;  %v4191_v47 = vld [vmem:[%s6081_s1 + $0x408] ss:$12 sps:$4 sm:$0xff]  }
  0x11   :  { %2658 = vmatprep.subr.bf16.mxu0 %v4146_v17  ;;  %v4811_v48 = vld [vmem:[%s6082_s0 + $0x4] ss:$56 sps:$4 sm:$0xff]   ;;  %v4224_v51 = vld [vmem:[%s6082_s0 + $0x14] ss:$56 sps:$4 sm:$0xff]   ;;  %v4874_v4 = vld [vmem:[%s6082_s0] ss:$56 sps:$4 sm:$0xff]  }
  0x12   :  { %v4192_v49 = vld [vmem:[%s6081_s1 + $0x124] ss:$12 sps:$4 sm:$0xff]   ;;  %2556 = vmatprep.mubr.bf16.mxu1 %v4811_v48  ;;  %v4196_v52 = vld [vmem:[%s6081_s1 + $0x120] ss:$12 sps:$4 sm:$0xff]   ;;  %v4198_v54 = vld [vmem:[%s6081_s1 + $0x13c] ss:$12 sps:$4 sm:$0xff]   ;;  %2682 = vmatprep.mubr.bf16.mxu0 %v4224_v51 }
  0x13   :  { %2533 = vmatpush1.bf16.msra.mxu1 %v4148_v18  ;;  %v4194_v50 = vld [vmem:[%s6081_s1 + $0x424] ss:$12 sps:$4 sm:$0xff]   ;;  %v4197_v53 = vld [vmem:[%s6081_s1 + $0x420] ss:$12 sps:$4 sm:$0xff]   ;;  %v4200_v55 = vld [vmem:[%s6081_s1 + $0x43c] ss:$12 sps:$4 sm:$0xff]  }
  0x14   :  { %2659 = vmatpush1.bf16.msra.mxu0 %v4149_v19  ;;  %2534 = vmatprep.subr.bf16.mxu1 %v4150_v20  ;;  %v4202_v56 = vld [vmem:[%s6081_s1 + $0x138] ss:$12 sps:$4 sm:$0xff]   ;;  %v4204_v58 = vld [vmem:[%s6081_s1 + $0x154] ss:$12 sps:$4 sm:$0xff]   ;;  %v4208_v60 = vld [vmem:[%s6081_s1 + $0x150] ss:$12 sps:$4 sm:$0xff]  }
  0x15   :  { %2660 = vmatprep.subr.bf16.mxu0 %v4152_v21  ;;  %v4203_v57 = vld [vmem:[%s6081_s1 + $0x438] ss:$12 sps:$4 sm:$0xff]   ;;  %v4206_v59 = vld [vmem:[%s6081_s1 + $0x454] ss:$12 sps:$4 sm:$0xff]   ;;  %v4209_v61 = vld [vmem:[%s6081_s1 + $0x450] ss:$12 sps:$4 sm:$0xff]  }
  0x16   :  { %v4210_v62 = vld [vmem:[%s6081_s1 + $0x16c] ss:$12 sps:$4 sm:$0xff]   ;;  %v4214_v0 = vld [vmem:[%s6081_s1 + $0x168] ss:$12 sps:$4 sm:$0xff]   ;;  %v4221_v2 = vld [vmem:[%s6081_s1 + $0x184] ss:$12 sps:$4 sm:$0xff]  }
  0x17   :  { %2535 = vmatpush1.bf16.msra.mxu1 %v4154_v22  ;;  %v4212_v63 = vld [vmem:[%s6081_s1 + $0x46c] ss:$12 sps:$4 sm:$0xff]   ;;  %v4215_v1 = vld [vmem:[%s6081_s1 + $0x468] ss:$12 sps:$4 sm:$0xff]   ;;  %v4227_v3 = vld [vmem:[%s6081_s1 + $0x484] ss:$12 sps:$4 sm:$0xff]  }
  0x18   :  { %2661 = vmatpush1.bf16.msra.mxu0 %v4155_v23  ;;  %2536 = vmatprep.subr.bf16.mxu1 %v4156_v24  ;;  %v4219_v5 = vld [vmem:[%s6081_s1 + $0x180] ss:$12 sps:$4 sm:$0xff]   ;;  %v4222_v6 = vld [vmem:[%s6082_s0 + $0x10] ss:$56 sps:$4 sm:$0xff]   ;;  %v4228_v10 = vld [vmem:[%s6081_s1 + $0x198] ss:$12 sps:$4 sm:$0xff]  }
  0x19   :  { %2662 = vmatprep.subr.bf16.mxu0 %v4158_v25  ;;  %v4225_v7 = vld [vmem:[%s6081_s1 + $0x480] ss:$12 sps:$4 sm:$0xff]   ;;  %v4230_v8 = vld [vmem:[%s6081_s1 + $0x19c] ss:$12 sps:$4 sm:$0xff]   ;;  %v4231_v11 = vld [vmem:[%s6081_s1 + $0x498] ss:$12 sps:$4 sm:$0xff]  }
  0x1a   :  { %v4233_v9 = vld [vmem:[%s6081_s1 + $0x49c] ss:$12 sps:$4 sm:$0xff]   ;;  %v4236_v12 = vld [vmem:[%s6081_s1 + $0x1b4] ss:$12 sps:$4 sm:$0xff]   ;;  %v4242_v16 = vld [vmem:[%s6081_s1 + $0x1cc] ss:$12 sps:$4 sm:$0xff]  }
  0x1b   :  { %2537 = vmatpush1.bf16.msra.mxu1 %v4160_v26  ;;  %v4239_v13 = vld [vmem:[%s6081_s1 + $0x4b4] ss:$12 sps:$4 sm:$0xff]   ;;  %v4234_v14 = vld [vmem:[%s6081_s1 + $0x1b0] ss:$12 sps:$4 sm:$0xff]   ;;  %v4245_v17 = vld [vmem:[%s6081_s1 + $0x4cc] ss:$12 sps:$4 sm:$0xff]  }
  0x1c   :  { %2663 = vmatpush1.bf16.msra.mxu0 %v4161_v27  ;;  %2538 = vmatprep.subr.bf16.mxu1 %v4162_v28  ;;  %v4237_v15 = vld [vmem:[%s6081_s1 + $0x4b0] ss:$12 sps:$4 sm:$0xff]   ;;  %v4240_v18 = vld [vmem:[%s6081_s1 + $0x1c8] ss:$12 sps:$4 sm:$0xff]   ;;  %v4246_v22 = vld [vmem:[%s6081_s1 + $0x1e0] ss:$12 sps:$4 sm:$0xff]  }
  0x1d   :  { %2664 = vmatprep.subr.bf16.mxu0 %v4164_v29  ;;  %v4243_v19 = vld [vmem:[%s6081_s1 + $0x4c8] ss:$12 sps:$4 sm:$0xff]   ;;  %v4248_v20 = vld [vmem:[%s6081_s1 + $0x1e4] ss:$12 sps:$4 sm:$0xff]   ;;  %v4249_v23 = vld [vmem:[%s6081_s1 + $0x4e0] ss:$12 sps:$4 sm:$0xff]  }
  0x1e   :  { %v4251_v21 = vld [vmem:[%s6081_s1 + $0x4e4] ss:$12 sps:$4 sm:$0xff]   ;;  %v4937_v24 = vld [vmem:[%s6082_s0 + $0x74] ss:$56 sps:$4 sm:$0xff]   ;;  %v4254_v25 = vld [vmem:[%s6081_s1 + $0x1fc] ss:$12 sps:$4 sm:$0xff]  }
  0x1f   :  { %2539 = vmatpush1.bf16.msra.mxu1 %v4166_v30  ;;  %v4945_v26 = vld [vmem:[%s6082_s0 + $0x70] ss:$56 sps:$4 sm:$0xff]   ;;  %v4300_v27 = vld [vmem:[%s6082_s0 + $0x84] ss:$56 sps:$4 sm:$0xff]   ;;  %v4305_v29 = vld [vmem:[%s6082_s0 + $0x80] ss:$56 sps:$4 sm:$0xff]  }
  0x20   :  { %2665 = vmatpush1.bf16.msra.mxu0 %v4167_v31  ;;  %2540 = vmatprep.subr.bf16.mxu1 %v4168_v32  ;;  %v4257_v28 = vld [vmem:[%s6081_s1 + $0x4fc] ss:$12 sps:$4 sm:$0xff]   ;;  %v4252_v30 = vld [vmem:[%s6081_s1 + $0x1f8] ss:$12 sps:$4 sm:$0xff]   ;;  %v4260_v32 = vld [vmem:[%s6081_s1 + $0x214] ss:$12 sps:$4 sm:$0xff]  }
  0x21   :  { %2666 = vmatprep.subr.bf16.mxu0 %v4170_v33  ;;  %v4255_v31 = vld [vmem:[%s6081_s1 + $0x4f8] ss:$12 sps:$4 sm:$0xff]   ;;  %v4263_v33 = vld [vmem:[%s6081_s1 + $0x514] ss:$12 sps:$4 sm:$0xff]   ;;  %v4278_v51 = vld [vmem:[%s6081_s1 + $0x25c] ss:$12 sps:$4 sm:$0xff]  }
  0x23   :  { %2541 = vmatpush1.bf16.msra.mxu1 %v4172_v34  ;;  %v4258_v34 = vld [vmem:[%s6081_s1 + $0x210] ss:$12 sps:$4 sm:$0xff]  }
  0x24   :  { %2667 = vmatpush1.bf16.msra.mxu0 %v4173_v35  ;;  %2542 = vmatprep.subr.bf16.mxu1 %v4174_v36  ;;  %v4261_v35 = vld [vmem:[%s6081_s1 + $0x510] ss:$12 sps:$4 sm:$0xff]  }
  0x25   :  { %2668 = vmatprep.subr.bf16.mxu0 %v4176_v37  ;;  %v4979_v36 = vld [vmem:[%s6082_s0 + $0xe4] ss:$56 sps:$4 sm:$0xff]   ;;  %v4266_v37 = vld [vmem:[%s6081_s1 + $0x22c] ss:$12 sps:$4 sm:$0xff]  }
  0x27   :  { %2543 = vmatpush1.bf16.msra.mxu1 %v4178_v38  ;;  %v4987_v38 = vld [vmem:[%s6082_s0 + $0xe0] ss:$56 sps:$4 sm:$0xff]  }
  0x28   :  { %2669 = vmatpush1.bf16.msra.mxu0 %v4179_v39  ;;  %2544 = vmatprep.subr.bf16.mxu1 %v4180_v40  ;;  %v4318_v39 = vld [vmem:[%s6082_s0 + $0xf4] ss:$56 sps:$4 sm:$0xff]  }
  0x29   :  { %2670 = vmatprep.subr.bf16.mxu0 %v4182_v41  ;;  %v4269_v40 = vld [vmem:[%s6081_s1 + $0x52c] ss:$12 sps:$4 sm:$0xff]   ;;  %v4323_v41 = vld [vmem:[%s6082_s0 + $0xf0] ss:$56 sps:$4 sm:$0xff]  }
  0x2b   :  { %2545 = vmatpush1.bf16.msra.mxu1 %v4184_v42  ;;  %v4264_v42 = vld [vmem:[%s6081_s1 + $0x228] ss:$12 sps:$4 sm:$0xff]  }
  0x2c   :  { %2671 = vmatpush1.bf16.msra.mxu0 %v4185_v43  ;;  %2546 = vmatprep.subr.bf16.mxu1 %v4186_v44  ;;  %v4267_v43 = vld [vmem:[%s6081_s1 + $0x528] ss:$12 sps:$4 sm:$0xff]   ;;  %v4272_v44 = vld [vmem:[%s6081_s1 + $0x244] ss:$12 sps:$4 sm:$0xff]  }
  0x2d   :  { %2672 = vmatprep.subr.bf16.mxu0 %v4188_v45  ;;  %v4275_v45 = vld [vmem:[%s6081_s1 + $0x544] ss:$12 sps:$4 sm:$0xff]  }
  0x2f   :  { %2547 = vmatpush1.bf16.msra.mxu1 %v4190_v46  ;;  %v4270_v46 = vld [vmem:[%s6081_s1 + $0x240] ss:$12 sps:$4 sm:$0xff]  }
  0x30   :  { %2673 = vmatpush1.bf16.msra.mxu0 %v4191_v47  ;;  %2548 = vmatprep.subr.bf16.mxu1 %v4192_v49  ;;  %v5018_v47 = vld [vmem:[%s6082_s0 + $0xc] ss:$56 sps:$4 sm:$0xff]  }
  0x31   :  { %2674 = vmatprep.subr.bf16.mxu0 %v4194_v50  ;;  %v4273_v49 = vld [vmem:[%s6081_s1 + $0x540] ss:$12 sps:$4 sm:$0xff]   ;;  %v4335_v50 = vld [vmem:[%s6082_s0 + $0x1c] ss:$56 sps:$4 sm:$0xff]  }
  0x33   :  { %2549 = vmatpush1.bf16.msra.mxu1 %v4196_v52  ;;  %v4281_v52 = vld [vmem:[%s6081_s1 + $0x55c] ss:$12 sps:$4 sm:$0xff]  }
  0x34   :  { %2675 = vmatpush1.bf16.msra.mxu0 %v4197_v53  ;;  %2550 = vmatprep.subr.bf16.mxu1 %v4198_v54  ;;  %v4276_v53 = vld [vmem:[%s6081_s1 + $0x258] ss:$12 sps:$4 sm:$0xff]  }
  0x35   :  { %2676 = vmatprep.subr.bf16.mxu0 %v4200_v55  ;;  %v4279_v54 = vld [vmem:[%s6081_s1 + $0x558] ss:$12 sps:$4 sm:$0xff]   ;;  %v4284_v55 = vld [vmem:[%s6081_s1 + $0x274] ss:$12 sps:$4 sm:$0xff]  }
  0x37   :  { %2551 = vmatpush1.bf16.msra.mxu1 %v4202_v56  ;;  %v4287_v56 = vld [vmem:[%s6081_s1 + $0x574] ss:$12 sps:$4 sm:$0xff]  }
  0x38   :  { %2677 = vmatpush1.bf16.msra.mxu0 %v4203_v57  ;;  %2552 = vmatprep.subr.bf16.mxu1 %v4204_v58  ;;  %v4282_v57 = vld [vmem:[%s6081_s1 + $0x270] ss:$12 sps:$4 sm:$0xff]  }
  0x39   :  { %2678 = vmatprep.subr.bf16.mxu0 %v4206_v59  ;;  %v4285_v58 = vld [vmem:[%s6081_s1 + $0x570] ss:$12 sps:$4 sm:$0xff]   ;;  %v4290_v59 = vld [vmem:[%s6081_s1 + $0x28c] ss:$12 sps:$4 sm:$0xff]  }
  0x3b   :  { %2553 = vmatpush1.bf16.msra.mxu1 %v4208_v60  ;;  %v4293_v60 = vld [vmem:[%s6081_s1 + $0x58c] ss:$12 sps:$4 sm:$0xff]  }
  0x3c   :  { %2679 = vmatpush1.bf16.msra.mxu0 %v4209_v61  ;;  %2554 = vmatprep.subr.bf16.mxu1 %v4210_v62  ;;  %v4288_v61 = vld [vmem:[%s6081_s1 + $0x288] ss:$12 sps:$4 sm:$0xff]  }
  0x3d   :  { %2680 = vmatprep.subr.bf16.mxu0 %v4212_v63  ;;  %v4291_v62 = vld [vmem:[%s6081_s1 + $0x588] ss:$12 sps:$4 sm:$0xff]   ;;  %v4299_v63 = vld [vmem:[%s6081_s1 + $0x2a4] ss:$12 sps:$4 sm:$0xff]  }
  0x3f   :  { %2555 = vmatpush1.bf16.msra.mxu1 %v4214_v0  ;;  %v4304_v0 = vld [vmem:[%s6081_s1 + $0x5a4] ss:$12 sps:$4 sm:$0xff]  }
  0x40   :  { %2681 = vmatpush1.bf16.msra.mxu0 %v4215_v1  ;;  %2587 = vmatprep.subr.bf16.mxu1 %v4221_v2  ;;  %v4297_v1 = vld [vmem:[%s6081_s1 + $0x2a0] ss:$12 sps:$4 sm:$0xff]  }
  0x41   :  { %2713 = vmatprep.subr.bf16.mxu0 %v4227_v3  ;;  %v4302_v2 = vld [vmem:[%s6081_s1 + $0x5a0] ss:$12 sps:$4 sm:$0xff]   ;;  %v4308_v3 = vld [vmem:[%s6081_s1 + $0x2bc] ss:$12 sps:$4 sm:$0xff]  }
  0x42   :  { %2557 = vmatmul.mubr.bf16.vlgmr.msra.gmra.mrb[0].mxu1 %v4874_v4 }
  0x43   :  { %2683 = vmatmul.mubr.bf16.vlgmr.msra.gmra.mrb[0].mxu0 %v4222_v6  ;;  %2588 = vmatpush1.bf16.msra.mxu1 %v4219_v5  ;;  %v4311_v5 = vld [vmem:[%s6081_s1 + $0x5bc] ss:$12 sps:$4 sm:$0xff]   ;;  %v4306_v6 = vld [vmem:[%s6081_s1 + $0x2b8] ss:$12 sps:$4 sm:$0xff]  }
  0x44   :  { %2714 = vmatpush1.bf16.msra.mxu0 %v4225_v7  ;;  %2589 = vmatprep.subr.bf16.mxu1 %v4230_v8  ;;  %v4309_v7 = vld [vmem:[%s6081_s1 + $0x5b8] ss:$12 sps:$4 sm:$0xff]   ;;  %v4317_v8 = vld [vmem:[%s6081_s1 + $0x2d4] ss:$12 sps:$4 sm:$0xff]  }
  0x45   :  { %2715 = vmatprep.subr.bf16.mxu0 %v4233_v9  ;;  %2566 = vmatprep.mubr.bf16.mxu1 %v4937_v24  ;;  %v4322_v9 = vld [vmem:[%s6081_s1 + $0x5d4] ss:$12 sps:$4 sm:$0xff]  }
  0x46   :  { %2692 = vmatprep.mubr.bf16.mxu0 %v4300_v27  ;;  %v5143_v27 = vld [vmem:[%s6082_s0 + $0x7c] ss:$56 sps:$4 sm:$0xff]  }
  0x47   :  { %2590 = vmatpush1.bf16.msra.mxu1 %v4228_v10  ;;  %v4315_v10 = vld [vmem:[%s6081_s1 + $0x2d0] ss:$12 sps:$4 sm:$0xff]  }
  0x48   :  { %2716 = vmatpush1.bf16.msra.mxu0 %v4231_v11  ;;  %2591 = vmatprep.subr.bf16.mxu1 %v4236_v12  ;;  %v4320_v11 = vld [vmem:[%s6081_s1 + $0x5d0] ss:$12 sps:$4 sm:$0xff]   ;;  %v4326_v12 = vld [vmem:[%s6081_s1 + $0x2ec] ss:$12 sps:$4 sm:$0xff]  }
  0x49   :  { %2717 = vmatprep.subr.bf16.mxu0 %v4239_v13  ;;  %v4329_v13 = vld [vmem:[%s6081_s1 + $0x5ec] ss:$12 sps:$4 sm:$0xff]  }
  0x4a   :  { %2567 = vmatmul.mubr.bf16.gmra.mrb[4].mxu1 %v4945_v26 }
  0x4b   :  { %2592 = vmatpush1.bf16.msra.mxu1 %v4234_v14  ;;  %2693 = vmatmul.mubr.bf16.gmra.mrb[4].mxu0 %v4305_v29  ;;  %v4324_v14 = vld [vmem:[%s6081_s1 + $0x2e8] ss:$12 sps:$4 sm:$0xff]  }
  0x4c   :  { %2718 = vmatpush1.bf16.msra.mxu0 %v4237_v15  ;;  %2593 = vmatprep.subr.bf16.mxu1 %v4242_v16  ;;  %v4327_v15 = vld [vmem:[%s6081_s1 + $0x5e8] ss:$12 sps:$4 sm:$0xff]   ;;  %v4338_v16 = vld [vmem:[%s6081_s1 + $0x604] ss:$12 sps:$4 sm:$0xff]  }
  0x4d   :  { %2719 = vmatprep.subr.bf16.mxu0 %v4245_v17  ;;  %2576 = vmatprep.mubr.bf16.mxu1 %v4979_v36  ;;  %v4339_v17 = vld [vmem:[%s6081_s1 + $0xc8] ss:$12 sps:$4 sm:$0xff]  }
  0x4e   :  { %2702 = vmatprep.mubr.bf16.mxu0 %v4318_v39  ;;  %v4351_v29 = vld [vmem:[%s6081_s1 + $0x634] ss:$12 sps:$4 sm:$0xff]   ;;  %v5179_v39 = vld [vmem:[%s6082_s0 + $0xec] ss:$56 sps:$4 sm:$0xff]  }
  0x4f   :  { %2594 = vmatpush1.bf16.msra.mxu1 %v4240_v18  ;;  %v5120_v18 = vld [vmem:[%s6082_s0 + $0x8] ss:$56 sps:$4 sm:$0xff]  }
  0x50   :  { %2720 = vmatpush1.bf16.msra.mxu0 %v4243_v19  ;;  %2595 = vmatprep.subr.bf16.mxu1 %v4248_v20  ;;  %v4333_v19 = vld [vmem:[%s6082_s0 + $0x18] ss:$56 sps:$4 sm:$0xff]   ;;  %v4336_v20 = vld [vmem:[%s6081_s1 + $0x600] ss:$12 sps:$4 sm:$0xff]  }
  0x51   :  { %2721 = vmatprep.subr.bf16.mxu0 %v4251_v21  ;;  %v4340_v21 = vld [vmem:[%s6081_s1 + $0x8] ss:$12 sps:$4 sm:$0xff]  }
  0x52   :  { %2577 = vmatmul.mubr.bf16.gmra.mrb[8].mxu1 %v4987_v38 }
  0x53   :  { %2596 = vmatpush1.bf16.msra.mxu1 %v4246_v22  ;;  %2703 = vmatmul.mubr.bf16.gmra.mrb[8].mxu0 %v4323_v41  ;;  %v4343_v22 = vld [vmem:[%s6081_s1 + $0x61c] ss:$12 sps:$4 sm:$0xff]  }
  0x54   :  { %2722 = vmatpush1.bf16.msra.mxu0 %v4249_v23  ;;  %2597 = vmatprep.subr.bf16.mxu1 %v4254_v25  ;;  %v4344_v23 = vld [vmem:[%s6081_s1 + $0xe0] ss:$12 sps:$4 sm:$0xff]   ;;  %v4341_v25 = vld [vmem:[%s6081_s1 + $0x618] ss:$12 sps:$4 sm:$0xff]   ;;  %v4358_v41 = vld [vmem:[%s6081_s1 + $0x50] ss:$12 sps:$4 sm:$0xff]  }
  0x55   :  { %2723 = vmatprep.subr.bf16.mxu0 %v4257_v28  ;;  %2619 = vmatprep.mubr.bf16.mxu1 %v5018_v47  ;;  %v4345_v28 = vld [vmem:[%s6081_s1 + $0x20] ss:$12 sps:$4 sm:$0xff]  }
  0x56   :  { %2745 = vmatprep.mubr.bf16.mxu0 %v4335_v50  ;;  %v4369_v50 = vld [vmem:[%s6081_s1 + $0x67c] ss:$12 sps:$4 sm:$0xff]  }
  0x57   :  { %2598 = vmatpush1.bf16.msra.mxu1 %v4252_v30  ;;  %v4352_v30 = vld [vmem:[%s6081_s1 + $0xf8] ss:$12 sps:$4 sm:$0xff]  }
  0x58   :  { %2724 = vmatpush1.bf16.msra.mxu0 %v4255_v31  ;;  %2599 = vmatprep.subr.bf16.mxu1 %v4260_v32  ;;  %v5159_v31 = vld [vmem:[%s6082_s0 + $0x78] ss:$56 sps:$4 sm:$0xff]  }
  0x59   :  { %2725 = vmatprep.subr.bf16.mxu0 %v4263_v33  ;;  %v4349_v32 = vld [vmem:[%s6081_s1 + $0x630] ss:$12 sps:$4 sm:$0xff]   ;;  %v4353_v33 = vld [vmem:[%s6081_s1 + $0x38] ss:$12 sps:$4 sm:$0xff]  }
  0x5b   :  { %2600 = vmatpush1.bf16.msra.mxu1 %v4258_v34  ;;  %v4356_v34 = vld [vmem:[%s6081_s1 + $0x64c] ss:$12 sps:$4 sm:$0xff]  }
  0x5c   :  { %2726 = vmatpush1.bf16.msra.mxu0 %v4261_v35  ;;  %2601 = vmatprep.subr.bf16.mxu1 %v4266_v37  ;;  %v4357_v35 = vld [vmem:[%s6081_s1 + $0x110] ss:$12 sps:$4 sm:$0xff]   ;;  %v4354_v37 = vld [vmem:[%s6081_s1 + $0x648] ss:$12 sps:$4 sm:$0xff]  }
  0x5d   :  { %2727 = vmatprep.subr.bf16.mxu0 %v4269_v40  ;;  %v4402_v40 = vld [vmem:[%s6082_s0 + $0x8c] ss:$56 sps:$4 sm:$0xff]  }
  0x5f   :  { %2602 = vmatpush1.bf16.msra.mxu1 %v4264_v42  ;;  %v4364_v42 = vld [vmem:[%s6081_s1 + $0x664] ss:$12 sps:$4 sm:$0xff]  }
  0x60   :  { %2728 = vmatpush1.bf16.msra.mxu0 %v4267_v43  ;;  %2603 = vmatprep.subr.bf16.mxu1 %v4272_v44  ;;  %v5194_v43 = vld [vmem:[%s6082_s0 + $0xe8] ss:$56 sps:$4 sm:$0xff]  }
  0x61   :  { %2729 = vmatprep.subr.bf16.mxu0 %v4275_v45  ;;  %v4365_v44 = vld [vmem:[%s6081_s1 + $0x128] ss:$12 sps:$4 sm:$0xff]  }
  0x62   :  { %v4408_v45 = vld [vmem:[%s6082_s0 + $0x88] ss:$56 sps:$4 sm:$0xff]  }
  0x63   :  { %2604 = vmatpush1.bf16.msra.mxu1 %v4270_v46  ;;  %v4362_v46 = vld [vmem:[%s6081_s1 + $0x660] ss:$12 sps:$4 sm:$0xff]  }
  0x64   :  { %2730 = vmatpush1.bf16.msra.mxu0 %v4273_v49  ;;  %2605 = vmatprep.subr.bf16.mxu1 %v4278_v51  ;;  %v4366_v49 = vld [vmem:[%s6081_s1 + $0x68] ss:$12 sps:$4 sm:$0xff]   ;;  %v4370_v51 = vld [vmem:[%s6081_s1 + $0x140] ss:$12 sps:$4 sm:$0xff]  }
  0x65   :  { %2731 = vmatprep.subr.bf16.mxu0 %v4281_v52  ;;  %v4367_v52 = vld [vmem:[%s6081_s1 + $0x678] ss:$12 sps:$4 sm:$0xff]  }
  0x67   :  { %2606 = vmatpush1.bf16.msra.mxu1 %v4276_v53  ;;  %v4415_v53 = vld [vmem:[%s6082_s0 + $0xfc] ss:$56 sps:$4 sm:$0xff]  }
  0x68   :  { %2732 = vmatpush1.bf16.msra.mxu0 %v4279_v54  ;;  %2607 = vmatprep.subr.bf16.mxu1 %v4284_v55  ;;  %v4371_v54 = vld [vmem:[%s6081_s1 + $0x80] ss:$12 sps:$4 sm:$0xff]  }
  0x69   :  { %2733 = vmatprep.subr.bf16.mxu0 %v4287_v56  ;;  %v4374_v55 = vld [vmem:[%s6081_s1 + $0x694] ss:$12 sps:$4 sm:$0xff]   ;;  %v4375_v56 = vld [vmem:[%s6081_s1 + $0x158] ss:$12 sps:$4 sm:$0xff]  }
  0x6b   :  { %2608 = vmatpush1.bf16.msra.mxu1 %v4282_v57  ;;  %v4421_v57 = vld [vmem:[%s6082_s0 + $0xf8] ss:$56 sps:$4 sm:$0xff]  }
  0x6c   :  { %2734 = vmatpush1.bf16.msra.mxu0 %v4285_v58  ;;  %2609 = vmatprep.subr.bf16.mxu1 %v4290_v59  ;;  %v4372_v58 = vld [vmem:[%s6081_s1 + $0x690] ss:$12 sps:$4 sm:$0xff]   ;;  %v4376_v59 = vld [vmem:[%s6081_s1 + $0x98] ss:$12 sps:$4 sm:$0xff]  }
  0x6d   :  { %2735 = vmatprep.subr.bf16.mxu0 %v4293_v60  ;;  %v4379_v60 = vld [vmem:[%s6081_s1 + $0x6ac] ss:$12 sps:$4 sm:$0xff]  }
  0x6f   :  { %2610 = vmatpush1.bf16.msra.mxu1 %v4288_v61  ;;  %v4377_v61 = vld [vmem:[%s6081_s1 + $0x6a8] ss:$12 sps:$4 sm:$0xff]  }
  0x70   :  { %2736 = vmatpush1.bf16.msra.mxu0 %v4291_v62  ;;  %2611 = vmatprep.subr.bf16.mxu1 %v4299_v63  ;;  %v4381_v62 = vld [vmem:[%s6081_s1 + $0xb0] ss:$12 sps:$4 sm:$0xff]  }
  0x71   :  { %2737 = vmatprep.subr.bf16.mxu0 %v4304_v0  ;;  %v4430_v63 = vld [vmem:[%s6082_s0 + $0x24] ss:$56 sps:$4 sm:$0xff]  }
  0x72   :  { %v4384_v0 = vld [vmem:[%s6081_s1 + $0x6c4] ss:$12 sps:$4 sm:$0xff]  }
  0x73   :  { %2612 = vmatpush1.bf16.msra.mxu1 %v4297_v1  ;;  %v4385_v1 = vld [vmem:[%s6081_s1 + $0x248] ss:$12 sps:$4 sm:$0xff]  }
  0x74   :  { %2738 = vmatpush1.bf16.msra.mxu0 %v4302_v2  ;;  %2613 = vmatprep.subr.bf16.mxu1 %v4308_v3  ;;  %v4382_v2 = vld [vmem:[%s6081_s1 + $0x6c0] ss:$12 sps:$4 sm:$0xff]   ;;  %v4386_v3 = vld [vmem:[%s6081_s1 + $0x188] ss:$12 sps:$4 sm:$0xff]  }
  0x75   :  { %2739 = vmatprep.subr.bf16.mxu0 %v4311_v5  ;;  %v4389_v5 = vld [vmem:[%s6081_s1 + $0x6dc] ss:$12 sps:$4 sm:$0xff]  }
  0x77   :  { %2614 = vmatpush1.bf16.msra.mxu1 %v4306_v6  ;;  %v4390_v6 = vld [vmem:[%s6081_s1 + $0x260] ss:$12 sps:$4 sm:$0xff]  }
  0x78   :  { %2740 = vmatpush1.bf16.msra.mxu0 %v4309_v7  ;;  %2615 = vmatprep.subr.bf16.mxu1 %v4317_v8  ;;  %v4387_v7 = vld [vmem:[%s6081_s1 + $0x6d8] ss:$12 sps:$4 sm:$0xff]   ;;  %v4391_v8 = vld [vmem:[%s6081_s1 + $0x1a0] ss:$12 sps:$4 sm:$0xff]  }
  0x79   :  { %2741 = vmatprep.subr.bf16.mxu0 %v4322_v9  ;;  %v4394_v9 = vld [vmem:[%s6081_s1 + $0x6f4] ss:$12 sps:$4 sm:$0xff]  }
  0x7b   :  { %2616 = vmatpush1.bf16.msra.mxu1 %v4315_v10  ;;  %v4392_v10 = vld [vmem:[%s6081_s1 + $0x6f0] ss:$12 sps:$4 sm:$0xff]  }
  0x7c   :  { %2742 = vmatpush1.bf16.msra.mxu0 %v4320_v11  ;;  %2617 = vmatprep.subr.bf16.mxu1 %v4326_v12  ;;  %v4396_v11 = vld [vmem:[%s6081_s1 + $0x1b8] ss:$12 sps:$4 sm:$0xff]  }
  0x7d   :  { %2743 = vmatprep.subr.bf16.mxu0 %v4329_v13  ;;  %v4399_v12 = vld [vmem:[%s6081_s1 + $0x70c] ss:$12 sps:$4 sm:$0xff]   ;;  %v4400_v13 = vld [vmem:[%s6081_s1 + $0x290] ss:$12 sps:$4 sm:$0xff]  }
  0x7f   :  { %2618 = vmatpush1.bf16.msra.mxu1 %v4324_v14  ;;  %v4401_v14 = vld [vmem:[%s6081_s1 + $0x1d0] ss:$12 sps:$4 sm:$0xff]  }
  0x80   :  { %2744 = vmatpush1.bf16.msra.mxu0 %v4327_v15  ;;  %3782 = vmatprep.subr.bf16.mxu1 %v4339_v17  ;;  %v4406_v15 = vld [vmem:[%s6081_s1 + $0x724] ss:$12 sps:$4 sm:$0xff]   ;;  %v4409_v17 = vld [vmem:[%s6081_s1 + $0x1e8] ss:$12 sps:$4 sm:$0xff]  }
  0x81   :  { %2776 = vmatprep.subr.bf16.mxu0 %v4338_v16  ;;  %v4407_v16 = vld [vmem:[%s6081_s1 + $0x2a8] ss:$12 sps:$4 sm:$0xff]  }
  0x82   :  { %2620 = vmatmul.mubr.bf16.vlgmr.msra.gmra.mrb[0].mxu1 %v5120_v18 }
  0x83   :  { %2746 = vmatmul.mubr.bf16.vlgmr.msra.gmra.mrb[0].mxu0 %v4333_v19  ;;  %3783 = vmatpush3.bf16.msra.mxu1 %v4340_v21  ;;  %v4412_v19 = vld [vmem:[%s6081_s1 + $0x73c] ss:$12 sps:$4 sm:$0xff]   ;;  %v4414_v21 = vld [vmem:[%s6081_s1 + $0x200] ss:$12 sps:$4 sm:$0xff]  }
  0x84   :  { %2777 = vmatpush1.bf16.msra.mxu0 %v4336_v20  ;;  %3784 = vmatprep.subr.bf16.mxu1 %v4344_v23  ;;  %v4413_v20 = vld [vmem:[%s6081_s1 + $0x2c0] ss:$12 sps:$4 sm:$0xff]   ;;  %v4420_v23 = vld [vmem:[%s6081_s1 + $0x2d8] ss:$12 sps:$4 sm:$0xff]  }
  0x85   :  { %2778 = vmatprep.subr.bf16.mxu0 %v4343_v22  ;;  %2629 = vmatprep.mubr.bf16.mxu1 %v5143_v27  ;;  %v4419_v22 = vld [vmem:[%s6081_s1 + $0x754] ss:$12 sps:$4 sm:$0xff]  }
  0x86   :  { %2755 = vmatprep.mubr.bf16.mxu0 %v4402_v40  ;;  %v4438_v40 = vld [vmem:[%s6081_s1 + $0x79c] ss:$12 sps:$4 sm:$0xff]  }
  0x87   :  { %3785 = vmatpush3.bf16.msra.mxu1 %v4345_v28  ;;  %v4425_v28 = vld [vmem:[%s6081_s1 + $0x76c] ss:$12 sps:$4 sm:$0xff]  }
  0x88   :  { %2779 = vmatpush1.bf16.msra.mxu0 %v4341_v25  ;;  %3786 = vmatprep.subr.bf16.mxu1 %v4352_v30  ;;  %v4422_v25 = vld [vmem:[%s6081_s1 + $0x218] ss:$12 sps:$4 sm:$0xff]   ;;  %v4427_v30 = vld [vmem:[%s6081_s1 + $0x230] ss:$12 sps:$4 sm:$0xff]  }
  0x89   :  { %2780 = vmatprep.subr.bf16.mxu0 %v4351_v29  ;;  %v4423_v29 = vld [vmem:[%s6081_s1 + $0x768] ss:$12 sps:$4 sm:$0xff]  }
  0x8a   :  { %2630 = vmatmul.mubr.bf16.gmra.mrb[4].mxu1 %v5159_v31 }
  0x8b   :  { %3787 = vmatpush3.bf16.msra.mxu1 %v4353_v33  ;;  %2639 = vmatprep.mubr.bf16.mxu1 %v5179_v39  ;;  %v4434_v33 = vld [vmem:[%s6081_s1 + $0x3c8] ss:$12 sps:$4 sm:$0xff]  }
  0x8c   :  { %2781 = vmatpush1.bf16.msra.mxu0 %v4349_v32  ;;  %3788 = vmatprep.subr.bf16.mxu1 %v4357_v35  ;;  %v4433_v32 = vld [vmem:[%s6081_s1 + $0x784] ss:$12 sps:$4 sm:$0xff]   ;;  %v4431_v35 = vld [vmem:[%s6081_s1 + $0x780] ss:$12 sps:$4 sm:$0xff]  }
  0x8d   :  { %2782 = vmatprep.subr.bf16.mxu0 %v4356_v34  ;;  %2756 = vmatmul.mubr.bf16.gmra.mrb[4].mxu0 %v4408_v45  ;;  %v5367_v34 = vld [vmem:[%s6082_s0 + $0x20] ss:$56 sps:$4 sm:$0xff]  }
  0x8e   :  { %2765 = vmatprep.mubr.bf16.mxu0 %v4415_v53  ;;  %v4443_v45 = vld [vmem:[%s6081_s1 + $0x7b4] ss:$12 sps:$4 sm:$0xff]  }
  0x8f   :  { %3789 = vmatpush3.bf16.msra.mxu1 %v4358_v41  ;;  %v4439_v41 = vld [vmem:[%s6081_s1 + $0x3e0] ss:$12 sps:$4 sm:$0xff]   ;;  %v4446_v53 = vld [vmem:[%s6081_s1 + $0x7c8] ss:$12 sps:$4 sm:$0xff]  }
  0x90   :  { %2783 = vmatpush1.bf16.msra.mxu0 %v4354_v37  ;;  %3790 = vmatprep.subr.bf16.mxu1 %v4365_v44  ;;  %v4435_v37 = vld [vmem:[%s6081_s1 + $0x308] ss:$12 sps:$4 sm:$0xff]   ;;  %v4440_v44 = vld [vmem:[%s6081_s1 + $0x320] ss:$12 sps:$4 sm:$0xff]  }
  0x91   :  { %2784 = vmatprep.subr.bf16.mxu0 %v4364_v42  ;;  %v4436_v42 = vld [vmem:[%s6081_s1 + $0x798] ss:$12 sps:$4 sm:$0xff]  }
  0x92   :  { %2640 = vmatmul.mubr.bf16.gmra.mrb[8].mxu1 %v5194_v43 }
  0x93   :  { %3791 = vmatpush3.bf16.msra.mxu1 %v4366_v49  ;;  %2997 = vmatprep.mubr.bf16.mxu1 %v4811_v48  ;;  %v4380_v48 = vld [vmem:[%s6081_s1 + $0x170] ss:$12 sps:$4 sm:$0xff]   ;;  %v4444_v49 = vld [vmem:[%s6081_s1 + $0x3f8] ss:$12 sps:$4 sm:$0xff]  }
  0x94   :  { %2785 = vmatpush1.bf16.msra.mxu0 %v4362_v46  ;;  %3792 = vmatprep.subr.bf16.mxu1 %v4370_v51  ;;  %v5395_v46 = vld [vmem:[%s6082_s0 + $0x94] ss:$56 sps:$4 sm:$0xff]   ;;  %v4445_v51 = vld [vmem:[%s6081_s1 + $0x338] ss:$12 sps:$4 sm:$0xff]  }
  0x95   :  { %2786 = vmatprep.subr.bf16.mxu0 %v4369_v50  ;;  %2766 = vmatmul.mubr.bf16.gmra.mrb[8].mxu0 %v4421_v57  ;;  %v5408_v50 = vld [vmem:[%s6082_s0 + $0x90] ss:$56 sps:$4 sm:$0xff]  }
  0x96   :  { %2808 = vmatprep.mubr.bf16.mxu0 %v4430_v63  ;;  %v4454_v57 = vld [vmem:[%s6081_s1 + $0x428] ss:$12 sps:$4 sm:$0xff]   ;;  %v4464_v63 = vld [vmem:[%s6081_s1 + $0x458] ss:$12 sps:$4 sm:$0xff]  }
  0x97   :  { %3793 = vmatpush3.bf16.msra.mxu1 %v4371_v54  ;;  %v4450_v54 = vld [vmem:[%s6081_s1 + $0x350] ss:$12 sps:$4 sm:$0xff]  }
  0x98   :  { %2787 = vmatpush1.bf16.msra.mxu0 %v4367_v52  ;;  %3794 = vmatprep.subr.bf16.mxu1 %v4375_v56  ;;  %v4449_v52 = vld [vmem:[%s6081_s1 + $0x410] ss:$12 sps:$4 sm:$0xff]  }
  0x99   :  { %2788 = vmatprep.subr.bf16.mxu0 %v4374_v55  ;;  %v4453_v55 = vld [vmem:[%s6081_s1 + $0x7e4] ss:$12 sps:$4 sm:$0xff]  }
  0x9a   :  { %v5433_v56 = vld [vmem:[%s6082_s0 + $0x104] ss:$56 sps:$4 sm:$0xff]  }
  0x9b   :  { %3795 = vmatpush3.bf16.msra.mxu1 %v4376_v59  ;;  %v4455_v59 = vld [vmem:[%s6081_s1 + $0x368] ss:$12 sps:$4 sm:$0xff]  }
  0x9c   :  { %2789 = vmatpush1.bf16.msra.mxu0 %v4372_v58  ;;  %3796 = vmatprep.subr.bf16.mxu1 %v4380_v48  ;;  %v5446_v58 = vld [vmem:[%s6082_s0 + $0x100] ss:$56 sps:$4 sm:$0xff]  }
  0x9d   :  { %2790 = vmatprep.subr.bf16.mxu0 %v4379_v60  ;;  %v4459_v60 = vld [vmem:[%s6081_s1 + $0x440] ss:$12 sps:$4 sm:$0xff]   ;;  %v4456_v48 = vld [vmem:[%s6081_s1 + $0x7f8] ss:$12 sps:$4 sm:$0xff]  }
  0x9f   :  { %3797 = vmatpush3.bf16.msra.mxu1 %v4381_v62  ;;  %v4463_v62 = vld [vmem:[%s6081_s1 + $0x814] ss:$12 sps:$4 sm:$0xff]  }
  0xa0   :  { %2791 = vmatpush1.bf16.msra.mxu0 %v4377_v61  ;;  %3816 = vmatprep.subr.bf16.mxu1 %v4385_v1  ;;  %v4460_v61 = vld [vmem:[%s6081_s1 + $0x380] ss:$12 sps:$4 sm:$0xff]   ;;  %v4461_v1 = vld [vmem:[%s6081_s1 + $0x810] ss:$12 sps:$4 sm:$0xff]  }
  0xa1   :  { %2792 = vmatprep.subr.bf16.mxu0 %v4384_v0  ;;  %v5474_v0 = vld [vmem:[%s6082_s0 + $0x2c] ss:$56 sps:$4 sm:$0xff]  }
  0xa2   :  { %2998 = vmatmul.mubr.bf16.vlgmr.msra.gmra.mrb[12].mxu1 %v4874_v4  ;;  %v4395_v4 = vld [vmem:[%s6081_s1 + $0x278] ss:$12 sps:$4 sm:$0xff]  }
  0xa3   :  { %3817 = vmatpush3.bf16.msra.mxu1 %v4386_v3  ;;  %3005 = vmatprep.mubr.bf16.mxu1 %v4937_v24  ;;  %v4397_v24 = vld [vmem:[%s6081_s1 + $0x708] ss:$12 sps:$4 sm:$0xff]   ;;  %v4468_v3 = vld [vmem:[%s6081_s1 + $0x82c] ss:$12 sps:$4 sm:$0xff]  }
  0xa4   :  { %2793 = vmatpush1.bf16.msra.mxu0 %v4382_v2  ;;  %3818 = vmatprep.subr.bf16.mxu1 %v4390_v6  ;;  %v4465_v2 = vld [vmem:[%s6081_s1 + $0x398] ss:$12 sps:$4 sm:$0xff]   ;;  %v4466_v6 = vld [vmem:[%s6081_s1 + $0x828] ss:$12 sps:$4 sm:$0xff]  }
  0xa5   :  { %2794 = vmatprep.subr.bf16.mxu0 %v4389_v5  ;;  %v4469_v5 = vld [vmem:[%s6081_s1 + $0x470] ss:$12 sps:$4 sm:$0xff]  }
  0xa7   :  { %3819 = vmatpush3.bf16.msra.mxu1 %v4391_v8  ;;  %v4473_v8 = vld [vmem:[%s6081_s1 + $0x844] ss:$12 sps:$4 sm:$0xff]  }
  0xa8   :  { %2795 = vmatpush1.bf16.msra.mxu0 %v4387_v7  ;;  %3820 = vmatprep.subr.bf16.mxu1 %v4395_v4  ;;  %v4470_v7 = vld [vmem:[%s6081_s1 + $0x3b0] ss:$12 sps:$4 sm:$0xff]   ;;  %v4471_v4 = vld [vmem:[%s6081_s1 + $0x840] ss:$12 sps:$4 sm:$0xff]  }
  0xa9   :  { %2796 = vmatprep.subr.bf16.mxu0 %v4394_v9  ;;  %v4474_v9 = vld [vmem:[%s6081_s1 + $0x548] ss:$12 sps:$4 sm:$0xff]  }
  0xaa   :  { %3006 = vmatmul.mubr.bf16.gmra.mrb[16].mxu1 %v4945_v26  ;;  %v4404_v26 = vld [vmem:[%s6081_s1 + $0x720] ss:$12 sps:$4 sm:$0xff]  }
  0xab   :  { %3821 = vmatpush3.bf16.msra.mxu1 %v4396_v11  ;;  %3013 = vmatprep.mubr.bf16.mxu1 %v4979_v36  ;;  %v4410_v36 = vld [vmem:[%s6081_s1 + $0x738] ss:$12 sps:$4 sm:$0xff]   ;;  %v4478_v11 = vld [vmem:[%s6081_s1 + $0x85c] ss:$12 sps:$4 sm:$0xff]  }
  0xac   :  { %2797 = vmatpush1.bf16.msra.mxu0 %v4392_v10  ;;  %3822 = vmatprep.subr.bf16.mxu1 %v4400_v13  ;;  %v4475_v10 = vld [vmem:[%s6081_s1 + $0x488] ss:$12 sps:$4 sm:$0xff]  }
  0xad   :  { %2798 = vmatprep.subr.bf16.mxu0 %v4399_v12  ;;  %v4479_v12 = vld [vmem:[%s6081_s1 + $0x560] ss:$12 sps:$4 sm:$0xff]   ;;  %v4632_v13 = vld [vmem:[%s6082_s0 + $0x10] ss:$56 sps:$4 sm:$0xff]  }
  0xaf   :  { %3823 = vmatpush3.bf16.msra.mxu1 %v4401_v14  ;;  %v4480_v14 = vld [vmem:[%s6081_s1 + $0x4a0] ss:$12 sps:$4 sm:$0xff]  }
  0xb0   :  { %2799 = vmatpush1.bf16.msra.mxu0 %v4397_v24  ;;  %3824 = vmatprep.subr.bf16.mxu1 %v4407_v16  ;;  %v4476_v24 = vld [vmem:[%s6081_s1 + $0x858] ss:$12 sps:$4 sm:$0xff]  }
  0xb1   :  { %2800 = vmatprep.subr.bf16.mxu0 %v4406_v15  ;;  %v4483_v15 = vld [vmem:[%s6081_s1 + $0x874] ss:$12 sps:$4 sm:$0xff]   ;;  %v4484_v16 = vld [vmem:[%s6081_s1 + $0x578] ss:$12 sps:$4 sm:$0xff]  }
  0xb2   :  { %3014 = vmatmul.mubr.bf16.gmra.mrb[20].mxu1 %v4987_v38  ;;  %v4417_v38 = vld [vmem:[%s6081_s1 + $0x750] ss:$12 sps:$4 sm:$0xff]  }
  0xb3   :  { %3825 = vmatpush3.bf16.msra.mxu1 %v4409_v17  ;;  %3054 = vmatprep.mubr.bf16.mxu1 %v5018_v47  ;;  %v4426_v47 = vld [vmem:[%s6081_s1 + $0x2f0] ss:$12 sps:$4 sm:$0xff]  }
  0xb4   :  { %2801 = vmatpush1.bf16.msra.mxu0 %v4404_v26  ;;  %3826 = vmatprep.subr.bf16.mxu1 %v4413_v20  ;;  %v4633_v26 = vld [vmem:[%s6082_s0 + $0x84] ss:$56 sps:$4 sm:$0xff]   ;;  %v4488_v20 = vld [vmem:[%s6081_s1 + $0x88c] ss:$12 sps:$4 sm:$0xff]  }
  0xb5   :  { %2802 = vmatprep.subr.bf16.mxu0 %v4412_v19  ;;  %v4481_v17 = vld [vmem:[%s6081_s1 + $0x870] ss:$12 sps:$4 sm:$0xff]   ;;  %v4485_v19 = vld [vmem:[%s6081_s1 + $0x4b8] ss:$12 sps:$4 sm:$0xff]  }
  0xb7   :  { %3827 = vmatpush3.bf16.msra.mxu1 %v4414_v21  ;;  %v4634_v21 = vld [vmem:[%s6082_s0 + $0x80] ss:$56 sps:$4 sm:$0xff]  }
  0xb8   :  { %2803 = vmatpush1.bf16.msra.mxu0 %v4410_v36  ;;  %3828 = vmatprep.subr.bf16.mxu1 %v4420_v23  ;;  %v4489_v36 = vld [vmem:[%s6081_s1 + $0x590] ss:$12 sps:$4 sm:$0xff]  }
  0xb9   :  { %2804 = vmatprep.subr.bf16.mxu0 %v4419_v22  ;;  %v4486_v22 = vld [vmem:[%s6081_s1 + $0x888] ss:$12 sps:$4 sm:$0xff]   ;;  %v4490_v23 = vld [vmem:[%s6081_s1 + $0x4d0] ss:$12 sps:$4 sm:$0xff]  }
  0xbb   :  { %3829 = vmatpush3.bf16.msra.mxu1 %v4422_v25  ;;  %v4496_v25 = vld [vmem:[%s6081_s1 + $0x5a8] ss:$12 sps:$4 sm:$0xff]  }
  0xbc   :  { %2805 = vmatpush1.bf16.msra.mxu0 %v4417_v38  ;;  %3830 = vmatprep.subr.bf16.mxu1 %v4426_v47  ;;  %v4495_v38 = vld [vmem:[%s6081_s1 + $0x8a4] ss:$12 sps:$4 sm:$0xff]   ;;  %v4493_v47 = vld [vmem:[%s6081_s1 + $0x8a0] ss:$12 sps:$4 sm:$0xff]  }
  0xbd   :  { %2806 = vmatprep.subr.bf16.mxu0 %v4425_v28  ;;  %v4635_v28 = vld [vmem:[%s6082_s0 + $0xf4] ss:$56 sps:$4 sm:$0xff]  }
  0xbf   :  { %3831 = vmatpush3.bf16.msra.mxu1 %v4427_v30  ;;  %v4501_v30 = vld [vmem:[%s6081_s1 + $0x8bc] ss:$12 sps:$4 sm:$0xff]  }
  0xc0   :  { %2807 = vmatpush1.bf16.msra.mxu0 %v4423_v29  ;;  %3850 = vmatprep.subr.bf16.mxu1 %v4434_v33  ;;  %v4498_v29 = vld [vmem:[%s6081_s1 + $0x4e8] ss:$12 sps:$4 sm:$0xff]  }
  0xc1   :  { %2839 = vmatprep.subr.bf16.mxu0 %v4433_v32  ;;  %v4502_v32 = vld [vmem:[%s6081_s1 + $0x5c0] ss:$12 sps:$4 sm:$0xff]   ;;  %v4636_v33 = vld [vmem:[%s6082_s0 + $0xf0] ss:$56 sps:$4 sm:$0xff]  }
  0xc2   :  { %3055 = vmatmul.mubr.bf16.vlgmr.msra.gmra.mrb[24].mxu1 %v5120_v18  ;;  %v4441_v18 = vld [vmem:[%s6081_s1 + $0x7b0] ss:$12 sps:$4 sm:$0xff]  }
  0xc3   :  { %2809 = vmatmul.mubr.bf16.vlgmr.msra.gmra.mrb[0].mxu0 %v5367_v34  ;;  %3851 = vmatpush3.bf16.msra.mxu1 %v4435_v37  ;;  %v4503_v37 = vld [vmem:[%s6081_s1 + $0x500] ss:$12 sps:$4 sm:$0xff]  }
  0xc4   :  { %2840 = vmatpush1.bf16.msra.mxu0 %v4431_v35  ;;  %3852 = vmatprep.subr.bf16.mxu1 %v4439_v41  ;;  %v4499_v35 = vld [vmem:[%s6081_s1 + $0x8b8] ss:$12 sps:$4 sm:$0xff]  }
  0xc5   :  { %2841 = vmatprep.subr.bf16.mxu0 %v4438_v40  ;;  %3062 = vmatprep.mubr.bf16.mxu1 %v5143_v27  ;;  %v4448_v27 = vld [vmem:[%s6081_s1 + $0x7cc] ss:$12 sps:$4 sm:$0xff]   ;;  %v4508_v40 = vld [vmem:[%s6081_s1 + $0x8d4] ss:$12 sps:$4 sm:$0xff]  }
  0xc6   :  { %2818 = vmatprep.mubr.bf16.mxu0 %v5395_v46  ;;  %v4509_v41 = vld [vmem:[%s6081_s1 + $0x5d8] ss:$12 sps:$4 sm:$0xff]  }
  0xc7   :  { %3853 = vmatpush3.bf16.msra.mxu1 %v4440_v44  ;;  %v4506_v44 = vld [vmem:[%s6081_s1 + $0x8d0] ss:$12 sps:$4 sm:$0xff]  }
  0xc8   :  { %2842 = vmatpush1.bf16.msra.mxu0 %v4436_v42  ;;  %3854 = vmatprep.subr.bf16.mxu1 %v4444_v49  ;;  %v4637_v42 = vld [vmem:[%s6082_s0 + $0x1c] ss:$56 sps:$4 sm:$0xff]   ;;  %v4514_v49 = vld [vmem:[%s6081_s1 + $0x8ec] ss:$12 sps:$4 sm:$0xff]  }
  0xc9   :  { %2843 = vmatprep.subr.bf16.mxu0 %v4443_v45  ;;  %v4511_v45 = vld [vmem:[%s6081_s1 + $0x518] ss:$12 sps:$4 sm:$0xff]  }
  0xca   :  { %3063 = vmatmul.mubr.bf16.gmra.mrb[28].mxu1 %v5159_v31  ;;  %v4451_v31 = vld [vmem:[%s6081_s1 + $0x7e0] ss:$12 sps:$4 sm:$0xff]  }
  0xcb   :  { %2819 = vmatmul.mubr.bf16.gmra.mrb[4].mxu0 %v5408_v50  ;;  %3855 = vmatpush3.bf16.msra.mxu1 %v4445_v51  ;;  %v4512_v51 = vld [vmem:[%s6081_s1 + $0x8e8] ss:$12 sps:$4 sm:$0xff]  }
  0xcc   :  { %2844 = vmatpush1.bf16.msra.mxu0 %v4441_v18  ;;  %3856 = vmatprep.subr.bf16.mxu1 %v4449_v52  ;;  %v4515_v18 = vld [vmem:[%s6081_s1 + $0x5f0] ss:$12 sps:$4 sm:$0xff]  }
  0xcd   :  { %2845 = vmatprep.subr.bf16.mxu0 %v4448_v27  ;;  %3070 = vmatprep.mubr.bf16.mxu1 %v5179_v39  ;;  %v4458_v39 = vld [vmem:[%s6081_s1 + $0x7fc] ss:$12 sps:$4 sm:$0xff]   ;;  %v4522_v52 = vld [vmem:[%s6081_s1 + $0x904] ss:$12 sps:$4 sm:$0xff]  }
  0xce   :  { %2828 = vmatprep.mubr.bf16.mxu0 %v5433_v56  ;;  %v4516_v27 = vld [vmem:[%s6081_s1 + $0x530] ss:$12 sps:$4 sm:$0xff]  }
  0xcf   :  { %3857 = vmatpush3.bf16.msra.mxu1 %v4450_v54  ;;  %v5621_v54 = vld [vmem:[%s6082_s0 + $0x28] ss:$56 sps:$4 sm:$0xff]  }
  0xd0   :  { %2846 = vmatpush1.bf16.msra.mxu0 %v4446_v53  ;;  %3858 = vmatprep.subr.bf16.mxu1 %v4454_v57  ;;  %v4523_v53 = vld [vmem:[%s6081_s1 + $0x6c8] ss:$12 sps:$4 sm:$0xff]  }
  0xd1   :  { %2847 = vmatprep.subr.bf16.mxu0 %v4453_v55  ;;  %v4520_v55 = vld [vmem:[%s6081_s1 + $0x900] ss:$12 sps:$4 sm:$0xff]   ;;  %v4524_v57 = vld [vmem:[%s6081_s1 + $0x608] ss:$12 sps:$4 sm:$0xff]  }
  0xd2   :  { %3071 = vmatmul.mubr.bf16.gmra.mrb[32].mxu1 %v5194_v43  ;;  %v4631_v43 = vld [vmem:[%s6082_s0 + $0x14] ss:$56 sps:$4 sm:$0xff]  }
  0xd3   :  { %2829 = vmatmul.mubr.bf16.gmra.mrb[8].mxu0 %v5446_v58  ;;  %3859 = vmatpush3.bf16.msra.mxu1 %v4455_v59  ;;  %v4528_v59 = vld [vmem:[%s6081_s1 + $0x6e0] ss:$12 sps:$4 sm:$0xff]  }
  0xd4   :  { %2848 = vmatpush1.bf16.msra.mxu0 %v4451_v31  ;;  %3860 = vmatprep.subr.bf16.mxu1 %v4459_v60  ;;  %v4527_v31 = vld [vmem:[%s6081_s1 + $0x91c] ss:$12 sps:$4 sm:$0xff]  }
  0xd5   :  { %2849 = vmatprep.subr.bf16.mxu0 %v4458_v39  ;;  %3111 = vmatprep.mubr.bf16.mxu1 %v4631_v43  ;;  %v4525_v39 = vld [vmem:[%s6081_s1 + $0x918] ss:$12 sps:$4 sm:$0xff]   ;;  %v5641_v60 = vld [vmem:[%s6082_s0 + $0x9c] ss:$56 sps:$4 sm:$0xff]  }
  0xd6   :  { %2871 = vmatprep.mubr.bf16.mxu0 %v5474_v0  ;;  %v4639_v43 = vld [vmem:[%s6082_s0 + $0x8c] ss:$56 sps:$4 sm:$0xff]  }
  0xd7   :  { %3861 = vmatpush3.bf16.msra.mxu1 %v4460_v61  ;;  %v4529_v61 = vld [vmem:[%s6081_s1 + $0x620] ss:$12 sps:$4 sm:$0xff]  }
  0xd8   :  { %2850 = vmatpush1.bf16.msra.mxu0 %v4456_v48  ;;  %3862 = vmatprep.subr.bf16.mxu1 %v4464_v63  ;;  %v4638_v48 = vld [vmem:[%s6082_s0 + $0x18] ss:$56 sps:$4 sm:$0xff]  }
  0xd9   :  { %2851 = vmatprep.subr.bf16.mxu0 %v4463_v62  ;;  %v4532_v62 = vld [vmem:[%s6081_s1 + $0x934] ss:$12 sps:$4 sm:$0xff]   ;;  %v4533_v63 = vld [vmem:[%s6081_s1 + $0x6f8] ss:$12 sps:$4 sm:$0xff]  }
  0xdb   :  { %3863 = vmatpush3.bf16.msra.mxu1 %v4465_v2  ;;  %v4534_v2 = vld [vmem:[%s6081_s1 + $0x638] ss:$12 sps:$4 sm:$0xff]  }
  0xdc   :  { %2852 = vmatpush1.bf16.msra.mxu0 %v4461_v1  ;;  %3864 = vmatprep.subr.bf16.mxu1 %v4469_v5  ;;  %v4530_v1 = vld [vmem:[%s6081_s1 + $0x930] ss:$12 sps:$4 sm:$0xff]   ;;  %v4537_v5 = vld [vmem:[%s6081_s1 + $0x94c] ss:$12 sps:$4 sm:$0xff]  }
  0xdd   :  { %2853 = vmatprep.subr.bf16.mxu0 %v4468_v3  ;;  %v5669_v3 = vld [vmem:[%s6082_s0 + $0x98] ss:$56 sps:$4 sm:$0xff]  }
  0xdf   :  { %3865 = vmatpush3.bf16.msra.mxu1 %v4470_v7  ;;  %v4535_v7 = vld [vmem:[%s6081_s1 + $0x948] ss:$12 sps:$4 sm:$0xff]  }
  0xe0   :  { %2854 = vmatpush1.bf16.msra.mxu0 %v4466_v6  ;;  %3884 = vmatprep.subr.bf16.mxu1 %v4474_v9  ;;  %v4538_v6 = vld [vmem:[%s6081_s1 + $0x710] ss:$12 sps:$4 sm:$0xff]   ;;  %v4640_v9 = vld [vmem:[%s6082_s0 + $0x88] ss:$56 sps:$4 sm:$0xff]  }
  0xe1   :  { %2855 = vmatprep.subr.bf16.mxu0 %v4473_v8  ;;  %v5683_v8 = vld [vmem:[%s6082_s0 + $0x10c] ss:$56 sps:$4 sm:$0xff]  }
  0xe2   :  { %3112 = vmatmul.mubr.bf16.vlgmr.msra.gmra.mrb[36].mxu1 %v4632_v13  ;;  %v4540_v13 = vld [vmem:[%s6081_s1 + $0x960] ss:$12 sps:$4 sm:$0xff]  }
  0xe3   :  { %3885 = vmatpush3.bf16.msra.mxu1 %v4475_v10  ;;  %3119 = vmatprep.mubr.bf16.mxu1 %v4633_v26  ;;  %v4542_v10 = vld [vmem:[%s6081_s1 + $0x964] ss:$12 sps:$4 sm:$0xff]   ;;  %v5722_v26 = vld [vmem:[%s6082_s0 + $0x34] ss:$56 sps:$4 sm:$0xff]  }
  0xe4   :  { %2856 = vmatpush1.bf16.msra.mxu0 %v4471_v4  ;;  %3886 = vmatprep.subr.bf16.mxu1 %v4479_v12  ;;  %v4539_v4 = vld [vmem:[%s6081_s1 + $0x650] ss:$12 sps:$4 sm:$0xff]  }
  0xe5   :  { %2857 = vmatprep.subr.bf16.mxu0 %v4478_v11  ;;  %v4543_v11 = vld [vmem:[%s6081_s1 + $0x728] ss:$12 sps:$4 sm:$0xff]  }
  0xe6   :  { %v4641_v12 = vld [vmem:[%s6082_s0 + $0xfc] ss:$56 sps:$4 sm:$0xff]  }
  0xe7   :  { %3887 = vmatpush3.bf16.msra.mxu1 %v4480_v14  ;;  %v5711_v14 = vld [vmem:[%s6082_s0 + $0x108] ss:$56 sps:$4 sm:$0xff]  }
  0xe8   :  { %2858 = vmatpush1.bf16.msra.mxu0 %v4476_v24  ;;  %3888 = vmatprep.subr.bf16.mxu1 %v4484_v16  ;;  %v4544_v24 = vld [vmem:[%s6081_s1 + $0x668] ss:$12 sps:$4 sm:$0xff]   ;;  %v4548_v16 = vld [vmem:[%s6081_s1 + $0x740] ss:$12 sps:$4 sm:$0xff]  }
  0xe9   :  { %2859 = vmatprep.subr.bf16.mxu0 %v4483_v15  ;;  %v4547_v15 = vld [vmem:[%s6081_s1 + $0x97c] ss:$12 sps:$4 sm:$0xff]  }
  0xea   :  { %3120 = vmatmul.mubr.bf16.gmra.mrb[40].mxu1 %v4634_v21  ;;  %v4553_v21 = vld [vmem:[%s6081_s1 + $0x758] ss:$12 sps:$4 sm:$0xff]  }
  0xeb   :  { %3889 = vmatpush3.bf16.msra.mxu1 %v4485_v19  ;;  %3127 = vmatprep.mubr.bf16.mxu1 %v4635_v28  ;;  %v4545_v19 = vld [vmem:[%s6081_s1 + $0x978] ss:$12 sps:$4 sm:$0xff]   ;;  %v4558_v28 = vld [vmem:[%s6081_s1 + $0x770] ss:$12 sps:$4 sm:$0xff]  }
  0xec   :  { %2860 = vmatpush1.bf16.msra.mxu0 %v4481_v17  ;;  %3890 = vmatprep.subr.bf16.mxu1 %v4489_v36  ;;  %v4642_v17 = vld [vmem:[%s6082_s0 + $0xf8] ss:$56 sps:$4 sm:$0xff]   ;;  %v4552_v36 = vld [vmem:[%s6081_s1 + $0x994] ss:$12 sps:$4 sm:$0xff]  }
  0xed   :  { %2861 = vmatprep.subr.bf16.mxu0 %v4488_v20  ;;  %v4549_v20 = vld [vmem:[%s6081_s1 + $0x680] ss:$12 sps:$4 sm:$0xff]  }
  0xef   :  { %3891 = vmatpush3.bf16.msra.mxu1 %v4490_v23  ;;  %v4643_v23 = vld [vmem:[%s6082_s0 + $0x24] ss:$56 sps:$4 sm:$0xff]  }
  0xf0   :  { %2862 = vmatpush1.bf16.msra.mxu0 %v4486_v22  ;;  %3892 = vmatprep.subr.bf16.mxu1 %v4496_v25  ;;  %v4550_v22 = vld [vmem:[%s6081_s1 + $0x990] ss:$12 sps:$4 sm:$0xff]   ;;  %v4557_v25 = vld [vmem:[%s6081_s1 + $0x9ac] ss:$12 sps:$4 sm:$0xff]  }
  0xf1   :  { %2863 = vmatprep.subr.bf16.mxu0 %v4495_v38  ;;  %v4554_v38 = vld [vmem:[%s6081_s1 + $0x698] ss:$12 sps:$4 sm:$0xff]  }
  0xf2   :  { %3128 = vmatmul.mubr.bf16.gmra.mrb[44].mxu1 %v4636_v33  ;;  %v4560_v33 = vld [vmem:[%s6081_s1 + $0x9c0] ss:$12 sps:$4 sm:$0xff]  }
  0xf3   :  { %3893 = vmatpush3.bf16.msra.mxu1 %v4498_v29  ;;  %3168 = vmatprep.mubr.bf16.mxu1 %v4637_v42  ;;  %v4559_v29 = vld [vmem:[%s6081_s1 + $0x6b0] ss:$12 sps:$4 sm:$0xff]   ;;  %v4569_v42 = vld [vmem:[%s6081_s1 + $0x7a0] ss:$12 sps:$4 sm:$0xff]  }
  0xf4   :  { %2864 = vmatpush1.bf16.msra.mxu0 %v4493_v47  ;;  %3894 = vmatprep.subr.bf16.mxu1 %v4502_v32  ;;  %v4555_v47 = vld [vmem:[%s6081_s1 + $0x9a8] ss:$12 sps:$4 sm:$0xff]  }
  0xf5   :  { %2865 = vmatprep.subr.bf16.mxu0 %v4501_v30  ;;  %v4562_v30 = vld [vmem:[%s6081_s1 + $0x9c4] ss:$12 sps:$4 sm:$0xff]   ;;  %v4563_v32 = vld [vmem:[%s6081_s1 + $0x848] ss:$12 sps:$4 sm:$0xff]  }
  0xf7   :  { %3895 = vmatpush3.bf16.msra.mxu1 %v4503_v37  ;;  %v4567_v37 = vld [vmem:[%s6081_s1 + $0x9dc] ss:$12 sps:$4 sm:$0xff]  }
  0xf8   :  { %2866 = vmatpush1.bf16.msra.mxu0 %v4499_v35  ;;  %3896 = vmatprep.subr.bf16.mxu1 %v4509_v41  ;;  %v4564_v35 = vld [vmem:[%s6081_s1 + $0x788] ss:$12 sps:$4 sm:$0xff]   ;;  %v4565_v41 = vld [vmem:[%s6081_s1 + $0x9d8] ss:$12 sps:$4 sm:$0xff]  }
  0xf9   :  { %2867 = vmatprep.subr.bf16.mxu0 %v4508_v40  ;;  %v4568_v40 = vld [vmem:[%s6081_s1 + $0x860] ss:$12 sps:$4 sm:$0xff]  }
  0xfb   :  { %3897 = vmatpush3.bf16.msra.mxu1 %v4511_v45  ;;  %v4570_v45 = vld [vmem:[%s6081_s1 + $0x9f0] ss:$12 sps:$4 sm:$0xff]  }
  0xfc   :  { %2868 = vmatpush1.bf16.msra.mxu0 %v4506_v44  ;;  %3898 = vmatprep.subr.bf16.mxu1 %v4515_v18  ;;  %v4572_v44 = vld [vmem:[%s6081_s1 + $0x9f4] ss:$12 sps:$4 sm:$0xff]   ;;  %v4577_v18 = vld [vmem:[%s6081_s1 + $0xa0c] ss:$12 sps:$4 sm:$0xff]  }
  0xfd   :  { %2869 = vmatprep.subr.bf16.mxu0 %v4514_v49  ;;  %v4574_v49 = vld [vmem:[%s6081_s1 + $0x7b8] ss:$12 sps:$4 sm:$0xff]  }
  0xff   :  { %3899 = vmatpush3.bf16.msra.mxu1 %v4516_v27  ;;  %v4579_v27 = vld [vmem:[%s6081_s1 + $0x7d0] ss:$12 sps:$4 sm:$0xff]  }
 0x100   :  { %2870 = vmatpush1.bf16.msra.mxu0 %v4512_v51  ;;  %3918 = vmatprep.subr.bf16.mxu1 %v4523_v53  ;;  %v4575_v51 = vld [vmem:[%s6081_s1 + $0xa08] ss:$12 sps:$4 sm:$0xff]   ;;  %v4583_v53 = vld [vmem:[%s6081_s1 + $0xa20] ss:$12 sps:$4 sm:$0xff]  }
 0x101   :  { %2902 = vmatprep.subr.bf16.mxu0 %v4522_v52  ;;  %v4585_v52 = vld [vmem:[%s6081_s1 + $0xa24] ss:$12 sps:$4 sm:$0xff]  }
 0x102   :  { %3169 = vmatmul.mubr.bf16.vlgmr.msra.gmra.mrb[48].mxu1 %v4638_v48  ;;  %v4596_v48 = vld [vmem:[%s6081_s1 + $0xa50] ss:$12 sps:$4 sm:$0xff]  }
 0x103   :  { %2872 = vmatmul.mubr.bf16.vlgmr.msra.gmra.mrb[0].mxu0 %v5621_v54  ;;  %3919 = vmatpush3.bf16.msra.mxu1 %v4524_v57  ;;  %v4590_v57 = vld [vmem:[%s6081_s1 + $0xa3c] ss:$12 sps:$4 sm:$0xff]  }
 0x104   :  { %2903 = vmatpush1.bf16.msra.mxu0 %v4520_v55  ;;  %3920 = vmatprep.subr.bf16.mxu1 %v4528_v59  ;;  %v4587_v55 = vld [vmem:[%s6081_s1 + $0x7e8] ss:$12 sps:$4 sm:$0xff]   ;;  %v4592_v59 = vld [vmem:[%s6081_s1 + $0x800] ss:$12 sps:$4 sm:$0xff]  }
 0x105   :  { %2904 = vmatprep.subr.bf16.mxu0 %v4527_v31  ;;  %3176 = vmatprep.mubr.bf16.mxu1 %v4639_v43  ;;  %v4588_v31 = vld [vmem:[%s6081_s1 + $0xa38] ss:$12 sps:$4 sm:$0xff]   ;;  %v4605_v43 = vld [vmem:[%s6081_s1 + $0x830] ss:$12 sps:$4 sm:$0xff]  }
 0x106   :  { %2881 = vmatprep.mubr.bf16.mxu0 %v5641_v60 }
 0x107   :  { %3921 = vmatpush3.bf16.msra.mxu1 %v4529_v61  ;;  %v4600_v61 = vld [vmem:[%s6081_s1 + $0x818] ss:$12 sps:$4 sm:$0xff]  }
 0x108   :  { %2905 = vmatpush1.bf16.msra.mxu0 %v4525_v39  ;;  %3922 = vmatprep.subr.bf16.mxu1 %v4533_v63  ;;  %v4598_v39 = vld [vmem:[%s6081_s1 + $0xa54] ss:$12 sps:$4 sm:$0xff]  }
 0x109   :  { %2906 = vmatprep.subr.bf16.mxu0 %v4532_v62  ;;  %v4603_v62 = vld [vmem:[%s6081_s1 + $0xa6c] ss:$12 sps:$4 sm:$0xff]   ;;  %v4601_v63 = vld [vmem:[%s6081_s1 + $0xa68] ss:$12 sps:$4 sm:$0xff]  }
 0x10a   :  { %3177 = vmatmul.mubr.bf16.gmra.mrb[52].mxu1 %v4640_v9  ;;  %v4612_v9 = vld [vmem:[%s6081_s1 + $0x920] ss:$12 sps:$4 sm:$0xff]  }
 0x10b   :  { %2882 = vmatmul.mubr.bf16.gmra.mrb[4].mxu0 %v5669_v3  ;;  %3923 = vmatpush3.bf16.msra.mxu1 %v4534_v2  ;;  %v5870_v2 = vld [vmem:[%s6082_s0 + $0x30] ss:$56 sps:$4 sm:$0xff]  }
 0x10c   :  { %2907 = vmatpush1.bf16.msra.mxu0 %v4530_v1  ;;  %3924 = vmatprep.subr.bf16.mxu1 %v4538_v6  ;;  %v4609_v1 = vld [vmem:[%s6081_s1 + $0x9c8] ss:$12 sps:$4 sm:$0xff]   ;;  %v4611_v6 = vld [vmem:[%s6081_s1 + $0x9e0] ss:$12 sps:$4 sm:$0xff]  }
 0x10d   :  { %2908 = vmatprep.subr.bf16.mxu0 %v4537_v5  ;;  %3184 = vmatprep.mubr.bf16.mxu1 %v4641_v12  ;;  %v4610_v5 = vld [vmem:[%s6081_s1 + $0x908] ss:$12 sps:$4 sm:$0xff]   ;;  %v4619_v12 = vld [vmem:[%s6081_s1 + $0x950] ss:$12 sps:$4 sm:$0xff]  }
 0x10e   :  { %2891 = vmatprep.mubr.bf16.mxu0 %v5683_v8 }
 0x10f   :  { %3925 = vmatpush3.bf16.msra.mxu1 %v4539_v4  ;;  %v4616_v4 = vld [vmem:[%s6081_s1 + $0x9f8] ss:$12 sps:$4 sm:$0xff]  }
 0x110   :  { %2909 = vmatpush1.bf16.msra.mxu0 %v4535_v7  ;;  %3926 = vmatprep.subr.bf16.mxu1 %v4543_v11  ;;  %v5881_v7 = vld [vmem:[%s6082_s0 + $0xa4] ss:$56 sps:$4 sm:$0xff]  }
 0x111   :  { %2910 = vmatprep.subr.bf16.mxu0 %v4542_v10  ;;  %v4617_v10 = vld [vmem:[%s6081_s1 + $0x938] ss:$12 sps:$4 sm:$0xff]   ;;  %v4618_v11 = vld [vmem:[%s6081_s1 + $0xa10] ss:$12 sps:$4 sm:$0xff]  }
 0x112   :  { %3185 = vmatmul.mubr.bf16.gmra.mrb[56].mxu1 %v4642_v17 }
 0x113   :  { %2892 = vmatmul.mubr.bf16.gmra.mrb[8].mxu0 %v5711_v14  ;;  %3927 = vmatpush3.bf16.msra.mxu1 %v4544_v24  ;;  %v4622_v24 = vld [vmem:[%s6082_s0 + $0x110] ss:$56 sps:$4 sm:$0xff]  }
 0x114   :  { %2911 = vmatpush1.bf16.msra.mxu0 %v4540_v13  ;;  %3928 = vmatprep.subr.bf16.mxu1 %v4548_v16  ;;  %v4623_v13 = vld [vmem:[%s6081_s1 + $0xa28] ss:$12 sps:$4 sm:$0xff]   ;;  %v4627_v16 = vld [vmem:[%s6081_s1 + $0xa58] ss:$12 sps:$4 sm:$0xff]  }
 0x115   :  { %2912 = vmatprep.subr.bf16.mxu0 %v4547_v15  ;;  %3225 = vmatprep.mubr.bf16.mxu1 %v4643_v23  ;;  %v4625_v15 = vld [vmem:[%s6081_s1 + $0xa40] ss:$12 sps:$4 sm:$0xff]  }
 0x116   :  { %2934 = vmatprep.mubr.bf16.mxu0 %v5722_v26 }
 0x117   :  { %3929 = vmatpush3.bf16.msra.mxu1 %v4549_v20  ;;  %v4628_v20 = vld [vmem:[%s6081_s1 + $0x998] ss:$12 sps:$4 sm:$0xff]  }
 0x118   :  { %2913 = vmatpush1.bf16.msra.mxu0 %v4545_v19  ;;  %3930 = vmatprep.subr.bf16.mxu1 %v4553_v21  ;;  %v4629_v21 = vld [vmem:[%s6081_s1 + $0xa70] ss:$12 sps:$4 sm:$0xff]  }
 0x119   :  { %2914 = vmatprep.subr.bf16.mxu0 %v4552_v36 }
 0x11b   :  { %3931 = vmatpush3.bf16.msra.mxu1 %v4554_v38 }
 0x11c   :  { %2915 = vmatpush1.bf16.msra.mxu0 %v4550_v22  ;;  %3932 = vmatprep.subr.bf16.mxu1 %v4558_v28 }
 0x11d   :  { %2916 = vmatprep.subr.bf16.mxu0 %v4557_v25 }
 0x11f   :  { %3933 = vmatpush3.bf16.msra.mxu1 %v4559_v29 }
 0x120   :  { %2917 = vmatpush1.bf16.msra.mxu0 %v4555_v47  ;;  %3952 = vmatprep.subr.bf16.mxu1 %v4563_v32 }
 0x121   :  { %2918 = vmatprep.subr.bf16.mxu0 %v4562_v30 }
 0x122   :  { %3226 = vmatmul.mubr.bf16.vlgmr.msra.gmra.mrb[60].mxu1 %v5367_v34  ;;  %v4573_v34 = vld [vmem:[%s6081_s1 + $0x878] ss:$12 sps:$4 sm:$0xff]  }
 0x123   :  { %3953 = vmatpush3.bf16.msra.mxu1 %v4564_v35  ;;  %3233 = vmatprep.mubr.bf16.mxu1 %v5395_v46  ;;  %v4578_v46 = vld [vmem:[%s6081_s1 + $0x890] ss:$12 sps:$4 sm:$0xff]  }
 0x124   :  { %2919 = vmatpush1.bf16.msra.mxu0 %v4560_v33  ;;  %3954 = vmatprep.subr.bf16.mxu1 %v4568_v40 }
 0x125   :  { %2920 = vmatprep.subr.bf16.mxu0 %v4567_v37 }
 0x127   :  { %3955 = vmatpush3.bf16.msra.mxu1 %v4569_v42 }
 0x128   :  { %2921 = vmatpush1.bf16.msra.mxu0 %v4565_v41  ;;  %3956 = vmatprep.subr.bf16.mxu1 %v4573_v34 }
 0x129   :  { %2922 = vmatprep.subr.bf16.mxu0 %v4572_v44 }
 0x12a   :  { %3234 = vmatmul.mubr.bf16.gmra.mrb[64].mxu1 %v5408_v50  ;;  %v4586_v50 = vld [vmem:[%s6081_s1 + $0x8a8] ss:$12 sps:$4 sm:$0xff]  }
 0x12b   :  { %3957 = vmatpush3.bf16.msra.mxu1 %v4574_v49  ;;  %3241 = vmatprep.mubr.bf16.mxu1 %v5433_v56  ;;  %v4591_v56 = vld [vmem:[%s6081_s1 + $0x8c0] ss:$12 sps:$4 sm:$0xff]  }
 0x12c   :  { %2923 = vmatpush1.bf16.msra.mxu0 %v4570_v45  ;;  %3958 = vmatprep.subr.bf16.mxu1 %v4578_v46 }
 0x12d   :  { %2924 = vmatprep.subr.bf16.mxu0 %v4577_v18 }
 0x12f   :  { %3959 = vmatpush3.bf16.msra.mxu1 %v4579_v27 }
 0x130   :  { %2925 = vmatpush1.bf16.msra.mxu0 %v4575_v51  ;;  %3960 = vmatprep.subr.bf16.mxu1 %v4586_v50 }
 0x131   :  { %2926 = vmatprep.subr.bf16.mxu0 %v4585_v52 }
 0x132   :  { %3242 = vmatmul.mubr.bf16.gmra.mrb[68].mxu1 %v5446_v58  ;;  %v4599_v58 = vld [vmem:[%s6081_s1 + $0x8d8] ss:$12 sps:$4 sm:$0xff]  }
 0x133   :  { %3961 = vmatpush3.bf16.msra.mxu1 %v4587_v55  ;;  %3282 = vmatprep.mubr.bf16.mxu1 %v5474_v0  ;;  %v4604_v0 = vld [vmem:[%s6081_s1 + $0x8f0] ss:$12 sps:$4 sm:$0xff]  }
 0x134   :  { %2927 = vmatpush1.bf16.msra.mxu0 %v4583_v53  ;;  %3962 = vmatprep.subr.bf16.mxu1 %v4591_v56  ;;  %v507_v53 = vlaneseq }
 0x135   :  { %2928 = vmatprep.subr.bf16.mxu0 %v4590_v57 }
 0x136   :  { %v5965_v57 = vshrl.u32 %v507_v53, 7 }
 0x137   :  { %3963 = vmatpush3.bf16.msra.mxu1 %v4592_v59 }
 0x138   :  { %2929 = vmatpush1.bf16.msra.mxu0 %v4588_v31  ;;  %3964 = vmatprep.subr.bf16.mxu1 %v4599_v58  ;;  %v517_v56 = vsub.s32 2, %v5965_v57  ;;  %v5971_v31 = vld [vmem:[%s6083_s2] sm:$0x7] }
 0x139   :  { %2930 = vmatprep.subr.bf16.mxu0 %v4598_v39 }
 0x13a   :  { %v518_v59 = vrot.slane %v5971_v31, %v517_v56 }
 0x13b   :  { %3965 = vmatpush3.bf16.msra.mxu1 %v4600_v61 }
 0x13c   :  { %2931 = vmatpush1.bf16.msra.mxu0 %v4596_v48  ;;  %3966 = vmatprep.subr.bf16.mxu1 %v4604_v0 }
 0x13d   :  { %2932 = vmatprep.subr.bf16.mxu0 %v4603_v62 }
 0x13f   :  { %3967 = vmatpush3.bf16.msra.mxu1 %v4605_v43 }
 0x140   :  { %2933 = vmatpush1.bf16.msra.mxu0 %v4601_v63  ;;  %4020 = vmatprep.subr.bf16.mxu1 %v4609_v1 }
 0x141   :  { %3986 = vmatprep.subr.bf16.mxu0 %v4609_v1 }
 0x142   :  { %3283 = vmatmul.mubr.bf16.vlgmr.msra.gmra.mrb[72].mxu1 %v5621_v54  ;;  %v4615_v54 = vld [vmem:[%s6082_s0 + $0xa0] ss:$56 sps:$4 sm:$0xff]  }
 0x143   :  { %2935 = vmatmul.mubr.bf16.vlgmr.msra.gmra.mrb[0].mxu0 %v5870_v2  ;;  %4028 = vmatpush3.bf16.msra.mxu1 %v4610_v5 }
 0x144   :  { %3987 = vmatpush3.bf16.msra.mxu0 %v4610_v5  ;;  %4021 = vmatprep.subr.bf16.mxu1 %v4611_v6 }
 0x145   :  { %3988 = vmatprep.subr.bf16.mxu0 %v4611_v6  ;;  %2944 = vmatprep.mubr.bf16.mxu0 %v5881_v7 }
 0x146   :  { %3290 = vmatprep.mubr.bf16.mxu1 %v5641_v60  ;;  %v4620_v60 = vld [vmem:[%s6082_s0 + $0x114] ss:$56 sps:$4 sm:$0xff]  }
 0x147   :  { %4029 = vmatpush3.bf16.msra.mxu1 %v4612_v9 }
 0x148   :  { %3989 = vmatpush3.bf16.msra.mxu0 %v4612_v9  ;;  %4022 = vmatprep.subr.bf16.mxu1 %v4616_v4 }
 0x149   :  { %3990 = vmatprep.subr.bf16.mxu0 %v4616_v4 }
 0x14a   :  { %3291 = vmatmul.mubr.bf16.gmra.mrb[76].mxu1 %v5669_v3  ;;  %v4624_v3 = vld [vmem:[%s6081_s1 + $0x968] ss:$12 sps:$4 sm:$0xff]  }
 0x14b   :  { %2945 = vmatmul.mubr.bf16.gmra.mrb[4].mxu0 %v4615_v54  ;;  %4030 = vmatpush3.bf16.msra.mxu1 %v4617_v10 }
 0x14c   :  { %3991 = vmatpush3.bf16.msra.mxu0 %v4617_v10  ;;  %4023 = vmatprep.subr.bf16.mxu1 %v4618_v11 }
 0x14d   :  { %3992 = vmatprep.subr.bf16.mxu0 %v4618_v11  ;;  %2954 = vmatprep.mubr.bf16.mxu0 %v4620_v60 }
 0x14e   :  { %3298 = vmatprep.mubr.bf16.mxu1 %v5683_v8  ;;  %v4626_v8 = vld [vmem:[%s6081_s1 + $0x980] ss:$12 sps:$4 sm:$0xff]  }
 0x14f   :  { %4031 = vmatpush3.bf16.msra.mxu1 %v4619_v12 }
 0x150   :  { %3993 = vmatpush3.bf16.msra.mxu0 %v4619_v12  ;;  %4024 = vmatprep.subr.bf16.mxu1 %v4623_v13 }
 0x151   :  { %3994 = vmatprep.subr.bf16.mxu0 %v4623_v13 }
 0x152   :  { %3299 = vmatmul.mubr.bf16.gmra.mrb[80].mxu1 %v5711_v14 }
 0x153   :  { %2955 = vmatmul.mubr.bf16.gmra.mrb[8].mxu0 %v4622_v24  ;;  %4032 = vmatpush3.bf16.msra.mxu1 %v4624_v3 }
 0x154   :  { %3995 = vmatpush3.bf16.msra.mxu0 %v4624_v3  ;;  %4025 = vmatprep.subr.bf16.mxu1 %v4625_v15 }
 0x155   :  { %3996 = vmatprep.subr.bf16.mxu0 %v4625_v15  ;;  %v5929_v17 = vpop.f32.mrb[0].mxu1  ;;  %3339 = vmatprep.mubr.bf16.mxu0 %v5722_v26  ;;  %v4630_v26 = vld [vmem:[%s6081_s1 + $0x9b0] ss:$12 sps:$4 sm:$0xff]  }
 0x156   :  { %3355 = vmatprep.mubr.bf16.mxu1 %v4620_v60  ;;  %v5932_v19 = vpop.f32.mrb[1].mxu1 }
 0x157   :  { %v5934_v14 = vpop.f32.mrb[2].mxu1  ;;  %4033 = vmatpush3.bf16.msra.mxu1 %v4626_v8 }
 0x158   :  { %3997 = vmatpush3.bf16.msra.mxu0 %v4626_v8  ;;  %v5939_v36 = vpop.f32.mrb[3].mxu1  ;;  %4026 = vmatprep.subr.bf16.mxu1 %v4627_v16 }
 0x159   :  { %3998 = vmatprep.subr.bf16.mxu0 %v4627_v16 }
 0x15b   :  { %4034 = vmatpush3.bf16.msra.mxu1 %v4628_v20 }
 0x15c   :  { %3999 = vmatpush3.bf16.msra.mxu0 %v4628_v20  ;;  %4027 = vmatprep.subr.bf16.mxu1 %v4629_v21 }
 0x15d   :  { %4000 = vmatprep.subr.bf16.mxu0 %v4629_v21  ;;  %v5947_v22 = vpop.f32.mrb[4].mxu1 }
 0x15e   :  { %v5949_v23 = vpop.f32.mrb[5].mxu1 }
 0x15f   :  { %v5951_v38 = vpop.f32.mrb[6].mxu1  ;;  %4035 = vmatpush3.bf16.msra.mxu1 %v4630_v26 }
 0x160   :  { %4001 = vmatpush3.bf16.msra.mxu0 %v4630_v26  ;;  %v5953_v25 = vpop.f32.mrb[7].mxu1 }
 0x162   :  { %3356 = vmatmul.mubr.bf16.vlgmr.msra.gmra.mrb[84].mxu1 %v4622_v24 }
 0x163   :  { %3340 = vmatmul.mubr.bf16.vlgmr.msra.gmra.mrb[12].mxu0 %v5870_v2 }
 0x164   :  { %3347 = vmatprep.mubr.bf16.mxu0 %v5881_v7 }
 0x165   :  { %v5957_v28 = vpop.f32.mrb[8].mxu1 }
 0x166   :  { %v5959_v47 = vpop.f32.mrb[9].mxu1 }
 0x167   :  { %v5961_v29 = vpop.f32.mrb[10].mxu1 }
 0x168   :  { %v5963_v30 = vpop.f32.mrb[11].mxu1 }
 0x16b   :  { %3348 = vmatmul.mubr.bf16.gmra.mrb[16].mxu0 %v4615_v54 }
 0x175   :  { %v3798_v32 = vpop.f32.mrb[12].mxu1 }
 0x176   :  { %v3799_v33 = vpop.f32.mrb[13].mxu1 }
 0x177   :  { %v3800_v35 = vadd.f32 %v3799_v33, %v3798_v32  ;;  %v3801_v37 = vpop.f32.mrb[14].mxu1 }
 0x178   :  { %v3802_v40 = vpop.f32.mrb[15].mxu1 }
 0x179   :  { %v3803_v41 = vadd.f32 %v3802_v40, %v3801_v37  ;;  %v3000_v48 = vadd.f32 %v3800_v35, %v518_v59 }
 0x17b   :  { %v3003_v63 = vadd.f32 %v3803_v41, %v518_v59 }
 0x17d   :  { %v3804_v42 = vpop.f32.mrb[16].mxu1 }
 0x17e   :  { %v3805_v44 = vpop.f32.mrb[17].mxu1 }
 0x17f   :  { %v3806_v34 = vadd.f32 %v3805_v44, %v3804_v42  ;;  %v3807_v45 = vpop.f32.mrb[18].mxu1 }
 0x180   :  { %v3808_v49 = vpop.f32.mrb[19].mxu1 }
 0x181   :  { %v3809_v18 = vadd.f32 %v3808_v49, %v3807_v45  ;;  %v3008_v7 = vadd.f32 %v3806_v34, %v518_v59 }
 0x183   :  { %v3011_v10 = vadd.f32 %v3809_v18, %v518_v59 }
 0x185   :  { %v3810_v46 = vpop.f32.mrb[20].mxu1 }
 0x186   :  { %v3811_v51 = vpop.f32.mrb[21].mxu1 }
 0x187   :  { %v3812_v27 = vadd.f32 %v3811_v51, %v3810_v46  ;;  %v3813_v52 = vpop.f32.mrb[22].mxu1 }
 0x188   :  { %v3814_v50 = vpop.f32.mrb[23].mxu1 }
 0x189   :  { %v3815_v55 = vadd.f32 %v3814_v50, %v3813_v52  ;;  %v3016_v3 = vadd.f32 %v3812_v27, %v518_v59 }
 0x18b   :  { %v3019_v20 = vadd.f32 %v3815_v55, %v518_v59 }
 0x195   :  { %v3832_v39 = vpop.f32.mrb[24].mxu1 }
 0x196   :  { %v3833_v58 = vpop.f32.mrb[25].mxu1 }
 0x197   :  { %v3834_v61 = vadd.f32 %v3833_v58, %v3832_v39  ;;  %v3835_v62 = vpop.f32.mrb[26].mxu1 }
 0x198   :  { %v3836_v0 = vpop.f32.mrb[27].mxu1 }
 0x199   :  { %v3057_v43 = vadd.f32 %v3834_v61, %v3000_v48  ;;  %v3837_v1 = vadd.f32 %v3836_v0, %v3835_v62 }
 0x19b   :  { %v3060_v2 = vadd.f32 %v3837_v1, %v3003_v63 }
 0x19d   :  { %v3838_v5 = vpop.f32.mrb[28].mxu1 }
 0x19e   :  { %v3839_v6 = vpop.f32.mrb[29].mxu1 }
 0x19f   :  { %v3840_v9 = vadd.f32 %v3839_v6, %v3838_v5  ;;  %v3841_v4 = vpop.f32.mrb[30].mxu1 }
 0x1a0   :  { %v3842_v54 = vpop.f32.mrb[31].mxu1 }
 0x1a1   :  { %v3065_v11 = vadd.f32 %v3840_v9, %v3008_v7  ;;  %v3843_v60 = vadd.f32 %v3842_v54, %v3841_v4 }
 0x1a3   :  { %v3068_v12 = vadd.f32 %v3843_v60, %v3011_v10 }
 0x1a5   :  { %v3844_v13 = vpop.f32.mrb[32].mxu1 }
 0x1a6   :  { %v3845_v24 = vpop.f32.mrb[33].mxu1 }
 0x1a7   :  { %v3846_v15 = vadd.f32 %v3845_v24, %v3844_v13  ;;  %v3847_v8 = vpop.f32.mrb[34].mxu1 }
 0x1a8   :  { %v3848_v16 = vpop.f32.mrb[35].mxu1 }
 0x1a9   :  { %v3073_v21 = vadd.f32 %v3846_v15, %v3016_v3  ;;  %v3849_v26 = vadd.f32 %v3848_v16, %v3847_v8 }
 0x1ab   :  { %v3076_v32 = vadd.f32 %v3849_v26, %v3019_v20 }
 0x1b5   :  { %v3866_v33 = vpop.f32.mrb[36].mxu1 }
 0x1b6   :  { %v3867_v35 = vpop.f32.mrb[37].mxu1 }
 0x1b7   :  { %v3868_v37 = vadd.f32 %v3867_v35, %v3866_v33  ;;  %v3869_v40 = vpop.f32.mrb[38].mxu1 }
 0x1b8   :  { %v3870_v41 = vpop.f32.mrb[39].mxu1 }
 0x1b9   :  { %v3114_v42 = vadd.f32 %v3868_v37, %v3057_v43  ;;  %v3871_v44 = vadd.f32 %v3870_v41, %v3869_v40 }
 0x1bb   :  { %v3117_v34 = vadd.f32 %v3871_v44, %v3060_v2 }
 0x1bd   :  { %v3872_v45 = vpop.f32.mrb[40].mxu1 }
 0x1be   :  { %v3873_v49 = vpop.f32.mrb[41].mxu1 }
 0x1bf   :  { %v3874_v18 = vadd.f32 %v3873_v49, %v3872_v45  ;;  %v3875_v46 = vpop.f32.mrb[42].mxu1 }
 0x1c0   :  { %v3876_v51 = vpop.f32.mrb[43].mxu1 }
 0x1c1   :  { %v3122_v27 = vadd.f32 %v3874_v18, %v3065_v11  ;;  %v3877_v52 = vadd.f32 %v3876_v51, %v3875_v46 }
 0x1c3   :  { %v3125_v50 = vadd.f32 %v3877_v52, %v3068_v12 }
 0x1c5   :  { %v3878_v53 = vpop.f32.mrb[44].mxu1 }
 0x1c6   :  { %v3879_v55 = vpop.f32.mrb[45].mxu1 }
 0x1c7   :  { %v3880_v56 = vadd.f32 %v3879_v55, %v3878_v53  ;;  %v3881_v59 = vpop.f32.mrb[46].mxu1 }
 0x1c8   :  { %v3882_v39 = vpop.f32.mrb[47].mxu1 }
 0x1c9   :  { %v3130_v58 = vadd.f32 %v3880_v56, %v3073_v21  ;;  %v3883_v48 = vadd.f32 %v3882_v39, %v3881_v59 }
 0x1cb   :  { %v3133_v61 = vadd.f32 %v3883_v48, %v3076_v32  ;;  %v509_v48 = vsub.s32 0, %v5965_v57 }
 0x1d5   :  { %v3900_v62 = vpop.f32.mrb[48].mxu1 }
 0x1d6   :  { %v3901_v0 = vpop.f32.mrb[49].mxu1 }
 0x1d7   :  { %v3902_v63 = vadd.f32 %v3901_v0, %v3900_v62  ;;  %v3903_v43 = vpop.f32.mrb[50].mxu1  ;;  %v5983_v62 = vrot.slane %v5971_v31, %v509_v48 }
 0x1d8   :  { %v3904_v1 = vpop.f32.mrb[51].mxu1 }
 0x1d9   :  { %v3171_v2 = vadd.f32 %v3902_v63, %v3114_v42  ;;  %v3905_v5 = vadd.f32 %v3904_v1, %v3903_v43  ;;  %v4036_v63 = vadd.f32 %v5929_v17, %v5983_v62 }
 0x1db   :  { %v3174_v6 = vadd.f32 %v3905_v5, %v3117_v34  ;;  %v4040_v5 = vadd.f32 %v5934_v14, %v5983_v62 }
 0x1dd   :  { %v3906_v7 = vpop.f32.mrb[52].mxu1 }
 0x1de   :  { %v3907_v9 = vpop.f32.mrb[53].mxu1 }
 0x1df   :  { %v3908_v4 = vadd.f32 %v3907_v9, %v3906_v7  ;;  %v3909_v54 = vpop.f32.mrb[54].mxu1 }
 0x1e0   :  { %v3910_v10 = vpop.f32.mrb[55].mxu1 }
 0x1e1   :  { %v3179_v11 = vadd.f32 %v3908_v4, %v3122_v27  ;;  %v3911_v60 = vadd.f32 %v3910_v10, %v3909_v54 }
 0x1e3   :  { %v3182_v12 = vadd.f32 %v3911_v60, %v3125_v50 }
 0x1e5   :  { %v3912_v13 = vpop.f32.mrb[56].mxu1 }
 0x1e6   :  { %v3913_v24 = vpop.f32.mrb[57].mxu1 }
 0x1e7   :  { %v3914_v3 = vadd.f32 %v3913_v24, %v3912_v13  ;;  %v3915_v15 = vpop.f32.mrb[58].mxu1 }
 0x1e8   :  { %v3916_v8 = vpop.f32.mrb[59].mxu1 }
 0x1e9   :  { %v3187_v16 = vadd.f32 %v3914_v3, %v3130_v58  ;;  %v3917_v20 = vadd.f32 %v3916_v8, %v3915_v15  ;;  %v4044_v8 = vadd.f32 %v5947_v22, %v5983_v62 }
 0x1eb   :  { %v3190_v21 = vadd.f32 %v3917_v20, %v3133_v61  ;;  %v513_v61 = vsub.s32 1, %v5965_v57 }
 0x1ed   :  { %v5986_v0 = vrot.slane %v5971_v31, %v513_v61 }
 0x1ef   :  { %v4038_v43 = vadd.f32 %v5932_v19, %v5986_v0  ;;  %v4042_v9 = vadd.f32 %v5939_v36, %v5986_v0  ;;  %v4050_v22 = vadd.f32 %v5953_v25, %v5986_v0 }
 0x1f5   :  { %v3934_v26 = vpop.f32.mrb[60].mxu1 }
 0x1f6   :  { %v3935_v32 = vpop.f32.mrb[61].mxu1 }
 0x1f7   :  { %v3936_v33 = vadd.f32 %v3935_v32, %v3934_v26  ;;  %v3937_v35 = vpop.f32.mrb[62].mxu1  ;;  %v4048_v26 = vadd.f32 %v5951_v38, %v5983_v62 }
 0x1f8   :  { %v3938_v37 = vpop.f32.mrb[63].mxu1 }
 0x1f9   :  { %v3228_v40 = vadd.f32 %v3936_v33, %v3171_v2  ;;  %v3939_v41 = vadd.f32 %v3938_v37, %v3937_v35 }
 0x1fb   :  { %v3231_v42 = vadd.f32 %v3939_v41, %v3174_v6 }
 0x1fd   :  { %v3940_v44 = vpop.f32.mrb[64].mxu1 }
 0x1fe   :  { %v3941_v34 = vpop.f32.mrb[65].mxu1 }
 0x1ff   :  { %v3942_v45 = vadd.f32 %v3941_v34, %v3940_v44  ;;  %v3943_v49 = vpop.f32.mrb[66].mxu1 }
 0x200   :  { %v3944_v18 = vpop.f32.mrb[67].mxu1 }
 0x201   :  { %v3236_v46 = vadd.f32 %v3942_v45, %v3179_v11  ;;  %v3945_v51 = vadd.f32 %v3944_v18, %v3943_v49 }
 0x203   :  { %v5974_v27 = vadd.f32 %v3945_v51, %v3182_v12 }
 0x205   :  { %v3946_v52 = vpop.f32.mrb[68].mxu1 }
 0x206   :  { %v3947_v50 = vpop.f32.mrb[69].mxu1 }
 0x207   :  { %v3948_v53 = vadd.f32 %v3947_v50, %v3946_v52  ;;  %v3949_v55 = vpop.f32.mrb[70].mxu1 }
 0x208   :  { %v3950_v56 = vpop.f32.mrb[71].mxu1 }
 0x209   :  { %v5976_v59 = vadd.f32 %v3948_v53, %v3187_v16  ;;  %v3951_v39 = vadd.f32 %v3950_v56, %v3949_v55  ;;  %v4046_v16 = vadd.f32 %v5949_v23, %v5986_v0  ;;  %v4052_v53 = vadd.f32 %v5957_v28, %v5983_v62 }
 0x20a   :  { %v4058_v28 = vadd.f32 %v5963_v30, %v5986_v0 }
 0x20b   :  { %v5978_v58 = vadd.f32 %v3951_v39, %v3190_v21 }
 0x215   :  { %v3968_v2 = vpop.f32.mrb[72].mxu1 }
 0x216   :  { %v2936_v1 = vpop.f32.mrb[0].mxu0  ;;  %v3969_v57 = vpop.f32.mrb[73].mxu1 }
 0x217   :  { %v4037_v6 = vadd.f32 %v4036_v63, %v2936_v1  ;;  %v2938_v7 = vpop.f32.mrb[1].mxu0  ;;  %v3970_v31 = vadd.f32 %v3969_v57, %v3968_v2  ;;  %v3971_v10 = vpop.f32.mrb[74].mxu1 }
 0x218   :  { %v4039_v4 = vadd.f32 %v4038_v43, %v2938_v7  ;;  %v2940_v54 = vpop.f32.mrb[2].mxu0  ;;  %v3972_v12 = vpop.f32.mrb[75].mxu1 }
 0x219   :  { %v3364_v11 = vmax.f32 %v4037_v6, 0.0  ;;  %v4041_v17 = vadd.f32 %v4040_v5, %v2940_v54  ;;  %v2942_v60 = vpop.f32.mrb[3].mxu0  ;;  %v5996_v13 = vadd.f32 %v3970_v31, %v3228_v40  ;;  %v3973_v3 = vadd.f32 %v3972_v12, %v3971_v10 }
 0x21a   :  { %v3365_v19 = vmax.f32 %v4039_v4, 0.0  ;;  %v4043_v24 = vadd.f32 %v4042_v9, %v2942_v60 }
 0x21b   :  { %3382 = vst [vmem:[%s6084_s3] sm:$0xff] %v3364_v11  ;;  %v3367_v14 = vmax.f32 %v4041_v17, 0.0  ;;  %v6004_v15 = vadd.f32 %v3973_v3, %v3231_v42 }
 0x21c   :  { %3383 = vst [vmem:[%s6084_s3 + $0x8] sm:$0xff] %v3365_v19  ;;  %v3368_v36 = vmax.f32 %v4043_v24, 0.0 }
 0x21d   :  { %3385 = vst [vmem:[%s6084_s3 + $0x18] sm:$0xff] %v3367_v14  ;;  %v3974_v21 = vpop.f32.mrb[76].mxu1 }
 0x21e   :  { %3386 = vst [vmem:[%s6084_s3 + $0x20] sm:$0xff] %v3368_v36  ;;  %v2946_v20 = vpop.f32.mrb[4].mxu0  ;;  %v3975_v35 = vpop.f32.mrb[77].mxu1 }
 0x21f   :  { %v4045_v32 = vadd.f32 %v4044_v8, %v2946_v20  ;;  %v2948_v33 = vpop.f32.mrb[5].mxu0  ;;  %v3976_v40 = vadd.f32 %v3975_v35, %v3974_v21  ;;  %v3977_v42 = vpop.f32.mrb[78].mxu1 }
 0x220   :  { %v4047_v37 = vadd.f32 %v4046_v16, %v2948_v33  ;;  %v2950_v41 = vpop.f32.mrb[6].mxu0  ;;  %v3978_v45 = vpop.f32.mrb[79].mxu1 }
 0x221   :  { %v3370_v23 = vmax.f32 %v4045_v32, 0.0  ;;  %v4049_v44 = vadd.f32 %v4048_v26, %v2950_v41  ;;  %v2952_v34 = vpop.f32.mrb[7].mxu0  ;;  %v6020_v18 = vadd.f32 %v3976_v40, %v3236_v46  ;;  %v3979_v52 = vadd.f32 %v3978_v45, %v3977_v42 }
 0x222   :  { %v3371_v49 = vmax.f32 %v4047_v37, 0.0  ;;  %v4051_v51 = vadd.f32 %v4050_v22, %v2952_v34  ;;  %v4054_v46 = vadd.f32 %v5959_v47, %v5986_v0 }
 0x223   :  { %3388 = vst [vmem:[%s6084_s3 + $0x30] sm:$0xff] %v3370_v23  ;;  %v3373_v38 = vmax.f32 %v4049_v44, 0.0  ;;  %v6029_v50 = vadd.f32 %v3979_v52, %v5974_v27  ;;  %v4056_v27 = vadd.f32 %v5961_v29, %v5983_v62 }
 0x224   :  { %3389 = vst [vmem:[%s6084_s3 + $0x38] sm:$0xff] %v3371_v49  ;;  %v3374_v25 = vmax.f32 %v4051_v51, 0.0 }
 0x225   :  { %3391 = vst [vmem:[%s6084_s3 + $0x48] sm:$0xff] %v3373_v38  ;;  %v3980_v56 = vpop.f32.mrb[80].mxu1 }
 0x226   :  { %3392 = vst [vmem:[%s6084_s3 + $0x50] sm:$0xff] %v3374_v25  ;;  %v2956_v55 = vpop.f32.mrb[8].mxu0  ;;  %v3981_v61 = vpop.f32.mrb[81].mxu1 }
 0x227   :  { %v4053_v39 = vadd.f32 %v4052_v53, %v2956_v55  ;;  %v2958_v48 = vpop.f32.mrb[9].mxu0  ;;  %v3982_v43 = vadd.f32 %v3981_v61, %v3980_v56  ;;  %v3983_v2 = vpop.f32.mrb[82].mxu1 }
 0x228   :  { %v4055_v63 = vadd.f32 %v4054_v46, %v2958_v48  ;;  %v2960_v1 = vpop.f32.mrb[10].mxu0  ;;  %v3984_v7 = vpop.f32.mrb[83].mxu1 }
 0x229   :  { %v3376_v47 = vmax.f32 %v4053_v39, 0.0  ;;  %v4057_v5 = vadd.f32 %v4056_v27, %v2960_v1  ;;  %v2962_v6 = vpop.f32.mrb[11].mxu0  ;;  %v3301_v9 = vadd.f32 %v3982_v43, %v5976_v59  ;;  %v3985_v31 = vadd.f32 %v3984_v7, %v3983_v2 }
 0x22a   :  { %v3377_v57 = vmax.f32 %v4055_v63, 0.0  ;;  %v4059_v4 = vadd.f32 %v4058_v28, %v2962_v6 }
 0x22b   :  { %3394 = vst [vmem:[%s6084_s3 + $0x60] sm:$0xff] %v3376_v47  ;;  %v3379_v29 = vmax.f32 %v4057_v5, 0.0  ;;  %v3304_v62 = vadd.f32 %v3985_v31, %v5978_v58 }
 0x22c   :  { %3395 = vst [vmem:[%s6084_s3 + $0x68] sm:$0xff] %v3377_v57  ;;  %v3380_v30 = vmax.f32 %v4059_v4, 0.0 }
 0x22d   :  { %3397 = vst [vmem:[%s6084_s3 + $0x78] sm:$0xff] %v3379_v29 }
 0x22e   :  { %3398 = vst [vmem:[%s6084_s3 + $0x80] sm:$0xff] %v3380_v30 }
 0x235   :  { %v4014_v0 = vpop.f32.mrb[84].mxu1 }
 0x236   :  { %v4002_v59 = vpop.f32.mrb[12].mxu0  ;;  %v4015_v10 = vpop.f32.mrb[85].mxu1 }
 0x237   :  { %v4003_v54 = vpop.f32.mrb[13].mxu0  ;;  %v4016_v17 = vadd.f32 %v4015_v10, %v4014_v0  ;;  %v4017_v12 = vpop.f32.mrb[86].mxu1 }
 0x238   :  { %v4004_v11 = vadd.f32 %v4003_v54, %v4002_v59  ;;  %v4005_v60 = vpop.f32.mrb[14].mxu0  ;;  %v4018_v24 = vpop.f32.mrb[87].mxu1 }
 0x239   :  { %v4006_v19 = vpop.f32.mrb[15].mxu0  ;;  %v3358_v3 = vadd.f32 %v4016_v17, %v3301_v9  ;;  %v4019_v36 = vadd.f32 %v4018_v24, %v4017_v12 }
 0x23a   :  { %v3342_v58 = vadd.f32 %v4004_v11, %v5996_v13  ;;  %v4007_v14 = vadd.f32 %v4006_v19, %v4005_v60 }
 0x23b   :  { %v3378_v16 = vmax.f32 %v3358_v3, 0.0  ;;  %v3361_v21 = vadd.f32 %v4019_v36, %v3304_v62 }
 0x23c   :  { %v3366_v8 = vmax.f32 %v3342_v58, 0.0  ;;  %v3345_v20 = vadd.f32 %v4007_v14, %v6004_v15 }
 0x23d   :  { %3396 = vst [vmem:[%s6084_s3 + $0x70] sm:$0xff] %v3378_v16  ;;  %v3381_v32 = vmax.f32 %v3361_v21, 0.0 }
 0x23e   :  { %3384 = vst [vmem:[%s6084_s3 + $0x10] sm:$0xff] %v3366_v8  ;;  %v3369_v26 = vmax.f32 %v3345_v20, 0.0  ;;  %v4008_v33 = vpop.f32.mrb[16].mxu0 }
 0x23f   :  { %v4009_v13 = vpop.f32.mrb[17].mxu0  ;;  %3399 = vst [vmem:[%s6084_s3 + $0x88] sm:$0xff] %v3381_v32 }
 0x240   :  { %3387 = vst [vmem:[%s6084_s3 + $0x28] sm:$0xff] %v3369_v26  ;;  %v4010_v15 = vadd.f32 %v4009_v13, %v4008_v33  ;;  %v4011_v35 = vpop.f32.mrb[18].mxu0 }
 0x241   :  { %v4012_v22 = vpop.f32.mrb[19].mxu0 }
 0x242   :  { %v3350_v37 = vadd.f32 %v4010_v15, %v6020_v18  ;;  %v4013_v40 = vadd.f32 %v4012_v22, %v4011_v35 }
 0x244   :  { %v3372_v41 = vmax.f32 %v3350_v37, 0.0  ;;  %v3353_v42 = vadd.f32 %v4013_v40, %v6029_v50 }
 0x246   :  { %3390 = vst [vmem:[%s6084_s3 + $0x40] sm:$0xff] %v3372_v41  ;;  %v3375_v23 = vmax.f32 %v3353_v42, 0.0 }
 0x248   :  { %3393 = vst [vmem:[%s6084_s3 + $0x58] sm:$0xff] %v3375_v23 }

// kernel: perceptual_loss.18
= control target key start
LH: loop header
LB: loop body
LE: loop exit
PB: predicated region body
PF: predicated region fallthrough
CT: control target
= control target key end

     0   :  { %s527_s12 = smov 0   ;;  %s529_s13 = smov 0   ;;  %s611_s0 = inlined_call_operand.vmem [shape: f32[32,256], index: 0, kind: input, shape index: {}]   ;;  %s612_s1 = inlined_call_operand.vmem [shape: f32[32,256], index: 1, kind: input, shape index: {}]   ;;  %s613_s2 = inlined_call_operand.vmem [shape: f32[1,256], index: 2, kind: input, shape index: {}]   ;;  %s614_s3 = inlined_call_operand.vmem [shape: f32[16,256], index: 3, kind: output, shape index: {}]  }
   0x1   :  { %s531_s14 = smov 0  }
   0x2 LB: > { %s25_s15 = sadd.s32 1, %s501_s13  ;;  %p428_p0 = scmp.ge.s32.totalorder %s505_s14, 1  ;;  %s505_s14 = sphi %s531_s14, %s13_s14   ;;  %s501_s13 = sphi %s529_s13, %s616_s13   ;;  %s497_s12 = sphi %s527_s12, %s615_s12  }
   0x3   : > { %p27_p1 = scmp.ge.s32.totalorder %s25_s15, 2  ;;  %p171_p2 = scmp.lt.s32.totalorder %s505_s14, 3 }
   0x5   : > { %s618_s15 = smov (%p27_p1, %s25_s15), 0  ;;  %p172_p3 = pnand %p428_p0, %p171_p2 }
   0x6   : > { %s429_s16 = sshll.u32 (!%p172_p3), %s497_s12, 1  ;;  %v315_v48 = vlaneseq (!%p172_p3)  ;;  %v313_v61 = vld [vmem:[%s613_s2] sm:$0x3] (!%p172_p3)  ;;  %p222_p5 = scmp.lt.s32.totalorder (!%p172_p3), %s497_s12, 1 }
   0x7   : > { %175 = sbr.rel (%p172_p3) target bundleno = 220 (0xdc), region = 32  ;;  %p206_p4 = scmp.lt.s32.totalorder (!%p172_p3), %s429_s16, 3 }
   0x8   : > { %v316_v49 = vshrl.u32 (!%p172_p3), %v315_v48, 7 }
   0xa   : > { %v317_v56 = vsub.s32 (!%p172_p3), 0, %v316_v49  ;;  %v321_v57 = vsub.s32 (!%p172_p3), 1, %v316_v49 }
   0xe   : > { %s620_s16 = smov (!%p206_p4, %s429_s16), 3  ;;  %s622_s12 = smov (!%p222_p5, %s497_s12), 1 }
   0xf   : > { %s439_s17 = sshll.u32 %s620_s16, 4  ;;  %s441_s26 = sshll.u32 %s622_s12, 4 }
  0x10   : > { %s219_s20 = scalar_lea.vmem %s612_s1, %s439_s17  ;;  %s210_s23 = scalar_lea.vmem %s611_s0, %s439_s17 }
  0x11   : > { %v554_v0 = vld [vmem:[%s219_s20] sm:$0xff]  ;;  %v556_v1 = vld [vmem:[%s219_s20 + $0x8] sm:$0xff]  ;;  %v568_v7 = vld [vmem:[%s219_s20 + $0x10] sm:$0xff]  ;;  %s226_s29 = scalar_lea.vmem %s614_s3, %s441_s26 }
  0x12   : > { %v558_v2 = vld [vmem:[%s210_s23] sm:$0xff]  ;;  %v269_v3 = vmul.f32 %v554_v0, %v554_v0  ;;  %v270_v4 = vmul.f32 %v556_v1, %v556_v1  ;;  %v564_v5 = vld [vmem:[%s210_s23 + $0x8] sm:$0xff]  ;;  %v570_v8 = vld [vmem:[%s219_s20 + $0x18] sm:$0xff]  ;;  %v271_v10 = vmul.f32 %v568_v7, %v568_v7 }
  0x13   : > { %v241_v6 = vmul.f32 %v558_v2, %v558_v2  ;;  %v242_v9 = vmul.f32 %v564_v5, %v564_v5  ;;  %v272_v11 = vmul.f32 %v570_v8, %v570_v8  ;;  %v578_v12 = vld [vmem:[%s210_s23 + $0x10] sm:$0xff]  ;;  %v580_v13 = vld [vmem:[%s210_s23 + $0x18] sm:$0xff] }
  0x14   : > { %v273_v14 = vadd.f32 %v270_v4, %v269_v3  ;;  %v243_v15 = vmul.f32 %v578_v12, %v578_v12  ;;  %v244_v16 = vmul.f32 %v580_v13, %v580_v13  ;;  %v318_v3 = vrot.slane %v313_v61, %v317_v56 }
  0x15   : > { %v245_v17 = vadd.f32 %v242_v9, %v241_v6  ;;  %v276_v18 = vadd.f32 %v272_v11, %v271_v10  ;;  %v322_v4 = vrot.slane %v313_v61, %v321_v57 }
  0x16   : > { %274 = vadd.xlane.f32.xlu1 %v273_v14  ;;  %v248_v19 = vadd.f32 %v244_v16, %v243_v15 }
  0x17   : > { %246 = vadd.xlane.f32.xlu0 %v245_v17 }
  0x1a   : > { %277 = vadd.xlane.f32.xlu1 %v276_v18 }
  0x1b   : > { %249 = vadd.xlane.f32.xlu0 %v248_v19 }
  0xa3   : > { %v275_v20 = vpop.xlane.xlu1 %274 }
  0xa4   : > { %467 = vrsqrt.f32 %v275_v20  ;;  %v247_v21 = vpop.xlane.xlu0 %246  ;;  %vm281_vm0 = vcmp.eq.f32.partialorder %v275_v20, inf  ;;  %v284_v27 = vand.u32 2147483648, %v275_v20  ;;  %vm283_vm1 = vcmp.eq.f32.partialorder %v275_v20, 0.0 }
  0xa5   : > { %469 = vrsqrt.f32 %v247_v21  ;;  %vm253_vm2 = vcmp.eq.f32.partialorder %v247_v21, inf  ;;  %v256_v30 = vand.u32 2147483648, %v247_v21  ;;  %vm255_vm3 = vcmp.eq.f32.partialorder %v247_v21, 0.0 }
  0xa7   : > { %v278_v22 = vpop.xlane.xlu1 %277 }
  0xa8   : > { %471 = vrsqrt.f32 %v278_v22  ;;  %v250_v23 = vpop.xlane.xlu0 %249  ;;  %vm288_vm4 = vcmp.eq.f32.partialorder %v278_v22, inf  ;;  %vm290_vm5 = vcmp.eq.f32.partialorder %v278_v22, 0.0  ;;  %v291_v39 = vand.u32 2147483648, %v278_v22 }
  0xa9   : > { %473 = vrsqrt.f32 %v250_v23  ;;  %vm260_vm6 = vcmp.eq.f32.partialorder %v250_v23, inf  ;;  %v263_v42 = vand.u32 2147483648, %v250_v23  ;;  %vm262_vm7 = vcmp.eq.f32.partialorder %v250_v23, 0.0 }
  0xae   : > { %v468_v24 = vpop.eup %467 }
  0xaf   : > { %v470_v25 = vpop.eup %469  ;;  %v280_v26 = vmul.f32 %v468_v24, %v275_v20 }
  0xb0   : > { %v252_v28 = vmul.f32 %v470_v25, %v247_v21 }
  0xb1   : > { %v282_v29 = vsel %vm281_vm0, %v275_v20, %v280_v26 }
  0xb2   : > { %v472_v31 = vpop.eup %471  ;;  %v285_v32 = vsel %vm283_vm1, %v284_v27, %v282_v29  ;;  %v254_v33 = vsel %vm253_vm2, %v247_v21, %v252_v28 }
  0xb3   : > { %v474_v34 = vpop.eup %473  ;;  %v293_v35 = vadd.f32 1e-10, %v285_v32  ;;  %v257_v36 = vsel %vm255_vm3, %v256_v30, %v254_v33  ;;  %v287_v37 = vmul.f32 %v472_v31, %v278_v22 }
  0xb4   : > { %v265_v38 = vadd.f32 1e-10, %v257_v36  ;;  %v259_v40 = vmul.f32 %v474_v34, %v250_v23 }
  0xb5   : > { %475 = vrcp.f32 %v293_v35  ;;  %v289_v41 = vsel %vm288_vm4, %v278_v22, %v287_v37 }
  0xb6   : > { %477 = vrcp.f32 %v265_v38  ;;  %v292_v43 = vsel %vm290_vm5, %v291_v39, %v289_v41  ;;  %v261_v44 = vsel %vm260_vm6, %v250_v23, %v259_v40 }
  0xb7   : > { %v294_v45 = vadd.f32 1e-10, %v292_v43  ;;  %v264_v46 = vsel %vm262_vm7, %v263_v42, %v261_v44 }
  0xb8   : > { %v266_v47 = vadd.f32 1e-10, %v264_v46 }
  0xb9   : > { %479 = vrcp.f32 %v294_v45 }
  0xba   : > { %481 = vrcp.f32 %v266_v47 }
  0xbf   : > { %v476_v50 = vpop.eup %475 }
  0xc0   : > { %v478_v51 = vpop.eup %477  ;;  %v301_v52 = vmul.f32 %v476_v50, %v554_v0  ;;  %v302_v53 = vmul.f32 %v476_v50, %v556_v1 }
  0xc1   : > { %v297_v54 = vmul.f32 %v478_v51, %v558_v2  ;;  %v298_v55 = vmul.f32 %v478_v51, %v564_v5 }
  0xc3   : > { %v480_v58 = vpop.eup %479  ;;  %v305_v59 = vsub.f32 %v297_v54, %v301_v52  ;;  %v306_v60 = vsub.f32 %v298_v55, %v302_v53 }
  0xc4   : > { %v482_v62 = vpop.eup %481  ;;  %v303_v63 = vmul.f32 %v480_v58, %v568_v7  ;;  %v304_v0 = vmul.f32 %v480_v58, %v570_v8 }
  0xc5   : > { %v299_v1 = vmul.f32 %v482_v62, %v578_v12  ;;  %v300_v2 = vmul.f32 %v482_v62, %v580_v13  ;;  %v309_v5 = vmul.f32 %v305_v59, %v305_v59  ;;  %v310_v6 = vmul.f32 %v306_v60, %v306_v60 }
  0xc7   : > { %v307_v9 = vsub.f32 %v299_v1, %v303_v63  ;;  %v308_v10 = vsub.f32 %v300_v2, %v304_v0  ;;  %v325_v15 = vmul.f32 %v318_v3, %v309_v5  ;;  %v326_v16 = vmul.f32 %v322_v4, %v310_v6 }
  0xc9   : > { %v311_v11 = vmul.f32 %v307_v9, %v307_v9  ;;  %v312_v14 = vmul.f32 %v308_v10, %v308_v10 }
  0xcb   : > { %v327_v17 = vmul.f32 %v318_v3, %v311_v11  ;;  %v328_v7 = vmul.f32 %v322_v4, %v312_v14 }
  0xcd   : > { %v329_v18 = vadd.f32 %v327_v17, %v325_v15  ;;  %v336_v8 = vadd.f32 %v328_v7, %v326_v16 }
  0xcf   : > { %v330_v12 = vrot.slane %v329_v18, 4  ;;  %v337_v19 = vrot.slane %v336_v8, 4 }
  0xd1   : > { %v331_v20 = vadd.f32 %v330_v12, %v329_v18  ;;  %v338_v13 = vadd.f32 %v337_v19, %v336_v8 }
  0xd3   : > { %v332_v21 = vrot.slane %v331_v20, 2  ;;  %v339_v22 = vrot.slane %v338_v13, 2 }
  0xd5   : > { %v333_v23 = vadd.f32 %v332_v21, %v331_v20  ;;  %v340_v24 = vadd.f32 %v339_v22, %v338_v13 }
  0xd7   : > { %v334_v25 = vrot.slane %v333_v23, 1  ;;  %v341_v26 = vrot.slane %v340_v24, 1 }
  0xd9   : > { %v335_v27 = vadd.f32 %v334_v25, %v333_v23  ;;  %v342_v28 = vadd.f32 %v341_v26, %v340_v24 }
  0xdb   : > { %347 = vst [vmem:[%s226_s29] sm:$0xff] %v335_v27  ;;  %348 = vst [vmem:[%s226_s29 + $0x8] sm:$0xff] %v342_v28 }
  0xdc PF: > { %s13_s14 = sadd.s32 1, %s505_s14   ;;  %s615_s12 = smov %s501_s13 }
  0xdd   : > { %p10_p6 = scmp.ge.s32.totalorder %s13_s14, 4   ;;  %s616_s13 = smov %s618_s15 }
  0xdf   :  { %12 = sbr.rel (!%p10_p6) target bundleno = 2 (0x2), region = 69 }

// kernel: perceptual_loss.13
= control target key start
LH: loop header
LB: loop body
LE: loop exit
PB: predicated region body
PF: predicated region fallthrough
CT: control target
= control target key end

     0   :  { %s7070_s1 = inlined_call_operand.vmem [shape: bf16[3456,256], index: 1, kind: input, shape index: {}]   ;;  %s7071_s0 = inlined_call_operand.vmem [shape: bf16[48,3456], index: 0, kind: input, shape index: {}]   ;;  %s7072_s2 = inlined_call_operand.vmem [shape: f32[1,256], index: 2, kind: input, shape index: {}]   ;;  %s7073_s3 = inlined_call_operand.vmem [shape: f32[48,256], index: 3, kind: output, shape index: {}]  }
   0x1   :  { %v4703_v0 = vld [vmem:[%s7070_s1 + $0x4] ss:$8 sps:$4 sm:$0xff]   ;;  %v4707_v2 = vld [vmem:[%s7070_s1] ss:$8 sps:$4 sm:$0xff]   ;;  %v4709_v4 = vld [vmem:[%s7070_s1 + $0x14] ss:$8 sps:$4 sm:$0xff]  }
   0x2   :  { %v4705_v1 = vld [vmem:[%s7070_s1 + $0x704] ss:$8 sps:$4 sm:$0xff]   ;;  %3111 = vmatprep.subr.bf16.mxu1 %v4703_v0  ;;  %v4708_v3 = vld [vmem:[%s7070_s1 + $0x700] ss:$8 sps:$4 sm:$0xff]   ;;  %v4711_v5 = vld [vmem:[%s7070_s1 + $0x714] ss:$8 sps:$4 sm:$0xff]  }
   0x3   :  { %3552 = vmatprep.subr.bf16.mxu0 %v4705_v1  ;;  %3112 = vmatpush1.bf16.msra.mxu1 %v4707_v2  ;;  %v4713_v6 = vld [vmem:[%s7070_s1 + $0x10] ss:$8 sps:$4 sm:$0xff]   ;;  %v4715_v8 = vld [vmem:[%s7070_s1 + $0x24] ss:$8 sps:$4 sm:$0xff]   ;;  %v4719_v10 = vld [vmem:[%s7070_s1 + $0x20] ss:$8 sps:$4 sm:$0xff]  }
   0x4   :  { %3553 = vmatpush1.bf16.msra.mxu0 %v4708_v3  ;;  %3113 = vmatprep.subr.bf16.mxu1 %v4709_v4  ;;  %v4714_v7 = vld [vmem:[%s7070_s1 + $0x710] ss:$8 sps:$4 sm:$0xff]   ;;  %v4717_v9 = vld [vmem:[%s7070_s1 + $0x724] ss:$8 sps:$4 sm:$0xff]   ;;  %v4720_v11 = vld [vmem:[%s7070_s1 + $0x720] ss:$8 sps:$4 sm:$0xff]  }
   0x5   :  { %3554 = vmatprep.subr.bf16.mxu0 %v4711_v5  ;;  %v4721_v12 = vld [vmem:[%s7070_s1 + $0x34] ss:$8 sps:$4 sm:$0xff]   ;;  %v4725_v14 = vld [vmem:[%s7070_s1 + $0x30] ss:$8 sps:$4 sm:$0xff]   ;;  %v4727_v16 = vld [vmem:[%s7070_s1 + $0x44] ss:$8 sps:$4 sm:$0xff]  }
   0x6   :  { %v4723_v13 = vld [vmem:[%s7070_s1 + $0x734] ss:$8 sps:$4 sm:$0xff]   ;;  %v4726_v15 = vld [vmem:[%s7070_s1 + $0x730] ss:$8 sps:$4 sm:$0xff]   ;;  %v4729_v17 = vld [vmem:[%s7070_s1 + $0x744] ss:$8 sps:$4 sm:$0xff]  }
   0x7   :  { %3114 = vmatpush1.bf16.msra.mxu1 %v4713_v6  ;;  %v4731_v18 = vld [vmem:[%s7070_s1 + $0x40] ss:$8 sps:$4 sm:$0xff]   ;;  %v4733_v20 = vld [vmem:[%s7070_s1 + $0x54] ss:$8 sps:$4 sm:$0xff]   ;;  %v4737_v22 = vld [vmem:[%s7070_s1 + $0x50] ss:$8 sps:$4 sm:$0xff]  }
   0x8   :  { %3555 = vmatpush1.bf16.msra.mxu0 %v4714_v7  ;;  %3115 = vmatprep.subr.bf16.mxu1 %v4715_v8  ;;  %v4732_v19 = vld [vmem:[%s7070_s1 + $0x740] ss:$8 sps:$4 sm:$0xff]   ;;  %v4735_v21 = vld [vmem:[%s7070_s1 + $0x754] ss:$8 sps:$4 sm:$0xff]   ;;  %v4738_v23 = vld [vmem:[%s7070_s1 + $0x750] ss:$8 sps:$4 sm:$0xff]  }
   0x9   :  { %3556 = vmatprep.subr.bf16.mxu0 %v4717_v9  ;;  %v4739_v24 = vld [vmem:[%s7070_s1 + $0x64] ss:$8 sps:$4 sm:$0xff]   ;;  %v4743_v26 = vld [vmem:[%s7070_s1 + $0x60] ss:$8 sps:$4 sm:$0xff]   ;;  %v4745_v28 = vld [vmem:[%s7070_s1 + $0x74] ss:$8 sps:$4 sm:$0xff]  }
   0xa   :  { %v4741_v25 = vld [vmem:[%s7070_s1 + $0x764] ss:$8 sps:$4 sm:$0xff]   ;;  %v4744_v27 = vld [vmem:[%s7070_s1 + $0x760] ss:$8 sps:$4 sm:$0xff]   ;;  %v4747_v29 = vld [vmem:[%s7070_s1 + $0x774] ss:$8 sps:$4 sm:$0xff]  }
   0xb   :  { %3116 = vmatpush1.bf16.msra.mxu1 %v4719_v10  ;;  %v4749_v30 = vld [vmem:[%s7070_s1 + $0x70] ss:$8 sps:$4 sm:$0xff]   ;;  %v4751_v32 = vld [vmem:[%s7070_s1 + $0x84] ss:$8 sps:$4 sm:$0xff]   ;;  %v4755_v34 = vld [vmem:[%s7070_s1 + $0x80] ss:$8 sps:$4 sm:$0xff]  }
   0xc   :  { %3557 = vmatpush1.bf16.msra.mxu0 %v4720_v11  ;;  %3117 = vmatprep.subr.bf16.mxu1 %v4721_v12  ;;  %v4750_v31 = vld [vmem:[%s7070_s1 + $0x770] ss:$8 sps:$4 sm:$0xff]   ;;  %v4753_v33 = vld [vmem:[%s7070_s1 + $0x784] ss:$8 sps:$4 sm:$0xff]   ;;  %v4756_v35 = vld [vmem:[%s7070_s1 + $0x780] ss:$8 sps:$4 sm:$0xff]  }
   0xd   :  { %3558 = vmatprep.subr.bf16.mxu0 %v4723_v13  ;;  %v4757_v36 = vld [vmem:[%s7070_s1 + $0x94] ss:$8 sps:$4 sm:$0xff]   ;;  %v4761_v38 = vld [vmem:[%s7070_s1 + $0x90] ss:$8 sps:$4 sm:$0xff]   ;;  %v4763_v40 = vld [vmem:[%s7070_s1 + $0xa4] ss:$8 sps:$4 sm:$0xff]  }
   0xe   :  { %v4759_v37 = vld [vmem:[%s7070_s1 + $0x794] ss:$8 sps:$4 sm:$0xff]   ;;  %v4762_v39 = vld [vmem:[%s7070_s1 + $0x790] ss:$8 sps:$4 sm:$0xff]   ;;  %v4765_v41 = vld [vmem:[%s7070_s1 + $0x7a4] ss:$8 sps:$4 sm:$0xff]  }
   0xf   :  { %3118 = vmatpush1.bf16.msra.mxu1 %v4725_v14  ;;  %v4767_v42 = vld [vmem:[%s7070_s1 + $0xa0] ss:$8 sps:$4 sm:$0xff]   ;;  %v4769_v44 = vld [vmem:[%s7070_s1 + $0xb4] ss:$8 sps:$4 sm:$0xff]   ;;  %v4773_v46 = vld [vmem:[%s7070_s1 + $0xb0] ss:$8 sps:$4 sm:$0xff]  }
  0x10   :  { %3559 = vmatpush1.bf16.msra.mxu0 %v4726_v15  ;;  %3119 = vmatprep.subr.bf16.mxu1 %v4727_v16  ;;  %v4768_v43 = vld [vmem:[%s7070_s1 + $0x7a0] ss:$8 sps:$4 sm:$0xff]   ;;  %v4771_v45 = vld [vmem:[%s7070_s1 + $0x7b4] ss:$8 sps:$4 sm:$0xff]   ;;  %v4774_v47 = vld [vmem:[%s7070_s1 + $0x7b0] ss:$8 sps:$4 sm:$0xff]  }
  0x11   :  { %3560 = vmatprep.subr.bf16.mxu0 %v4729_v17  ;;  %v4801_v48 = vld [vmem:[%s7071_s0 + $0x4] ss:$108 sps:$4 sm:$0xff]   ;;  %v4807_v51 = vld [vmem:[%s7071_s0 + $0x3c] ss:$108 sps:$4 sm:$0xff]   ;;  %v4799_v4 = vld [vmem:[%s7071_s0] ss:$108 sps:$4 sm:$0xff]  }
  0x12   :  { %v4775_v49 = vld [vmem:[%s7070_s1 + $0xc4] ss:$8 sps:$4 sm:$0xff]   ;;  %3143 = vmatprep.mubr.bf16.mxu1 %v4801_v48  ;;  %v4779_v52 = vld [vmem:[%s7070_s1 + $0xc0] ss:$8 sps:$4 sm:$0xff]   ;;  %v4781_v54 = vld [vmem:[%s7070_s1 + $0xd4] ss:$8 sps:$4 sm:$0xff]   ;;  %3584 = vmatprep.mubr.bf16.mxu0 %v4807_v51 }
  0x13   :  { %3120 = vmatpush1.bf16.msra.mxu1 %v4731_v18  ;;  %v4777_v50 = vld [vmem:[%s7070_s1 + $0x7c4] ss:$8 sps:$4 sm:$0xff]   ;;  %v4780_v53 = vld [vmem:[%s7070_s1 + $0x7c0] ss:$8 sps:$4 sm:$0xff]   ;;  %v4783_v55 = vld [vmem:[%s7070_s1 + $0x7d4] ss:$8 sps:$4 sm:$0xff]  }
  0x14   :  { %3561 = vmatpush1.bf16.msra.mxu0 %v4732_v19  ;;  %3121 = vmatprep.subr.bf16.mxu1 %v4733_v20  ;;  %v4785_v56 = vld [vmem:[%s7070_s1 + $0xd0] ss:$8 sps:$4 sm:$0xff]   ;;  %v4787_v58 = vld [vmem:[%s7070_s1 + $0xe4] ss:$8 sps:$4 sm:$0xff]   ;;  %v4791_v60 = vld [vmem:[%s7070_s1 + $0xe0] ss:$8 sps:$4 sm:$0xff]  }
  0x15   :  { %3562 = vmatprep.subr.bf16.mxu0 %v4735_v21  ;;  %v4786_v57 = vld [vmem:[%s7070_s1 + $0x7d0] ss:$8 sps:$4 sm:$0xff]   ;;  %v4789_v59 = vld [vmem:[%s7070_s1 + $0x7e4] ss:$8 sps:$4 sm:$0xff]   ;;  %v4792_v61 = vld [vmem:[%s7070_s1 + $0x7e0] ss:$8 sps:$4 sm:$0xff]  }
  0x16   :  { %v4793_v62 = vld [vmem:[%s7070_s1 + $0xf4] ss:$8 sps:$4 sm:$0xff]   ;;  %v4797_v0 = vld [vmem:[%s7070_s1 + $0xf0] ss:$8 sps:$4 sm:$0xff]   ;;  %v4804_v2 = vld [vmem:[%s7070_s1 + $0x104] ss:$8 sps:$4 sm:$0xff]  }
  0x17   :  { %3122 = vmatpush1.bf16.msra.mxu1 %v4737_v22  ;;  %v4795_v63 = vld [vmem:[%s7070_s1 + $0x7f4] ss:$8 sps:$4 sm:$0xff]   ;;  %v4798_v1 = vld [vmem:[%s7070_s1 + $0x7f0] ss:$8 sps:$4 sm:$0xff]   ;;  %v4810_v3 = vld [vmem:[%s7070_s1 + $0x804] ss:$8 sps:$4 sm:$0xff]  }
  0x18   :  { %3563 = vmatpush1.bf16.msra.mxu0 %v4738_v23  ;;  %3123 = vmatprep.subr.bf16.mxu1 %v4739_v24  ;;  %v4802_v5 = vld [vmem:[%s7070_s1 + $0x100] ss:$8 sps:$4 sm:$0xff]   ;;  %v4805_v6 = vld [vmem:[%s7071_s0 + $0x38] ss:$108 sps:$4 sm:$0xff]   ;;  %v4813_v8 = vld [vmem:[%s7070_s1 + $0x114] ss:$8 sps:$4 sm:$0xff]  }
  0x19   :  { %3564 = vmatprep.subr.bf16.mxu0 %v4741_v25  ;;  %v4808_v7 = vld [vmem:[%s7070_s1 + $0x800] ss:$8 sps:$4 sm:$0xff]   ;;  %v4816_v9 = vld [vmem:[%s7070_s1 + $0x814] ss:$8 sps:$4 sm:$0xff]   ;;  %v4811_v10 = vld [vmem:[%s7070_s1 + $0x110] ss:$8 sps:$4 sm:$0xff]  }
  0x1a   :  { %v4814_v11 = vld [vmem:[%s7070_s1 + $0x810] ss:$8 sps:$4 sm:$0xff]   ;;  %v4819_v12 = vld [vmem:[%s7070_s1 + $0x124] ss:$8 sps:$4 sm:$0xff]   ;;  %v4817_v14 = vld [vmem:[%s7070_s1 + $0x120] ss:$8 sps:$4 sm:$0xff]  }
  0x1b   :  { %3124 = vmatpush1.bf16.msra.mxu1 %v4743_v26  ;;  %v4822_v13 = vld [vmem:[%s7070_s1 + $0x824] ss:$8 sps:$4 sm:$0xff]   ;;  %v4820_v15 = vld [vmem:[%s7070_s1 + $0x820] ss:$8 sps:$4 sm:$0xff]   ;;  %v4825_v16 = vld [vmem:[%s7070_s1 + $0x134] ss:$8 sps:$4 sm:$0xff]  }
  0x1c   :  { %3565 = vmatpush1.bf16.msra.mxu0 %v4744_v27  ;;  %3125 = vmatprep.subr.bf16.mxu1 %v4745_v28  ;;  %v4828_v17 = vld [vmem:[%s7070_s1 + $0x834] ss:$8 sps:$4 sm:$0xff]   ;;  %v4823_v18 = vld [vmem:[%s7070_s1 + $0x130] ss:$8 sps:$4 sm:$0xff]   ;;  %v4831_v20 = vld [vmem:[%s7070_s1 + $0x144] ss:$8 sps:$4 sm:$0xff]  }
  0x1d   :  { %3566 = vmatprep.subr.bf16.mxu0 %v4747_v29  ;;  %v4826_v19 = vld [vmem:[%s7070_s1 + $0x830] ss:$8 sps:$4 sm:$0xff]   ;;  %v4834_v21 = vld [vmem:[%s7070_s1 + $0x844] ss:$8 sps:$4 sm:$0xff]   ;;  %v4877_v22 = vld [vmem:[%s7071_s0 + $0xdc] ss:$108 sps:$4 sm:$0xff]  }
  0x1e   :  { %v4829_v23 = vld [vmem:[%s7070_s1 + $0x140] ss:$8 sps:$4 sm:$0xff]   ;;  %v4837_v26 = vld [vmem:[%s7070_s1 + $0x154] ss:$8 sps:$4 sm:$0xff]   ;;  %v4887_v28 = vld [vmem:[%s7071_s0 + $0xd8] ss:$108 sps:$4 sm:$0xff]  }
  0x1f   :  { %3126 = vmatpush1.bf16.msra.mxu1 %v4749_v30  ;;  %v4832_v24 = vld [vmem:[%s7070_s1 + $0x840] ss:$8 sps:$4 sm:$0xff]   ;;  %v4840_v27 = vld [vmem:[%s7070_s1 + $0x854] ss:$8 sps:$4 sm:$0xff]   ;;  %v4835_v30 = vld [vmem:[%s7070_s1 + $0x150] ss:$8 sps:$4 sm:$0xff]  }
  0x20   :  { %3567 = vmatpush1.bf16.msra.mxu0 %v4750_v31  ;;  %3127 = vmatprep.subr.bf16.mxu1 %v4751_v32  ;;  %v4882_v25 = vld [vmem:[%s7071_s0 + $0x114] ss:$108 sps:$4 sm:$0xff]   ;;  %v4888_v29 = vld [vmem:[%s7071_s0 + $0x110] ss:$108 sps:$4 sm:$0xff]   ;;  %v4843_v32 = vld [vmem:[%s7070_s1 + $0x164] ss:$8 sps:$4 sm:$0xff]  }
  0x21   :  { %3568 = vmatprep.subr.bf16.mxu0 %v4753_v33  ;;  %v4838_v31 = vld [vmem:[%s7070_s1 + $0x850] ss:$8 sps:$4 sm:$0xff]   ;;  %v4846_v33 = vld [vmem:[%s7070_s1 + $0x864] ss:$8 sps:$4 sm:$0xff]   ;;  %v4856_v48 = vld [vmem:[%s7070_s1 + $0x880] ss:$8 sps:$4 sm:$0xff]  }
  0x22   :  { %v4921_v51 = vld [vmem:[%s7071_s0 + $0x44] ss:$108 sps:$4 sm:$0xff]  }
  0x23   :  { %3128 = vmatpush1.bf16.msra.mxu1 %v4755_v34  ;;  %v4895_v34 = vld [vmem:[%s7071_s0 + $0x1b4] ss:$108 sps:$4 sm:$0xff]  }
  0x24   :  { %3569 = vmatpush1.bf16.msra.mxu0 %v4756_v35  ;;  %3129 = vmatprep.subr.bf16.mxu1 %v4757_v36  ;;  %v4841_v35 = vld [vmem:[%s7070_s1 + $0x160] ss:$8 sps:$4 sm:$0xff]  }
  0x25   :  { %3570 = vmatprep.subr.bf16.mxu0 %v4759_v37  ;;  %v4844_v36 = vld [vmem:[%s7070_s1 + $0x860] ss:$8 sps:$4 sm:$0xff]   ;;  %v4900_v37 = vld [vmem:[%s7071_s0 + $0x1ec] ss:$108 sps:$4 sm:$0xff]  }
  0x27   :  { %3130 = vmatpush1.bf16.msra.mxu1 %v4761_v38  ;;  %v4849_v38 = vld [vmem:[%s7070_s1 + $0x174] ss:$8 sps:$4 sm:$0xff]  }
  0x28   :  { %3571 = vmatpush1.bf16.msra.mxu0 %v4762_v39  ;;  %3131 = vmatprep.subr.bf16.mxu1 %v4763_v40  ;;  %v4852_v39 = vld [vmem:[%s7070_s1 + $0x874] ss:$8 sps:$4 sm:$0xff]  }
  0x29   :  { %3572 = vmatprep.subr.bf16.mxu0 %v4765_v41  ;;  %v4905_v40 = vld [vmem:[%s7071_s0 + $0x1b0] ss:$108 sps:$4 sm:$0xff]   ;;  %v4906_v41 = vld [vmem:[%s7071_s0 + $0x1e8] ss:$108 sps:$4 sm:$0xff]  }
  0x2b   :  { %3132 = vmatpush1.bf16.msra.mxu1 %v4767_v42  ;;  %v4847_v42 = vld [vmem:[%s7070_s1 + $0x170] ss:$8 sps:$4 sm:$0xff]  }
  0x2c   :  { %3573 = vmatpush1.bf16.msra.mxu0 %v4768_v43  ;;  %3133 = vmatprep.subr.bf16.mxu1 %v4769_v44  ;;  %v4850_v43 = vld [vmem:[%s7070_s1 + $0x870] ss:$8 sps:$4 sm:$0xff]   ;;  %v4855_v44 = vld [vmem:[%s7070_s1 + $0x184] ss:$8 sps:$4 sm:$0xff]  }
  0x2d   :  { %3574 = vmatprep.subr.bf16.mxu0 %v4771_v45  ;;  %v4858_v45 = vld [vmem:[%s7070_s1 + $0x884] ss:$8 sps:$4 sm:$0xff]  }
  0x2f   :  { %3134 = vmatpush1.bf16.msra.mxu1 %v4773_v46  ;;  %v4853_v46 = vld [vmem:[%s7070_s1 + $0x180] ss:$8 sps:$4 sm:$0xff]  }
  0x30   :  { %3575 = vmatpush1.bf16.msra.mxu0 %v4774_v47  ;;  %3135 = vmatprep.subr.bf16.mxu1 %v4775_v49  ;;  %v4915_v47 = vld [vmem:[%s7071_s0 + $0xc] ss:$108 sps:$4 sm:$0xff]   ;;  %v4861_v49 = vld [vmem:[%s7070_s1 + $0x194] ss:$8 sps:$4 sm:$0xff]  }
  0x31   :  { %3576 = vmatprep.subr.bf16.mxu0 %v4777_v50  ;;  %v4864_v50 = vld [vmem:[%s7070_s1 + $0x894] ss:$8 sps:$4 sm:$0xff]  }
  0x33   :  { %3136 = vmatpush1.bf16.msra.mxu1 %v4779_v52  ;;  %v4859_v52 = vld [vmem:[%s7070_s1 + $0x190] ss:$8 sps:$4 sm:$0xff]  }
  0x34   :  { %3577 = vmatpush1.bf16.msra.mxu0 %v4780_v53  ;;  %3137 = vmatprep.subr.bf16.mxu1 %v4781_v54  ;;  %v4862_v53 = vld [vmem:[%s7070_s1 + $0x890] ss:$8 sps:$4 sm:$0xff]   ;;  %v4867_v54 = vld [vmem:[%s7070_s1 + $0x1a4] ss:$8 sps:$4 sm:$0xff]  }
  0x35   :  { %3578 = vmatprep.subr.bf16.mxu0 %v4783_v55  ;;  %v4870_v55 = vld [vmem:[%s7070_s1 + $0x8a4] ss:$8 sps:$4 sm:$0xff]  }
  0x37   :  { %3138 = vmatpush1.bf16.msra.mxu1 %v4785_v56  ;;  %v4865_v56 = vld [vmem:[%s7070_s1 + $0x1a0] ss:$8 sps:$4 sm:$0xff]  }
  0x38   :  { %3579 = vmatpush1.bf16.msra.mxu0 %v4786_v57  ;;  %3139 = vmatprep.subr.bf16.mxu1 %v4787_v58  ;;  %v4868_v57 = vld [vmem:[%s7070_s1 + $0x8a0] ss:$8 sps:$4 sm:$0xff]   ;;  %v4873_v58 = vld [vmem:[%s7070_s1 + $0x1b4] ss:$8 sps:$4 sm:$0xff]  }
  0x39   :  { %3580 = vmatprep.subr.bf16.mxu0 %v4789_v59  ;;  %v4876_v59 = vld [vmem:[%s7070_s1 + $0x8b4] ss:$8 sps:$4 sm:$0xff]  }
  0x3b   :  { %3140 = vmatpush1.bf16.msra.mxu1 %v4791_v60  ;;  %v4871_v60 = vld [vmem:[%s7070_s1 + $0x1b0] ss:$8 sps:$4 sm:$0xff]  }
  0x3c   :  { %3581 = vmatpush1.bf16.msra.mxu0 %v4792_v61  ;;  %3141 = vmatprep.subr.bf16.mxu1 %v4793_v62  ;;  %v4874_v61 = vld [vmem:[%s7070_s1 + $0x8b0] ss:$8 sps:$4 sm:$0xff]   ;;  %v4881_v62 = vld [vmem:[%s7070_s1 + $0x1c4] ss:$8 sps:$4 sm:$0xff]  }
  0x3d   :  { %3582 = vmatprep.subr.bf16.mxu0 %v4795_v63  ;;  %v4886_v63 = vld [vmem:[%s7070_s1 + $0x8c4] ss:$8 sps:$4 sm:$0xff]  }
  0x3f   :  { %3142 = vmatpush1.bf16.msra.mxu1 %v4797_v0  ;;  %v4879_v0 = vld [vmem:[%s7070_s1 + $0x1c0] ss:$8 sps:$4 sm:$0xff]  }
  0x40   :  { %3583 = vmatpush1.bf16.msra.mxu0 %v4798_v1  ;;  %3174 = vmatprep.subr.bf16.mxu1 %v4804_v2  ;;  %v4884_v1 = vld [vmem:[%s7070_s1 + $0x8c0] ss:$8 sps:$4 sm:$0xff]   ;;  %v4891_v2 = vld [vmem:[%s7070_s1 + $0x1d4] ss:$8 sps:$4 sm:$0xff]  }
  0x41   :  { %3615 = vmatprep.subr.bf16.mxu0 %v4810_v3  ;;  %v4894_v3 = vld [vmem:[%s7070_s1 + $0x8d4] ss:$8 sps:$4 sm:$0xff]  }
  0x42   :  { %3144 = vmatmul.mubr.bf16.vlgmr.msra.gmra.mrb[0].mxu1 %v4799_v4  ;;  %v4889_v4 = vld [vmem:[%s7070_s1 + $0x1d0] ss:$8 sps:$4 sm:$0xff]  }
  0x43   :  { %3585 = vmatmul.mubr.bf16.vlgmr.msra.gmra.mrb[0].mxu0 %v4805_v6  ;;  %3175 = vmatpush1.bf16.msra.mxu1 %v4802_v5  ;;  %v4892_v5 = vld [vmem:[%s7070_s1 + $0x8d0] ss:$8 sps:$4 sm:$0xff]   ;;  %v4899_v6 = vld [vmem:[%s7070_s1 + $0x1e4] ss:$8 sps:$4 sm:$0xff]  }
  0x44   :  { %3616 = vmatpush1.bf16.msra.mxu0 %v4808_v7  ;;  %3176 = vmatprep.subr.bf16.mxu1 %v4813_v8  ;;  %v4904_v7 = vld [vmem:[%s7070_s1 + $0x8e4] ss:$8 sps:$4 sm:$0xff]   ;;  %v4897_v8 = vld [vmem:[%s7070_s1 + $0x1e0] ss:$8 sps:$4 sm:$0xff]  }
  0x45   :  { %3617 = vmatprep.subr.bf16.mxu0 %v4816_v9  ;;  %3153 = vmatprep.mubr.bf16.mxu1 %v4877_v22  ;;  %v4902_v9 = vld [vmem:[%s7070_s1 + $0x8e0] ss:$8 sps:$4 sm:$0xff]   ;;  %v4991_v22 = vld [vmem:[%s7071_s0 + $0xe4] ss:$108 sps:$4 sm:$0xff]  }
  0x46   :  { %3594 = vmatprep.mubr.bf16.mxu0 %v4882_v25  ;;  %v4928_v25 = vld [vmem:[%s7070_s1 + $0x910] ss:$8 sps:$4 sm:$0xff]  }
  0x47   :  { %3177 = vmatpush1.bf16.msra.mxu1 %v4811_v10  ;;  %v4909_v10 = vld [vmem:[%s7070_s1 + $0x1f4] ss:$8 sps:$4 sm:$0xff]  }
  0x48   :  { %3618 = vmatpush1.bf16.msra.mxu0 %v4814_v11  ;;  %3178 = vmatprep.subr.bf16.mxu1 %v4819_v12  ;;  %v4912_v11 = vld [vmem:[%s7070_s1 + $0x8f4] ss:$8 sps:$4 sm:$0xff]   ;;  %v4907_v12 = vld [vmem:[%s7070_s1 + $0x1f0] ss:$8 sps:$4 sm:$0xff]  }
  0x49   :  { %3619 = vmatprep.subr.bf16.mxu0 %v4822_v13  ;;  %v4910_v13 = vld [vmem:[%s7070_s1 + $0x8f0] ss:$8 sps:$4 sm:$0xff]  }
  0x4a   :  { %3154 = vmatmul.mubr.bf16.gmra.mrb[4].mxu1 %v4887_v28  ;;  %v4931_v28 = vld [vmem:[%s7070_s1 + $0x220] ss:$8 sps:$4 sm:$0xff]  }
  0x4b   :  { %3179 = vmatpush1.bf16.msra.mxu1 %v4817_v14  ;;  %3595 = vmatmul.mubr.bf16.gmra.mrb[4].mxu0 %v4888_v29  ;;  %v4918_v14 = vld [vmem:[%s7070_s1 + $0x204] ss:$8 sps:$4 sm:$0xff]   ;;  %v4934_v29 = vld [vmem:[%s7070_s1 + $0x920] ss:$8 sps:$4 sm:$0xff]  }
  0x4c   :  { %3620 = vmatpush1.bf16.msra.mxu0 %v4820_v15  ;;  %3180 = vmatprep.subr.bf16.mxu1 %v4825_v16  ;;  %v4924_v15 = vld [vmem:[%s7070_s1 + $0x904] ss:$8 sps:$4 sm:$0xff]   ;;  %v4913_v16 = vld [vmem:[%s7071_s0 + $0x8] ss:$108 sps:$4 sm:$0xff]  }
  0x4d   :  { %3621 = vmatprep.subr.bf16.mxu0 %v4828_v17  ;;  %3163 = vmatprep.mubr.bf16.mxu1 %v4895_v34  ;;  %v4916_v17 = vld [vmem:[%s7070_s1 + $0x200] ss:$8 sps:$4 sm:$0xff]  }
  0x4e   :  { %3604 = vmatprep.mubr.bf16.mxu0 %v4900_v37  ;;  %v5009_v34 = vld [vmem:[%s7071_s0 + $0x1bc] ss:$108 sps:$4 sm:$0xff]   ;;  %v4940_v37 = vld [vmem:[%s7070_s1 + $0x930] ss:$8 sps:$4 sm:$0xff]  }
  0x4f   :  { %3181 = vmatpush1.bf16.msra.mxu1 %v4823_v18  ;;  %v4919_v18 = vld [vmem:[%s7071_s0 + $0x40] ss:$108 sps:$4 sm:$0xff]  }
  0x50   :  { %3622 = vmatpush1.bf16.msra.mxu0 %v4826_v19  ;;  %3182 = vmatprep.subr.bf16.mxu1 %v4831_v20  ;;  %v4922_v19 = vld [vmem:[%s7070_s1 + $0x900] ss:$8 sps:$4 sm:$0xff]   ;;  %v4927_v20 = vld [vmem:[%s7070_s1 + $0x214] ss:$8 sps:$4 sm:$0xff]  }
  0x51   :  { %3623 = vmatprep.subr.bf16.mxu0 %v4834_v21  ;;  %v4930_v21 = vld [vmem:[%s7070_s1 + $0x914] ss:$8 sps:$4 sm:$0xff]  }
  0x52   :  { %3164 = vmatmul.mubr.bf16.gmra.mrb[8].mxu1 %v4905_v40  ;;  %v4943_v40 = vld [vmem:[%s7070_s1 + $0x240] ss:$8 sps:$4 sm:$0xff]  }
  0x53   :  { %3183 = vmatpush1.bf16.msra.mxu1 %v4829_v23  ;;  %3605 = vmatmul.mubr.bf16.gmra.mrb[8].mxu0 %v4906_v41  ;;  %v4996_v23 = vld [vmem:[%s7071_s0 + $0x11c] ss:$108 sps:$4 sm:$0xff]  }
  0x54   :  { %3624 = vmatpush1.bf16.msra.mxu0 %v4832_v24  ;;  %3184 = vmatprep.subr.bf16.mxu1 %v4837_v26  ;;  %v4925_v24 = vld [vmem:[%s7070_s1 + $0x210] ss:$8 sps:$4 sm:$0xff]   ;;  %v4933_v26 = vld [vmem:[%s7070_s1 + $0x224] ss:$8 sps:$4 sm:$0xff]   ;;  %v4946_v41 = vld [vmem:[%s7070_s1 + $0x940] ss:$8 sps:$4 sm:$0xff]  }
  0x55   :  { %3625 = vmatprep.subr.bf16.mxu0 %v4840_v27  ;;  %3206 = vmatprep.mubr.bf16.mxu1 %v4915_v47  ;;  %v4936_v27 = vld [vmem:[%s7070_s1 + $0x924] ss:$8 sps:$4 sm:$0xff]   ;;  %v5029_v47 = vld [vmem:[%s7071_s0 + $0x14] ss:$108 sps:$4 sm:$0xff]  }
  0x56   :  { %3647 = vmatprep.mubr.bf16.mxu0 %v4921_v51  ;;  %v4960_v51 = vld [vmem:[%s7070_s1 + $0x964] ss:$8 sps:$4 sm:$0xff]  }
  0x57   :  { %3185 = vmatpush1.bf16.msra.mxu1 %v4835_v30  ;;  %v5001_v30 = vld [vmem:[%s7071_s0 + $0xe0] ss:$108 sps:$4 sm:$0xff]  }
  0x58   :  { %3626 = vmatpush1.bf16.msra.mxu0 %v4838_v31  ;;  %3186 = vmatprep.subr.bf16.mxu1 %v4843_v32  ;;  %v5002_v31 = vld [vmem:[%s7071_s0 + $0x118] ss:$108 sps:$4 sm:$0xff]   ;;  %v4939_v32 = vld [vmem:[%s7070_s1 + $0x234] ss:$8 sps:$4 sm:$0xff]  }
  0x59   :  { %3627 = vmatprep.subr.bf16.mxu0 %v4846_v33  ;;  %v4942_v33 = vld [vmem:[%s7070_s1 + $0x934] ss:$8 sps:$4 sm:$0xff]  }
  0x5b   :  { %3187 = vmatpush1.bf16.msra.mxu1 %v4841_v35  ;;  %v5014_v35 = vld [vmem:[%s7071_s0 + $0x1f4] ss:$108 sps:$4 sm:$0xff]  }
  0x5c   :  { %3628 = vmatpush1.bf16.msra.mxu0 %v4844_v36  ;;  %3188 = vmatprep.subr.bf16.mxu1 %v4849_v38  ;;  %v4937_v36 = vld [vmem:[%s7070_s1 + $0x230] ss:$8 sps:$4 sm:$0xff]   ;;  %v4945_v38 = vld [vmem:[%s7070_s1 + $0x244] ss:$8 sps:$4 sm:$0xff]  }
  0x5d   :  { %3629 = vmatprep.subr.bf16.mxu0 %v4852_v39  ;;  %v4948_v39 = vld [vmem:[%s7070_s1 + $0x944] ss:$8 sps:$4 sm:$0xff]  }
  0x5f   :  { %3189 = vmatpush1.bf16.msra.mxu1 %v4847_v42  ;;  %v5019_v42 = vld [vmem:[%s7071_s0 + $0x1b8] ss:$108 sps:$4 sm:$0xff]  }
  0x60   :  { %3630 = vmatpush1.bf16.msra.mxu0 %v4850_v43  ;;  %3190 = vmatprep.subr.bf16.mxu1 %v4855_v44  ;;  %v5020_v43 = vld [vmem:[%s7071_s0 + $0x1f0] ss:$108 sps:$4 sm:$0xff]  }
  0x61   :  { %3631 = vmatprep.subr.bf16.mxu0 %v4858_v45  ;;  %v4951_v44 = vld [vmem:[%s7070_s1 + $0x254] ss:$8 sps:$4 sm:$0xff]  }
  0x62   :  { %v4954_v45 = vld [vmem:[%s7070_s1 + $0x954] ss:$8 sps:$4 sm:$0xff]  }
  0x63   :  { %3191 = vmatpush1.bf16.msra.mxu1 %v4853_v46  ;;  %v4949_v46 = vld [vmem:[%s7070_s1 + $0x250] ss:$8 sps:$4 sm:$0xff]  }
  0x64   :  { %3632 = vmatpush1.bf16.msra.mxu0 %v4856_v48  ;;  %3192 = vmatprep.subr.bf16.mxu1 %v4861_v49  ;;  %v4952_v48 = vld [vmem:[%s7070_s1 + $0x950] ss:$8 sps:$4 sm:$0xff]  }
  0x65   :  { %3633 = vmatprep.subr.bf16.mxu0 %v4864_v50  ;;  %v5035_v49 = vld [vmem:[%s7071_s0 + $0x4c] ss:$108 sps:$4 sm:$0xff]  }
  0x66   :  { %v4957_v50 = vld [vmem:[%s7070_s1 + $0x264] ss:$8 sps:$4 sm:$0xff]  }
  0x67   :  { %3193 = vmatpush1.bf16.msra.mxu1 %v4859_v52  ;;  %v4955_v52 = vld [vmem:[%s7070_s1 + $0x260] ss:$8 sps:$4 sm:$0xff]  }
  0x68   :  { %3634 = vmatpush1.bf16.msra.mxu0 %v4862_v53  ;;  %3194 = vmatprep.subr.bf16.mxu1 %v4867_v54  ;;  %v4958_v53 = vld [vmem:[%s7070_s1 + $0x960] ss:$8 sps:$4 sm:$0xff]   ;;  %v4963_v54 = vld [vmem:[%s7070_s1 + $0x274] ss:$8 sps:$4 sm:$0xff]  }
  0x69   :  { %3635 = vmatprep.subr.bf16.mxu0 %v4870_v55  ;;  %v4966_v55 = vld [vmem:[%s7070_s1 + $0x974] ss:$8 sps:$4 sm:$0xff]  }
  0x6b   :  { %3195 = vmatpush1.bf16.msra.mxu1 %v4865_v56  ;;  %v4961_v56 = vld [vmem:[%s7070_s1 + $0x270] ss:$8 sps:$4 sm:$0xff]  }
  0x6c   :  { %3636 = vmatpush1.bf16.msra.mxu0 %v4868_v57  ;;  %3196 = vmatprep.subr.bf16.mxu1 %v4873_v58  ;;  %v4964_v57 = vld [vmem:[%s7070_s1 + $0x970] ss:$8 sps:$4 sm:$0xff]   ;;  %v4969_v58 = vld [vmem:[%s7070_s1 + $0x284] ss:$8 sps:$4 sm:$0xff]  }
  0x6d   :  { %3637 = vmatprep.subr.bf16.mxu0 %v4876_v59  ;;  %v4972_v59 = vld [vmem:[%s7070_s1 + $0x984] ss:$8 sps:$4 sm:$0xff]  }
  0x6f   :  { %3197 = vmatpush1.bf16.msra.mxu1 %v4871_v60  ;;  %v4967_v60 = vld [vmem:[%s7070_s1 + $0x280] ss:$8 sps:$4 sm:$0xff]  }
  0x70   :  { %3638 = vmatpush1.bf16.msra.mxu0 %v4874_v61  ;;  %3198 = vmatprep.subr.bf16.mxu1 %v4881_v62  ;;  %v4970_v61 = vld [vmem:[%s7070_s1 + $0x980] ss:$8 sps:$4 sm:$0xff]   ;;  %v4975_v62 = vld [vmem:[%s7070_s1 + $0x294] ss:$8 sps:$4 sm:$0xff]  }
  0x71   :  { %3639 = vmatprep.subr.bf16.mxu0 %v4886_v63  ;;  %v4978_v63 = vld [vmem:[%s7070_s1 + $0x994] ss:$8 sps:$4 sm:$0xff]  }
  0x73   :  { %3199 = vmatpush1.bf16.msra.mxu1 %v4879_v0  ;;  %v4973_v0 = vld [vmem:[%s7070_s1 + $0x290] ss:$8 sps:$4 sm:$0xff]  }
  0x74   :  { %3640 = vmatpush1.bf16.msra.mxu0 %v4884_v1  ;;  %3200 = vmatprep.subr.bf16.mxu1 %v4891_v2  ;;  %v4976_v1 = vld [vmem:[%s7070_s1 + $0x990] ss:$8 sps:$4 sm:$0xff]   ;;  %v4981_v2 = vld [vmem:[%s7070_s1 + $0x2a4] ss:$8 sps:$4 sm:$0xff]  }
  0x75   :  { %3641 = vmatprep.subr.bf16.mxu0 %v4894_v3  ;;  %v4984_v3 = vld [vmem:[%s7070_s1 + $0x9a4] ss:$8 sps:$4 sm:$0xff]  }
  0x77   :  { %3201 = vmatpush1.bf16.msra.mxu1 %v4889_v4  ;;  %v4979_v4 = vld [vmem:[%s7070_s1 + $0x2a0] ss:$8 sps:$4 sm:$0xff]  }
  0x78   :  { %3642 = vmatpush1.bf16.msra.mxu0 %v4892_v5  ;;  %3202 = vmatprep.subr.bf16.mxu1 %v4899_v6  ;;  %v4982_v5 = vld [vmem:[%s7070_s1 + $0x9a0] ss:$8 sps:$4 sm:$0xff]   ;;  %v4987_v6 = vld [vmem:[%s7070_s1 + $0x2b4] ss:$8 sps:$4 sm:$0xff]  }
  0x79   :  { %3643 = vmatprep.subr.bf16.mxu0 %v4904_v7  ;;  %v4990_v7 = vld [vmem:[%s7070_s1 + $0x9b4] ss:$8 sps:$4 sm:$0xff]  }
  0x7b   :  { %3203 = vmatpush1.bf16.msra.mxu1 %v4897_v8  ;;  %v4985_v8 = vld [vmem:[%s7070_s1 + $0x2b0] ss:$8 sps:$4 sm:$0xff]  }
  0x7c   :  { %3644 = vmatpush1.bf16.msra.mxu0 %v4902_v9  ;;  %3204 = vmatprep.subr.bf16.mxu1 %v4909_v10  ;;  %v4988_v9 = vld [vmem:[%s7070_s1 + $0x9b0] ss:$8 sps:$4 sm:$0xff]   ;;  %v4995_v10 = vld [vmem:[%s7070_s1 + $0x2c4] ss:$8 sps:$4 sm:$0xff]  }
  0x7d   :  { %3645 = vmatprep.subr.bf16.mxu0 %v4912_v11  ;;  %v5000_v11 = vld [vmem:[%s7070_s1 + $0x9c4] ss:$8 sps:$4 sm:$0xff]  }
  0x7f   :  { %3205 = vmatpush1.bf16.msra.mxu1 %v4907_v12  ;;  %v4993_v12 = vld [vmem:[%s7070_s1 + $0x2c0] ss:$8 sps:$4 sm:$0xff]  }
  0x80   :  { %3646 = vmatpush1.bf16.msra.mxu0 %v4910_v13  ;;  %3237 = vmatprep.subr.bf16.mxu1 %v4918_v14  ;;  %v4998_v13 = vld [vmem:[%s7070_s1 + $0x9c0] ss:$8 sps:$4 sm:$0xff]   ;;  %v5005_v14 = vld [vmem:[%s7070_s1 + $0x2d4] ss:$8 sps:$4 sm:$0xff]  }
  0x81   :  { %3678 = vmatprep.subr.bf16.mxu0 %v4924_v15  ;;  %v5008_v15 = vld [vmem:[%s7070_s1 + $0x9d4] ss:$8 sps:$4 sm:$0xff]  }
  0x82   :  { %3207 = vmatmul.mubr.bf16.vlgmr.msra.gmra.mrb[0].mxu1 %v4913_v16  ;;  %v5003_v16 = vld [vmem:[%s7070_s1 + $0x2d0] ss:$8 sps:$4 sm:$0xff]  }
  0x83   :  { %3648 = vmatmul.mubr.bf16.vlgmr.msra.gmra.mrb[0].mxu0 %v4919_v18  ;;  %3238 = vmatpush1.bf16.msra.mxu1 %v4916_v17  ;;  %v5006_v17 = vld [vmem:[%s7070_s1 + $0x9d0] ss:$8 sps:$4 sm:$0xff]   ;;  %v5013_v18 = vld [vmem:[%s7070_s1 + $0x2e4] ss:$8 sps:$4 sm:$0xff]  }
  0x84   :  { %3679 = vmatpush1.bf16.msra.mxu0 %v4922_v19  ;;  %3239 = vmatprep.subr.bf16.mxu1 %v4927_v20  ;;  %v5018_v19 = vld [vmem:[%s7070_s1 + $0x9e4] ss:$8 sps:$4 sm:$0xff]   ;;  %v5011_v20 = vld [vmem:[%s7070_s1 + $0x2e0] ss:$8 sps:$4 sm:$0xff]  }
  0x85   :  { %3680 = vmatprep.subr.bf16.mxu0 %v4930_v21  ;;  %3216 = vmatprep.mubr.bf16.mxu1 %v4991_v22  ;;  %v5016_v21 = vld [vmem:[%s7070_s1 + $0x9e0] ss:$8 sps:$4 sm:$0xff]   ;;  %v5023_v22 = vld [vmem:[%s7070_s1 + $0x2f4] ss:$8 sps:$4 sm:$0xff]  }
  0x86   :  { %3657 = vmatprep.mubr.bf16.mxu0 %v4996_v23  ;;  %v5026_v23 = vld [vmem:[%s7070_s1 + $0x9f4] ss:$8 sps:$4 sm:$0xff]  }
  0x87   :  { %3240 = vmatpush1.bf16.msra.mxu1 %v4925_v24  ;;  %v5021_v24 = vld [vmem:[%s7070_s1 + $0x2f0] ss:$8 sps:$4 sm:$0xff]  }
  0x88   :  { %3681 = vmatpush1.bf16.msra.mxu0 %v4928_v25  ;;  %3241 = vmatprep.subr.bf16.mxu1 %v4933_v26  ;;  %v5024_v25 = vld [vmem:[%s7070_s1 + $0x9f0] ss:$8 sps:$4 sm:$0xff]   ;;  %v5032_v26 = vld [vmem:[%s7070_s1 + $0x304] ss:$8 sps:$4 sm:$0xff]  }
  0x89   :  { %3682 = vmatprep.subr.bf16.mxu0 %v4936_v27  ;;  %v5038_v27 = vld [vmem:[%s7070_s1 + $0xa04] ss:$8 sps:$4 sm:$0xff]  }
  0x8a   :  { %3217 = vmatmul.mubr.bf16.gmra.mrb[4].mxu1 %v5001_v30  ;;  %v5033_v30 = vld [vmem:[%s7071_s0 + $0x48] ss:$108 sps:$4 sm:$0xff]  }
  0x8b   :  { %3658 = vmatmul.mubr.bf16.gmra.mrb[4].mxu0 %v5002_v31  ;;  %3242 = vmatpush1.bf16.msra.mxu1 %v4931_v28  ;;  %v5027_v28 = vld [vmem:[%s7071_s0 + $0x10] ss:$108 sps:$4 sm:$0xff]   ;;  %v5036_v31 = vld [vmem:[%s7070_s1 + $0xa00] ss:$8 sps:$4 sm:$0xff]  }
  0x8c   :  { %3683 = vmatpush1.bf16.msra.mxu0 %v4934_v29  ;;  %3243 = vmatprep.subr.bf16.mxu1 %v4939_v32  ;;  %v5030_v29 = vld [vmem:[%s7070_s1 + $0x300] ss:$8 sps:$4 sm:$0xff]   ;;  %v5041_v32 = vld [vmem:[%s7070_s1 + $0x314] ss:$8 sps:$4 sm:$0xff]  }
  0x8d   :  { %3684 = vmatprep.subr.bf16.mxu0 %v4942_v33  ;;  %3226 = vmatprep.mubr.bf16.mxu1 %v5009_v34  ;;  %v5044_v33 = vld [vmem:[%s7070_s1 + $0xa14] ss:$8 sps:$4 sm:$0xff]   ;;  %v5105_v34 = vld [vmem:[%s7071_s0 + $0xec] ss:$108 sps:$4 sm:$0xff]  }
  0x8e   :  { %3667 = vmatprep.mubr.bf16.mxu0 %v5014_v35  ;;  %v5110_v35 = vld [vmem:[%s7071_s0 + $0x124] ss:$108 sps:$4 sm:$0xff]  }
  0x8f   :  { %3244 = vmatpush1.bf16.msra.mxu1 %v4937_v36  ;;  %v5039_v36 = vld [vmem:[%s7070_s1 + $0x310] ss:$8 sps:$4 sm:$0xff]  }
  0x90   :  { %3685 = vmatpush1.bf16.msra.mxu0 %v4940_v37  ;;  %3245 = vmatprep.subr.bf16.mxu1 %v4945_v38  ;;  %v5042_v37 = vld [vmem:[%s7070_s1 + $0xa10] ss:$8 sps:$4 sm:$0xff]   ;;  %v5047_v38 = vld [vmem:[%s7070_s1 + $0x324] ss:$8 sps:$4 sm:$0xff]  }
  0x91   :  { %3686 = vmatprep.subr.bf16.mxu0 %v4948_v39  ;;  %v5050_v39 = vld [vmem:[%s7070_s1 + $0xa24] ss:$8 sps:$4 sm:$0xff]  }
  0x92   :  { %3227 = vmatmul.mubr.bf16.gmra.mrb[8].mxu1 %v5019_v42  ;;  %v5115_v42 = vld [vmem:[%s7071_s0 + $0xe8] ss:$108 sps:$4 sm:$0xff]  }
  0x93   :  { %3668 = vmatmul.mubr.bf16.gmra.mrb[8].mxu0 %v5020_v43  ;;  %3246 = vmatpush1.bf16.msra.mxu1 %v4943_v40  ;;  %v5045_v40 = vld [vmem:[%s7070_s1 + $0x320] ss:$8 sps:$4 sm:$0xff]  }
  0x94   :  { %3687 = vmatpush1.bf16.msra.mxu0 %v4946_v41  ;;  %3247 = vmatprep.subr.bf16.mxu1 %v4951_v44  ;;  %v5048_v41 = vld [vmem:[%s7070_s1 + $0xa20] ss:$8 sps:$4 sm:$0xff]   ;;  %v5053_v44 = vld [vmem:[%s7070_s1 + $0x334] ss:$8 sps:$4 sm:$0xff]  }
  0x95   :  { %3688 = vmatprep.subr.bf16.mxu0 %v4954_v45  ;;  %3269 = vmatprep.mubr.bf16.mxu1 %v5029_v47  ;;  %v5116_v43 = vld [vmem:[%s7071_s0 + $0x120] ss:$108 sps:$4 sm:$0xff]   ;;  %v5056_v45 = vld [vmem:[%s7070_s1 + $0xa34] ss:$8 sps:$4 sm:$0xff]  }
  0x96   :  { %3710 = vmatprep.mubr.bf16.mxu0 %v5035_v49  ;;  %v5128_v47 = vld [vmem:[%s7071_s0 + $0x1fc] ss:$108 sps:$4 sm:$0xff]   ;;  %v5054_v49 = vld [vmem:[%s7070_s1 + $0xa30] ss:$8 sps:$4 sm:$0xff]  }
  0x97   :  { %3248 = vmatpush1.bf16.msra.mxu1 %v4949_v46  ;;  %v5123_v46 = vld [vmem:[%s7071_s0 + $0x1c4] ss:$108 sps:$4 sm:$0xff]  }
  0x98   :  { %3689 = vmatpush1.bf16.msra.mxu0 %v4952_v48  ;;  %3249 = vmatprep.subr.bf16.mxu1 %v4957_v50  ;;  %v5051_v48 = vld [vmem:[%s7070_s1 + $0x330] ss:$8 sps:$4 sm:$0xff]   ;;  %v5059_v50 = vld [vmem:[%s7070_s1 + $0x344] ss:$8 sps:$4 sm:$0xff]  }
  0x99   :  { %3690 = vmatprep.subr.bf16.mxu0 %v4960_v51  ;;  %v5062_v51 = vld [vmem:[%s7070_s1 + $0xa44] ss:$8 sps:$4 sm:$0xff]  }
  0x9b   :  { %3250 = vmatpush1.bf16.msra.mxu1 %v4955_v52  ;;  %v5057_v52 = vld [vmem:[%s7070_s1 + $0x340] ss:$8 sps:$4 sm:$0xff]  }
  0x9c   :  { %3691 = vmatpush1.bf16.msra.mxu0 %v4958_v53  ;;  %3251 = vmatprep.subr.bf16.mxu1 %v4963_v54  ;;  %v5060_v53 = vld [vmem:[%s7070_s1 + $0xa40] ss:$8 sps:$4 sm:$0xff]  }
  0x9d   :  { %3692 = vmatprep.subr.bf16.mxu0 %v4966_v55  ;;  %v5133_v54 = vld [vmem:[%s7071_s0 + $0x1c0] ss:$108 sps:$4 sm:$0xff]   ;;  %v5134_v55 = vld [vmem:[%s7071_s0 + $0x1f8] ss:$108 sps:$4 sm:$0xff]  }
  0x9f   :  { %3252 = vmatpush1.bf16.msra.mxu1 %v4961_v56  ;;  %v5065_v56 = vld [vmem:[%s7070_s1 + $0x354] ss:$8 sps:$4 sm:$0xff]  }
  0xa0   :  { %3693 = vmatpush1.bf16.msra.mxu0 %v4964_v57  ;;  %3253 = vmatprep.subr.bf16.mxu1 %v4969_v58  ;;  %v5068_v57 = vld [vmem:[%s7070_s1 + $0xa54] ss:$8 sps:$4 sm:$0xff]  }
  0xa1   :  { %3694 = vmatprep.subr.bf16.mxu0 %v4972_v59  ;;  %v5143_v58 = vld [vmem:[%s7071_s0 + $0x1c] ss:$108 sps:$4 sm:$0xff]   ;;  %v5149_v59 = vld [vmem:[%s7071_s0 + $0x54] ss:$108 sps:$4 sm:$0xff]  }
  0xa3   :  { %3254 = vmatpush1.bf16.msra.mxu1 %v4967_v60  ;;  %v5063_v60 = vld [vmem:[%s7070_s1 + $0x350] ss:$8 sps:$4 sm:$0xff]  }
  0xa4   :  { %3695 = vmatpush1.bf16.msra.mxu0 %v4970_v61  ;;  %3255 = vmatprep.subr.bf16.mxu1 %v4975_v62  ;;  %v5066_v61 = vld [vmem:[%s7070_s1 + $0xa50] ss:$8 sps:$4 sm:$0xff]   ;;  %v5071_v62 = vld [vmem:[%s7070_s1 + $0x364] ss:$8 sps:$4 sm:$0xff]  }
  0xa5   :  { %3696 = vmatprep.subr.bf16.mxu0 %v4978_v63  ;;  %v5074_v63 = vld [vmem:[%s7070_s1 + $0xa64] ss:$8 sps:$4 sm:$0xff]  }
  0xa7   :  { %3256 = vmatpush1.bf16.msra.mxu1 %v4973_v0  ;;  %v5069_v0 = vld [vmem:[%s7070_s1 + $0x360] ss:$8 sps:$4 sm:$0xff]  }
  0xa8   :  { %3697 = vmatpush1.bf16.msra.mxu0 %v4976_v1  ;;  %3257 = vmatprep.subr.bf16.mxu1 %v4981_v2  ;;  %v5072_v1 = vld [vmem:[%s7070_s1 + $0xa60] ss:$8 sps:$4 sm:$0xff]   ;;  %v5077_v2 = vld [vmem:[%s7070_s1 + $0x374] ss:$8 sps:$4 sm:$0xff]  }
  0xa9   :  { %3698 = vmatprep.subr.bf16.mxu0 %v4984_v3  ;;  %v5080_v3 = vld [vmem:[%s7070_s1 + $0xa74] ss:$8 sps:$4 sm:$0xff]  }
  0xab   :  { %3258 = vmatpush1.bf16.msra.mxu1 %v4979_v4  ;;  %v5075_v4 = vld [vmem:[%s7070_s1 + $0x370] ss:$8 sps:$4 sm:$0xff]  }
  0xac   :  { %3699 = vmatpush1.bf16.msra.mxu0 %v4982_v5  ;;  %3259 = vmatprep.subr.bf16.mxu1 %v4987_v6  ;;  %v5078_v5 = vld [vmem:[%s7070_s1 + $0xa70] ss:$8 sps:$4 sm:$0xff]   ;;  %v5083_v6 = vld [vmem:[%s7070_s1 + $0x384] ss:$8 sps:$4 sm:$0xff]  }
  0xad   :  { %3700 = vmatprep.subr.bf16.mxu0 %v4990_v7  ;;  %v5086_v7 = vld [vmem:[%s7070_s1 + $0xa84] ss:$8 sps:$4 sm:$0xff]  }
  0xaf   :  { %3260 = vmatpush1.bf16.msra.mxu1 %v4985_v8  ;;  %v5081_v8 = vld [vmem:[%s7070_s1 + $0x380] ss:$8 sps:$4 sm:$0xff]  }
  0xb0   :  { %3701 = vmatpush1.bf16.msra.mxu0 %v4988_v9  ;;  %3261 = vmatprep.subr.bf16.mxu1 %v4995_v10  ;;  %v5084_v9 = vld [vmem:[%s7070_s1 + $0xa80] ss:$8 sps:$4 sm:$0xff]   ;;  %v5089_v10 = vld [vmem:[%s7070_s1 + $0x394] ss:$8 sps:$4 sm:$0xff]  }
  0xb1   :  { %3702 = vmatprep.subr.bf16.mxu0 %v5000_v11  ;;  %v5092_v11 = vld [vmem:[%s7070_s1 + $0xa94] ss:$8 sps:$4 sm:$0xff]  }
  0xb3   :  { %3262 = vmatpush1.bf16.msra.mxu1 %v4993_v12  ;;  %v5087_v12 = vld [vmem:[%s7070_s1 + $0x390] ss:$8 sps:$4 sm:$0xff]  }
  0xb4   :  { %3703 = vmatpush1.bf16.msra.mxu0 %v4998_v13  ;;  %3263 = vmatprep.subr.bf16.mxu1 %v5005_v14  ;;  %v5090_v13 = vld [vmem:[%s7070_s1 + $0xa90] ss:$8 sps:$4 sm:$0xff]   ;;  %v5095_v14 = vld [vmem:[%s7070_s1 + $0x3a4] ss:$8 sps:$4 sm:$0xff]  }
  0xb5   :  { %3704 = vmatprep.subr.bf16.mxu0 %v5008_v15  ;;  %v5098_v15 = vld [vmem:[%s7070_s1 + $0xaa4] ss:$8 sps:$4 sm:$0xff]  }
  0xb7   :  { %3264 = vmatpush1.bf16.msra.mxu1 %v5003_v16  ;;  %v5093_v16 = vld [vmem:[%s7070_s1 + $0x3a0] ss:$8 sps:$4 sm:$0xff]  }
  0xb8   :  { %3705 = vmatpush1.bf16.msra.mxu0 %v5006_v17  ;;  %3265 = vmatprep.subr.bf16.mxu1 %v5013_v18  ;;  %v5096_v17 = vld [vmem:[%s7070_s1 + $0xaa0] ss:$8 sps:$4 sm:$0xff]   ;;  %v5101_v18 = vld [vmem:[%s7070_s1 + $0x3b4] ss:$8 sps:$4 sm:$0xff]  }
  0xb9   :  { %3706 = vmatprep.subr.bf16.mxu0 %v5018_v19  ;;  %v5104_v19 = vld [vmem:[%s7070_s1 + $0xab4] ss:$8 sps:$4 sm:$0xff]  }
  0xbb   :  { %3266 = vmatpush1.bf16.msra.mxu1 %v5011_v20  ;;  %v5099_v20 = vld [vmem:[%s7070_s1 + $0x3b0] ss:$8 sps:$4 sm:$0xff]  }
  0xbc   :  { %3707 = vmatpush1.bf16.msra.mxu0 %v5016_v21  ;;  %3267 = vmatprep.subr.bf16.mxu1 %v5023_v22  ;;  %v5102_v21 = vld [vmem:[%s7070_s1 + $0xab0] ss:$8 sps:$4 sm:$0xff]   ;;  %v5109_v22 = vld [vmem:[%s7070_s1 + $0x3c4] ss:$8 sps:$4 sm:$0xff]  }
  0xbd   :  { %3708 = vmatprep.subr.bf16.mxu0 %v5026_v23  ;;  %v5114_v23 = vld [vmem:[%s7070_s1 + $0xac4] ss:$8 sps:$4 sm:$0xff]  }
  0xbf   :  { %3268 = vmatpush1.bf16.msra.mxu1 %v5021_v24  ;;  %v5107_v24 = vld [vmem:[%s7070_s1 + $0x3c0] ss:$8 sps:$4 sm:$0xff]  }
  0xc0   :  { %3709 = vmatpush1.bf16.msra.mxu0 %v5024_v25  ;;  %3300 = vmatprep.subr.bf16.mxu1 %v5032_v26  ;;  %v5112_v25 = vld [vmem:[%s7070_s1 + $0xac0] ss:$8 sps:$4 sm:$0xff]   ;;  %v5119_v26 = vld [vmem:[%s7070_s1 + $0x3d4] ss:$8 sps:$4 sm:$0xff]  }
  0xc1   :  { %3741 = vmatprep.subr.bf16.mxu0 %v5038_v27  ;;  %v5122_v27 = vld [vmem:[%s7070_s1 + $0xad4] ss:$8 sps:$4 sm:$0xff]  }
  0xc2   :  { %3270 = vmatmul.mubr.bf16.vlgmr.msra.gmra.mrb[0].mxu1 %v5027_v28  ;;  %v5117_v28 = vld [vmem:[%s7070_s1 + $0x3d0] ss:$8 sps:$4 sm:$0xff]  }
  0xc3   :  { %3711 = vmatmul.mubr.bf16.vlgmr.msra.gmra.mrb[0].mxu0 %v5033_v30  ;;  %3301 = vmatpush1.bf16.msra.mxu1 %v5030_v29  ;;  %v5120_v29 = vld [vmem:[%s7070_s1 + $0xad0] ss:$8 sps:$4 sm:$0xff]   ;;  %v5127_v30 = vld [vmem:[%s7070_s1 + $0x3e4] ss:$8 sps:$4 sm:$0xff]  }
  0xc4   :  { %3742 = vmatpush1.bf16.msra.mxu0 %v5036_v31  ;;  %3302 = vmatprep.subr.bf16.mxu1 %v5041_v32  ;;  %v5132_v31 = vld [vmem:[%s7070_s1 + $0xae4] ss:$8 sps:$4 sm:$0xff]   ;;  %v5125_v32 = vld [vmem:[%s7070_s1 + $0x3e0] ss:$8 sps:$4 sm:$0xff]  }
  0xc5   :  { %3743 = vmatprep.subr.bf16.mxu0 %v5044_v33  ;;  %3279 = vmatprep.mubr.bf16.mxu1 %v5105_v34  ;;  %v5130_v33 = vld [vmem:[%s7070_s1 + $0xae0] ss:$8 sps:$4 sm:$0xff]   ;;  %v5137_v34 = vld [vmem:[%s7070_s1 + $0x3f4] ss:$8 sps:$4 sm:$0xff]  }
  0xc6   :  { %3720 = vmatprep.mubr.bf16.mxu0 %v5110_v35  ;;  %v5140_v35 = vld [vmem:[%s7070_s1 + $0xaf4] ss:$8 sps:$4 sm:$0xff]  }
  0xc7   :  { %3303 = vmatpush1.bf16.msra.mxu1 %v5039_v36  ;;  %v5135_v36 = vld [vmem:[%s7070_s1 + $0x3f0] ss:$8 sps:$4 sm:$0xff]  }
  0xc8   :  { %3744 = vmatpush1.bf16.msra.mxu0 %v5042_v37  ;;  %3304 = vmatprep.subr.bf16.mxu1 %v5047_v38  ;;  %v5138_v37 = vld [vmem:[%s7070_s1 + $0xaf0] ss:$8 sps:$4 sm:$0xff]   ;;  %v5146_v38 = vld [vmem:[%s7070_s1 + $0x404] ss:$8 sps:$4 sm:$0xff]  }
  0xc9   :  { %3745 = vmatprep.subr.bf16.mxu0 %v5050_v39  ;;  %v5152_v39 = vld [vmem:[%s7070_s1 + $0xb04] ss:$8 sps:$4 sm:$0xff]  }
  0xca   :  { %3280 = vmatmul.mubr.bf16.gmra.mrb[4].mxu1 %v5115_v42  ;;  %v5147_v42 = vld [vmem:[%s7071_s0 + $0x50] ss:$108 sps:$4 sm:$0xff]  }
  0xcb   :  { %3721 = vmatmul.mubr.bf16.gmra.mrb[4].mxu0 %v5116_v43  ;;  %3305 = vmatpush1.bf16.msra.mxu1 %v5045_v40  ;;  %v5141_v40 = vld [vmem:[%s7071_s0 + $0x18] ss:$108 sps:$4 sm:$0xff]   ;;  %v5150_v43 = vld [vmem:[%s7070_s1 + $0xb00] ss:$8 sps:$4 sm:$0xff]  }
  0xcc   :  { %3746 = vmatpush1.bf16.msra.mxu0 %v5048_v41  ;;  %3306 = vmatprep.subr.bf16.mxu1 %v5053_v44  ;;  %v5144_v41 = vld [vmem:[%s7070_s1 + $0x400] ss:$8 sps:$4 sm:$0xff]   ;;  %v5155_v44 = vld [vmem:[%s7070_s1 + $0x414] ss:$8 sps:$4 sm:$0xff]  }
  0xcd   :  { %3747 = vmatprep.subr.bf16.mxu0 %v5056_v45  ;;  %3289 = vmatprep.mubr.bf16.mxu1 %v5123_v46  ;;  %v5158_v45 = vld [vmem:[%s7070_s1 + $0xb14] ss:$8 sps:$4 sm:$0xff]  }
  0xce   :  { %3730 = vmatprep.mubr.bf16.mxu0 %v5128_v47  ;;  %v5219_v46 = vld [vmem:[%s7071_s0 + $0xf4] ss:$108 sps:$4 sm:$0xff]   ;;  %v5224_v47 = vld [vmem:[%s7071_s0 + $0x12c] ss:$108 sps:$4 sm:$0xff]  }
  0xcf   :  { %3307 = vmatpush1.bf16.msra.mxu1 %v5051_v48  ;;  %v5153_v48 = vld [vmem:[%s7070_s1 + $0x410] ss:$8 sps:$4 sm:$0xff]  }
  0xd0   :  { %3748 = vmatpush1.bf16.msra.mxu0 %v5054_v49  ;;  %3308 = vmatprep.subr.bf16.mxu1 %v5059_v50  ;;  %v5156_v49 = vld [vmem:[%s7070_s1 + $0xb10] ss:$8 sps:$4 sm:$0xff]   ;;  %v5161_v50 = vld [vmem:[%s7070_s1 + $0x424] ss:$8 sps:$4 sm:$0xff]  }
  0xd1   :  { %3749 = vmatprep.subr.bf16.mxu0 %v5062_v51  ;;  %v5164_v51 = vld [vmem:[%s7070_s1 + $0xb24] ss:$8 sps:$4 sm:$0xff]  }
  0xd2   :  { %3290 = vmatmul.mubr.bf16.gmra.mrb[8].mxu1 %v5133_v54  ;;  %v5229_v54 = vld [vmem:[%s7071_s0 + $0xf0] ss:$108 sps:$4 sm:$0xff]  }
  0xd3   :  { %3731 = vmatmul.mubr.bf16.gmra.mrb[8].mxu0 %v5134_v55  ;;  %3309 = vmatpush1.bf16.msra.mxu1 %v5057_v52  ;;  %v5159_v52 = vld [vmem:[%s7070_s1 + $0x420] ss:$8 sps:$4 sm:$0xff]  }
  0xd4   :  { %3750 = vmatpush1.bf16.msra.mxu0 %v5060_v53  ;;  %3310 = vmatprep.subr.bf16.mxu1 %v5065_v56  ;;  %v5162_v53 = vld [vmem:[%s7070_s1 + $0xb20] ss:$8 sps:$4 sm:$0xff]   ;;  %v5167_v56 = vld [vmem:[%s7070_s1 + $0x434] ss:$8 sps:$4 sm:$0xff]  }
  0xd5   :  { %3751 = vmatprep.subr.bf16.mxu0 %v5068_v57  ;;  %3332 = vmatprep.mubr.bf16.mxu1 %v5143_v58  ;;  %v5230_v55 = vld [vmem:[%s7071_s0 + $0x128] ss:$108 sps:$4 sm:$0xff]   ;;  %v5237_v58 = vld [vmem:[%s7071_s0 + $0x1cc] ss:$108 sps:$4 sm:$0xff]  }
  0xd6   :  { %3773 = vmatprep.mubr.bf16.mxu0 %v5149_v59  ;;  %v5170_v57 = vld [vmem:[%s7070_s1 + $0xb34] ss:$8 sps:$4 sm:$0xff]   ;;  %v5242_v59 = vld [vmem:[%s7071_s0 + $0x204] ss:$108 sps:$4 sm:$0xff]  }
  0xd7   :  { %3311 = vmatpush1.bf16.msra.mxu1 %v5063_v60  ;;  %v5165_v60 = vld [vmem:[%s7070_s1 + $0x430] ss:$8 sps:$4 sm:$0xff]  }
  0xd8   :  { %3752 = vmatpush1.bf16.msra.mxu0 %v5066_v61  ;;  %3312 = vmatprep.subr.bf16.mxu1 %v5071_v62  ;;  %v5168_v61 = vld [vmem:[%s7070_s1 + $0xb30] ss:$8 sps:$4 sm:$0xff]   ;;  %v5173_v62 = vld [vmem:[%s7070_s1 + $0x444] ss:$8 sps:$4 sm:$0xff]  }
  0xd9   :  { %3753 = vmatprep.subr.bf16.mxu0 %v5074_v63  ;;  %v5176_v63 = vld [vmem:[%s7070_s1 + $0xb44] ss:$8 sps:$4 sm:$0xff]  }
  0xdb   :  { %3313 = vmatpush1.bf16.msra.mxu1 %v5069_v0  ;;  %v5171_v0 = vld [vmem:[%s7070_s1 + $0x440] ss:$8 sps:$4 sm:$0xff]  }
  0xdc   :  { %3754 = vmatpush1.bf16.msra.mxu0 %v5072_v1  ;;  %3314 = vmatprep.subr.bf16.mxu1 %v5077_v2  ;;  %v5174_v1 = vld [vmem:[%s7070_s1 + $0xb40] ss:$8 sps:$4 sm:$0xff]  }
  0xdd   :  { %3755 = vmatprep.subr.bf16.mxu0 %v5080_v3  ;;  %v5247_v2 = vld [vmem:[%s7071_s0 + $0x1c8] ss:$108 sps:$4 sm:$0xff]   ;;  %v5248_v3 = vld [vmem:[%s7071_s0 + $0x200] ss:$108 sps:$4 sm:$0xff]  }
  0xdf   :  { %3315 = vmatpush1.bf16.msra.mxu1 %v5075_v4  ;;  %v5179_v4 = vld [vmem:[%s7070_s1 + $0x454] ss:$8 sps:$4 sm:$0xff]  }
  0xe0   :  { %3756 = vmatpush1.bf16.msra.mxu0 %v5078_v5  ;;  %3316 = vmatprep.subr.bf16.mxu1 %v5083_v6  ;;  %v5182_v5 = vld [vmem:[%s7070_s1 + $0xb54] ss:$8 sps:$4 sm:$0xff]   ;;  %v5257_v6 = vld [vmem:[%s7071_s0 + $0x24] ss:$108 sps:$4 sm:$0xff]  }
  0xe1   :  { %3757 = vmatprep.subr.bf16.mxu0 %v5086_v7  ;;  %v5263_v7 = vld [vmem:[%s7071_s0 + $0x5c] ss:$108 sps:$4 sm:$0xff]  }
  0xe3   :  { %3317 = vmatpush1.bf16.msra.mxu1 %v5081_v8  ;;  %v5177_v8 = vld [vmem:[%s7070_s1 + $0x450] ss:$8 sps:$4 sm:$0xff]  }
  0xe4   :  { %3758 = vmatpush1.bf16.msra.mxu0 %v5084_v9  ;;  %3318 = vmatprep.subr.bf16.mxu1 %v5089_v10  ;;  %v5180_v9 = vld [vmem:[%s7070_s1 + $0xb50] ss:$8 sps:$4 sm:$0xff]   ;;  %v5185_v10 = vld [vmem:[%s7070_s1 + $0x464] ss:$8 sps:$4 sm:$0xff]  }
  0xe5   :  { %3759 = vmatprep.subr.bf16.mxu0 %v5092_v11  ;;  %v5188_v11 = vld [vmem:[%s7070_s1 + $0xb64] ss:$8 sps:$4 sm:$0xff]  }
  0xe7   :  { %3319 = vmatpush1.bf16.msra.mxu1 %v5087_v12  ;;  %v5183_v12 = vld [vmem:[%s7070_s1 + $0x460] ss:$8 sps:$4 sm:$0xff]  }
  0xe8   :  { %3760 = vmatpush1.bf16.msra.mxu0 %v5090_v13  ;;  %3320 = vmatprep.subr.bf16.mxu1 %v5095_v14  ;;  %v5186_v13 = vld [vmem:[%s7070_s1 + $0xb60] ss:$8 sps:$4 sm:$0xff]   ;;  %v5191_v14 = vld [vmem:[%s7070_s1 + $0x474] ss:$8 sps:$4 sm:$0xff]  }
  0xe9   :  { %3761 = vmatprep.subr.bf16.mxu0 %v5098_v15  ;;  %v5194_v15 = vld [vmem:[%s7070_s1 + $0xb74] ss:$8 sps:$4 sm:$0xff]  }
  0xeb   :  { %3321 = vmatpush1.bf16.msra.mxu1 %v5093_v16  ;;  %v5189_v16 = vld [vmem:[%s7070_s1 + $0x470] ss:$8 sps:$4 sm:$0xff]  }
  0xec   :  { %3762 = vmatpush1.bf16.msra.mxu0 %v5096_v17  ;;  %3322 = vmatprep.subr.bf16.mxu1 %v5101_v18  ;;  %v5192_v17 = vld [vmem:[%s7070_s1 + $0xb70] ss:$8 sps:$4 sm:$0xff]   ;;  %v5197_v18 = vld [vmem:[%s7070_s1 + $0x484] ss:$8 sps:$4 sm:$0xff]  }
  0xed   :  { %3763 = vmatprep.subr.bf16.mxu0 %v5104_v19  ;;  %v5200_v19 = vld [vmem:[%s7070_s1 + $0xb84] ss:$8 sps:$4 sm:$0xff]  }
  0xef   :  { %3323 = vmatpush1.bf16.msra.mxu1 %v5099_v20  ;;  %v5195_v20 = vld [vmem:[%s7070_s1 + $0x480] ss:$8 sps:$4 sm:$0xff]  }
  0xf0   :  { %3764 = vmatpush1.bf16.msra.mxu0 %v5102_v21  ;;  %3324 = vmatprep.subr.bf16.mxu1 %v5109_v22  ;;  %v5198_v21 = vld [vmem:[%s7070_s1 + $0xb80] ss:$8 sps:$4 sm:$0xff]   ;;  %v5203_v22 = vld [vmem:[%s7070_s1 + $0x494] ss:$8 sps:$4 sm:$0xff]  }
  0xf1   :  { %3765 = vmatprep.subr.bf16.mxu0 %v5114_v23  ;;  %v5206_v23 = vld [vmem:[%s7070_s1 + $0xb94] ss:$8 sps:$4 sm:$0xff]  }
  0xf3   :  { %3325 = vmatpush1.bf16.msra.mxu1 %v5107_v24  ;;  %v5201_v24 = vld [vmem:[%s7070_s1 + $0x490] ss:$8 sps:$4 sm:$0xff]  }
  0xf4   :  { %3766 = vmatpush1.bf16.msra.mxu0 %v5112_v25  ;;  %3326 = vmatprep.subr.bf16.mxu1 %v5119_v26  ;;  %v5204_v25 = vld [vmem:[%s7070_s1 + $0xb90] ss:$8 sps:$4 sm:$0xff]   ;;  %v5209_v26 = vld [vmem:[%s7070_s1 + $0x4a4] ss:$8 sps:$4 sm:$0xff]  }
  0xf5   :  { %3767 = vmatprep.subr.bf16.mxu0 %v5122_v27  ;;  %v5212_v27 = vld [vmem:[%s7070_s1 + $0xba4] ss:$8 sps:$4 sm:$0xff]  }
  0xf7   :  { %3327 = vmatpush1.bf16.msra.mxu1 %v5117_v28  ;;  %v5207_v28 = vld [vmem:[%s7070_s1 + $0x4a0] ss:$8 sps:$4 sm:$0xff]  }
  0xf8   :  { %3768 = vmatpush1.bf16.msra.mxu0 %v5120_v29  ;;  %3328 = vmatprep.subr.bf16.mxu1 %v5127_v30  ;;  %v5210_v29 = vld [vmem:[%s7070_s1 + $0xba0] ss:$8 sps:$4 sm:$0xff]   ;;  %v5215_v30 = vld [vmem:[%s7070_s1 + $0x4b4] ss:$8 sps:$4 sm:$0xff]  }
  0xf9   :  { %3769 = vmatprep.subr.bf16.mxu0 %v5132_v31  ;;  %v5218_v31 = vld [vmem:[%s7070_s1 + $0xbb4] ss:$8 sps:$4 sm:$0xff]  }
  0xfb   :  { %3329 = vmatpush1.bf16.msra.mxu1 %v5125_v32  ;;  %v5213_v32 = vld [vmem:[%s7070_s1 + $0x4b0] ss:$8 sps:$4 sm:$0xff]  }
  0xfc   :  { %3770 = vmatpush1.bf16.msra.mxu0 %v5130_v33  ;;  %3330 = vmatprep.subr.bf16.mxu1 %v5137_v34  ;;  %v5216_v33 = vld [vmem:[%s7070_s1 + $0xbb0] ss:$8 sps:$4 sm:$0xff]   ;;  %v5223_v34 = vld [vmem:[%s7070_s1 + $0x4c4] ss:$8 sps:$4 sm:$0xff]  }
  0xfd   :  { %3771 = vmatprep.subr.bf16.mxu0 %v5140_v35  ;;  %v5228_v35 = vld [vmem:[%s7070_s1 + $0xbc4] ss:$8 sps:$4 sm:$0xff]  }
  0xff   :  { %3331 = vmatpush1.bf16.msra.mxu1 %v5135_v36  ;;  %v5221_v36 = vld [vmem:[%s7070_s1 + $0x4c0] ss:$8 sps:$4 sm:$0xff]  }
 0x100   :  { %3772 = vmatpush1.bf16.msra.mxu0 %v5138_v37  ;;  %3363 = vmatprep.subr.bf16.mxu1 %v5146_v38  ;;  %v5226_v37 = vld [vmem:[%s7070_s1 + $0xbc0] ss:$8 sps:$4 sm:$0xff]   ;;  %v5233_v38 = vld [vmem:[%s7070_s1 + $0x4d4] ss:$8 sps:$4 sm:$0xff]  }
 0x101   :  { %3804 = vmatprep.subr.bf16.mxu0 %v5152_v39  ;;  %v5236_v39 = vld [vmem:[%s7070_s1 + $0xbd4] ss:$8 sps:$4 sm:$0xff]  }
 0x102   :  { %3333 = vmatmul.mubr.bf16.vlgmr.msra.gmra.mrb[0].mxu1 %v5141_v40  ;;  %v5231_v40 = vld [vmem:[%s7070_s1 + $0x4d0] ss:$8 sps:$4 sm:$0xff]  }
 0x103   :  { %3774 = vmatmul.mubr.bf16.vlgmr.msra.gmra.mrb[0].mxu0 %v5147_v42  ;;  %3364 = vmatpush1.bf16.msra.mxu1 %v5144_v41  ;;  %v5234_v41 = vld [vmem:[%s7070_s1 + $0xbd0] ss:$8 sps:$4 sm:$0xff]   ;;  %v5241_v42 = vld [vmem:[%s7070_s1 + $0x4e4] ss:$8 sps:$4 sm:$0xff]  }
 0x104   :  { %3805 = vmatpush1.bf16.msra.mxu0 %v5150_v43  ;;  %3365 = vmatprep.subr.bf16.mxu1 %v5155_v44  ;;  %v5246_v43 = vld [vmem:[%s7070_s1 + $0xbe4] ss:$8 sps:$4 sm:$0xff]   ;;  %v5239_v44 = vld [vmem:[%s7070_s1 + $0x4e0] ss:$8 sps:$4 sm:$0xff]  }
 0x105   :  { %3806 = vmatprep.subr.bf16.mxu0 %v5158_v45  ;;  %3342 = vmatprep.mubr.bf16.mxu1 %v5219_v46  ;;  %v5244_v45 = vld [vmem:[%s7070_s1 + $0xbe0] ss:$8 sps:$4 sm:$0xff]   ;;  %v5251_v46 = vld [vmem:[%s7070_s1 + $0x4f4] ss:$8 sps:$4 sm:$0xff]  }
 0x106   :  { %3783 = vmatprep.mubr.bf16.mxu0 %v5224_v47  ;;  %v5254_v47 = vld [vmem:[%s7070_s1 + $0xbf4] ss:$8 sps:$4 sm:$0xff]  }
 0x107   :  { %3366 = vmatpush1.bf16.msra.mxu1 %v5153_v48  ;;  %v5249_v48 = vld [vmem:[%s7070_s1 + $0x4f0] ss:$8 sps:$4 sm:$0xff]  }
 0x108   :  { %3807 = vmatpush1.bf16.msra.mxu0 %v5156_v49  ;;  %3367 = vmatprep.subr.bf16.mxu1 %v5161_v50  ;;  %v5252_v49 = vld [vmem:[%s7070_s1 + $0xbf0] ss:$8 sps:$4 sm:$0xff]   ;;  %v5260_v50 = vld [vmem:[%s7070_s1 + $0x504] ss:$8 sps:$4 sm:$0xff]  }
 0x109   :  { %3808 = vmatprep.subr.bf16.mxu0 %v5164_v51  ;;  %v5266_v51 = vld [vmem:[%s7070_s1 + $0xc04] ss:$8 sps:$4 sm:$0xff]  }
 0x10a   :  { %3343 = vmatmul.mubr.bf16.gmra.mrb[4].mxu1 %v5229_v54  ;;  %v5261_v54 = vld [vmem:[%s7071_s0 + $0x58] ss:$108 sps:$4 sm:$0xff]  }
 0x10b   :  { %3784 = vmatmul.mubr.bf16.gmra.mrb[4].mxu0 %v5230_v55  ;;  %3368 = vmatpush1.bf16.msra.mxu1 %v5159_v52  ;;  %v5255_v52 = vld [vmem:[%s7071_s0 + $0x20] ss:$108 sps:$4 sm:$0xff]  }
 0x10c   :  { %3809 = vmatpush1.bf16.msra.mxu0 %v5162_v53  ;;  %3369 = vmatprep.subr.bf16.mxu1 %v5167_v56  ;;  %v5258_v53 = vld [vmem:[%s7070_s1 + $0x500] ss:$8 sps:$4 sm:$0xff]   ;;  %v5269_v56 = vld [vmem:[%s7070_s1 + $0x514] ss:$8 sps:$4 sm:$0xff]  }
 0x10d   :  { %3810 = vmatprep.subr.bf16.mxu0 %v5170_v57  ;;  %3352 = vmatprep.mubr.bf16.mxu1 %v5237_v58  ;;  %v5264_v55 = vld [vmem:[%s7070_s1 + $0xc00] ss:$8 sps:$4 sm:$0xff]   ;;  %v5272_v57 = vld [vmem:[%s7070_s1 + $0xc14] ss:$8 sps:$4 sm:$0xff]  }
 0x10e   :  { %3793 = vmatprep.mubr.bf16.mxu0 %v5242_v59  ;;  %v5333_v58 = vld [vmem:[%s7071_s0 + $0xfc] ss:$108 sps:$4 sm:$0xff]   ;;  %v5338_v59 = vld [vmem:[%s7071_s0 + $0x134] ss:$108 sps:$4 sm:$0xff]  }
 0x10f   :  { %3370 = vmatpush1.bf16.msra.mxu1 %v5165_v60  ;;  %v5267_v60 = vld [vmem:[%s7070_s1 + $0x510] ss:$8 sps:$4 sm:$0xff]  }
 0x110   :  { %3811 = vmatpush1.bf16.msra.mxu0 %v5168_v61  ;;  %3371 = vmatprep.subr.bf16.mxu1 %v5173_v62  ;;  %v5270_v61 = vld [vmem:[%s7070_s1 + $0xc10] ss:$8 sps:$4 sm:$0xff]   ;;  %v5275_v62 = vld [vmem:[%s7070_s1 + $0x524] ss:$8 sps:$4 sm:$0xff]  }
 0x111   :  { %3812 = vmatprep.subr.bf16.mxu0 %v5176_v63  ;;  %v5278_v63 = vld [vmem:[%s7070_s1 + $0xc24] ss:$8 sps:$4 sm:$0xff]  }
 0x112   :  { %3353 = vmatmul.mubr.bf16.gmra.mrb[8].mxu1 %v5247_v2  ;;  %v5343_v2 = vld [vmem:[%s7071_s0 + $0xf8] ss:$108 sps:$4 sm:$0xff]  }
 0x113   :  { %3794 = vmatmul.mubr.bf16.gmra.mrb[8].mxu0 %v5248_v3  ;;  %3372 = vmatpush1.bf16.msra.mxu1 %v5171_v0  ;;  %v5273_v0 = vld [vmem:[%s7070_s1 + $0x520] ss:$8 sps:$4 sm:$0xff]   ;;  %v5344_v3 = vld [vmem:[%s7071_s0 + $0x130] ss:$108 sps:$4 sm:$0xff]  }
 0x114   :  { %3813 = vmatpush1.bf16.msra.mxu0 %v5174_v1  ;;  %3373 = vmatprep.subr.bf16.mxu1 %v5179_v4  ;;  %v5276_v1 = vld [vmem:[%s7070_s1 + $0xc20] ss:$8 sps:$4 sm:$0xff]   ;;  %v5281_v4 = vld [vmem:[%s7070_s1 + $0x534] ss:$8 sps:$4 sm:$0xff]  }
 0x115   :  { %3814 = vmatprep.subr.bf16.mxu0 %v5182_v5  ;;  %3395 = vmatprep.mubr.bf16.mxu1 %v5257_v6  ;;  %v5284_v5 = vld [vmem:[%s7070_s1 + $0xc34] ss:$8 sps:$4 sm:$0xff]  }
 0x116   :  { %3836 = vmatprep.mubr.bf16.mxu0 %v5263_v7  ;;  %v5351_v6 = vld [vmem:[%s7071_s0 + $0x1d4] ss:$108 sps:$4 sm:$0xff]   ;;  %v5356_v7 = vld [vmem:[%s7071_s0 + $0x20c] ss:$108 sps:$4 sm:$0xff]  }
 0x117   :  { %3374 = vmatpush1.bf16.msra.mxu1 %v5177_v8  ;;  %v5279_v8 = vld [vmem:[%s7070_s1 + $0x530] ss:$8 sps:$4 sm:$0xff]  }
 0x118   :  { %3815 = vmatpush1.bf16.msra.mxu0 %v5180_v9  ;;  %3375 = vmatprep.subr.bf16.mxu1 %v5185_v10  ;;  %v5282_v9 = vld [vmem:[%s7070_s1 + $0xc30] ss:$8 sps:$4 sm:$0xff]   ;;  %v5287_v10 = vld [vmem:[%s7070_s1 + $0x544] ss:$8 sps:$4 sm:$0xff]  }
 0x119   :  { %3816 = vmatprep.subr.bf16.mxu0 %v5188_v11  ;;  %v5290_v11 = vld [vmem:[%s7070_s1 + $0xc44] ss:$8 sps:$4 sm:$0xff]  }
 0x11b   :  { %3376 = vmatpush1.bf16.msra.mxu1 %v5183_v12  ;;  %v5285_v12 = vld [vmem:[%s7070_s1 + $0x540] ss:$8 sps:$4 sm:$0xff]  }
 0x11c   :  { %3817 = vmatpush1.bf16.msra.mxu0 %v5186_v13  ;;  %3377 = vmatprep.subr.bf16.mxu1 %v5191_v14  ;;  %v5361_v13 = vld [vmem:[%s7071_s0 + $0x1d0] ss:$108 sps:$4 sm:$0xff]   ;;  %v5362_v14 = vld [vmem:[%s7071_s0 + $0x208] ss:$108 sps:$4 sm:$0xff]  }
 0x11d   :  { %3818 = vmatprep.subr.bf16.mxu0 %v5194_v15  ;;  %v5288_v15 = vld [vmem:[%s7070_s1 + $0xc40] ss:$8 sps:$4 sm:$0xff]  }
 0x11f   :  { %3378 = vmatpush1.bf16.msra.mxu1 %v5189_v16  ;;  %v5293_v16 = vld [vmem:[%s7070_s1 + $0x554] ss:$8 sps:$4 sm:$0xff]  }
 0x120   :  { %3819 = vmatpush1.bf16.msra.mxu0 %v5192_v17  ;;  %3379 = vmatprep.subr.bf16.mxu1 %v5197_v18  ;;  %v5296_v17 = vld [vmem:[%s7070_s1 + $0xc54] ss:$8 sps:$4 sm:$0xff]   ;;  %v5371_v18 = vld [vmem:[%s7071_s0 + $0x2c] ss:$108 sps:$4 sm:$0xff]  }
 0x121   :  { %3820 = vmatprep.subr.bf16.mxu0 %v5200_v19  ;;  %v5377_v19 = vld [vmem:[%s7071_s0 + $0x64] ss:$108 sps:$4 sm:$0xff]  }
 0x123   :  { %3380 = vmatpush1.bf16.msra.mxu1 %v5195_v20  ;;  %v5291_v20 = vld [vmem:[%s7070_s1 + $0x550] ss:$8 sps:$4 sm:$0xff]  }
 0x124   :  { %3821 = vmatpush1.bf16.msra.mxu0 %v5198_v21  ;;  %3381 = vmatprep.subr.bf16.mxu1 %v5203_v22  ;;  %v5294_v21 = vld [vmem:[%s7070_s1 + $0xc50] ss:$8 sps:$4 sm:$0xff]   ;;  %v5299_v22 = vld [vmem:[%s7070_s1 + $0x564] ss:$8 sps:$4 sm:$0xff]  }
 0x125   :  { %3822 = vmatprep.subr.bf16.mxu0 %v5206_v23  ;;  %v5302_v23 = vld [vmem:[%s7070_s1 + $0xc64] ss:$8 sps:$4 sm:$0xff]  }
 0x127   :  { %3382 = vmatpush1.bf16.msra.mxu1 %v5201_v24  ;;  %v5297_v24 = vld [vmem:[%s7070_s1 + $0x560] ss:$8 sps:$4 sm:$0xff]  }
 0x128   :  { %3823 = vmatpush1.bf16.msra.mxu0 %v5204_v25  ;;  %3383 = vmatprep.subr.bf16.mxu1 %v5209_v26  ;;  %v5300_v25 = vld [vmem:[%s7070_s1 + $0xc60] ss:$8 sps:$4 sm:$0xff]   ;;  %v5305_v26 = vld [vmem:[%s7070_s1 + $0x574] ss:$8 sps:$4 sm:$0xff]  }
 0x129   :  { %3824 = vmatprep.subr.bf16.mxu0 %v5212_v27  ;;  %v5308_v27 = vld [vmem:[%s7070_s1 + $0xc74] ss:$8 sps:$4 sm:$0xff]  }
 0x12b   :  { %3384 = vmatpush1.bf16.msra.mxu1 %v5207_v28  ;;  %v5303_v28 = vld [vmem:[%s7070_s1 + $0x570] ss:$8 sps:$4 sm:$0xff]  }
 0x12c   :  { %3825 = vmatpush1.bf16.msra.mxu0 %v5210_v29  ;;  %3385 = vmatprep.subr.bf16.mxu1 %v5215_v30  ;;  %v5306_v29 = vld [vmem:[%s7070_s1 + $0xc70] ss:$8 sps:$4 sm:$0xff]   ;;  %v5311_v30 = vld [vmem:[%s7070_s1 + $0x584] ss:$8 sps:$4 sm:$0xff]  }
 0x12d   :  { %3826 = vmatprep.subr.bf16.mxu0 %v5218_v31  ;;  %v5314_v31 = vld [vmem:[%s7070_s1 + $0xc84] ss:$8 sps:$4 sm:$0xff]  }
 0x12f   :  { %3386 = vmatpush1.bf16.msra.mxu1 %v5213_v32  ;;  %v5309_v32 = vld [vmem:[%s7070_s1 + $0x580] ss:$8 sps:$4 sm:$0xff]  }
 0x130   :  { %3827 = vmatpush1.bf16.msra.mxu0 %v5216_v33  ;;  %3387 = vmatprep.subr.bf16.mxu1 %v5223_v34  ;;  %v5312_v33 = vld [vmem:[%s7070_s1 + $0xc80] ss:$8 sps:$4 sm:$0xff]   ;;  %v5317_v34 = vld [vmem:[%s7070_s1 + $0x594] ss:$8 sps:$4 sm:$0xff]  }
 0x131   :  { %3828 = vmatprep.subr.bf16.mxu0 %v5228_v35  ;;  %v5320_v35 = vld [vmem:[%s7070_s1 + $0xc94] ss:$8 sps:$4 sm:$0xff]  }
 0x133   :  { %3388 = vmatpush1.bf16.msra.mxu1 %v5221_v36  ;;  %v5315_v36 = vld [vmem:[%s7070_s1 + $0x590] ss:$8 sps:$4 sm:$0xff]  }
 0x134   :  { %3829 = vmatpush1.bf16.msra.mxu0 %v5226_v37  ;;  %3389 = vmatprep.subr.bf16.mxu1 %v5233_v38  ;;  %v5318_v37 = vld [vmem:[%s7070_s1 + $0xc90] ss:$8 sps:$4 sm:$0xff]   ;;  %v5323_v38 = vld [vmem:[%s7070_s1 + $0x5a4] ss:$8 sps:$4 sm:$0xff]  }
 0x135   :  { %3830 = vmatprep.subr.bf16.mxu0 %v5236_v39  ;;  %v5326_v39 = vld [vmem:[%s7070_s1 + $0xca4] ss:$8 sps:$4 sm:$0xff]  }
 0x137   :  { %3390 = vmatpush1.bf16.msra.mxu1 %v5231_v40  ;;  %v5321_v40 = vld [vmem:[%s7070_s1 + $0x5a0] ss:$8 sps:$4 sm:$0xff]  }
 0x138   :  { %3831 = vmatpush1.bf16.msra.mxu0 %v5234_v41  ;;  %3391 = vmatprep.subr.bf16.mxu1 %v5241_v42  ;;  %v5324_v41 = vld [vmem:[%s7070_s1 + $0xca0] ss:$8 sps:$4 sm:$0xff]   ;;  %v5329_v42 = vld [vmem:[%s7070_s1 + $0x5b4] ss:$8 sps:$4 sm:$0xff]  }
 0x139   :  { %3832 = vmatprep.subr.bf16.mxu0 %v5246_v43  ;;  %v5332_v43 = vld [vmem:[%s7070_s1 + $0xcb4] ss:$8 sps:$4 sm:$0xff]  }
 0x13b   :  { %3392 = vmatpush1.bf16.msra.mxu1 %v5239_v44  ;;  %v5327_v44 = vld [vmem:[%s7070_s1 + $0x5b0] ss:$8 sps:$4 sm:$0xff]  }
 0x13c   :  { %3833 = vmatpush1.bf16.msra.mxu0 %v5244_v45  ;;  %3393 = vmatprep.subr.bf16.mxu1 %v5251_v46  ;;  %v5330_v45 = vld [vmem:[%s7070_s1 + $0xcb0] ss:$8 sps:$4 sm:$0xff]   ;;  %v5337_v46 = vld [vmem:[%s7070_s1 + $0x5c4] ss:$8 sps:$4 sm:$0xff]  }
 0x13d   :  { %3834 = vmatprep.subr.bf16.mxu0 %v5254_v47  ;;  %v5342_v47 = vld [vmem:[%s7070_s1 + $0xcc4] ss:$8 sps:$4 sm:$0xff]  }
 0x13f   :  { %3394 = vmatpush1.bf16.msra.mxu1 %v5249_v48  ;;  %v5335_v48 = vld [vmem:[%s7070_s1 + $0x5c0] ss:$8 sps:$4 sm:$0xff]  }
 0x140   :  { %3835 = vmatpush1.bf16.msra.mxu0 %v5252_v49  ;;  %3426 = vmatprep.subr.bf16.mxu1 %v5260_v50  ;;  %v5340_v49 = vld [vmem:[%s7070_s1 + $0xcc0] ss:$8 sps:$4 sm:$0xff]   ;;  %v5347_v50 = vld [vmem:[%s7070_s1 + $0x5d4] ss:$8 sps:$4 sm:$0xff]  }
 0x141   :  { %3867 = vmatprep.subr.bf16.mxu0 %v5266_v51  ;;  %v5350_v51 = vld [vmem:[%s7070_s1 + $0xcd4] ss:$8 sps:$4 sm:$0xff]  }
 0x142   :  { %3396 = vmatmul.mubr.bf16.vlgmr.msra.gmra.mrb[0].mxu1 %v5255_v52  ;;  %v5345_v52 = vld [vmem:[%s7070_s1 + $0x5d0] ss:$8 sps:$4 sm:$0xff]  }
 0x143   :  { %3837 = vmatmul.mubr.bf16.vlgmr.msra.gmra.mrb[0].mxu0 %v5261_v54  ;;  %3427 = vmatpush1.bf16.msra.mxu1 %v5258_v53  ;;  %v5348_v53 = vld [vmem:[%s7070_s1 + $0xcd0] ss:$8 sps:$4 sm:$0xff]   ;;  %v5355_v54 = vld [vmem:[%s7070_s1 + $0x5e4] ss:$8 sps:$4 sm:$0xff]  }
 0x144   :  { %3868 = vmatpush1.bf16.msra.mxu0 %v5264_v55  ;;  %3428 = vmatprep.subr.bf16.mxu1 %v5269_v56  ;;  %v5360_v55 = vld [vmem:[%s7070_s1 + $0xce4] ss:$8 sps:$4 sm:$0xff]   ;;  %v5353_v56 = vld [vmem:[%s7070_s1 + $0x5e0] ss:$8 sps:$4 sm:$0xff]  }
 0x145   :  { %3869 = vmatprep.subr.bf16.mxu0 %v5272_v57  ;;  %3405 = vmatprep.mubr.bf16.mxu1 %v5333_v58  ;;  %v5358_v57 = vld [vmem:[%s7070_s1 + $0xce0] ss:$8 sps:$4 sm:$0xff]   ;;  %v5365_v58 = vld [vmem:[%s7070_s1 + $0x5f4] ss:$8 sps:$4 sm:$0xff]  }
 0x146   :  { %3846 = vmatprep.mubr.bf16.mxu0 %v5338_v59  ;;  %v5368_v59 = vld [vmem:[%s7070_s1 + $0xcf4] ss:$8 sps:$4 sm:$0xff]  }
 0x147   :  { %3429 = vmatpush1.bf16.msra.mxu1 %v5267_v60  ;;  %v5363_v60 = vld [vmem:[%s7070_s1 + $0x5f0] ss:$8 sps:$4 sm:$0xff]  }
 0x148   :  { %3870 = vmatpush1.bf16.msra.mxu0 %v5270_v61  ;;  %3430 = vmatprep.subr.bf16.mxu1 %v5275_v62  ;;  %v5366_v61 = vld [vmem:[%s7070_s1 + $0xcf0] ss:$8 sps:$4 sm:$0xff]   ;;  %v5374_v62 = vld [vmem:[%s7070_s1 + $0x604] ss:$8 sps:$4 sm:$0xff]  }
 0x149   :  { %3871 = vmatprep.subr.bf16.mxu0 %v5278_v63  ;;  %v5380_v63 = vld [vmem:[%s7070_s1 + $0xd04] ss:$8 sps:$4 sm:$0xff]  }
 0x14a   :  { %3406 = vmatmul.mubr.bf16.gmra.mrb[4].mxu1 %v5343_v2  ;;  %v5372_v2 = vld [vmem:[%s7070_s1 + $0x600] ss:$8 sps:$4 sm:$0xff]  }
 0x14b   :  { %3847 = vmatmul.mubr.bf16.gmra.mrb[4].mxu0 %v5344_v3  ;;  %3431 = vmatpush1.bf16.msra.mxu1 %v5273_v0  ;;  %v5369_v0 = vld [vmem:[%s7071_s0 + $0x28] ss:$108 sps:$4 sm:$0xff]  }
 0x14c   :  { %3872 = vmatpush1.bf16.msra.mxu0 %v5276_v1  ;;  %3432 = vmatprep.subr.bf16.mxu1 %v5281_v4  ;;  %v5375_v1 = vld [vmem:[%s7071_s0 + $0x60] ss:$108 sps:$4 sm:$0xff]   ;;  %v5383_v4 = vld [vmem:[%s7070_s1 + $0x614] ss:$8 sps:$4 sm:$0xff]  }
 0x14d   :  { %3873 = vmatprep.subr.bf16.mxu0 %v5284_v5  ;;  %3415 = vmatprep.mubr.bf16.mxu1 %v5351_v6  ;;  %v5378_v3 = vld [vmem:[%s7070_s1 + $0xd00] ss:$8 sps:$4 sm:$0xff]   ;;  %v5386_v5 = vld [vmem:[%s7070_s1 + $0xd14] ss:$8 sps:$4 sm:$0xff]  }
 0x14e   :  { %3856 = vmatprep.mubr.bf16.mxu0 %v5356_v7  ;;  %v5399_v6 = vld [vmem:[%s7071_s0 + $0x13c] ss:$108 sps:$4 sm:$0xff]   ;;  %v5443_v7 = vld [vmem:[%s7071_s0 + $0x104] ss:$108 sps:$4 sm:$0xff]  }
 0x14f   :  { %3433 = vmatpush1.bf16.msra.mxu1 %v5279_v8  ;;  %v5381_v8 = vld [vmem:[%s7070_s1 + $0x610] ss:$8 sps:$4 sm:$0xff]  }
 0x150   :  { %3874 = vmatpush1.bf16.msra.mxu0 %v5282_v9  ;;  %3434 = vmatprep.subr.bf16.mxu1 %v5287_v10  ;;  %v5384_v9 = vld [vmem:[%s7070_s1 + $0xd10] ss:$8 sps:$4 sm:$0xff]   ;;  %v5389_v10 = vld [vmem:[%s7070_s1 + $0x624] ss:$8 sps:$4 sm:$0xff]  }
 0x151   :  { %3875 = vmatprep.subr.bf16.mxu0 %v5290_v11  ;;  %v5392_v11 = vld [vmem:[%s7070_s1 + $0xd24] ss:$8 sps:$4 sm:$0xff]  }
 0x152   :  { %3416 = vmatmul.mubr.bf16.gmra.mrb[8].mxu1 %v5361_v13  ;;  %v5445_v13 = vld [vmem:[%s7071_s0 + $0x100] ss:$108 sps:$4 sm:$0xff]  }
 0x153   :  { %3857 = vmatmul.mubr.bf16.gmra.mrb[8].mxu0 %v5362_v14  ;;  %3435 = vmatpush1.bf16.msra.mxu1 %v5285_v12  ;;  %v5404_v12 = vld [vmem:[%s7071_s0 + $0x138] ss:$108 sps:$4 sm:$0xff]   ;;  %v5387_v14 = vld [vmem:[%s7070_s1 + $0x620] ss:$8 sps:$4 sm:$0xff]  }
 0x154   :  { %3876 = vmatpush1.bf16.msra.mxu0 %v5288_v15  ;;  %3436 = vmatprep.subr.bf16.mxu1 %v5293_v16  ;;  %v5390_v15 = vld [vmem:[%s7070_s1 + $0xd20] ss:$8 sps:$4 sm:$0xff]   ;;  %v5395_v16 = vld [vmem:[%s7070_s1 + $0x634] ss:$8 sps:$4 sm:$0xff]  }
 0x155   :  { %3877 = vmatprep.subr.bf16.mxu0 %v5296_v17  ;;  %3458 = vmatprep.mubr.bf16.mxu1 %v5371_v18  ;;  %v5398_v17 = vld [vmem:[%s7070_s1 + $0xd34] ss:$8 sps:$4 sm:$0xff]  }
 0x156   :  { %3899 = vmatprep.mubr.bf16.mxu0 %v5377_v19  ;;  %v5414_v18 = vld [vmem:[%s7071_s0 + $0x214] ss:$108 sps:$4 sm:$0xff]   ;;  %v5453_v19 = vld [vmem:[%s7071_s0 + $0x1dc] ss:$108 sps:$4 sm:$0xff]  }
 0x157   :  { %3437 = vmatpush1.bf16.msra.mxu1 %v5291_v20  ;;  %v5393_v20 = vld [vmem:[%s7070_s1 + $0x630] ss:$8 sps:$4 sm:$0xff]  }
 0x158   :  { %3878 = vmatpush1.bf16.msra.mxu0 %v5294_v21  ;;  %3438 = vmatprep.subr.bf16.mxu1 %v5299_v22  ;;  %v5396_v21 = vld [vmem:[%s7070_s1 + $0xd30] ss:$8 sps:$4 sm:$0xff]   ;;  %v5403_v22 = vld [vmem:[%s7070_s1 + $0x644] ss:$8 sps:$4 sm:$0xff]  }
 0x159   :  { %3879 = vmatprep.subr.bf16.mxu0 %v5302_v23  ;;  %v5407_v23 = vld [vmem:[%s7070_s1 + $0xd44] ss:$8 sps:$4 sm:$0xff]  }
 0x15b   :  { %3439 = vmatpush1.bf16.msra.mxu1 %v5297_v24  ;;  %v5419_v24 = vld [vmem:[%s7071_s0 + $0x210] ss:$108 sps:$4 sm:$0xff]  }
 0x15c   :  { %3880 = vmatpush1.bf16.msra.mxu0 %v5300_v25  ;;  %3440 = vmatprep.subr.bf16.mxu1 %v5305_v26  ;;  %v5455_v25 = vld [vmem:[%s7071_s0 + $0x1d8] ss:$108 sps:$4 sm:$0xff]   ;;  %v5401_v26 = vld [vmem:[%s7070_s1 + $0x640] ss:$8 sps:$4 sm:$0xff]  }
 0x15d   :  { %3881 = vmatprep.subr.bf16.mxu0 %v5308_v27  ;;  %v5405_v27 = vld [vmem:[%s7070_s1 + $0xd40] ss:$8 sps:$4 sm:$0xff]  }
 0x15f   :  { %3441 = vmatpush1.bf16.msra.mxu1 %v5303_v28  ;;  %v5410_v28 = vld [vmem:[%s7070_s1 + $0x654] ss:$8 sps:$4 sm:$0xff]  }
 0x160   :  { %3882 = vmatpush1.bf16.msra.mxu0 %v5306_v29  ;;  %3442 = vmatprep.subr.bf16.mxu1 %v5311_v30  ;;  %v5413_v29 = vld [vmem:[%s7070_s1 + $0xd54] ss:$8 sps:$4 sm:$0xff]  }
 0x161   :  { %3883 = vmatprep.subr.bf16.mxu0 %v5314_v31  ;;  %v5464_v30 = vld [vmem:[%s7071_s0 + $0x34] ss:$108 sps:$4 sm:$0xff]   ;;  %v5408_v31 = vld [vmem:[%s7070_s1 + $0x650] ss:$8 sps:$4 sm:$0xff]  }
 0x163   :  { %3443 = vmatpush1.bf16.msra.mxu1 %v5309_v32  ;;  %v5411_v32 = vld [vmem:[%s7070_s1 + $0xd50] ss:$8 sps:$4 sm:$0xff]  }
 0x164   :  { %3884 = vmatpush1.bf16.msra.mxu0 %v5312_v33  ;;  %3444 = vmatprep.subr.bf16.mxu1 %v5317_v34  ;;  %v5418_v33 = vld [vmem:[%s7070_s1 + $0x664] ss:$8 sps:$4 sm:$0xff]  }
 0x165   :  { %3885 = vmatprep.subr.bf16.mxu0 %v5320_v35  ;;  %v5422_v34 = vld [vmem:[%s7070_s1 + $0xd64] ss:$8 sps:$4 sm:$0xff]   ;;  %v5471_v35 = vmov 0  }
 0x167   :  { %3445 = vmatpush1.bf16.msra.mxu1 %v5315_v36  ;;  %v5416_v36 = vld [vmem:[%s7070_s1 + $0x660] ss:$8 sps:$4 sm:$0xff]  }
 0x168   :  { %3886 = vmatpush1.bf16.msra.mxu0 %v5318_v37  ;;  %3446 = vmatprep.subr.bf16.mxu1 %v5323_v38  ;;  %v5420_v37 = vld [vmem:[%s7070_s1 + $0xd60] ss:$8 sps:$4 sm:$0xff]   ;;  %v5425_v38 = vld [vmem:[%s7070_s1 + $0x674] ss:$8 sps:$4 sm:$0xff]  }
 0x169   :  { %3887 = vmatprep.subr.bf16.mxu0 %v5326_v39  ;;  %v5428_v39 = vld [vmem:[%s7070_s1 + $0xd74] ss:$8 sps:$4 sm:$0xff]  }
 0x16b   :  { %3447 = vmatpush1.bf16.msra.mxu1 %v5321_v40  ;;  %v5423_v40 = vld [vmem:[%s7070_s1 + $0x670] ss:$8 sps:$4 sm:$0xff]  }
 0x16c   :  { %3888 = vmatpush1.bf16.msra.mxu0 %v5324_v41  ;;  %3448 = vmatprep.subr.bf16.mxu1 %v5329_v42  ;;  %v5426_v41 = vld [vmem:[%s7070_s1 + $0xd70] ss:$8 sps:$4 sm:$0xff]   ;;  %v5431_v42 = vld [vmem:[%s7070_s1 + $0x684] ss:$8 sps:$4 sm:$0xff]  }
 0x16d   :  { %3889 = vmatprep.subr.bf16.mxu0 %v5332_v43  ;;  %v5432_v43 = vld [vmem:[%s7071_s0 + $0x68] ss:$108 sps:$4 sm:$0xff]  }
 0x16f   :  { %3449 = vmatpush1.bf16.msra.mxu1 %v5327_v44  ;;  %v5429_v44 = vld [vmem:[%s7070_s1 + $0x680] ss:$8 sps:$4 sm:$0xff]  }
 0x170   :  { %3890 = vmatpush1.bf16.msra.mxu0 %v5330_v45  ;;  %3450 = vmatprep.subr.bf16.mxu1 %v5337_v46  ;;  %v5435_v45 = vld [vmem:[%s7070_s1 + $0x694] ss:$8 sps:$4 sm:$0xff]   ;;  %v5433_v46 = vld [vmem:[%s7070_s1 + $0x690] ss:$8 sps:$4 sm:$0xff]  }
 0x171   :  { %3891 = vmatprep.subr.bf16.mxu0 %v5342_v47  ;;  %v5438_v47 = vld [vmem:[%s7070_s1 + $0x6a4] ss:$8 sps:$4 sm:$0xff]  }
 0x173   :  { %3451 = vmatpush1.bf16.msra.mxu1 %v5335_v48  ;;  %v5439_v48 = vld [vmem:[%s7071_s0 + $0x140] ss:$108 sps:$4 sm:$0xff]  }
 0x174   :  { %3892 = vmatpush1.bf16.msra.mxu0 %v5340_v49  ;;  %3452 = vmatprep.subr.bf16.mxu1 %v5347_v50  ;;  %v5436_v49 = vld [vmem:[%s7070_s1 + $0x6a0] ss:$8 sps:$4 sm:$0xff]   ;;  %v5442_v50 = vld [vmem:[%s7070_s1 + $0x6b4] ss:$8 sps:$4 sm:$0xff]  }
 0x175   :  { %3893 = vmatprep.subr.bf16.mxu0 %v5350_v51  ;;  %v5440_v51 = vld [vmem:[%s7070_s1 + $0x6b0] ss:$8 sps:$4 sm:$0xff]  }
 0x177   :  { %3453 = vmatpush1.bf16.msra.mxu1 %v5345_v52  ;;  %v5448_v52 = vld [vmem:[%s7070_s1 + $0x6c4] ss:$8 sps:$4 sm:$0xff]  }
 0x178   :  { %3894 = vmatpush1.bf16.msra.mxu0 %v5348_v53  ;;  %3454 = vmatprep.subr.bf16.mxu1 %v5355_v54  ;;  %v5449_v53 = vld [vmem:[%s7071_s0 + $0x218] ss:$108 sps:$4 sm:$0xff]   ;;  %v5446_v54 = vld [vmem:[%s7070_s1 + $0x6c0] ss:$8 sps:$4 sm:$0xff]  }
 0x179   :  { %3895 = vmatprep.subr.bf16.mxu0 %v5360_v55  ;;  %v5452_v55 = vld [vmem:[%s7070_s1 + $0x6d4] ss:$8 sps:$4 sm:$0xff]  }
 0x17b   :  { %3455 = vmatpush1.bf16.msra.mxu1 %v5353_v56  ;;  %v5450_v56 = vld [vmem:[%s7070_s1 + $0x6d0] ss:$8 sps:$4 sm:$0xff]  }
 0x17c   :  { %3896 = vmatpush1.bf16.msra.mxu0 %v5358_v57  ;;  %3456 = vmatprep.subr.bf16.mxu1 %v5365_v58  ;;  %v5458_v57 = vld [vmem:[%s7070_s1 + $0x6e4] ss:$8 sps:$4 sm:$0xff]   ;;  %v5456_v58 = vld [vmem:[%s7070_s1 + $0x6e0] ss:$8 sps:$4 sm:$0xff]  }
 0x17d   :  { %3897 = vmatprep.subr.bf16.mxu0 %v5368_v59  ;;  %v5461_v59 = vld [vmem:[%s7070_s1 + $0x6f4] ss:$8 sps:$4 sm:$0xff]  }
 0x17f   :  { %3457 = vmatpush1.bf16.msra.mxu1 %v5363_v60  ;;  %v5459_v60 = vld [vmem:[%s7070_s1 + $0x6f0] ss:$8 sps:$4 sm:$0xff]  }
 0x180   :  { %3898 = vmatpush1.bf16.msra.mxu0 %v5366_v61  ;;  %3489 = vmatprep.subr.bf16.mxu1 %v5374_v62  ;;  %v5462_v61 = vld [vmem:[%s7071_s0 + $0x30] ss:$108 sps:$4 sm:$0xff]   ;;  %v5465_v62 = vld [vmem:[%s7071_s0 + $0x10c] ss:$108 sps:$4 sm:$0xff]  }
 0x181   :  { %3930 = vmatprep.subr.bf16.mxu0 %v5380_v63  ;;  %v5467_v63 = vld [vmem:[%s7071_s0 + $0x108] ss:$108 sps:$4 sm:$0xff]  }
 0x182   :  { %3459 = vmatmul.mubr.bf16.vlgmr.msra.gmra.mrb[0].mxu1 %v5369_v0  ;;  %v5468_v0 = vld [vmem:[%s7071_s0 + $0x1e4] ss:$108 sps:$4 sm:$0xff]  }
 0x183   :  { %3900 = vmatmul.mubr.bf16.vlgmr.msra.gmra.mrb[0].mxu0 %v5375_v1  ;;  %3490 = vmatpush1.bf16.msra.mxu1 %v5372_v2  ;;  %v5470_v1 = vld [vmem:[%s7071_s0 + $0x1e0] ss:$108 sps:$4 sm:$0xff]  }
 0x184   :  { %3931 = vmatpush1.bf16.msra.mxu0 %v5378_v3  ;;  %3491 = vmatprep.subr.bf16.mxu1 %v5383_v4 }
 0x185   :  { %3932 = vmatprep.subr.bf16.mxu0 %v5386_v5  ;;  %3909 = vmatprep.mubr.bf16.mxu0 %v5399_v6 }
 0x186   :  { %3468 = vmatprep.mubr.bf16.mxu1 %v5443_v7 }
 0x187   :  { %3492 = vmatpush1.bf16.msra.mxu1 %v5381_v8 }
 0x188   :  { %3933 = vmatpush1.bf16.msra.mxu0 %v5384_v9  ;;  %3493 = vmatprep.subr.bf16.mxu1 %v5389_v10 }
 0x189   :  { %3934 = vmatprep.subr.bf16.mxu0 %v5392_v11 }
 0x18a   :  { %3469 = vmatmul.mubr.bf16.gmra.mrb[4].mxu1 %v5445_v13 }
 0x18b   :  { %3910 = vmatmul.mubr.bf16.gmra.mrb[4].mxu0 %v5404_v12  ;;  %3494 = vmatpush1.bf16.msra.mxu1 %v5387_v14  ;;  %v533_v12 = vlaneseq }
 0x18c   :  { %3935 = vmatpush1.bf16.msra.mxu0 %v5390_v15  ;;  %3495 = vmatprep.subr.bf16.mxu1 %v5395_v16 }
 0x18d   :  { %3936 = vmatprep.subr.bf16.mxu0 %v5398_v17  ;;  %3919 = vmatprep.mubr.bf16.mxu0 %v5414_v18  ;;  %v534_v15 = vshrl.u32 %v533_v12, 7  ;;  %v531_v17 = vld [vmem:[%s7072_s2] sm:$0x3] }
 0x18e   :  { %3478 = vmatprep.mubr.bf16.mxu1 %v5453_v19 }
 0x18f   :  { %3496 = vmatpush1.bf16.msra.mxu1 %v5393_v20  ;;  %v535_v16 = vsub.s32 0, %v534_v15  ;;  %v539_v18 = vsub.s32 1, %v534_v15 }
 0x190   :  { %3937 = vmatpush1.bf16.msra.mxu0 %v5396_v21  ;;  %3497 = vmatprep.subr.bf16.mxu1 %v5403_v22 }
 0x191   :  { %3938 = vmatprep.subr.bf16.mxu0 %v5407_v23  ;;  %v536_v19 = vrot.slane %v531_v17, %v535_v16  ;;  %v540_v20 = vrot.slane %v531_v17, %v539_v18 }
 0x192   :  { %3479 = vmatmul.mubr.bf16.gmra.mrb[8].mxu1 %v5455_v25 }
 0x193   :  { %3920 = vmatmul.mubr.bf16.gmra.mrb[8].mxu0 %v5419_v24  ;;  %3498 = vmatpush1.bf16.msra.mxu1 %v5401_v26 }
 0x194   :  { %3939 = vmatpush1.bf16.msra.mxu0 %v5405_v27  ;;  %3499 = vmatprep.subr.bf16.mxu1 %v5410_v28 }
 0x195   :  { %3940 = vmatprep.subr.bf16.mxu0 %v5413_v29  ;;  %3962 = vmatprep.mubr.bf16.mxu0 %v5471_v35 }
 0x196   :  { %3521 = vmatprep.mubr.bf16.mxu1 %v5464_v30 }
 0x197   :  { %3500 = vmatpush1.bf16.msra.mxu1 %v5408_v31 }
 0x198   :  { %3941 = vmatpush1.bf16.msra.mxu0 %v5411_v32  ;;  %3501 = vmatprep.subr.bf16.mxu1 %v5418_v33 }
 0x199   :  { %3942 = vmatprep.subr.bf16.mxu0 %v5422_v34 }
 0x19b   :  { %3502 = vmatpush1.bf16.msra.mxu1 %v5416_v36 }
 0x19c   :  { %3943 = vmatpush1.bf16.msra.mxu0 %v5420_v37  ;;  %3503 = vmatprep.subr.bf16.mxu1 %v5425_v38 }
 0x19d   :  { %3944 = vmatprep.subr.bf16.mxu0 %v5428_v39 }
 0x19f   :  { %3504 = vmatpush1.bf16.msra.mxu1 %v5423_v40 }
 0x1a0   :  { %3945 = vmatpush1.bf16.msra.mxu0 %v5426_v41  ;;  %3505 = vmatprep.subr.bf16.mxu1 %v5431_v42 }
 0x1a3   :  { %3963 = vmatmul.mubr.bf16.vlgmr.msra.gmra.mrb[0].mxu0 %v5432_v43  ;;  %3506 = vmatpush1.bf16.msra.mxu1 %v5429_v44 }
 0x1a4   :  { %3972 = vmatprep.mubr.bf16.mxu0 %v5471_v35  ;;  %3507 = vmatprep.subr.bf16.mxu1 %v5435_v45 }
 0x1a7   :  { %3508 = vmatpush1.bf16.msra.mxu1 %v5433_v46 }
 0x1a8   :  { %3509 = vmatprep.subr.bf16.mxu1 %v5438_v47 }
 0x1ab   :  { %3973 = vmatmul.mubr.bf16.gmra.mrb[4].mxu0 %v5439_v48  ;;  %3510 = vmatpush1.bf16.msra.mxu1 %v5436_v49 }
 0x1ac   :  { %3982 = vmatprep.mubr.bf16.mxu0 %v5471_v35  ;;  %3511 = vmatprep.subr.bf16.mxu1 %v5442_v50 }
 0x1af   :  { %3512 = vmatpush1.bf16.msra.mxu1 %v5440_v51 }
 0x1b0   :  { %3513 = vmatprep.subr.bf16.mxu1 %v5448_v52 }
 0x1b3   :  { %3983 = vmatmul.mubr.bf16.gmra.mrb[8].mxu0 %v5449_v53  ;;  %3514 = vmatpush1.bf16.msra.mxu1 %v5446_v54 }
 0x1b4   :  { %3515 = vmatprep.subr.bf16.mxu1 %v5452_v55 }
 0x1b7   :  { %3516 = vmatpush1.bf16.msra.mxu1 %v5450_v56 }
 0x1b8   :  { %3517 = vmatprep.subr.bf16.mxu1 %v5458_v57 }
 0x1bb   :  { %3518 = vmatpush1.bf16.msra.mxu1 %v5456_v58 }
 0x1bc   :  { %3519 = vmatprep.subr.bf16.mxu1 %v5461_v59 }
 0x1bf   :  { %3520 = vmatpush1.bf16.msra.mxu1 %v5459_v60 }
 0x1c2   :  { %3522 = vmatmul.mubr.bf16.vlgmr.msra.gmra.mrb[0].mxu1 %v5462_v61 }
 0x1c3   :  { %3531 = vmatprep.mubr.bf16.mxu1 %v5465_v62 }
 0x1ca   :  { %3532 = vmatmul.mubr.bf16.gmra.mrb[4].mxu1 %v5467_v63 }
 0x1cb   :  { %3541 = vmatprep.mubr.bf16.mxu1 %v5468_v0 }
 0x1d2   :  { %3542 = vmatmul.mubr.bf16.gmra.mrb[8].mxu1 %v5470_v1 }
 0x276   :  { %v3964_v2 = vpop.f32.mrb[0].mxu0 }
 0x277   :  { %v3966_v3 = vpop.f32.mrb[1].mxu0 }
 0x278   :  { %v3968_v4 = vpop.f32.mrb[2].mxu0 }
 0x279   :  { %v3970_v5 = vpop.f32.mrb[3].mxu0 }
 0x27e   :  { %v3974_v6 = vpop.f32.mrb[4].mxu0 }
 0x27f   :  { %v3976_v7 = vpop.f32.mrb[5].mxu0 }
 0x280   :  { %v3978_v8 = vpop.f32.mrb[6].mxu0 }
 0x281   :  { %v3980_v9 = vpop.f32.mrb[7].mxu0 }
 0x286   :  { %v3984_v10 = vpop.f32.mrb[8].mxu0 }
 0x287   :  { %v3986_v11 = vpop.f32.mrb[9].mxu0 }
 0x288   :  { %v3988_v13 = vpop.f32.mrb[10].mxu0 }
 0x289   :  { %v3990_v14 = vpop.f32.mrb[11].mxu0 }
 0x295   :  { %v3523_v21 = vpop.f32.mrb[0].mxu1 }
 0x296   :  { %v4534_v22 = vadd.f32 %v3523_v21, %v536_v19  ;;  %v3525_v23 = vpop.f32.mrb[1].mxu1 }
 0x297   :  { %v4536_v24 = vadd.f32 %v3525_v23, %v540_v20  ;;  %v3527_v25 = vpop.f32.mrb[2].mxu1 }
 0x298   :  { %v4535_v26 = vadd.f32 %v4534_v22, %v3964_v2  ;;  %v4538_v27 = vadd.f32 %v3527_v25, %v536_v19  ;;  %v3529_v28 = vpop.f32.mrb[3].mxu1 }
 0x299   :  { %v4537_v29 = vadd.f32 %v4536_v24, %v3966_v3  ;;  %v4540_v30 = vadd.f32 %v3529_v28, %v540_v20 }
 0x29a   :  { %v3993_v31 = vmax.f32 %v4535_v26, 0.0  ;;  %v4539_v32 = vadd.f32 %v4538_v27, %v3968_v4 }
 0x29b   :  { %v3994_v33 = vmax.f32 %v4537_v29, 0.0  ;;  %v4541_v34 = vadd.f32 %v4540_v30, %v3970_v5 }
 0x29c   :  { %4005 = vst [vmem:[%s7073_s3] sm:$0xff] %v3993_v31  ;;  %v3995_v35 = vmax.f32 %v4539_v32, 0.0 }
 0x29d   :  { %4006 = vst [vmem:[%s7073_s3 + $0x8] sm:$0xff] %v3994_v33  ;;  %v3996_v36 = vmax.f32 %v4541_v34, 0.0  ;;  %v3533_v37 = vpop.f32.mrb[4].mxu1 }
 0x29e   :  { %4007 = vst [vmem:[%s7073_s3 + $0x10] sm:$0xff] %v3995_v35  ;;  %v4542_v38 = vadd.f32 %v3533_v37, %v536_v19  ;;  %v3535_v39 = vpop.f32.mrb[5].mxu1 }
 0x29f   :  { %4008 = vst [vmem:[%s7073_s3 + $0x18] sm:$0xff] %v3996_v36  ;;  %v4544_v40 = vadd.f32 %v3535_v39, %v540_v20  ;;  %v3537_v41 = vpop.f32.mrb[6].mxu1 }
 0x2a0   :  { %v4543_v42 = vadd.f32 %v4542_v38, %v3974_v6  ;;  %v4546_v43 = vadd.f32 %v3537_v41, %v536_v19  ;;  %v3539_v44 = vpop.f32.mrb[7].mxu1 }
 0x2a1   :  { %v4545_v45 = vadd.f32 %v4544_v40, %v3976_v7  ;;  %v4548_v46 = vadd.f32 %v3539_v44, %v540_v20 }
 0x2a2   :  { %v3997_v47 = vmax.f32 %v4543_v42, 0.0  ;;  %v4547_v48 = vadd.f32 %v4546_v43, %v3978_v8 }
 0x2a3   :  { %v3998_v49 = vmax.f32 %v4545_v45, 0.0  ;;  %v4549_v50 = vadd.f32 %v4548_v46, %v3980_v9 }
 0x2a4   :  { %4009 = vst [vmem:[%s7073_s3 + $0x20] sm:$0xff] %v3997_v47  ;;  %v3999_v51 = vmax.f32 %v4547_v48, 0.0 }
 0x2a5   :  { %4010 = vst [vmem:[%s7073_s3 + $0x28] sm:$0xff] %v3998_v49  ;;  %v4000_v52 = vmax.f32 %v4549_v50, 0.0  ;;  %v3543_v53 = vpop.f32.mrb[8].mxu1 }
 0x2a6   :  { %4011 = vst [vmem:[%s7073_s3 + $0x30] sm:$0xff] %v3999_v51  ;;  %v4550_v54 = vadd.f32 %v3543_v53, %v536_v19  ;;  %v3545_v55 = vpop.f32.mrb[9].mxu1 }
 0x2a7   :  { %4012 = vst [vmem:[%s7073_s3 + $0x38] sm:$0xff] %v4000_v52  ;;  %v4552_v56 = vadd.f32 %v3545_v55, %v540_v20  ;;  %v3547_v57 = vpop.f32.mrb[10].mxu1 }
 0x2a8   :  { %v4551_v58 = vadd.f32 %v4550_v54, %v3984_v10  ;;  %v4554_v59 = vadd.f32 %v3547_v57, %v536_v19  ;;  %v3549_v60 = vpop.f32.mrb[11].mxu1 }
 0x2a9   :  { %v4553_v61 = vadd.f32 %v4552_v56, %v3986_v11  ;;  %v4556_v62 = vadd.f32 %v3549_v60, %v540_v20 }
 0x2aa   :  { %v4001_v63 = vmax.f32 %v4551_v58, 0.0  ;;  %v4555_v0 = vadd.f32 %v4554_v59, %v3988_v13 }
 0x2ab   :  { %v4002_v1 = vmax.f32 %v4553_v61, 0.0  ;;  %v4557_v2 = vadd.f32 %v4556_v62, %v3990_v14 }
 0x2ac   :  { %4013 = vst [vmem:[%s7073_s3 + $0x40] sm:$0xff] %v4001_v63  ;;  %v4003_v3 = vmax.f32 %v4555_v0, 0.0 }
 0x2ad   :  { %4014 = vst [vmem:[%s7073_s3 + $0x48] sm:$0xff] %v4002_v1  ;;  %v4004_v4 = vmax.f32 %v4557_v2, 0.0 }
 0x2ae   :  { %4015 = vst [vmem:[%s7073_s3 + $0x50] sm:$0xff] %v4003_v3 }
 0x2af   :  { %4016 = vst [vmem:[%s7073_s3 + $0x58] sm:$0xff] %v4004_v4 }

// kernel: perceptual_loss.14
= control target key start
LH: loop header
LB: loop body
LE: loop exit
PB: predicated region body
PF: predicated region fallthrough
CT: control target
= control target key end

     0   :  { %s4753_s1 = inlined_call_operand.vmem [shape: bf16[2304,256], index: 1, kind: input, shape index: {}]   ;;  %s4754_s0 = inlined_call_operand.vmem [shape: bf16[48,2304], index: 0, kind: input, shape index: {}]   ;;  %s4755_s2 = inlined_call_operand.vmem [shape: f32[1,256], index: 2, kind: input, shape index: {}]   ;;  %s4756_s3 = inlined_call_operand.vmem [shape: f32[48,256], index: 3, kind: output, shape index: {}]  }
   0x1   :  { %v3155_v0 = vld [vmem:[%s4753_s1 + $0x4] ss:$8 sps:$4 sm:$0xff]   ;;  %v3159_v2 = vld [vmem:[%s4753_s1] ss:$8 sps:$4 sm:$0xff]   ;;  %v3161_v4 = vld [vmem:[%s4753_s1 + $0x14] ss:$8 sps:$4 sm:$0xff]  }
   0x2   :  { %v3157_v1 = vld [vmem:[%s4753_s1 + $0x404] ss:$8 sps:$4 sm:$0xff]   ;;  %2078 = vmatprep.subr.bf16.mxu1 %v3155_v0  ;;  %v3160_v3 = vld [vmem:[%s4753_s1 + $0x400] ss:$8 sps:$4 sm:$0xff]   ;;  %v3163_v5 = vld [vmem:[%s4753_s1 + $0x414] ss:$8 sps:$4 sm:$0xff]  }
   0x3   :  { %2330 = vmatprep.subr.bf16.mxu0 %v3157_v1  ;;  %2079 = vmatpush1.bf16.msra.mxu1 %v3159_v2  ;;  %v3165_v6 = vld [vmem:[%s4753_s1 + $0x10] ss:$8 sps:$4 sm:$0xff]   ;;  %v3167_v8 = vld [vmem:[%s4753_s1 + $0x24] ss:$8 sps:$4 sm:$0xff]   ;;  %v3171_v10 = vld [vmem:[%s4753_s1 + $0x20] ss:$8 sps:$4 sm:$0xff]  }
   0x4   :  { %2331 = vmatpush1.bf16.msra.mxu0 %v3160_v3  ;;  %2080 = vmatprep.subr.bf16.mxu1 %v3161_v4  ;;  %v3166_v7 = vld [vmem:[%s4753_s1 + $0x410] ss:$8 sps:$4 sm:$0xff]   ;;  %v3169_v9 = vld [vmem:[%s4753_s1 + $0x424] ss:$8 sps:$4 sm:$0xff]   ;;  %v3172_v11 = vld [vmem:[%s4753_s1 + $0x420] ss:$8 sps:$4 sm:$0xff]  }
   0x5   :  { %2332 = vmatprep.subr.bf16.mxu0 %v3163_v5  ;;  %v3173_v12 = vld [vmem:[%s4753_s1 + $0x34] ss:$8 sps:$4 sm:$0xff]   ;;  %v3177_v14 = vld [vmem:[%s4753_s1 + $0x30] ss:$8 sps:$4 sm:$0xff]   ;;  %v3179_v16 = vld [vmem:[%s4753_s1 + $0x44] ss:$8 sps:$4 sm:$0xff]  }
   0x6   :  { %v3175_v13 = vld [vmem:[%s4753_s1 + $0x434] ss:$8 sps:$4 sm:$0xff]   ;;  %v3178_v15 = vld [vmem:[%s4753_s1 + $0x430] ss:$8 sps:$4 sm:$0xff]   ;;  %v3181_v17 = vld [vmem:[%s4753_s1 + $0x444] ss:$8 sps:$4 sm:$0xff]  }
   0x7   :  { %2081 = vmatpush1.bf16.msra.mxu1 %v3165_v6  ;;  %v3183_v18 = vld [vmem:[%s4753_s1 + $0x40] ss:$8 sps:$4 sm:$0xff]   ;;  %v3185_v20 = vld [vmem:[%s4753_s1 + $0x54] ss:$8 sps:$4 sm:$0xff]   ;;  %v3189_v22 = vld [vmem:[%s4753_s1 + $0x50] ss:$8 sps:$4 sm:$0xff]  }
   0x8   :  { %2333 = vmatpush1.bf16.msra.mxu0 %v3166_v7  ;;  %2082 = vmatprep.subr.bf16.mxu1 %v3167_v8  ;;  %v3184_v19 = vld [vmem:[%s4753_s1 + $0x440] ss:$8 sps:$4 sm:$0xff]   ;;  %v3187_v21 = vld [vmem:[%s4753_s1 + $0x454] ss:$8 sps:$4 sm:$0xff]   ;;  %v3190_v23 = vld [vmem:[%s4753_s1 + $0x450] ss:$8 sps:$4 sm:$0xff]  }
   0x9   :  { %2334 = vmatprep.subr.bf16.mxu0 %v3169_v9  ;;  %v3191_v24 = vld [vmem:[%s4753_s1 + $0x64] ss:$8 sps:$4 sm:$0xff]   ;;  %v3195_v26 = vld [vmem:[%s4753_s1 + $0x60] ss:$8 sps:$4 sm:$0xff]   ;;  %v3197_v28 = vld [vmem:[%s4753_s1 + $0x74] ss:$8 sps:$4 sm:$0xff]  }
   0xa   :  { %v3193_v25 = vld [vmem:[%s4753_s1 + $0x464] ss:$8 sps:$4 sm:$0xff]   ;;  %v3196_v27 = vld [vmem:[%s4753_s1 + $0x460] ss:$8 sps:$4 sm:$0xff]   ;;  %v3199_v29 = vld [vmem:[%s4753_s1 + $0x474] ss:$8 sps:$4 sm:$0xff]  }
   0xb   :  { %2083 = vmatpush1.bf16.msra.mxu1 %v3171_v10  ;;  %v3201_v30 = vld [vmem:[%s4753_s1 + $0x70] ss:$8 sps:$4 sm:$0xff]   ;;  %v3203_v32 = vld [vmem:[%s4753_s1 + $0x84] ss:$8 sps:$4 sm:$0xff]   ;;  %v3207_v34 = vld [vmem:[%s4753_s1 + $0x80] ss:$8 sps:$4 sm:$0xff]  }
   0xc   :  { %2335 = vmatpush1.bf16.msra.mxu0 %v3172_v11  ;;  %2084 = vmatprep.subr.bf16.mxu1 %v3173_v12  ;;  %v3202_v31 = vld [vmem:[%s4753_s1 + $0x470] ss:$8 sps:$4 sm:$0xff]   ;;  %v3205_v33 = vld [vmem:[%s4753_s1 + $0x484] ss:$8 sps:$4 sm:$0xff]   ;;  %v3208_v35 = vld [vmem:[%s4753_s1 + $0x480] ss:$8 sps:$4 sm:$0xff]  }
   0xd   :  { %2336 = vmatprep.subr.bf16.mxu0 %v3175_v13  ;;  %v3209_v36 = vld [vmem:[%s4753_s1 + $0x94] ss:$8 sps:$4 sm:$0xff]   ;;  %v3213_v38 = vld [vmem:[%s4753_s1 + $0x90] ss:$8 sps:$4 sm:$0xff]   ;;  %v3215_v40 = vld [vmem:[%s4753_s1 + $0xa4] ss:$8 sps:$4 sm:$0xff]  }
   0xe   :  { %v3211_v37 = vld [vmem:[%s4753_s1 + $0x494] ss:$8 sps:$4 sm:$0xff]   ;;  %v3214_v39 = vld [vmem:[%s4753_s1 + $0x490] ss:$8 sps:$4 sm:$0xff]   ;;  %v3217_v41 = vld [vmem:[%s4753_s1 + $0x4a4] ss:$8 sps:$4 sm:$0xff]  }
   0xf   :  { %2085 = vmatpush1.bf16.msra.mxu1 %v3177_v14  ;;  %v3219_v42 = vld [vmem:[%s4753_s1 + $0xa0] ss:$8 sps:$4 sm:$0xff]   ;;  %v3221_v44 = vld [vmem:[%s4753_s1 + $0xb4] ss:$8 sps:$4 sm:$0xff]   ;;  %v3225_v46 = vld [vmem:[%s4753_s1 + $0xb0] ss:$8 sps:$4 sm:$0xff]  }
  0x10   :  { %2337 = vmatpush1.bf16.msra.mxu0 %v3178_v15  ;;  %2086 = vmatprep.subr.bf16.mxu1 %v3179_v16  ;;  %v3220_v43 = vld [vmem:[%s4753_s1 + $0x4a0] ss:$8 sps:$4 sm:$0xff]   ;;  %v3223_v45 = vld [vmem:[%s4753_s1 + $0x4b4] ss:$8 sps:$4 sm:$0xff]   ;;  %v3226_v47 = vld [vmem:[%s4753_s1 + $0x4b0] ss:$8 sps:$4 sm:$0xff]  }
  0x11   :  { %2338 = vmatprep.subr.bf16.mxu0 %v3181_v17  ;;  %v3253_v48 = vld [vmem:[%s4754_s0 + $0x4] ss:$72 sps:$4 sm:$0xff]   ;;  %v3231_v52 = vld [vmem:[%s4753_s1 + $0xc0] ss:$8 sps:$4 sm:$0xff]   ;;  %v3233_v54 = vld [vmem:[%s4753_s1 + $0xd4] ss:$8 sps:$4 sm:$0xff]  }
  0x12   :  { %v3227_v49 = vld [vmem:[%s4753_s1 + $0xc4] ss:$8 sps:$4 sm:$0xff]   ;;  %2110 = vmatprep.mubr.bf16.mxu1 %v3253_v48  ;;  %v3232_v53 = vld [vmem:[%s4753_s1 + $0x4c0] ss:$8 sps:$4 sm:$0xff]   ;;  %v3235_v55 = vld [vmem:[%s4753_s1 + $0x4d4] ss:$8 sps:$4 sm:$0xff]  }
  0x13   :  { %2087 = vmatpush1.bf16.msra.mxu1 %v3183_v18  ;;  %v3229_v50 = vld [vmem:[%s4753_s1 + $0x4c4] ss:$8 sps:$4 sm:$0xff]   ;;  %v3237_v56 = vld [vmem:[%s4753_s1 + $0xd0] ss:$8 sps:$4 sm:$0xff]   ;;  %v3243_v60 = vld [vmem:[%s4753_s1 + $0xe0] ss:$8 sps:$4 sm:$0xff]  }
  0x14   :  { %2339 = vmatpush1.bf16.msra.mxu0 %v3184_v19  ;;  %2088 = vmatprep.subr.bf16.mxu1 %v3185_v20  ;;  %v3259_v51 = vld [vmem:[%s4754_s0 + $0x24] ss:$72 sps:$4 sm:$0xff]   ;;  %v3238_v57 = vld [vmem:[%s4753_s1 + $0x4d0] ss:$8 sps:$4 sm:$0xff]   ;;  %v3244_v61 = vld [vmem:[%s4753_s1 + $0x4e0] ss:$8 sps:$4 sm:$0xff]  }
  0x15   :  { %2340 = vmatprep.subr.bf16.mxu0 %v3187_v21  ;;  %2362 = vmatprep.mubr.bf16.mxu0 %v3259_v51  ;;  %v3239_v58 = vld [vmem:[%s4753_s1 + $0xe4] ss:$8 sps:$4 sm:$0xff]   ;;  %v3245_v62 = vld [vmem:[%s4753_s1 + $0xf4] ss:$8 sps:$4 sm:$0xff]   ;;  %v3249_v0 = vld [vmem:[%s4753_s1 + $0xf0] ss:$8 sps:$4 sm:$0xff]  }
  0x16   :  { %v3241_v59 = vld [vmem:[%s4753_s1 + $0x4e4] ss:$8 sps:$4 sm:$0xff]   ;;  %v3247_v63 = vld [vmem:[%s4753_s1 + $0x4f4] ss:$8 sps:$4 sm:$0xff]   ;;  %v3250_v1 = vld [vmem:[%s4753_s1 + $0x4f0] ss:$8 sps:$4 sm:$0xff]  }
  0x17   :  { %2089 = vmatpush1.bf16.msra.mxu1 %v3189_v22  ;;  %v3256_v2 = vld [vmem:[%s4753_s1 + $0x104] ss:$8 sps:$4 sm:$0xff]   ;;  %v3251_v4 = vld [vmem:[%s4754_s0] ss:$72 sps:$4 sm:$0xff]   ;;  %v3265_v8 = vld [vmem:[%s4753_s1 + $0x114] ss:$8 sps:$4 sm:$0xff]  }
  0x18   :  { %2341 = vmatpush1.bf16.msra.mxu0 %v3190_v23  ;;  %2090 = vmatprep.subr.bf16.mxu1 %v3191_v24  ;;  %v3262_v3 = vld [vmem:[%s4753_s1 + $0x504] ss:$8 sps:$4 sm:$0xff]   ;;  %v3254_v5 = vld [vmem:[%s4753_s1 + $0x100] ss:$8 sps:$4 sm:$0xff]   ;;  %v3268_v9 = vld [vmem:[%s4753_s1 + $0x514] ss:$8 sps:$4 sm:$0xff]  }
  0x19   :  { %2342 = vmatprep.subr.bf16.mxu0 %v3193_v25  ;;  %v3257_v6 = vld [vmem:[%s4754_s0 + $0x20] ss:$72 sps:$4 sm:$0xff]   ;;  %v3263_v10 = vld [vmem:[%s4753_s1 + $0x110] ss:$8 sps:$4 sm:$0xff]   ;;  %v3271_v12 = vld [vmem:[%s4753_s1 + $0x124] ss:$8 sps:$4 sm:$0xff]  }
  0x1a   :  { %v3260_v7 = vld [vmem:[%s4753_s1 + $0x500] ss:$8 sps:$4 sm:$0xff]   ;;  %v3266_v11 = vld [vmem:[%s4753_s1 + $0x510] ss:$8 sps:$4 sm:$0xff]   ;;  %v3274_v13 = vld [vmem:[%s4753_s1 + $0x524] ss:$8 sps:$4 sm:$0xff]  }
  0x1b   :  { %2091 = vmatpush1.bf16.msra.mxu1 %v3195_v26  ;;  %v3269_v14 = vld [vmem:[%s4753_s1 + $0x120] ss:$8 sps:$4 sm:$0xff]   ;;  %v3277_v16 = vld [vmem:[%s4753_s1 + $0x134] ss:$8 sps:$4 sm:$0xff]   ;;  %v3275_v18 = vld [vmem:[%s4753_s1 + $0x130] ss:$8 sps:$4 sm:$0xff]  }
  0x1c   :  { %2343 = vmatpush1.bf16.msra.mxu0 %v3196_v27  ;;  %2092 = vmatprep.subr.bf16.mxu1 %v3197_v28  ;;  %v3272_v15 = vld [vmem:[%s4753_s1 + $0x520] ss:$8 sps:$4 sm:$0xff]   ;;  %v3280_v17 = vld [vmem:[%s4753_s1 + $0x534] ss:$8 sps:$4 sm:$0xff]   ;;  %v3278_v19 = vld [vmem:[%s4753_s1 + $0x530] ss:$8 sps:$4 sm:$0xff]  }
  0x1d   :  { %2344 = vmatprep.subr.bf16.mxu0 %v3199_v29  ;;  %v3283_v20 = vld [vmem:[%s4753_s1 + $0x144] ss:$8 sps:$4 sm:$0xff]   ;;  %v3329_v22 = vld [vmem:[%s4754_s0 + $0x94] ss:$72 sps:$4 sm:$0xff]   ;;  %v3281_v23 = vld [vmem:[%s4753_s1 + $0x140] ss:$8 sps:$4 sm:$0xff]  }
  0x1e   :  { %v3286_v21 = vld [vmem:[%s4753_s1 + $0x544] ss:$8 sps:$4 sm:$0xff]   ;;  %v3284_v24 = vld [vmem:[%s4753_s1 + $0x540] ss:$8 sps:$4 sm:$0xff]   ;;  %v3334_v25 = vld [vmem:[%s4754_s0 + $0xb4] ss:$72 sps:$4 sm:$0xff]  }
  0x1f   :  { %2093 = vmatpush1.bf16.msra.mxu1 %v3201_v30  ;;  %v3289_v26 = vld [vmem:[%s4753_s1 + $0x154] ss:$8 sps:$4 sm:$0xff]   ;;  %v3339_v28 = vld [vmem:[%s4754_s0 + $0x90] ss:$72 sps:$4 sm:$0xff]   ;;  %v3308_v48 = vld [vmem:[%s4753_s1 + $0x580] ss:$8 sps:$4 sm:$0xff]  }
  0x20   :  { %2345 = vmatpush1.bf16.msra.mxu0 %v3202_v31  ;;  %2094 = vmatprep.subr.bf16.mxu1 %v3203_v32  ;;  %v3292_v27 = vld [vmem:[%s4753_s1 + $0x554] ss:$8 sps:$4 sm:$0xff]   ;;  %v3340_v29 = vld [vmem:[%s4754_s0 + $0xb0] ss:$72 sps:$4 sm:$0xff]   ;;  %v3295_v32 = vld [vmem:[%s4753_s1 + $0x164] ss:$8 sps:$4 sm:$0xff]  }
  0x21   :  { %2346 = vmatprep.subr.bf16.mxu0 %v3205_v33  ;;  %v3287_v30 = vld [vmem:[%s4753_s1 + $0x150] ss:$8 sps:$4 sm:$0xff]   ;;  %v3298_v33 = vld [vmem:[%s4753_s1 + $0x564] ss:$8 sps:$4 sm:$0xff]  }
  0x22   :  { %v3290_v31 = vld [vmem:[%s4753_s1 + $0x550] ss:$8 sps:$4 sm:$0xff]   ;;  %v3373_v51 = vld [vmem:[%s4754_s0 + $0x2c] ss:$72 sps:$4 sm:$0xff]  }
  0x23   :  { %2095 = vmatpush1.bf16.msra.mxu1 %v3207_v34  ;;  %v3347_v34 = vld [vmem:[%s4754_s0 + $0x124] ss:$72 sps:$4 sm:$0xff]  }
  0x24   :  { %2347 = vmatpush1.bf16.msra.mxu0 %v3208_v35  ;;  %2096 = vmatprep.subr.bf16.mxu1 %v3209_v36  ;;  %v3293_v35 = vld [vmem:[%s4753_s1 + $0x160] ss:$8 sps:$4 sm:$0xff]  }
  0x25   :  { %2348 = vmatprep.subr.bf16.mxu0 %v3211_v37  ;;  %v3296_v36 = vld [vmem:[%s4753_s1 + $0x560] ss:$8 sps:$4 sm:$0xff]   ;;  %v3352_v37 = vld [vmem:[%s4754_s0 + $0x144] ss:$72 sps:$4 sm:$0xff]  }
  0x27   :  { %2097 = vmatpush1.bf16.msra.mxu1 %v3213_v38  ;;  %v3301_v38 = vld [vmem:[%s4753_s1 + $0x174] ss:$8 sps:$4 sm:$0xff]  }
  0x28   :  { %2349 = vmatpush1.bf16.msra.mxu0 %v3214_v39  ;;  %2098 = vmatprep.subr.bf16.mxu1 %v3215_v40  ;;  %v3304_v39 = vld [vmem:[%s4753_s1 + $0x574] ss:$8 sps:$4 sm:$0xff]   ;;  %v3357_v40 = vld [vmem:[%s4754_s0 + $0x120] ss:$72 sps:$4 sm:$0xff]  }
  0x29   :  { %2350 = vmatprep.subr.bf16.mxu0 %v3217_v41  ;;  %v3358_v41 = vld [vmem:[%s4754_s0 + $0x140] ss:$72 sps:$4 sm:$0xff]  }
  0x2b   :  { %2099 = vmatpush1.bf16.msra.mxu1 %v3219_v42  ;;  %v3299_v42 = vld [vmem:[%s4753_s1 + $0x170] ss:$8 sps:$4 sm:$0xff]  }
  0x2c   :  { %2351 = vmatpush1.bf16.msra.mxu0 %v3220_v43  ;;  %2100 = vmatprep.subr.bf16.mxu1 %v3221_v44  ;;  %v3302_v43 = vld [vmem:[%s4753_s1 + $0x570] ss:$8 sps:$4 sm:$0xff]   ;;  %v3307_v44 = vld [vmem:[%s4753_s1 + $0x184] ss:$8 sps:$4 sm:$0xff]  }
  0x2d   :  { %2352 = vmatprep.subr.bf16.mxu0 %v3223_v45  ;;  %v3310_v45 = vld [vmem:[%s4753_s1 + $0x584] ss:$8 sps:$4 sm:$0xff]  }
  0x2f   :  { %2101 = vmatpush1.bf16.msra.mxu1 %v3225_v46  ;;  %v3305_v46 = vld [vmem:[%s4753_s1 + $0x180] ss:$8 sps:$4 sm:$0xff]  }
  0x30   :  { %2353 = vmatpush1.bf16.msra.mxu0 %v3226_v47  ;;  %2102 = vmatprep.subr.bf16.mxu1 %v3227_v49  ;;  %v3367_v47 = vld [vmem:[%s4754_s0 + $0xc] ss:$72 sps:$4 sm:$0xff]  }
  0x31   :  { %2354 = vmatprep.subr.bf16.mxu0 %v3229_v50  ;;  %v3313_v49 = vld [vmem:[%s4753_s1 + $0x194] ss:$8 sps:$4 sm:$0xff]  }
  0x32   :  { %v3316_v50 = vld [vmem:[%s4753_s1 + $0x594] ss:$8 sps:$4 sm:$0xff]  }
  0x33   :  { %2103 = vmatpush1.bf16.msra.mxu1 %v3231_v52  ;;  %v3311_v52 = vld [vmem:[%s4753_s1 + $0x190] ss:$8 sps:$4 sm:$0xff]  }
  0x34   :  { %2355 = vmatpush1.bf16.msra.mxu0 %v3232_v53  ;;  %2104 = vmatprep.subr.bf16.mxu1 %v3233_v54  ;;  %v3314_v53 = vld [vmem:[%s4753_s1 + $0x590] ss:$8 sps:$4 sm:$0xff]   ;;  %v3319_v54 = vld [vmem:[%s4753_s1 + $0x1a4] ss:$8 sps:$4 sm:$0xff]  }
  0x35   :  { %2356 = vmatprep.subr.bf16.mxu0 %v3235_v55  ;;  %v3322_v55 = vld [vmem:[%s4753_s1 + $0x5a4] ss:$8 sps:$4 sm:$0xff]  }
  0x37   :  { %2105 = vmatpush1.bf16.msra.mxu1 %v3237_v56  ;;  %v3317_v56 = vld [vmem:[%s4753_s1 + $0x1a0] ss:$8 sps:$4 sm:$0xff]  }
  0x38   :  { %2357 = vmatpush1.bf16.msra.mxu0 %v3238_v57  ;;  %2106 = vmatprep.subr.bf16.mxu1 %v3239_v58  ;;  %v3320_v57 = vld [vmem:[%s4753_s1 + $0x5a0] ss:$8 sps:$4 sm:$0xff]   ;;  %v3325_v58 = vld [vmem:[%s4753_s1 + $0x1b4] ss:$8 sps:$4 sm:$0xff]  }
  0x39   :  { %2358 = vmatprep.subr.bf16.mxu0 %v3241_v59  ;;  %v3328_v59 = vld [vmem:[%s4753_s1 + $0x5b4] ss:$8 sps:$4 sm:$0xff]  }
  0x3b   :  { %2107 = vmatpush1.bf16.msra.mxu1 %v3243_v60  ;;  %v3323_v60 = vld [vmem:[%s4753_s1 + $0x1b0] ss:$8 sps:$4 sm:$0xff]  }
  0x3c   :  { %2359 = vmatpush1.bf16.msra.mxu0 %v3244_v61  ;;  %2108 = vmatprep.subr.bf16.mxu1 %v3245_v62  ;;  %v3326_v61 = vld [vmem:[%s4753_s1 + $0x5b0] ss:$8 sps:$4 sm:$0xff]   ;;  %v3333_v62 = vld [vmem:[%s4753_s1 + $0x1c4] ss:$8 sps:$4 sm:$0xff]  }
  0x3d   :  { %2360 = vmatprep.subr.bf16.mxu0 %v3247_v63  ;;  %v3338_v63 = vld [vmem:[%s4753_s1 + $0x5c4] ss:$8 sps:$4 sm:$0xff]  }
  0x3f   :  { %2109 = vmatpush1.bf16.msra.mxu1 %v3249_v0  ;;  %v3331_v0 = vld [vmem:[%s4753_s1 + $0x1c0] ss:$8 sps:$4 sm:$0xff]  }
  0x40   :  { %2361 = vmatpush1.bf16.msra.mxu0 %v3250_v1  ;;  %2141 = vmatprep.subr.bf16.mxu1 %v3256_v2  ;;  %v3336_v1 = vld [vmem:[%s4753_s1 + $0x5c0] ss:$8 sps:$4 sm:$0xff]   ;;  %v3343_v2 = vld [vmem:[%s4753_s1 + $0x1d4] ss:$8 sps:$4 sm:$0xff]  }
  0x41   :  { %2393 = vmatprep.subr.bf16.mxu0 %v3262_v3  ;;  %v3346_v3 = vld [vmem:[%s4753_s1 + $0x5d4] ss:$8 sps:$4 sm:$0xff]  }
  0x42   :  { %2111 = vmatmul.mubr.bf16.vlgmr.msra.gmra.mrb[0].mxu1 %v3251_v4  ;;  %v3341_v4 = vld [vmem:[%s4753_s1 + $0x1d0] ss:$8 sps:$4 sm:$0xff]  }
  0x43   :  { %2363 = vmatmul.mubr.bf16.vlgmr.msra.gmra.mrb[0].mxu0 %v3257_v6  ;;  %2142 = vmatpush1.bf16.msra.mxu1 %v3254_v5  ;;  %v3344_v5 = vld [vmem:[%s4753_s1 + $0x5d0] ss:$8 sps:$4 sm:$0xff]   ;;  %v3351_v6 = vld [vmem:[%s4753_s1 + $0x1e4] ss:$8 sps:$4 sm:$0xff]  }
  0x44   :  { %2394 = vmatpush1.bf16.msra.mxu0 %v3260_v7  ;;  %2143 = vmatprep.subr.bf16.mxu1 %v3265_v8  ;;  %v3356_v7 = vld [vmem:[%s4753_s1 + $0x5e4] ss:$8 sps:$4 sm:$0xff]   ;;  %v3349_v8 = vld [vmem:[%s4753_s1 + $0x1e0] ss:$8 sps:$4 sm:$0xff]  }
  0x45   :  { %2395 = vmatprep.subr.bf16.mxu0 %v3268_v9  ;;  %2120 = vmatprep.mubr.bf16.mxu1 %v3329_v22  ;;  %v3354_v9 = vld [vmem:[%s4753_s1 + $0x5e0] ss:$8 sps:$4 sm:$0xff]   ;;  %v3443_v22 = vld [vmem:[%s4754_s0 + $0x9c] ss:$72 sps:$4 sm:$0xff]  }
  0x46   :  { %2372 = vmatprep.mubr.bf16.mxu0 %v3334_v25  ;;  %v3380_v25 = vld [vmem:[%s4753_s1 + $0x610] ss:$8 sps:$4 sm:$0xff]  }
  0x47   :  { %2144 = vmatpush1.bf16.msra.mxu1 %v3263_v10  ;;  %v3361_v10 = vld [vmem:[%s4753_s1 + $0x1f4] ss:$8 sps:$4 sm:$0xff]  }
  0x48   :  { %2396 = vmatpush1.bf16.msra.mxu0 %v3266_v11  ;;  %2145 = vmatprep.subr.bf16.mxu1 %v3271_v12  ;;  %v3364_v11 = vld [vmem:[%s4753_s1 + $0x5f4] ss:$8 sps:$4 sm:$0xff]   ;;  %v3359_v12 = vld [vmem:[%s4753_s1 + $0x1f0] ss:$8 sps:$4 sm:$0xff]  }
  0x49   :  { %2397 = vmatprep.subr.bf16.mxu0 %v3274_v13  ;;  %v3362_v13 = vld [vmem:[%s4753_s1 + $0x5f0] ss:$8 sps:$4 sm:$0xff]  }
  0x4a   :  { %2121 = vmatmul.mubr.bf16.gmra.mrb[4].mxu1 %v3339_v28  ;;  %v3383_v28 = vld [vmem:[%s4753_s1 + $0x220] ss:$8 sps:$4 sm:$0xff]  }
  0x4b   :  { %2146 = vmatpush1.bf16.msra.mxu1 %v3269_v14  ;;  %2373 = vmatmul.mubr.bf16.gmra.mrb[4].mxu0 %v3340_v29  ;;  %v3370_v14 = vld [vmem:[%s4753_s1 + $0x204] ss:$8 sps:$4 sm:$0xff]   ;;  %v3386_v29 = vld [vmem:[%s4753_s1 + $0x620] ss:$8 sps:$4 sm:$0xff]  }
  0x4c   :  { %2398 = vmatpush1.bf16.msra.mxu0 %v3272_v15  ;;  %2147 = vmatprep.subr.bf16.mxu1 %v3277_v16  ;;  %v3376_v15 = vld [vmem:[%s4753_s1 + $0x604] ss:$8 sps:$4 sm:$0xff]   ;;  %v3365_v16 = vld [vmem:[%s4754_s0 + $0x8] ss:$72 sps:$4 sm:$0xff]  }
  0x4d   :  { %2399 = vmatprep.subr.bf16.mxu0 %v3280_v17  ;;  %2130 = vmatprep.mubr.bf16.mxu1 %v3347_v34  ;;  %v3368_v17 = vld [vmem:[%s4753_s1 + $0x200] ss:$8 sps:$4 sm:$0xff]   ;;  %v3461_v34 = vld [vmem:[%s4754_s0 + $0x12c] ss:$72 sps:$4 sm:$0xff]  }
  0x4e   :  { %2382 = vmatprep.mubr.bf16.mxu0 %v3352_v37  ;;  %v3392_v37 = vld [vmem:[%s4753_s1 + $0x630] ss:$8 sps:$4 sm:$0xff]  }
  0x4f   :  { %2148 = vmatpush1.bf16.msra.mxu1 %v3275_v18  ;;  %v3371_v18 = vld [vmem:[%s4754_s0 + $0x28] ss:$72 sps:$4 sm:$0xff]  }
  0x50   :  { %2400 = vmatpush1.bf16.msra.mxu0 %v3278_v19  ;;  %2149 = vmatprep.subr.bf16.mxu1 %v3283_v20  ;;  %v3374_v19 = vld [vmem:[%s4753_s1 + $0x600] ss:$8 sps:$4 sm:$0xff]   ;;  %v3379_v20 = vld [vmem:[%s4753_s1 + $0x214] ss:$8 sps:$4 sm:$0xff]  }
  0x51   :  { %2401 = vmatprep.subr.bf16.mxu0 %v3286_v21  ;;  %v3382_v21 = vld [vmem:[%s4753_s1 + $0x614] ss:$8 sps:$4 sm:$0xff]  }
  0x52   :  { %2131 = vmatmul.mubr.bf16.gmra.mrb[8].mxu1 %v3357_v40  ;;  %v3395_v40 = vld [vmem:[%s4753_s1 + $0x240] ss:$8 sps:$4 sm:$0xff]  }
  0x53   :  { %2150 = vmatpush1.bf16.msra.mxu1 %v3281_v23  ;;  %2383 = vmatmul.mubr.bf16.gmra.mrb[8].mxu0 %v3358_v41  ;;  %v3448_v23 = vld [vmem:[%s4754_s0 + $0xbc] ss:$72 sps:$4 sm:$0xff]   ;;  %v3398_v41 = vld [vmem:[%s4753_s1 + $0x640] ss:$8 sps:$4 sm:$0xff]  }
  0x54   :  { %2402 = vmatpush1.bf16.msra.mxu0 %v3284_v24  ;;  %2151 = vmatprep.subr.bf16.mxu1 %v3289_v26  ;;  %v3377_v24 = vld [vmem:[%s4753_s1 + $0x210] ss:$8 sps:$4 sm:$0xff]   ;;  %v3385_v26 = vld [vmem:[%s4753_s1 + $0x224] ss:$8 sps:$4 sm:$0xff]  }
  0x55   :  { %2403 = vmatprep.subr.bf16.mxu0 %v3292_v27  ;;  %2173 = vmatprep.mubr.bf16.mxu1 %v3367_v47  ;;  %v3388_v27 = vld [vmem:[%s4753_s1 + $0x624] ss:$8 sps:$4 sm:$0xff]   ;;  %v3481_v47 = vld [vmem:[%s4754_s0 + $0x14] ss:$72 sps:$4 sm:$0xff]  }
  0x56   :  { %2425 = vmatprep.mubr.bf16.mxu0 %v3373_v51  ;;  %v3412_v51 = vld [vmem:[%s4753_s1 + $0x664] ss:$8 sps:$4 sm:$0xff]  }
  0x57   :  { %2152 = vmatpush1.bf16.msra.mxu1 %v3287_v30  ;;  %v3453_v30 = vld [vmem:[%s4754_s0 + $0x98] ss:$72 sps:$4 sm:$0xff]  }
  0x58   :  { %2404 = vmatpush1.bf16.msra.mxu0 %v3290_v31  ;;  %2153 = vmatprep.subr.bf16.mxu1 %v3295_v32  ;;  %v3454_v31 = vld [vmem:[%s4754_s0 + $0xb8] ss:$72 sps:$4 sm:$0xff]   ;;  %v3391_v32 = vld [vmem:[%s4753_s1 + $0x234] ss:$8 sps:$4 sm:$0xff]  }
  0x59   :  { %2405 = vmatprep.subr.bf16.mxu0 %v3298_v33  ;;  %v3394_v33 = vld [vmem:[%s4753_s1 + $0x634] ss:$8 sps:$4 sm:$0xff]  }
  0x5b   :  { %2154 = vmatpush1.bf16.msra.mxu1 %v3293_v35  ;;  %v3466_v35 = vld [vmem:[%s4754_s0 + $0x14c] ss:$72 sps:$4 sm:$0xff]  }
  0x5c   :  { %2406 = vmatpush1.bf16.msra.mxu0 %v3296_v36  ;;  %2155 = vmatprep.subr.bf16.mxu1 %v3301_v38  ;;  %v3389_v36 = vld [vmem:[%s4753_s1 + $0x230] ss:$8 sps:$4 sm:$0xff]   ;;  %v3397_v38 = vld [vmem:[%s4753_s1 + $0x244] ss:$8 sps:$4 sm:$0xff]  }
  0x5d   :  { %2407 = vmatprep.subr.bf16.mxu0 %v3304_v39  ;;  %v3400_v39 = vld [vmem:[%s4753_s1 + $0x644] ss:$8 sps:$4 sm:$0xff]  }
  0x5f   :  { %2156 = vmatpush1.bf16.msra.mxu1 %v3299_v42  ;;  %v3471_v42 = vld [vmem:[%s4754_s0 + $0x128] ss:$72 sps:$4 sm:$0xff]  }
  0x60   :  { %2408 = vmatpush1.bf16.msra.mxu0 %v3302_v43  ;;  %2157 = vmatprep.subr.bf16.mxu1 %v3307_v44  ;;  %v3472_v43 = vld [vmem:[%s4754_s0 + $0x148] ss:$72 sps:$4 sm:$0xff]   ;;  %v3403_v44 = vld [vmem:[%s4753_s1 + $0x254] ss:$8 sps:$4 sm:$0xff]  }
  0x61   :  { %2409 = vmatprep.subr.bf16.mxu0 %v3310_v45  ;;  %v3406_v45 = vld [vmem:[%s4753_s1 + $0x654] ss:$8 sps:$4 sm:$0xff]  }
  0x63   :  { %2158 = vmatpush1.bf16.msra.mxu1 %v3305_v46  ;;  %v3401_v46 = vld [vmem:[%s4753_s1 + $0x250] ss:$8 sps:$4 sm:$0xff]  }
  0x64   :  { %2410 = vmatpush1.bf16.msra.mxu0 %v3308_v48  ;;  %2159 = vmatprep.subr.bf16.mxu1 %v3313_v49  ;;  %v3404_v48 = vld [vmem:[%s4753_s1 + $0x650] ss:$8 sps:$4 sm:$0xff]   ;;  %v3487_v49 = vld [vmem:[%s4754_s0 + $0x34] ss:$72 sps:$4 sm:$0xff]  }
  0x65   :  { %2411 = vmatprep.subr.bf16.mxu0 %v3316_v50  ;;  %v3409_v50 = vld [vmem:[%s4753_s1 + $0x264] ss:$8 sps:$4 sm:$0xff]  }
  0x67   :  { %2160 = vmatpush1.bf16.msra.mxu1 %v3311_v52  ;;  %v3407_v52 = vld [vmem:[%s4753_s1 + $0x260] ss:$8 sps:$4 sm:$0xff]  }
  0x68   :  { %2412 = vmatpush1.bf16.msra.mxu0 %v3314_v53  ;;  %2161 = vmatprep.subr.bf16.mxu1 %v3319_v54  ;;  %v3410_v53 = vld [vmem:[%s4753_s1 + $0x660] ss:$8 sps:$4 sm:$0xff]   ;;  %v3415_v54 = vld [vmem:[%s4753_s1 + $0x274] ss:$8 sps:$4 sm:$0xff]  }
  0x69   :  { %2413 = vmatprep.subr.bf16.mxu0 %v3322_v55  ;;  %v3418_v55 = vld [vmem:[%s4753_s1 + $0x674] ss:$8 sps:$4 sm:$0xff]  }
  0x6b   :  { %2162 = vmatpush1.bf16.msra.mxu1 %v3317_v56  ;;  %v3413_v56 = vld [vmem:[%s4753_s1 + $0x270] ss:$8 sps:$4 sm:$0xff]  }
  0x6c   :  { %2414 = vmatpush1.bf16.msra.mxu0 %v3320_v57  ;;  %2163 = vmatprep.subr.bf16.mxu1 %v3325_v58  ;;  %v3416_v57 = vld [vmem:[%s4753_s1 + $0x670] ss:$8 sps:$4 sm:$0xff]   ;;  %v3421_v58 = vld [vmem:[%s4753_s1 + $0x284] ss:$8 sps:$4 sm:$0xff]  }
  0x6d   :  { %2415 = vmatprep.subr.bf16.mxu0 %v3328_v59  ;;  %v3424_v59 = vld [vmem:[%s4753_s1 + $0x684] ss:$8 sps:$4 sm:$0xff]  }
  0x6f   :  { %2164 = vmatpush1.bf16.msra.mxu1 %v3323_v60  ;;  %v3419_v60 = vld [vmem:[%s4753_s1 + $0x280] ss:$8 sps:$4 sm:$0xff]  }
  0x70   :  { %2416 = vmatpush1.bf16.msra.mxu0 %v3326_v61  ;;  %2165 = vmatprep.subr.bf16.mxu1 %v3333_v62  ;;  %v3422_v61 = vld [vmem:[%s4753_s1 + $0x680] ss:$8 sps:$4 sm:$0xff]   ;;  %v3427_v62 = vld [vmem:[%s4753_s1 + $0x294] ss:$8 sps:$4 sm:$0xff]  }
  0x71   :  { %2417 = vmatprep.subr.bf16.mxu0 %v3338_v63  ;;  %v3430_v63 = vld [vmem:[%s4753_s1 + $0x694] ss:$8 sps:$4 sm:$0xff]  }
  0x73   :  { %2166 = vmatpush1.bf16.msra.mxu1 %v3331_v0  ;;  %v3425_v0 = vld [vmem:[%s4753_s1 + $0x290] ss:$8 sps:$4 sm:$0xff]  }
  0x74   :  { %2418 = vmatpush1.bf16.msra.mxu0 %v3336_v1  ;;  %2167 = vmatprep.subr.bf16.mxu1 %v3343_v2  ;;  %v3428_v1 = vld [vmem:[%s4753_s1 + $0x690] ss:$8 sps:$4 sm:$0xff]   ;;  %v3433_v2 = vld [vmem:[%s4753_s1 + $0x2a4] ss:$8 sps:$4 sm:$0xff]  }
  0x75   :  { %2419 = vmatprep.subr.bf16.mxu0 %v3346_v3  ;;  %v3436_v3 = vld [vmem:[%s4753_s1 + $0x6a4] ss:$8 sps:$4 sm:$0xff]  }
  0x77   :  { %2168 = vmatpush1.bf16.msra.mxu1 %v3341_v4  ;;  %v3431_v4 = vld [vmem:[%s4753_s1 + $0x2a0] ss:$8 sps:$4 sm:$0xff]  }
  0x78   :  { %2420 = vmatpush1.bf16.msra.mxu0 %v3344_v5  ;;  %2169 = vmatprep.subr.bf16.mxu1 %v3351_v6  ;;  %v3434_v5 = vld [vmem:[%s4753_s1 + $0x6a0] ss:$8 sps:$4 sm:$0xff]   ;;  %v3439_v6 = vld [vmem:[%s4753_s1 + $0x2b4] ss:$8 sps:$4 sm:$0xff]  }
  0x79   :  { %2421 = vmatprep.subr.bf16.mxu0 %v3356_v7  ;;  %v3442_v7 = vld [vmem:[%s4753_s1 + $0x6b4] ss:$8 sps:$4 sm:$0xff]  }
  0x7b   :  { %2170 = vmatpush1.bf16.msra.mxu1 %v3349_v8  ;;  %v3437_v8 = vld [vmem:[%s4753_s1 + $0x2b0] ss:$8 sps:$4 sm:$0xff]  }
  0x7c   :  { %2422 = vmatpush1.bf16.msra.mxu0 %v3354_v9  ;;  %2171 = vmatprep.subr.bf16.mxu1 %v3361_v10  ;;  %v3440_v9 = vld [vmem:[%s4753_s1 + $0x6b0] ss:$8 sps:$4 sm:$0xff]   ;;  %v3447_v10 = vld [vmem:[%s4753_s1 + $0x2c4] ss:$8 sps:$4 sm:$0xff]  }
  0x7d   :  { %2423 = vmatprep.subr.bf16.mxu0 %v3364_v11  ;;  %v3452_v11 = vld [vmem:[%s4753_s1 + $0x6c4] ss:$8 sps:$4 sm:$0xff]  }
  0x7f   :  { %2172 = vmatpush1.bf16.msra.mxu1 %v3359_v12  ;;  %v3445_v12 = vld [vmem:[%s4753_s1 + $0x2c0] ss:$8 sps:$4 sm:$0xff]  }
  0x80   :  { %2424 = vmatpush1.bf16.msra.mxu0 %v3362_v13  ;;  %2204 = vmatprep.subr.bf16.mxu1 %v3370_v14  ;;  %v3450_v13 = vld [vmem:[%s4753_s1 + $0x6c0] ss:$8 sps:$4 sm:$0xff]   ;;  %v3457_v14 = vld [vmem:[%s4753_s1 + $0x2d4] ss:$8 sps:$4 sm:$0xff]  }
  0x81   :  { %2456 = vmatprep.subr.bf16.mxu0 %v3376_v15  ;;  %v3460_v15 = vld [vmem:[%s4753_s1 + $0x6d4] ss:$8 sps:$4 sm:$0xff]  }
  0x82   :  { %2174 = vmatmul.mubr.bf16.vlgmr.msra.gmra.mrb[0].mxu1 %v3365_v16  ;;  %v3455_v16 = vld [vmem:[%s4753_s1 + $0x2d0] ss:$8 sps:$4 sm:$0xff]  }
  0x83   :  { %2426 = vmatmul.mubr.bf16.vlgmr.msra.gmra.mrb[0].mxu0 %v3371_v18  ;;  %2205 = vmatpush1.bf16.msra.mxu1 %v3368_v17  ;;  %v3458_v17 = vld [vmem:[%s4753_s1 + $0x6d0] ss:$8 sps:$4 sm:$0xff]   ;;  %v3465_v18 = vld [vmem:[%s4753_s1 + $0x2e4] ss:$8 sps:$4 sm:$0xff]  }
  0x84   :  { %2457 = vmatpush1.bf16.msra.mxu0 %v3374_v19  ;;  %2206 = vmatprep.subr.bf16.mxu1 %v3379_v20  ;;  %v3470_v19 = vld [vmem:[%s4753_s1 + $0x6e4] ss:$8 sps:$4 sm:$0xff]   ;;  %v3463_v20 = vld [vmem:[%s4753_s1 + $0x2e0] ss:$8 sps:$4 sm:$0xff]  }
  0x85   :  { %2458 = vmatprep.subr.bf16.mxu0 %v3382_v21  ;;  %2183 = vmatprep.mubr.bf16.mxu1 %v3443_v22  ;;  %v3468_v21 = vld [vmem:[%s4753_s1 + $0x6e0] ss:$8 sps:$4 sm:$0xff]   ;;  %v3475_v22 = vld [vmem:[%s4753_s1 + $0x2f4] ss:$8 sps:$4 sm:$0xff]  }
  0x86   :  { %2435 = vmatprep.mubr.bf16.mxu0 %v3448_v23  ;;  %v3478_v23 = vld [vmem:[%s4753_s1 + $0x6f4] ss:$8 sps:$4 sm:$0xff]  }
  0x87   :  { %2207 = vmatpush1.bf16.msra.mxu1 %v3377_v24  ;;  %v3473_v24 = vld [vmem:[%s4753_s1 + $0x2f0] ss:$8 sps:$4 sm:$0xff]  }
  0x88   :  { %2459 = vmatpush1.bf16.msra.mxu0 %v3380_v25  ;;  %2208 = vmatprep.subr.bf16.mxu1 %v3385_v26  ;;  %v3476_v25 = vld [vmem:[%s4753_s1 + $0x6f0] ss:$8 sps:$4 sm:$0xff]   ;;  %v3484_v26 = vld [vmem:[%s4753_s1 + $0x304] ss:$8 sps:$4 sm:$0xff]  }
  0x89   :  { %2460 = vmatprep.subr.bf16.mxu0 %v3388_v27  ;;  %v3490_v27 = vld [vmem:[%s4753_s1 + $0x704] ss:$8 sps:$4 sm:$0xff]  }
  0x8a   :  { %2184 = vmatmul.mubr.bf16.gmra.mrb[4].mxu1 %v3453_v30  ;;  %v3485_v30 = vld [vmem:[%s4754_s0 + $0x30] ss:$72 sps:$4 sm:$0xff]  }
  0x8b   :  { %2436 = vmatmul.mubr.bf16.gmra.mrb[4].mxu0 %v3454_v31  ;;  %2209 = vmatpush1.bf16.msra.mxu1 %v3383_v28  ;;  %v3479_v28 = vld [vmem:[%s4754_s0 + $0x10] ss:$72 sps:$4 sm:$0xff]   ;;  %v3488_v31 = vld [vmem:[%s4753_s1 + $0x700] ss:$8 sps:$4 sm:$0xff]  }
  0x8c   :  { %2461 = vmatpush1.bf16.msra.mxu0 %v3386_v29  ;;  %2210 = vmatprep.subr.bf16.mxu1 %v3391_v32  ;;  %v3482_v29 = vld [vmem:[%s4753_s1 + $0x300] ss:$8 sps:$4 sm:$0xff]   ;;  %v3493_v32 = vld [vmem:[%s4753_s1 + $0x314] ss:$8 sps:$4 sm:$0xff]  }
  0x8d   :  { %2462 = vmatprep.subr.bf16.mxu0 %v3394_v33  ;;  %2193 = vmatprep.mubr.bf16.mxu1 %v3461_v34  ;;  %v3496_v33 = vld [vmem:[%s4753_s1 + $0x714] ss:$8 sps:$4 sm:$0xff]   ;;  %v3557_v34 = vld [vmem:[%s4754_s0 + $0xa4] ss:$72 sps:$4 sm:$0xff]  }
  0x8e   :  { %2445 = vmatprep.mubr.bf16.mxu0 %v3466_v35  ;;  %v3559_v35 = vld [vmem:[%s4754_s0 + $0xc4] ss:$72 sps:$4 sm:$0xff]  }
  0x8f   :  { %2211 = vmatpush1.bf16.msra.mxu1 %v3389_v36  ;;  %v3491_v36 = vld [vmem:[%s4753_s1 + $0x310] ss:$8 sps:$4 sm:$0xff]  }
  0x90   :  { %2463 = vmatpush1.bf16.msra.mxu0 %v3392_v37  ;;  %2212 = vmatprep.subr.bf16.mxu1 %v3397_v38  ;;  %v3494_v37 = vld [vmem:[%s4753_s1 + $0x710] ss:$8 sps:$4 sm:$0xff]   ;;  %v3499_v38 = vld [vmem:[%s4753_s1 + $0x324] ss:$8 sps:$4 sm:$0xff]  }
  0x91   :  { %2464 = vmatprep.subr.bf16.mxu0 %v3400_v39  ;;  %v3502_v39 = vld [vmem:[%s4753_s1 + $0x724] ss:$8 sps:$4 sm:$0xff]  }
  0x92   :  { %2194 = vmatmul.mubr.bf16.gmra.mrb[8].mxu1 %v3471_v42  ;;  %v3561_v42 = vld [vmem:[%s4754_s0 + $0xa0] ss:$72 sps:$4 sm:$0xff]  }
  0x93   :  { %2446 = vmatmul.mubr.bf16.gmra.mrb[8].mxu0 %v3472_v43  ;;  %2213 = vmatpush1.bf16.msra.mxu1 %v3395_v40  ;;  %v3497_v40 = vld [vmem:[%s4753_s1 + $0x320] ss:$8 sps:$4 sm:$0xff]  }
  0x94   :  { %2465 = vmatpush1.bf16.msra.mxu0 %v3398_v41  ;;  %2214 = vmatprep.subr.bf16.mxu1 %v3403_v44  ;;  %v3500_v41 = vld [vmem:[%s4753_s1 + $0x720] ss:$8 sps:$4 sm:$0xff]   ;;  %v3505_v44 = vld [vmem:[%s4753_s1 + $0x334] ss:$8 sps:$4 sm:$0xff]  }
  0x95   :  { %2466 = vmatprep.subr.bf16.mxu0 %v3406_v45  ;;  %2236 = vmatprep.mubr.bf16.mxu1 %v3481_v47  ;;  %v3565_v43 = vld [vmem:[%s4754_s0 + $0xc0] ss:$72 sps:$4 sm:$0xff]   ;;  %v3508_v45 = vld [vmem:[%s4753_s1 + $0x734] ss:$8 sps:$4 sm:$0xff]  }
  0x96   :  { %2488 = vmatprep.mubr.bf16.mxu0 %v3487_v49  ;;  %v3577_v47 = vld [vmem:[%s4754_s0 + $0x154] ss:$72 sps:$4 sm:$0xff]   ;;  %v3506_v49 = vld [vmem:[%s4753_s1 + $0x730] ss:$8 sps:$4 sm:$0xff]  }
  0x97   :  { %2215 = vmatpush1.bf16.msra.mxu1 %v3401_v46  ;;  %v3575_v46 = vld [vmem:[%s4754_s0 + $0x134] ss:$72 sps:$4 sm:$0xff]  }
  0x98   :  { %2467 = vmatpush1.bf16.msra.mxu0 %v3404_v48  ;;  %2216 = vmatprep.subr.bf16.mxu1 %v3409_v50  ;;  %v3503_v48 = vld [vmem:[%s4753_s1 + $0x330] ss:$8 sps:$4 sm:$0xff]   ;;  %v3511_v50 = vld [vmem:[%s4753_s1 + $0x344] ss:$8 sps:$4 sm:$0xff]  }
  0x99   :  { %2468 = vmatprep.subr.bf16.mxu0 %v3412_v51  ;;  %v3514_v51 = vld [vmem:[%s4753_s1 + $0x744] ss:$8 sps:$4 sm:$0xff]  }
  0x9b   :  { %2217 = vmatpush1.bf16.msra.mxu1 %v3407_v52  ;;  %v3509_v52 = vld [vmem:[%s4753_s1 + $0x340] ss:$8 sps:$4 sm:$0xff]  }
  0x9c   :  { %2469 = vmatpush1.bf16.msra.mxu0 %v3410_v53  ;;  %2218 = vmatprep.subr.bf16.mxu1 %v3415_v54  ;;  %v3512_v53 = vld [vmem:[%s4753_s1 + $0x740] ss:$8 sps:$4 sm:$0xff]   ;;  %v3579_v54 = vld [vmem:[%s4754_s0 + $0x130] ss:$72 sps:$4 sm:$0xff]  }
  0x9d   :  { %2470 = vmatprep.subr.bf16.mxu0 %v3418_v55  ;;  %v3583_v55 = vld [vmem:[%s4754_s0 + $0x150] ss:$72 sps:$4 sm:$0xff]  }
  0x9f   :  { %2219 = vmatpush1.bf16.msra.mxu1 %v3413_v56  ;;  %v3517_v56 = vld [vmem:[%s4753_s1 + $0x354] ss:$8 sps:$4 sm:$0xff]  }
  0xa0   :  { %2471 = vmatpush1.bf16.msra.mxu0 %v3416_v57  ;;  %2220 = vmatprep.subr.bf16.mxu1 %v3421_v58  ;;  %v3520_v57 = vld [vmem:[%s4753_s1 + $0x754] ss:$8 sps:$4 sm:$0xff]  }
  0xa1   :  { %2472 = vmatprep.subr.bf16.mxu0 %v3424_v59  ;;  %v3595_v58 = vld [vmem:[%s4754_s0 + $0x1c] ss:$72 sps:$4 sm:$0xff]  }
  0xa2   :  { %v3598_v59 = vld [vmem:[%s4754_s0 + $0x3c] ss:$72 sps:$4 sm:$0xff]  }
  0xa3   :  { %2221 = vmatpush1.bf16.msra.mxu1 %v3419_v60  ;;  %v3515_v60 = vld [vmem:[%s4753_s1 + $0x350] ss:$8 sps:$4 sm:$0xff]  }
  0xa4   :  { %2473 = vmatpush1.bf16.msra.mxu0 %v3422_v61  ;;  %2222 = vmatprep.subr.bf16.mxu1 %v3427_v62  ;;  %v3518_v61 = vld [vmem:[%s4753_s1 + $0x750] ss:$8 sps:$4 sm:$0xff]   ;;  %v3523_v62 = vld [vmem:[%s4753_s1 + $0x364] ss:$8 sps:$4 sm:$0xff]  }
  0xa5   :  { %2474 = vmatprep.subr.bf16.mxu0 %v3430_v63  ;;  %v3526_v63 = vld [vmem:[%s4753_s1 + $0x764] ss:$8 sps:$4 sm:$0xff]  }
  0xa7   :  { %2223 = vmatpush1.bf16.msra.mxu1 %v3425_v0  ;;  %v3521_v0 = vld [vmem:[%s4753_s1 + $0x360] ss:$8 sps:$4 sm:$0xff]  }
  0xa8   :  { %2475 = vmatpush1.bf16.msra.mxu0 %v3428_v1  ;;  %2224 = vmatprep.subr.bf16.mxu1 %v3433_v2  ;;  %v3524_v1 = vld [vmem:[%s4753_s1 + $0x760] ss:$8 sps:$4 sm:$0xff]   ;;  %v3529_v2 = vld [vmem:[%s4753_s1 + $0x374] ss:$8 sps:$4 sm:$0xff]  }
  0xa9   :  { %2476 = vmatprep.subr.bf16.mxu0 %v3436_v3  ;;  %v3532_v3 = vld [vmem:[%s4753_s1 + $0x774] ss:$8 sps:$4 sm:$0xff]  }
  0xab   :  { %2225 = vmatpush1.bf16.msra.mxu1 %v3431_v4  ;;  %v3527_v4 = vld [vmem:[%s4753_s1 + $0x370] ss:$8 sps:$4 sm:$0xff]  }
  0xac   :  { %2477 = vmatpush1.bf16.msra.mxu0 %v3434_v5  ;;  %2226 = vmatprep.subr.bf16.mxu1 %v3439_v6  ;;  %v3530_v5 = vld [vmem:[%s4753_s1 + $0x770] ss:$8 sps:$4 sm:$0xff]   ;;  %v3535_v6 = vld [vmem:[%s4753_s1 + $0x384] ss:$8 sps:$4 sm:$0xff]  }
  0xad   :  { %2478 = vmatprep.subr.bf16.mxu0 %v3442_v7  ;;  %v3538_v7 = vld [vmem:[%s4753_s1 + $0x784] ss:$8 sps:$4 sm:$0xff]  }
  0xaf   :  { %2227 = vmatpush1.bf16.msra.mxu1 %v3437_v8  ;;  %v3533_v8 = vld [vmem:[%s4753_s1 + $0x380] ss:$8 sps:$4 sm:$0xff]  }
  0xb0   :  { %2479 = vmatpush1.bf16.msra.mxu0 %v3440_v9  ;;  %2228 = vmatprep.subr.bf16.mxu1 %v3447_v10  ;;  %v3536_v9 = vld [vmem:[%s4753_s1 + $0x780] ss:$8 sps:$4 sm:$0xff]   ;;  %v3541_v10 = vld [vmem:[%s4753_s1 + $0x394] ss:$8 sps:$4 sm:$0xff]  }
  0xb1   :  { %2480 = vmatprep.subr.bf16.mxu0 %v3452_v11  ;;  %v3544_v11 = vld [vmem:[%s4753_s1 + $0x794] ss:$8 sps:$4 sm:$0xff]  }
  0xb3   :  { %2229 = vmatpush1.bf16.msra.mxu1 %v3445_v12  ;;  %v3539_v12 = vld [vmem:[%s4753_s1 + $0x390] ss:$8 sps:$4 sm:$0xff]  }
  0xb4   :  { %2481 = vmatpush1.bf16.msra.mxu0 %v3450_v13  ;;  %2230 = vmatprep.subr.bf16.mxu1 %v3457_v14  ;;  %v3542_v13 = vld [vmem:[%s4753_s1 + $0x790] ss:$8 sps:$4 sm:$0xff]   ;;  %v3547_v14 = vld [vmem:[%s4753_s1 + $0x3a4] ss:$8 sps:$4 sm:$0xff]  }
  0xb5   :  { %2482 = vmatprep.subr.bf16.mxu0 %v3460_v15  ;;  %v3550_v15 = vld [vmem:[%s4753_s1 + $0x7a4] ss:$8 sps:$4 sm:$0xff]  }
  0xb7   :  { %2231 = vmatpush1.bf16.msra.mxu1 %v3455_v16  ;;  %v3545_v16 = vld [vmem:[%s4753_s1 + $0x3a0] ss:$8 sps:$4 sm:$0xff]  }
  0xb8   :  { %2483 = vmatpush1.bf16.msra.mxu0 %v3458_v17  ;;  %2232 = vmatprep.subr.bf16.mxu1 %v3465_v18  ;;  %v3548_v17 = vld [vmem:[%s4753_s1 + $0x7a0] ss:$8 sps:$4 sm:$0xff]   ;;  %v3553_v18 = vld [vmem:[%s4753_s1 + $0x3b4] ss:$8 sps:$4 sm:$0xff]  }
  0xb9   :  { %2484 = vmatprep.subr.bf16.mxu0 %v3470_v19  ;;  %v3556_v19 = vld [vmem:[%s4753_s1 + $0x7b4] ss:$8 sps:$4 sm:$0xff]  }
  0xbb   :  { %2233 = vmatpush1.bf16.msra.mxu1 %v3463_v20  ;;  %v3551_v20 = vld [vmem:[%s4753_s1 + $0x3b0] ss:$8 sps:$4 sm:$0xff]  }
  0xbc   :  { %2485 = vmatpush1.bf16.msra.mxu0 %v3468_v21  ;;  %2234 = vmatprep.subr.bf16.mxu1 %v3475_v22  ;;  %v3554_v21 = vld [vmem:[%s4753_s1 + $0x7b0] ss:$8 sps:$4 sm:$0xff]   ;;  %v3564_v22 = vld [vmem:[%s4753_s1 + $0x3c4] ss:$8 sps:$4 sm:$0xff]  }
  0xbd   :  { %2486 = vmatprep.subr.bf16.mxu0 %v3478_v23  ;;  %v3568_v23 = vld [vmem:[%s4753_s1 + $0x7c4] ss:$8 sps:$4 sm:$0xff]  }
  0xbf   :  { %2235 = vmatpush1.bf16.msra.mxu1 %v3473_v24  ;;  %v3562_v24 = vld [vmem:[%s4753_s1 + $0x3c0] ss:$8 sps:$4 sm:$0xff]  }
  0xc0   :  { %2487 = vmatpush1.bf16.msra.mxu0 %v3476_v25  ;;  %2267 = vmatprep.subr.bf16.mxu1 %v3484_v26  ;;  %v3566_v25 = vld [vmem:[%s4753_s1 + $0x7c0] ss:$8 sps:$4 sm:$0xff]   ;;  %v3571_v26 = vld [vmem:[%s4753_s1 + $0x3d4] ss:$8 sps:$4 sm:$0xff]  }
  0xc1   :  { %2519 = vmatprep.subr.bf16.mxu0 %v3490_v27  ;;  %v3574_v27 = vld [vmem:[%s4753_s1 + $0x7d4] ss:$8 sps:$4 sm:$0xff]  }
  0xc2   :  { %2237 = vmatmul.mubr.bf16.vlgmr.msra.gmra.mrb[0].mxu1 %v3479_v28  ;;  %v3569_v28 = vld [vmem:[%s4753_s1 + $0x3d0] ss:$8 sps:$4 sm:$0xff]  }
  0xc3   :  { %2489 = vmatmul.mubr.bf16.vlgmr.msra.gmra.mrb[0].mxu0 %v3485_v30  ;;  %2268 = vmatpush1.bf16.msra.mxu1 %v3482_v29  ;;  %v3572_v29 = vld [vmem:[%s4753_s1 + $0x7d0] ss:$8 sps:$4 sm:$0xff]   ;;  %v3582_v30 = vld [vmem:[%s4753_s1 + $0x3e4] ss:$8 sps:$4 sm:$0xff]  }
  0xc4   :  { %2520 = vmatpush1.bf16.msra.mxu0 %v3488_v31  ;;  %2269 = vmatprep.subr.bf16.mxu1 %v3493_v32  ;;  %v3586_v31 = vld [vmem:[%s4753_s1 + $0x7e4] ss:$8 sps:$4 sm:$0xff]   ;;  %v3580_v32 = vld [vmem:[%s4753_s1 + $0x3e0] ss:$8 sps:$4 sm:$0xff]  }
  0xc5   :  { %2521 = vmatprep.subr.bf16.mxu0 %v3496_v33  ;;  %2246 = vmatprep.mubr.bf16.mxu1 %v3557_v34  ;;  %v3584_v33 = vld [vmem:[%s4753_s1 + $0x7e0] ss:$8 sps:$4 sm:$0xff]   ;;  %v3589_v34 = vld [vmem:[%s4753_s1 + $0x3f4] ss:$8 sps:$4 sm:$0xff]  }
  0xc6   :  { %2498 = vmatprep.mubr.bf16.mxu0 %v3559_v35  ;;  %v3592_v35 = vld [vmem:[%s4753_s1 + $0x7f4] ss:$8 sps:$4 sm:$0xff]  }
  0xc7   :  { %2270 = vmatpush1.bf16.msra.mxu1 %v3491_v36  ;;  %v3587_v36 = vld [vmem:[%s4753_s1 + $0x3f0] ss:$8 sps:$4 sm:$0xff]  }
  0xc8   :  { %2522 = vmatpush1.bf16.msra.mxu0 %v3494_v37  ;;  %2271 = vmatprep.subr.bf16.mxu1 %v3499_v38  ;;  %v3590_v37 = vld [vmem:[%s4753_s1 + $0x7f0] ss:$8 sps:$4 sm:$0xff]   ;;  %v3601_v38 = vld [vmem:[%s4753_s1 + $0x804] ss:$8 sps:$4 sm:$0xff]  }
  0xc9   :  { %2523 = vmatprep.subr.bf16.mxu0 %v3502_v39  ;;  %v3593_v39 = vld [vmem:[%s4754_s0 + $0x18] ss:$72 sps:$4 sm:$0xff]  }
  0xca   :  { %2247 = vmatmul.mubr.bf16.gmra.mrb[4].mxu1 %v3561_v42  ;;  %v3604_v42 = vld [vmem:[%s4753_s1 + $0x814] ss:$8 sps:$4 sm:$0xff]  }
  0xcb   :  { %2499 = vmatmul.mubr.bf16.gmra.mrb[4].mxu0 %v3565_v43  ;;  %2272 = vmatpush1.bf16.msra.mxu1 %v3497_v40  ;;  %v3596_v40 = vld [vmem:[%s4754_s0 + $0x38] ss:$72 sps:$4 sm:$0xff]   ;;  %v3605_v43 = vld [vmem:[%s4754_s0 + $0xac] ss:$72 sps:$4 sm:$0xff]  }
  0xcc   :  { %2524 = vmatpush1.bf16.msra.mxu0 %v3500_v41  ;;  %2273 = vmatprep.subr.bf16.mxu1 %v3505_v44  ;;  %v3599_v41 = vld [vmem:[%s4753_s1 + $0x800] ss:$8 sps:$4 sm:$0xff]   ;;  %v3607_v44 = vld [vmem:[%s4754_s0 + $0xcc] ss:$72 sps:$4 sm:$0xff]  }
  0xcd   :  { %2525 = vmatprep.subr.bf16.mxu0 %v3508_v45  ;;  %2256 = vmatprep.mubr.bf16.mxu1 %v3575_v46  ;;  %v3602_v45 = vld [vmem:[%s4753_s1 + $0x810] ss:$8 sps:$4 sm:$0xff]   ;;  %v3613_v46 = vld [vmem:[%s4753_s1 + $0x824] ss:$8 sps:$4 sm:$0xff]  }
  0xce   :  { %2508 = vmatprep.mubr.bf16.mxu0 %v3577_v47  ;;  %v3609_v47 = vld [vmem:[%s4754_s0 + $0xa8] ss:$72 sps:$4 sm:$0xff]  }
  0xcf   :  { %2274 = vmatpush1.bf16.msra.mxu1 %v3503_v48  ;;  %v3610_v48 = vld [vmem:[%s4754_s0 + $0xc8] ss:$72 sps:$4 sm:$0xff]  }
  0xd0   :  { %2526 = vmatpush1.bf16.msra.mxu0 %v3506_v49  ;;  %2275 = vmatprep.subr.bf16.mxu1 %v3511_v50  ;;  %v3611_v49 = vld [vmem:[%s4753_s1 + $0x820] ss:$8 sps:$4 sm:$0xff]   ;;  %v3616_v50 = vld [vmem:[%s4753_s1 + $0x834] ss:$8 sps:$4 sm:$0xff]  }
  0xd1   :  { %2527 = vmatprep.subr.bf16.mxu0 %v3514_v51  ;;  %v3617_v51 = vld [vmem:[%s4754_s0 + $0x13c] ss:$72 sps:$4 sm:$0xff]  }
  0xd2   :  { %2257 = vmatmul.mubr.bf16.gmra.mrb[8].mxu1 %v3579_v54  ;;  %v3625_v54 = vld [vmem:[%s4753_s1 + $0x844] ss:$8 sps:$4 sm:$0xff]  }
  0xd3   :  { %2509 = vmatmul.mubr.bf16.gmra.mrb[8].mxu0 %v3583_v55  ;;  %2276 = vmatpush1.bf16.msra.mxu1 %v3509_v52  ;;  %v3619_v52 = vld [vmem:[%s4754_s0 + $0x15c] ss:$72 sps:$4 sm:$0xff]   ;;  %v3621_v55 = vld [vmem:[%s4754_s0 + $0x138] ss:$72 sps:$4 sm:$0xff]  }
  0xd4   :  { %2528 = vmatpush1.bf16.msra.mxu0 %v3512_v53  ;;  %2277 = vmatprep.subr.bf16.mxu1 %v3517_v56  ;;  %v3614_v53 = vld [vmem:[%s4753_s1 + $0x830] ss:$8 sps:$4 sm:$0xff]  }
  0xd5   :  { %2529 = vmatprep.subr.bf16.mxu0 %v3520_v57  ;;  %2299 = vmatprep.mubr.bf16.mxu1 %v3595_v58  ;;  %v3622_v56 = vld [vmem:[%s4754_s0 + $0x158] ss:$72 sps:$4 sm:$0xff]   ;;  %v3628_v58 = vld [vmem:[%s4753_s1 + $0x854] ss:$8 sps:$4 sm:$0xff]  }
  0xd6   :  { %2551 = vmatprep.mubr.bf16.mxu0 %v3598_v59  ;;  %v3623_v57 = vld [vmem:[%s4753_s1 + $0x840] ss:$8 sps:$4 sm:$0xff]   ;;  %v3661_v59 = vld [vmem:[%s4754_s0 + $0x44] ss:$72 sps:$4 sm:$0xff]  }
  0xd7   :  { %2278 = vmatpush1.bf16.msra.mxu1 %v3515_v60  ;;  %v3664_v60 = vld [vmem:[%s4754_s0 + $0xd4] ss:$72 sps:$4 sm:$0xff]  }
  0xd8   :  { %2530 = vmatpush1.bf16.msra.mxu0 %v3518_v61  ;;  %2279 = vmatprep.subr.bf16.mxu1 %v3523_v62  ;;  %v3626_v61 = vld [vmem:[%s4753_s1 + $0x850] ss:$8 sps:$4 sm:$0xff]   ;;  %v3631_v62 = vld [vmem:[%s4753_s1 + $0x864] ss:$8 sps:$4 sm:$0xff]  }
  0xd9   :  { %2531 = vmatprep.subr.bf16.mxu0 %v3526_v63  ;;  %v3629_v63 = vld [vmem:[%s4753_s1 + $0x860] ss:$8 sps:$4 sm:$0xff]  }
  0xdb   :  { %2280 = vmatpush1.bf16.msra.mxu1 %v3521_v0  ;;  %v3634_v0 = vld [vmem:[%s4753_s1 + $0x874] ss:$8 sps:$4 sm:$0xff]  }
  0xdc   :  { %2532 = vmatpush1.bf16.msra.mxu0 %v3524_v1  ;;  %2281 = vmatprep.subr.bf16.mxu1 %v3529_v2  ;;  %v3632_v1 = vld [vmem:[%s4753_s1 + $0x870] ss:$8 sps:$4 sm:$0xff]   ;;  %v3637_v2 = vld [vmem:[%s4753_s1 + $0x884] ss:$8 sps:$4 sm:$0xff]  }
  0xdd   :  { %2533 = vmatprep.subr.bf16.mxu0 %v3532_v3  ;;  %v3635_v3 = vld [vmem:[%s4753_s1 + $0x880] ss:$8 sps:$4 sm:$0xff]  }
  0xdf   :  { %2282 = vmatpush1.bf16.msra.mxu1 %v3527_v4  ;;  %v3640_v4 = vld [vmem:[%s4753_s1 + $0x894] ss:$8 sps:$4 sm:$0xff]  }
  0xe0   :  { %2534 = vmatpush1.bf16.msra.mxu0 %v3530_v5  ;;  %2283 = vmatprep.subr.bf16.mxu1 %v3535_v6  ;;  %v3638_v5 = vld [vmem:[%s4753_s1 + $0x890] ss:$8 sps:$4 sm:$0xff]   ;;  %v3643_v6 = vld [vmem:[%s4753_s1 + $0x8a4] ss:$8 sps:$4 sm:$0xff]  }
  0xe1   :  { %2535 = vmatprep.subr.bf16.mxu0 %v3538_v7  ;;  %v3641_v7 = vld [vmem:[%s4753_s1 + $0x8a0] ss:$8 sps:$4 sm:$0xff]  }
  0xe3   :  { %2284 = vmatpush1.bf16.msra.mxu1 %v3533_v8  ;;  %v3646_v8 = vld [vmem:[%s4753_s1 + $0x8b4] ss:$8 sps:$4 sm:$0xff]  }
  0xe4   :  { %2536 = vmatpush1.bf16.msra.mxu0 %v3536_v9  ;;  %2285 = vmatprep.subr.bf16.mxu1 %v3541_v10  ;;  %v3644_v9 = vld [vmem:[%s4753_s1 + $0x8b0] ss:$8 sps:$4 sm:$0xff]   ;;  %v3649_v10 = vld [vmem:[%s4753_s1 + $0x8c4] ss:$8 sps:$4 sm:$0xff]  }
  0xe5   :  { %2537 = vmatprep.subr.bf16.mxu0 %v3544_v11  ;;  %v3647_v11 = vld [vmem:[%s4753_s1 + $0x8c0] ss:$8 sps:$4 sm:$0xff]  }
  0xe7   :  { %2286 = vmatpush1.bf16.msra.mxu1 %v3539_v12  ;;  %v3652_v12 = vld [vmem:[%s4753_s1 + $0x8d4] ss:$8 sps:$4 sm:$0xff]  }
  0xe8   :  { %2538 = vmatpush1.bf16.msra.mxu0 %v3542_v13  ;;  %2287 = vmatprep.subr.bf16.mxu1 %v3547_v14  ;;  %v3650_v13 = vld [vmem:[%s4753_s1 + $0x8d0] ss:$8 sps:$4 sm:$0xff]   ;;  %v3655_v14 = vld [vmem:[%s4753_s1 + $0x8e4] ss:$8 sps:$4 sm:$0xff]  }
  0xe9   :  { %2539 = vmatprep.subr.bf16.mxu0 %v3550_v15  ;;  %v3653_v15 = vld [vmem:[%s4753_s1 + $0x8e0] ss:$8 sps:$4 sm:$0xff]  }
  0xeb   :  { %2288 = vmatpush1.bf16.msra.mxu1 %v3545_v16  ;;  %v3658_v16 = vld [vmem:[%s4753_s1 + $0x8f4] ss:$8 sps:$4 sm:$0xff]  }
  0xec   :  { %2540 = vmatpush1.bf16.msra.mxu0 %v3548_v17  ;;  %2289 = vmatprep.subr.bf16.mxu1 %v3553_v18  ;;  %v3656_v17 = vld [vmem:[%s4753_s1 + $0x8f0] ss:$8 sps:$4 sm:$0xff]   ;;  %v3659_v18 = vld [vmem:[%s4754_s0 + $0x40] ss:$72 sps:$4 sm:$0xff]  }
  0xed   :  { %2541 = vmatprep.subr.bf16.mxu0 %v3556_v19  ;;  %v3662_v19 = vld [vmem:[%s4754_s0 + $0xd0] ss:$72 sps:$4 sm:$0xff]  }
  0xef   :  { %2290 = vmatpush1.bf16.msra.mxu1 %v3551_v20  ;;  %v3665_v20 = vld [vmem:[%s4754_s0 + $0x164] ss:$72 sps:$4 sm:$0xff]  }
  0xf0   :  { %2542 = vmatpush1.bf16.msra.mxu0 %v3554_v21  ;;  %2291 = vmatprep.subr.bf16.mxu1 %v3564_v22  ;;  %v3667_v21 = vld [vmem:[%s4754_s0 + $0x160] ss:$72 sps:$4 sm:$0xff]   ;;  %v358_v22 = vlaneseq }
  0xf1   :  { %2543 = vmatprep.subr.bf16.mxu0 %v3568_v23 }
  0xf2   :  { %v359_v23 = vshrl.u32 %v358_v22, 7 }
  0xf3   :  { %2292 = vmatpush1.bf16.msra.mxu1 %v3562_v24 }
  0xf4   :  { %2544 = vmatpush1.bf16.msra.mxu0 %v3566_v25  ;;  %2293 = vmatprep.subr.bf16.mxu1 %v3571_v26 }
  0xf5   :  { %2545 = vmatprep.subr.bf16.mxu0 %v3574_v27  ;;  %v360_v27 = vsub.s32 0, %v359_v23 }
  0xf7   :  { %2294 = vmatpush1.bf16.msra.mxu1 %v3569_v28 }
  0xf8   :  { %2546 = vmatpush1.bf16.msra.mxu0 %v3572_v29  ;;  %2295 = vmatprep.subr.bf16.mxu1 %v3582_v30  ;;  %v356_v29 = vld [vmem:[%s4755_s2] sm:$0x3]  ;;  %v364_v30 = vsub.s32 1, %v359_v23 }
  0xf9   :  { %2547 = vmatprep.subr.bf16.mxu0 %v3586_v31  ;;  %v361_v31 = vrot.slane %v356_v29, %v360_v27 }
  0xfb   :  { %2296 = vmatpush1.bf16.msra.mxu1 %v3580_v32  ;;  %v365_v32 = vrot.slane %v356_v29, %v364_v30 }
  0xfc   :  { %2548 = vmatpush1.bf16.msra.mxu0 %v3584_v33  ;;  %2297 = vmatprep.subr.bf16.mxu1 %v3589_v34 }
  0xfd   :  { %2549 = vmatprep.subr.bf16.mxu0 %v3592_v35 }
  0xff   :  { %2298 = vmatpush1.bf16.msra.mxu1 %v3587_v36 }
 0x100   :  { %2550 = vmatpush1.bf16.msra.mxu0 %v3590_v37  ;;  %3015 = vmatprep.subr.bf16.mxu1 %v3601_v38 }
 0x101   :  { %2582 = vmatprep.subr.bf16.mxu0 %v3601_v38 }
 0x102   :  { %2300 = vmatmul.mubr.bf16.vlgmr.msra.gmra.mrb[0].mxu1 %v3593_v39 }
 0x103   :  { %2552 = vmatmul.mubr.bf16.vlgmr.msra.gmra.mrb[0].mxu0 %v3596_v40  ;;  %3031 = vmatpush1.bf16.msra.mxu1 %v3599_v41 }
 0x104   :  { %2583 = vmatpush1.bf16.msra.mxu0 %v3599_v41  ;;  %3016 = vmatprep.subr.bf16.mxu1 %v3604_v42 }
 0x105   :  { %2584 = vmatprep.subr.bf16.mxu0 %v3604_v42  ;;  %2309 = vmatprep.mubr.bf16.mxu1 %v3605_v43 }
 0x106   :  { %2561 = vmatprep.mubr.bf16.mxu0 %v3607_v44 }
 0x107   :  { %3032 = vmatpush1.bf16.msra.mxu1 %v3602_v45 }
 0x108   :  { %2585 = vmatpush1.bf16.msra.mxu0 %v3602_v45  ;;  %3017 = vmatprep.subr.bf16.mxu1 %v3613_v46 }
 0x109   :  { %2586 = vmatprep.subr.bf16.mxu0 %v3613_v46 }
 0x10a   :  { %2310 = vmatmul.mubr.bf16.gmra.mrb[4].mxu1 %v3609_v47 }
 0x10b   :  { %2562 = vmatmul.mubr.bf16.gmra.mrb[4].mxu0 %v3610_v48  ;;  %3033 = vmatpush1.bf16.msra.mxu1 %v3611_v49 }
 0x10c   :  { %2587 = vmatpush1.bf16.msra.mxu0 %v3611_v49  ;;  %3018 = vmatprep.subr.bf16.mxu1 %v3616_v50 }
 0x10d   :  { %2588 = vmatprep.subr.bf16.mxu0 %v3616_v50  ;;  %2319 = vmatprep.mubr.bf16.mxu1 %v3617_v51 }
 0x10e   :  { %2571 = vmatprep.mubr.bf16.mxu0 %v3619_v52 }
 0x10f   :  { %3034 = vmatpush1.bf16.msra.mxu1 %v3614_v53 }
 0x110   :  { %2589 = vmatpush1.bf16.msra.mxu0 %v3614_v53  ;;  %3019 = vmatprep.subr.bf16.mxu1 %v3625_v54 }
 0x111   :  { %2590 = vmatprep.subr.bf16.mxu0 %v3625_v54 }
 0x112   :  { %2320 = vmatmul.mubr.bf16.gmra.mrb[8].mxu1 %v3621_v55 }
 0x113   :  { %2572 = vmatmul.mubr.bf16.gmra.mrb[8].mxu0 %v3622_v56  ;;  %3035 = vmatpush1.bf16.msra.mxu1 %v3623_v57 }
 0x114   :  { %2591 = vmatpush1.bf16.msra.mxu0 %v3623_v57  ;;  %3020 = vmatprep.subr.bf16.mxu1 %v3628_v58 }
 0x115   :  { %2592 = vmatprep.subr.bf16.mxu0 %v3628_v58  ;;  %2614 = vmatprep.mubr.bf16.mxu0 %v3661_v59 }
 0x116   :  { %2624 = vmatprep.mubr.bf16.mxu1 %v3664_v60 }
 0x117   :  { %3036 = vmatpush1.bf16.msra.mxu1 %v3626_v61 }
 0x118   :  { %2593 = vmatpush1.bf16.msra.mxu0 %v3626_v61  ;;  %3021 = vmatprep.subr.bf16.mxu1 %v3631_v62 }
 0x119   :  { %2594 = vmatprep.subr.bf16.mxu0 %v3631_v62 }
 0x11b   :  { %3037 = vmatpush1.bf16.msra.mxu1 %v3629_v63 }
 0x11c   :  { %2595 = vmatpush1.bf16.msra.mxu0 %v3629_v63  ;;  %3022 = vmatprep.subr.bf16.mxu1 %v3634_v0 }
 0x11d   :  { %2596 = vmatprep.subr.bf16.mxu0 %v3634_v0 }
 0x11f   :  { %3038 = vmatpush1.bf16.msra.mxu1 %v3632_v1 }
 0x120   :  { %2597 = vmatpush1.bf16.msra.mxu0 %v3632_v1  ;;  %3023 = vmatprep.subr.bf16.mxu1 %v3637_v2 }
 0x121   :  { %2598 = vmatprep.subr.bf16.mxu0 %v3637_v2 }
 0x123   :  { %3039 = vmatpush1.bf16.msra.mxu1 %v3635_v3 }
 0x124   :  { %2599 = vmatpush1.bf16.msra.mxu0 %v3635_v3  ;;  %3024 = vmatprep.subr.bf16.mxu1 %v3640_v4 }
 0x125   :  { %2600 = vmatprep.subr.bf16.mxu0 %v3640_v4 }
 0x127   :  { %3040 = vmatpush1.bf16.msra.mxu1 %v3638_v5 }
 0x128   :  { %2601 = vmatpush1.bf16.msra.mxu0 %v3638_v5  ;;  %3025 = vmatprep.subr.bf16.mxu1 %v3643_v6 }
 0x129   :  { %2602 = vmatprep.subr.bf16.mxu0 %v3643_v6 }
 0x12b   :  { %3041 = vmatpush1.bf16.msra.mxu1 %v3641_v7 }
 0x12c   :  { %2603 = vmatpush1.bf16.msra.mxu0 %v3641_v7  ;;  %3026 = vmatprep.subr.bf16.mxu1 %v3646_v8 }
 0x12d   :  { %2604 = vmatprep.subr.bf16.mxu0 %v3646_v8 }
 0x12f   :  { %3042 = vmatpush1.bf16.msra.mxu1 %v3644_v9 }
 0x130   :  { %2605 = vmatpush1.bf16.msra.mxu0 %v3644_v9  ;;  %3027 = vmatprep.subr.bf16.mxu1 %v3649_v10 }
 0x131   :  { %2606 = vmatprep.subr.bf16.mxu0 %v3649_v10 }
 0x133   :  { %3043 = vmatpush1.bf16.msra.mxu1 %v3647_v11 }
 0x134   :  { %2607 = vmatpush1.bf16.msra.mxu0 %v3647_v11  ;;  %3028 = vmatprep.subr.bf16.mxu1 %v3652_v12 }
 0x135   :  { %2608 = vmatprep.subr.bf16.mxu0 %v3652_v12 }
 0x137   :  { %3044 = vmatpush1.bf16.msra.mxu1 %v3650_v13 }
 0x138   :  { %2609 = vmatpush1.bf16.msra.mxu0 %v3650_v13  ;;  %3029 = vmatprep.subr.bf16.mxu1 %v3655_v14 }
 0x139   :  { %2610 = vmatprep.subr.bf16.mxu0 %v3655_v14 }
 0x13b   :  { %3045 = vmatpush1.bf16.msra.mxu1 %v3653_v15 }
 0x13c   :  { %2611 = vmatpush1.bf16.msra.mxu0 %v3653_v15  ;;  %3030 = vmatprep.subr.bf16.mxu1 %v3658_v16 }
 0x13d   :  { %2612 = vmatprep.subr.bf16.mxu0 %v3658_v16 }
 0x13f   :  { %3046 = vmatpush1.bf16.msra.mxu1 %v3656_v17 }
 0x140   :  { %2613 = vmatpush1.bf16.msra.mxu0 %v3656_v17 }
 0x142   :  { %2625 = vmatmul.mubr.bf16.vlgmr.msra.gmra.mrb[12].mxu1 %v3662_v19 }
 0x143   :  { %2615 = vmatmul.mubr.bf16.vlgmr.msra.gmra.mrb[0].mxu0 %v3659_v18  ;;  %2634 = vmatprep.mubr.bf16.mxu1 %v3665_v20 }
 0x14a   :  { %2635 = vmatmul.mubr.bf16.gmra.mrb[16].mxu1 %v3667_v21 }
 0x1d5   :  { %v2301_v24 = vpop.f32.mrb[0].mxu1 }
 0x1d6   :  { %v2303_v25 = vpop.f32.mrb[1].mxu1  ;;  %v3047_v1 = vadd.f32 %v2301_v24, %v361_v31 }
 0x1d7   :  { %v2305_v26 = vpop.f32.mrb[2].mxu1  ;;  %v3049_v2 = vadd.f32 %v2303_v25, %v365_v32 }
 0x1d8   :  { %v2307_v28 = vpop.f32.mrb[3].mxu1  ;;  %v3051_v5 = vadd.f32 %v2305_v26, %v361_v31 }
 0x1d9   :  { %v3053_v10 = vadd.f32 %v2307_v28, %v365_v32 }
 0x1dd   :  { %v2311_v33 = vpop.f32.mrb[4].mxu1 }
 0x1de   :  { %v2563_v34 = vpop.f32.mrb[4].mxu0  ;;  %v3055_v35 = vadd.f32 %v2311_v33, %v361_v31  ;;  %v2313_v36 = vpop.f32.mrb[5].mxu1 }
 0x1df   :  { %v2565_v37 = vpop.f32.mrb[5].mxu0  ;;  %v3058_v38 = vadd.f32 %v2313_v36, %v365_v32  ;;  %v2315_v39 = vpop.f32.mrb[6].mxu1 }
 0x1e0   :  { %v2567_v40 = vpop.f32.mrb[6].mxu0  ;;  %v3056_v41 = vadd.f32 %v3055_v35, %v2563_v34  ;;  %v3061_v42 = vadd.f32 %v2315_v39, %v361_v31  ;;  %v2317_v43 = vpop.f32.mrb[7].mxu1 }
 0x1e1   :  { %v2569_v44 = vpop.f32.mrb[7].mxu0  ;;  %v3059_v45 = vadd.f32 %v3058_v38, %v2565_v37  ;;  %v3064_v46 = vadd.f32 %v2317_v43, %v365_v32 }
 0x1e2   :  { %v3062_v47 = vadd.f32 %v3061_v42, %v2567_v40 }
 0x1e3   :  { %v3065_v48 = vadd.f32 %v3064_v46, %v2569_v44 }
 0x1e5   :  { %v2321_v49 = vpop.f32.mrb[8].mxu1 }
 0x1e6   :  { %v2573_v50 = vpop.f32.mrb[8].mxu0  ;;  %v3067_v51 = vadd.f32 %v2321_v49, %v361_v31  ;;  %v2323_v52 = vpop.f32.mrb[9].mxu1 }
 0x1e7   :  { %v2575_v53 = vpop.f32.mrb[9].mxu0  ;;  %v3070_v54 = vadd.f32 %v2323_v52, %v365_v32  ;;  %v2325_v55 = vpop.f32.mrb[10].mxu1 }
 0x1e8   :  { %v2577_v56 = vpop.f32.mrb[10].mxu0  ;;  %v3068_v57 = vadd.f32 %v3067_v51, %v2573_v50  ;;  %v3073_v58 = vadd.f32 %v2325_v55, %v361_v31  ;;  %v2327_v59 = vpop.f32.mrb[11].mxu1 }
 0x1e9   :  { %v2579_v60 = vpop.f32.mrb[11].mxu0  ;;  %v3071_v61 = vadd.f32 %v3070_v54, %v2575_v53  ;;  %v3076_v62 = vadd.f32 %v2327_v59, %v365_v32 }
 0x1ea   :  { %v3074_v63 = vadd.f32 %v3073_v58, %v2577_v56 }
 0x1eb   :  { %v3077_v0 = vadd.f32 %v3076_v62, %v2579_v60 }
 0x215   :  { %v2626_v4 = vpop.f32.mrb[12].mxu1 }
 0x216   :  { %v2616_v3 = vpop.f32.mrb[0].mxu0  ;;  %v3057_v7 = vadd.f32 %v3056_v41, %v2626_v4  ;;  %v2628_v9 = vpop.f32.mrb[13].mxu1 }
 0x217   :  { %v3048_v6 = vadd.f32 %v3047_v1, %v2616_v3  ;;  %v2618_v8 = vpop.f32.mrb[1].mxu0  ;;  %v3060_v12 = vadd.f32 %v3059_v45, %v2628_v9  ;;  %v2630_v14 = vpop.f32.mrb[14].mxu1 }
 0x218   :  { %v3050_v11 = vadd.f32 %v3049_v2, %v2618_v8  ;;  %v2620_v13 = vpop.f32.mrb[2].mxu0  ;;  %v2649_v16 = vmax.f32 %v3057_v7, 0.0  ;;  %v3063_v18 = vadd.f32 %v3062_v47, %v2630_v14  ;;  %v2632_v20 = vpop.f32.mrb[15].mxu1 }
 0x219   :  { %v2645_v15 = vmax.f32 %v3048_v6, 0.0  ;;  %v3052_v17 = vadd.f32 %v3051_v5, %v2620_v13  ;;  %v2622_v19 = vpop.f32.mrb[3].mxu0  ;;  %v2650_v22 = vmax.f32 %v3060_v12, 0.0  ;;  %v3066_v24 = vadd.f32 %v3065_v48, %v2632_v20 }
 0x21a   :  { %v2646_v21 = vmax.f32 %v3050_v11, 0.0  ;;  %v3054_v23 = vadd.f32 %v3053_v10, %v2622_v19  ;;  %2661 = vst [vmem:[%s4756_s3 + $0x20] sm:$0xff] %v2649_v16  ;;  %v2651_v26 = vmax.f32 %v3063_v18, 0.0 }
 0x21b   :  { %2657 = vst [vmem:[%s4756_s3] sm:$0xff] %v2645_v15  ;;  %v2647_v25 = vmax.f32 %v3052_v17, 0.0  ;;  %2662 = vst [vmem:[%s4756_s3 + $0x28] sm:$0xff] %v2650_v22  ;;  %v2652_v28 = vmax.f32 %v3066_v24, 0.0 }
 0x21c   :  { %2658 = vst [vmem:[%s4756_s3 + $0x8] sm:$0xff] %v2646_v21  ;;  %v2648_v27 = vmax.f32 %v3054_v23, 0.0  ;;  %2663 = vst [vmem:[%s4756_s3 + $0x30] sm:$0xff] %v2651_v26 }
 0x21d   :  { %2659 = vst [vmem:[%s4756_s3 + $0x10] sm:$0xff] %v2647_v25  ;;  %2664 = vst [vmem:[%s4756_s3 + $0x38] sm:$0xff] %v2652_v28  ;;  %v2636_v29 = vpop.f32.mrb[16].mxu1 }
 0x21e   :  { %2660 = vst [vmem:[%s4756_s3 + $0x18] sm:$0xff] %v2648_v27  ;;  %v3069_v30 = vadd.f32 %v3068_v57, %v2636_v29  ;;  %v2638_v31 = vpop.f32.mrb[17].mxu1 }
 0x21f   :  { %v3072_v32 = vadd.f32 %v3071_v61, %v2638_v31  ;;  %v2640_v33 = vpop.f32.mrb[18].mxu1 }
 0x220   :  { %v2653_v34 = vmax.f32 %v3069_v30, 0.0  ;;  %v3075_v35 = vadd.f32 %v3074_v63, %v2640_v33  ;;  %v2642_v36 = vpop.f32.mrb[19].mxu1 }
 0x221   :  { %v2654_v37 = vmax.f32 %v3072_v32, 0.0  ;;  %v3078_v38 = vadd.f32 %v3077_v0, %v2642_v36 }
 0x222   :  { %2665 = vst [vmem:[%s4756_s3 + $0x40] sm:$0xff] %v2653_v34  ;;  %v2655_v39 = vmax.f32 %v3075_v35, 0.0 }
 0x223   :  { %2666 = vst [vmem:[%s4756_s3 + $0x48] sm:$0xff] %v2654_v37  ;;  %v2656_v40 = vmax.f32 %v3078_v38, 0.0 }
 0x224   :  { %2667 = vst [vmem:[%s4756_s3 + $0x50] sm:$0xff] %v2655_v39 }
 0x225   :  { %2668 = vst [vmem:[%s4756_s3 + $0x58] sm:$0xff] %v2656_v40 }

</bundles_post_ra>
